<compile_context>
chip_gen: v7x
topology: tpu7x:2x2x1
jax: 0.10.0
libtpu: 0.0.40
codegen_flags: <defaults>
</compile_context>

<pallas_src>
import functools

import jax
import jax.numpy as jnp
import numpy as np
from jax.experimental import pallas as pl
from jax.experimental.pallas import tpu as pltpu


# ------------------------------ fused Pallas kernel ------------------------------

def _fused_kernel(xpar_ref, xmono_ref,
                  w1e_ref, s1e_ref, t1e_ref,
                  w2e_ref, s2e_ref, t2e_ref,
                  w1r_ref, s1r_ref, t1r_ref,
                  w2r_ref, s2r_ref, t2r_ref,
                  wqkv_ref, bqkv_ref, eye_ref,
                  out_ref, pad2e_ref, pad2r_ref,
                  *, H, W, cv, mid, kq):
    f32 = jnp.float32
    bf16 = jnp.bfloat16
    H2, W2 = H // 2, W // 2
    H4, W4 = H2 // 2, W2 // 2
    n0, n1, n2 = H * W, H2 * W2, H4 * W4
    c_e1 = 2 * cv              # [mono | cost] input channels of the expand convs
    c_e2 = 2 * mid             # [mono_f1 | multi_f1] channels after expand conv1
    taps = [(dy, dx) for dy in range(3) for dx in range(3)]

    def conv(cols, w_ref, s_ref, t_ref):
        # cols: 9 bf16 (n, Cin) tap windows -> one K = 9*Cin MXU matmul (f32 acc),
        # folded-BN scale/shift + ReLU epilogue in f32.
        x = jnp.concatenate(cols, axis=-1)
        acc = jnp.dot(x, w_ref[...], preferred_element_type=f32)
        return jnp.maximum(acc * s_ref[...] + t_ref[...], 0.0)

    # ---- expand conv1 (stride 2): parity-split padded input -> contiguous windows,
    #      evaluated only at the H2 x W2 stride-2 output pixels.
    cols = []
    for dy, dx in taps:
        par = (dy % 2) * 2 + (dx % 2)
        qy, qx = dy // 2, dx // 2
        cols.append(xpar_ref[par, qy:qy + H2, qx:qx + W2, :].reshape(n1, c_e1))
    act1e = conv(cols, w1e_ref, s1e_ref, t1e_ref)                      # (n1, 2*mid) f32

    # ---- padded scratch for expand conv2 (bf16): zero the 1-px halo only, write interior once.
    pad2e_ref[0:1, :, :] = jnp.zeros((1, W2 + 2, c_e2), bf16)
    pad2e_ref[H2 + 1:H2 + 2, :, :] = jnp.zeros((1, W2 + 2, c_e2), bf16)
    pad2e_ref[:, 0:1, :] = jnp.zeros((H2 + 2, 1, c_e2), bf16)
    pad2e_ref[:, W2 + 1:W2 + 2, :] = jnp.zeros((H2 + 2, 1, c_e2), bf16)
    pad2e_ref[1:1 + H2, 1:1 + W2, :] = act1e.astype(bf16).reshape(H2, W2, c_e2)

    # ---- expand conv2 (stride 2): evaluated on the (tiny) H2 x W2 map, then the stride-2
    #      output pixels are selected with reshape + static index (no gather matmul).
    cols = [pad2e_ref[dy:dy + H2, dx:dx + W2, :].reshape(n1, c_e2) for dy, dx in taps]
    act2e = conv(cols, w2e_ref, s2e_ref, t2e_ref)                      # (n1, 2*mid) f32
    tmp = act2e.reshape(H2 * W4, 2, c_e2)[:, 0, :]                     # keep even x
    feat2 = tmp.reshape(H4, 2, W4, c_e2)[:, 0, :, :].reshape(n2, c_e2)  # keep even y

    # ---- fused q/k/v 1x1 projections (gamma pre-folded into the v columns / bias).
    qkv = jnp.dot(feat2.astype(bf16), wqkv_ref[...],
                  preferred_element_type=f32) + bqkv_ref[...]          # (n2, 2*kq+mid)
    q = qkv[:, 0:kq].astype(bf16)
    k = qkv[:, kq:2 * kq].astype(bf16)
    v = qkv[:, 2 * kq:2 * kq + mid].astype(bf16)

    # ---- attention over this batch's H4*W4 pixels (per-batch grid -> no mask needed).
    s = jax.lax.dot_general(q, k, (((1,), (1,)), ((), ())),
                            preferred_element_type=f32)                # (n2, n2) f32
    e = jnp.exp(s - jnp.max(s, axis=-1, keepdims=True))
    a = e * pl.reciprocal(jnp.sum(e, axis=-1, keepdims=True), approx=True)
    attn = jnp.dot(a.astype(bf16), v, preferred_element_type=f32)      # (n2, mid) f32

    # ---- nearest 4x upsample via broadcast (src = dst // 4 on both axes).
    u = jnp.broadcast_to(attn.reshape(n2, 1, mid),
                         (n2, W // W4, mid)).reshape(H4, W, mid)
    up = jnp.broadcast_to(u.reshape(H4, 1, W, mid),
                          (H4, H // H4, W, mid)).reshape(n0, mid)      # (n0, mid) f32

    # ---- mono_reg conv1 (3x3, stride 1, full resolution).
    cols = [xmono_ref[dy:dy + H, dx:dx + W, :].reshape(n0, cv) for dy, dx in taps]
    res1 = conv(cols, w1r_ref, s1r_ref, t1r_ref)                       # (n0, mid) f32

    pad2r_ref[0:1, :, :] = jnp.zeros((1, W + 2, mid), bf16)
    pad2r_ref[H + 1:H + 2, :, :] = jnp.zeros((1, W + 2, mid), bf16)
    pad2r_ref[:, 0:1, :] = jnp.zeros((H + 2, 1, mid), bf16)
    pad2r_ref[:, W + 1:W + 2, :] = jnp.zeros((H + 2, 1, mid), bf16)
    pad2r_ref[1:1 + H, 1:1 + W, :] = res1.astype(bf16).reshape(H, W, mid)

    # ---- mono_reg conv2 (3x3, stride 1).
    cols = [pad2r_ref[dy:dy + H, dx:dx + W, :].reshape(n0, mid) for dy, dx in taps]
    res2 = conv(cols, w2r_ref, s2r_ref, t2r_ref)                       # (n0, mid) f32

    final = res2 + up                                                  # (n0, mid) f32

    # ---- lane-dense NCHW store: out[c, p] = final[p, c] via a tiny (mid x mid) identity
    #      contraction (exact in f32, avoids relying on an XLU value transpose).
    out_ref[...] = jax.lax.dot_general(eye_ref[...], final,
                                       (((1,), (1,)), ((), ())),
                                       preferred_element_type=f32)


# ------------------------------ weight preparation ------------------------------

def _prep_params(params, cv, mid, kq):
    """Fold BN (inference stats) and gamma, and build tap-major (9*Cin, Cout) conv weights
    (bf16) matching the kernel's in-VMEM im2col layout."""
    f32 = jnp.float32
    bf16 = jnp.bfloat16

    def bn_fold(p):
        _, b, g, bb, m, v = p
        s = g / jnp.sqrt(v + 1e-5)
        return s.astype(f32), ((b - m) * s + bb).astype(f32)

    def tap(w, dy, dx):                        # torch (Cout, Cin, 3, 3) -> (Cin, Cout)
        return w[:, :, dy, dx].T

    def taps_single(w):                        # -> (9*Cin, Cout), tap-major
        return jnp.concatenate(
            [tap(w, dy, dx) for dy in range(3) for dx in range(3)], axis=0)

    def taps_pair(wa, wb):                     # block-diagonal fusion of two branches
        za = jnp.zeros((wa.shape[1], wb.shape[0]), f32)
        zb = jnp.zeros((wb.shape[1], wa.shape[0]), f32)
        blocks = []
        for dy in range(3):
            for dx in range(3):
                top = jnp.concatenate([tap(wa, dy, dx), za], 1)
                bot = jnp.concatenate([zb, tap(wb, dy, dx)], 1)
                blocks.append(jnp.concatenate([top, bot], 0))
        return jnp.concatenate(blocks, 0)      # (9*(CinA+CinB), CoutA+CoutB)

    me1, me2 = params["mono_expand"]
    xe1, xe2 = params["multi_expand"]
    rg1, rg2 = params["mono_reg"]

    w1e = taps_pair(me1[0], xe1[0]).astype(bf16)      # (9*2cv,  2mid)
    w2e = taps_pair(me2[0], xe2[0]).astype(bf16)      # (9*2mid, 2mid)   (cv == mid)
    w1r = taps_single(rg1[0]).astype(bf16)            # (9*cv,   mid)
    w2r = taps_single(rg2[0]).astype(bf16)            # (9*mid,  mid)

    s_me1, t_me1 = bn_fold(me1)
    s_xe1, t_xe1 = bn_fold(xe1)
    s_me2, t_me2 = bn_fold(me2)
    s_xe2, t_xe2 = bn_fold(xe2)
    s_rg1, t_rg1 = bn_fold(rg1)
    s_rg2, t_rg2 = bn_fold(rg2)
    s1e = jnp.concatenate([s_me1, s_xe1]).reshape(1, -1)
    t1e = jnp.concatenate([t_me1, t_xe1]).reshape(1, -1)
    s2e = jnp.concatenate([s_me2, s_xe2]).reshape(1, -1)
    t2e = jnp.concatenate([t_me2, t_xe2]).reshape(1, -1)
    s1r = s_rg1.reshape(1, -1)
    t1r = t_rg1.reshape(1, -1)
    s2r = s_rg2.reshape(1, -1)
    t2r = t_rg2.reshape(1, -1)

    qw, qb = params["lin_multi_q"]
    kw, kb = params["lin_multi_k"]
    vw, vb = params["lin_mono_v"]
    gamma = params["gamma"][0].astype(f32)
    p1 = lambda w: w[:, :, 0, 0].T                     # (Cin, Cout)
    z = lambda r, c: jnp.zeros((r, c), f32)
    # rows = [mono_f2 | multi_f2], cols = [q | k | gamma*v]  (gamma folded -> exact)
    wqkv = jnp.concatenate([
        jnp.concatenate([z(mid, kq), z(mid, kq), gamma * p1(vw)], 1),
        jnp.concatenate([p1(qw), p1(kw), z(mid, mid)], 1),
    ], 0).astype(bf16)
    bqkv = jnp.concatenate([qb, kb, gamma * vb]).reshape(1, -1).astype(f32)
    eye = jnp.eye(mid, dtype=f32)

    return (w1e, s1e, t1e, w2e, s2e, t2e, w1r, s1r, t1r,
            w2r, s2r, t2r, wqkv, bqkv, eye)


# ------------------------------ forward wrapper ------------------------------

def multi_guide_mono_forward(params, mono_pseudo_cost, cost_volume, mid_dim):
    B, CV, H, W = cost_volume.shape
    KQ = mid_dim // 4 if mid_dim > 128 else mid_dim
    assert H % 4 == 0 and W % 4 == 0
    # The torch module feeds mid_dim-channel features into convs declared with cv_hypo_num
    # input channels, so (like the module itself) this requires cv_hypo_num == mid_dim.
    assert CV == mid_dim
    f32, bf16 = jnp.float32, jnp.bfloat16

    mono_nhwc = jnp.transpose(mono_pseudo_cost, (0, 2, 3, 1))
    cost_nhwc = jnp.transpose(cost_volume, (0, 2, 3, 1))
    # Zero-padded [mono | cost] concat, split into the 4 (row, col) parities of the padded
    # grid so the stride-2 convs only need contiguous windows inside the kernel.
    xpad = jnp.pad(jnp.concatenate([mono_nhwc, cost_nhwc], axis=-1),
                   ((0, 0), (1, 1), (1, 1), (0, 0)))
    Hp, Wp = (H + 2) // 2, (W + 2) // 2
    xpar = (xpad.reshape(B, Hp, 2, Wp, 2, 2 * CV)
                .transpose(0, 2, 4, 1, 3, 5)
                .reshape(B, 4, Hp, Wp, 2 * CV)
                .astype(bf16))
    xmono = jnp.pad(mono_nhwc, ((0, 0), (1, 1), (1, 1), (0, 0))).astype(bf16)

    args = _prep_params(params, CV, mid_dim, KQ)

    def bcast_spec(shape):                      # same (whole-array) block for every batch
        nd = len(shape)
        return pl.BlockSpec(shape, lambda b: (0,) * nd)

    in_specs = [
        pl.BlockSpec((None, 4, Hp, Wp, 2 * CV), lambda b: (b, 0, 0, 0, 0)),
        pl.BlockSpec((None, H + 2, W + 2, CV), lambda b: (b, 0, 0, 0)),
    ] + [bcast_spec(a.shape) for a in args]

    kern = functools.partial(_fused_kernel, H=H, W=W, cv=CV, mid=mid_dim, kq=KQ)
    out = pl.pallas_call(
        kern,
        out_shape=jax.ShapeDtypeStruct((B, mid_dim, H * W), f32),
        grid=(B,),
        in_specs=in_specs,
        out_specs=pl.BlockSpec((None, mid_dim, H * W), lambda b: (b, 0, 0)),
        scratch_shapes=[
            pltpu.VMEM((H // 2 + 2, W // 2 + 2, 2 * mid_dim), bf16),   # expand conv2 pad
            pltpu.VMEM((H + 2, W + 2, mid_dim), bf16),                 # mono_reg conv2 pad
        ],
        compiler_params=pltpu.CompilerParams(dimension_semantics=("parallel",)),
    )(xpar, xmono, *args)
    return out.reshape(B, mid_dim, H, W)


# ---------------------- pure-JAX reference (sanity check) ----------------------

def im2col(x, ksize, stride, pad):
    B, C, H, W = x.shape
    xp = jnp.pad(x, ((0, 0), (0, 0), (pad, pad), (pad, pad)))
    Ho = (H + 2 * pad - ksize) // stride + 1
    Wo = (W + 2 * pad - ksize) // stride + 1
    cols = []
    for dy in range(ksize):
        for dx in range(ksize):
            cols.append(
                xp[:, :, dy:dy + stride * (Ho - 1) + 1:stride,
                         dx:dx + stride * (Wo - 1) + 1:stride])
    cols = jnp.stack(cols, axis=2)
    cols = cols.reshape(B, C * ksize * ksize, Ho, Wo)
    cols = cols.transpose(0, 2, 3, 1).reshape(B * Ho * Wo, C * ksize * ksize)
    return cols, Ho, Wo


def ref_forward(params, mono, cost, mid_dim):
    def cbr(x, p, stride):
        w, b, g, bb, m, v = p
        cols, Ho, Wo = im2col(x, 3, stride, 1)
        wm = w.reshape(w.shape[0], -1).T
        s = g / jnp.sqrt(v + 1e-5)
        y = jnp.maximum(cols @ wm * s[None] + ((b - m) * s + bb)[None], 0.0)
        return y.reshape(x.shape[0], Ho, Wo, -1).transpose(0, 3, 1, 2)

    def c11(x, w, b):
        B, C, H, W = x.shape
        cols = x.transpose(0, 2, 3, 1).reshape(B * H * W, C)
        y = cols @ w.reshape(w.shape[0], C).T + b[None]
        return y.reshape(B, H * W, -1)

    ib, ic, ih, iw = cost.shape
    mf = cbr(cbr(mono, params["mono_expand"][0], 2), params["mono_expand"][1], 2)
    xf = cbr(cbr(cost, params["multi_expand"][0], 2), params["multi_expand"][1], 2)
    b, c, h, w = xf.shape
    q = c11(xf, *params["lin_multi_q"])
    k = c11(xf, *params["lin_multi_k"]).transpose(0, 2, 1)
    v = c11(mf, *params["lin_mono_v"]).transpose(0, 2, 1)
    s = jnp.einsum("bqc,bck->bqk", q, k)
    a = jax.nn.softmax(s, axis=-1)
    mo = jnp.einsum("bck,bqk->bcq", v, a).reshape(b, mid_dim, h, w)
    ri = (jnp.arange(ih) * h) // ih
    ci = (jnp.arange(iw) * w) // iw
    up = mo[:, :, ri, :][:, :, :, ci]
    res = cbr(cbr(mono, params["mono_reg"][0], 1), params["mono_reg"][1], 1)
    return res + params["gamma"][0] * up


# ------------------------------ param init ------------------------------

def init_cbr(key, cin, cout):
    k1, k2, k3, k4, k5, k6 = jax.random.split(key, 6)
    w = 0.05 * jax.random.normal(k1, (cout, cin, 3, 3), jnp.float32)
    b = 0.05 * jax.random.normal(k2, (cout,), jnp.float32)
    g = 1.0 + 0.1 * jax.random.normal(k3, (cout,), jnp.float32)
    bb = 0.1 * jax.random.normal(k4, (cout,), jnp.float32)
    m = 0.1 * jax.random.normal(k5, (cout,), jnp.float32)
    v = 1.0 + 0.1 * jax.random.uniform(k6, (cout,), jnp.float32)
    return (w, b, g, bb, m, v)


def init_1x1(key, cin, cout):
    k1, k2 = jax.random.split(key)
    w = 0.05 * jax.random.normal(k1, (cout, cin, 1, 1), jnp.float32)
    b = 0.05 * jax.random.normal(k2, (cout,), jnp.float32)
    return (w, b)


if __name__ == "__main__":
    # module config: cv_hypo_num=32, mid_dim=32, input_size=(16, 16) -> is_reduce=False
    CV, MID = 32, 32
    KQ = MID  # mid_dim <= 128
    B, H, W = 2, 16, 16

    key = jax.random.PRNGKey(0)
    ks = jax.random.split(key, 16)

    params = {
        "mono_expand": [init_cbr(ks[0], CV, MID), init_cbr(ks[1], CV, MID)],
        "multi_expand": [init_cbr(ks[2], CV, MID), init_cbr(ks[3], CV, MID)],
        "lin_mono_v": init_1x1(ks[4], MID, MID),
        "lin_multi_k": init_1x1(ks[5], MID, KQ),
        "lin_multi_q": init_1x1(ks[6], MID, KQ),
        "mono_reg": [init_cbr(ks[7], CV, MID), init_cbr(ks[8], CV, MID)],
        # nn.Parameter(torch.zeros(1)) -- set nonzero so the attention branch contributes.
        "gamma": jnp.array([0.7], jnp.float32),
    }

    mono_pseudo_cost = jax.random.normal(ks[9], (B, CV, H, W), jnp.float32)
    cost_volume = jax.random.normal(ks[10], (B, CV, H, W), jnp.float32)

    out = multi_guide_mono_forward(params, mono_pseudo_cost, cost_volume, MID)
    out = jax.block_until_ready(out)

    ref = jax.block_until_ready(ref_forward(params, mono_pseudo_cost, cost_volume, MID))

    assert out.shape == (B, MID, H, W), out.shape
    np.testing.assert_allclose(np.asarray(out), np.asarray(ref), rtol=3e-2, atol=3e-2)

    print("KERNEL_OK")
</pallas_src>

<mosaic_0001>
module attributes {stable_mosaic.version = 11 : i64} {
  func.func @_fused_kernel(%arg0: i32, %arg1: memref<1x4x9x9x64xbf16, #tpu.memory_space<vmem>>, %arg2: memref<1x18x18x32xbf16, #tpu.memory_space<vmem>>, %arg3: memref<576x64xbf16, #tpu.memory_space<vmem>>, %arg4: memref<1x64xf32, #tpu.memory_space<vmem>>, %arg5: memref<1x64xf32, #tpu.memory_space<vmem>>, %arg6: memref<576x64xbf16, #tpu.memory_space<vmem>>, %arg7: memref<1x64xf32, #tpu.memory_space<vmem>>, %arg8: memref<1x64xf32, #tpu.memory_space<vmem>>, %arg9: memref<288x32xbf16, #tpu.memory_space<vmem>>, %arg10: memref<1x32xf32, #tpu.memory_space<vmem>>, %arg11: memref<1x32xf32, #tpu.memory_space<vmem>>, %arg12: memref<288x32xbf16, #tpu.memory_space<vmem>>, %arg13: memref<1x32xf32, #tpu.memory_space<vmem>>, %arg14: memref<1x32xf32, #tpu.memory_space<vmem>>, %arg15: memref<64x96xbf16, #tpu.memory_space<vmem>>, %arg16: memref<1x96xf32, #tpu.memory_space<vmem>>, %arg17: memref<32x32xf32, #tpu.memory_space<vmem>>, %arg18: memref<1x32x256xf32, #tpu.memory_space<vmem>>, %arg19: memref<10x10x64xbf16, #tpu.memory_space<vmem>>, %arg20: memref<18x18x32xbf16, #tpu.memory_space<vmem>>) attributes {dimension_semantics = [#tpu.dimension_semantics<parallel>], iteration_bounds = array<i64: 2>, scalar_prefetch = 0 : i64, scratch_operands = 2 : i64, tpu.core_type = #tpu.core_type<tc>, window_params = [{transform_indices = @transform_0, window_bounds = array<i64: 1, 4, 9, 9, 64>}, {transform_indices = @transform_1, window_bounds = array<i64: 1, 18, 18, 32>}, {pipeline_mode = #tpu.pipeline_mode<synchronous>, transform_indices = @transform_2, window_bounds = array<i64: 576, 64>}, {pipeline_mode = #tpu.pipeline_mode<synchronous>, transform_indices = @transform_3, window_bounds = array<i64: 1, 64>}, {pipeline_mode = #tpu.pipeline_mode<synchronous>, transform_indices = @transform_4, window_bounds = array<i64: 1, 64>}, {pipeline_mode = #tpu.pipeline_mode<synchronous>, transform_indices = @transform_5, window_bounds = array<i64: 576, 64>}, {pipeline_mode = #tpu.pipeline_mode<synchronous>, transform_indices = @transform_6, window_bounds = array<i64: 1, 64>}, {pipeline_mode = #tpu.pipeline_mode<synchronous>, transform_indices = @transform_7, window_bounds = array<i64: 1, 64>}, {pipeline_mode = #tpu.pipeline_mode<synchronous>, transform_indices = @transform_8, window_bounds = array<i64: 288, 32>}, {pipeline_mode = #tpu.pipeline_mode<synchronous>, transform_indices = @transform_9, window_bounds = array<i64: 1, 32>}, {pipeline_mode = #tpu.pipeline_mode<synchronous>, transform_indices = @transform_10, window_bounds = array<i64: 1, 32>}, {pipeline_mode = #tpu.pipeline_mode<synchronous>, transform_indices = @transform_11, window_bounds = array<i64: 288, 32>}, {pipeline_mode = #tpu.pipeline_mode<synchronous>, transform_indices = @transform_12, window_bounds = array<i64: 1, 32>}, {pipeline_mode = #tpu.pipeline_mode<synchronous>, transform_indices = @transform_13, window_bounds = array<i64: 1, 32>}, {pipeline_mode = #tpu.pipeline_mode<synchronous>, transform_indices = @transform_14, window_bounds = array<i64: 64, 96>}, {pipeline_mode = #tpu.pipeline_mode<synchronous>, transform_indices = @transform_15, window_bounds = array<i64: 1, 96>}, {pipeline_mode = #tpu.pipeline_mode<synchronous>, transform_indices = @transform_16, window_bounds = array<i64: 32, 32>}, {transform_indices = @transform_17, window_bounds = array<i64: 1, 32, 256>}]} {
    %c0 = arith.constant 0 : index
    %c0_0 = arith.constant 0 : index
    %c0_1 = arith.constant 0 : index
    %c0_2 = arith.constant 0 : index
    %c0_3 = arith.constant 0 : index
    %0 = vector.load %arg1[%c0, %c0_0, %c0_1, %c0_2, %c0_3] : memref<1x4x9x9x64xbf16, #tpu.memory_space<vmem>>, vector<1x1x8x8x64xbf16>
    %1 = vector.shape_cast %0 : vector<1x1x8x8x64xbf16> to vector<8x8x64xbf16>
    %2 = vector.shape_cast %1 : vector<8x8x64xbf16> to vector<64x64xbf16>
    %c0_4 = arith.constant 0 : index
    %c1 = arith.constant 1 : index
    %c0_5 = arith.constant 0 : index
    %c0_6 = arith.constant 0 : index
    %c0_7 = arith.constant 0 : index
    %3 = vector.load %arg1[%c0_4, %c1, %c0_5, %c0_6, %c0_7] : memref<1x4x9x9x64xbf16, #tpu.memory_space<vmem>>, vector<1x1x8x8x64xbf16>
    %4 = vector.shape_cast %3 : vector<1x1x8x8x64xbf16> to vector<8x8x64xbf16>
    %5 = vector.shape_cast %4 : vector<8x8x64xbf16> to vector<64x64xbf16>
    %c0_8 = arith.constant 0 : index
    %c0_9 = arith.constant 0 : index
    %c0_10 = arith.constant 0 : index
    %c1_11 = arith.constant 1 : index
    %c0_12 = arith.constant 0 : index
    %6 = vector.load %arg1[%c0_8, %c0_9, %c0_10, %c1_11, %c0_12] : memref<1x4x9x9x64xbf16, #tpu.memory_space<vmem>>, vector<1x1x8x8x64xbf16>
    %7 = vector.shape_cast %6 : vector<1x1x8x8x64xbf16> to vector<8x8x64xbf16>
    %8 = vector.shape_cast %7 : vector<8x8x64xbf16> to vector<64x64xbf16>
    %c0_13 = arith.constant 0 : index
    %c2 = arith.constant 2 : index
    %c0_14 = arith.constant 0 : index
    %c0_15 = arith.constant 0 : index
    %c0_16 = arith.constant 0 : index
    %9 = vector.load %arg1[%c0_13, %c2, %c0_14, %c0_15, %c0_16] : memref<1x4x9x9x64xbf16, #tpu.memory_space<vmem>>, vector<1x1x8x8x64xbf16>
    %10 = vector.shape_cast %9 : vector<1x1x8x8x64xbf16> to vector<8x8x64xbf16>
    %11 = vector.shape_cast %10 : vector<8x8x64xbf16> to vector<64x64xbf16>
    %c0_17 = arith.constant 0 : index
    %c3 = arith.constant 3 : index
    %c0_18 = arith.constant 0 : index
    %c0_19 = arith.constant 0 : index
    %c0_20 = arith.constant 0 : index
    %12 = vector.load %arg1[%c0_17, %c3, %c0_18, %c0_19, %c0_20] : memref<1x4x9x9x64xbf16, #tpu.memory_space<vmem>>, vector<1x1x8x8x64xbf16>
    %13 = vector.shape_cast %12 : vector<1x1x8x8x64xbf16> to vector<8x8x64xbf16>
    %14 = vector.shape_cast %13 : vector<8x8x64xbf16> to vector<64x64xbf16>
    %c0_21 = arith.constant 0 : index
    %c2_22 = arith.constant 2 : index
    %c0_23 = arith.constant 0 : index
    %c1_24 = arith.constant 1 : index
    %c0_25 = arith.constant 0 : index
    %15 = vector.load %arg1[%c0_21, %c2_22, %c0_23, %c1_24, %c0_25] : memref<1x4x9x9x64xbf16, #tpu.memory_space<vmem>>, vector<1x1x8x8x64xbf16>
    %16 = vector.shape_cast %15 : vector<1x1x8x8x64xbf16> to vector<8x8x64xbf16>
    %17 = vector.shape_cast %16 : vector<8x8x64xbf16> to vector<64x64xbf16>
    %c0_26 = arith.constant 0 : index
    %c0_27 = arith.constant 0 : index
    %c1_28 = arith.constant 1 : index
    %c0_29 = arith.constant 0 : index
    %c0_30 = arith.constant 0 : index
    %18 = vector.load %arg1[%c0_26, %c0_27, %c1_28, %c0_29, %c0_30] : memref<1x4x9x9x64xbf16, #tpu.memory_space<vmem>>, vector<1x1x8x8x64xbf16>
    %19 = vector.shape_cast %18 : vector<1x1x8x8x64xbf16> to vector<8x8x64xbf16>
    %20 = vector.shape_cast %19 : vector<8x8x64xbf16> to vector<64x64xbf16>
    %c0_31 = arith.constant 0 : index
    %c1_32 = arith.constant 1 : index
    %c1_33 = arith.constant 1 : index
    %c0_34 = arith.constant 0 : index
    %c0_35 = arith.constant 0 : index
    %21 = vector.load %arg1[%c0_31, %c1_32, %c1_33, %c0_34, %c0_35] : memref<1x4x9x9x64xbf16, #tpu.memory_space<vmem>>, vector<1x1x8x8x64xbf16>
    %22 = vector.shape_cast %21 : vector<1x1x8x8x64xbf16> to vector<8x8x64xbf16>
    %23 = vector.shape_cast %22 : vector<8x8x64xbf16> to vector<64x64xbf16>
    %c0_36 = arith.constant 0 : index
    %c0_37 = arith.constant 0 : index
    %c1_38 = arith.constant 1 : index
    %c1_39 = arith.constant 1 : index
    %c0_40 = arith.constant 0 : index
    %24 = vector.load %arg1[%c0_36, %c0_37, %c1_38, %c1_39, %c0_40] : memref<1x4x9x9x64xbf16, #tpu.memory_space<vmem>>, vector<1x1x8x8x64xbf16>
    %25 = vector.shape_cast %24 : vector<1x1x8x8x64xbf16> to vector<8x8x64xbf16>
    %26 = vector.shape_cast %25 : vector<8x8x64xbf16> to vector<64x64xbf16>
    %27 = tpu.concatenate %2, %5, %8, %11, %14, %17, %20, %23, %26 in 1 : vector<64x64xbf16>, vector<64x64xbf16>, vector<64x64xbf16>, vector<64x64xbf16>, vector<64x64xbf16>, vector<64x64xbf16>, vector<64x64xbf16>, vector<64x64xbf16>, vector<64x64xbf16> -> vector<64x576xbf16>
    %c0_41 = arith.constant 0 : index
    %c0_42 = arith.constant 0 : index
    %28 = vector.load %arg3[%c0_41, %c0_42] : memref<576x64xbf16, #tpu.memory_space<vmem>>, vector<576x64xbf16>
    %cst = arith.constant dense<0.000000e+00> : vector<64x64xf32>
    %29 = tpu.matmul %27, %28, %cst {dimension_numbers = #tpu.dot_dimension_numbers<[1], [0], [0], [1], [0, 0, 1, 1], [], []>} : vector<64x576xbf16>, vector<576x64xbf16>, vector<64x64xf32> -> vector<64x64xf32>
    %c0_43 = arith.constant 0 : index
    %c0_44 = arith.constant 0 : index
    %30 = vector.load %arg4[%c0_43, %c0_44] : memref<1x64xf32, #tpu.memory_space<vmem>>, vector<1x64xf32>
    %31 = vector.broadcast %30 : vector<1x64xf32> to vector<64x64xf32>
    %32 = arith.mulf %29, %31 : vector<64x64xf32>
    %c0_45 = arith.constant 0 : index
    %c0_46 = arith.constant 0 : index
    %33 = vector.load %arg5[%c0_45, %c0_46] : memref<1x64xf32, #tpu.memory_space<vmem>>, vector<1x64xf32>
    %34 = vector.broadcast %33 : vector<1x64xf32> to vector<64x64xf32>
    %35 = arith.addf %32, %34 : vector<64x64xf32>
    %cst_47 = arith.constant 0.000000e+00 : f32
    %36 = vector.broadcast %cst_47 : f32 to vector<64x64xf32>
    %37 = arith.maximumf %35, %36 : vector<64x64xf32>
    %cst_48 = arith.constant 0.000000e+00 : bf16
    %38 = vector.broadcast %cst_48 : bf16 to vector<1x10x64xbf16>
    %c0_49 = arith.constant 0 : index
    %c0_50 = arith.constant 0 : index
    %c0_51 = arith.constant 0 : index
    %39 = vector.load %arg19[%c0_49, %c0_50, %c0_51] : memref<10x10x64xbf16, #tpu.memory_space<vmem>>, vector<1x10x64xbf16>
    tpu.vector_store %arg19[%c0_49, %c0_50, %c0_51], %38 {strides = array<i32>} : memref<10x10x64xbf16, #tpu.memory_space<vmem>>, vector<1x10x64xbf16>,
    %cst_52 = arith.constant 0.000000e+00 : bf16
    %40 = vector.broadcast %cst_52 : bf16 to vector<1x10x64xbf16>
    %c9 = arith.constant 9 : index
    %c0_53 = arith.constant 0 : index
    %c0_54 = arith.constant 0 : index
    %41 = vector.load %arg19[%c9, %c0_53, %c0_54] : memref<10x10x64xbf16, #tpu.memory_space<vmem>>, vector<1x10x64xbf16>
    tpu.vector_store %arg19[%c9, %c0_53, %c0_54], %40 {strides = array<i32>} : memref<10x10x64xbf16, #tpu.memory_space<vmem>>, vector<1x10x64xbf16>,
    %cst_55 = arith.constant 0.000000e+00 : bf16
    %42 = vector.broadcast %cst_55 : bf16 to vector<10x1x64xbf16>
    %c0_56 = arith.constant 0 : index
    %c0_57 = arith.constant 0 : index
    %c0_58 = arith.constant 0 : index
    %43 = vector.load %arg19[%c0_56, %c0_57, %c0_58] : memref<10x10x64xbf16, #tpu.memory_space<vmem>>, vector<10x1x64xbf16>
    tpu.vector_store %arg19[%c0_56, %c0_57, %c0_58], %42 {strides = array<i32>} : memref<10x10x64xbf16, #tpu.memory_space<vmem>>, vector<10x1x64xbf16>,
    %cst_59 = arith.constant 0.000000e+00 : bf16
    %44 = vector.broadcast %cst_59 : bf16 to vector<10x1x64xbf16>
    %c0_60 = arith.constant 0 : index
    %c9_61 = arith.constant 9 : index
    %c0_62 = arith.constant 0 : index
    %45 = vector.load %arg19[%c0_60, %c9_61, %c0_62] : memref<10x10x64xbf16, #tpu.memory_space<vmem>>, vector<10x1x64xbf16>
    tpu.vector_store %arg19[%c0_60, %c9_61, %c0_62], %44 {strides = array<i32>} : memref<10x10x64xbf16, #tpu.memory_space<vmem>>, vector<10x1x64xbf16>,
    %46 = arith.truncf %37 : vector<64x64xf32> to vector<64x64xbf16>
    %47 = vector.shape_cast %46 : vector<64x64xbf16> to vector<8x8x64xbf16>
    %c1_63 = arith.constant 1 : index
    %c1_64 = arith.constant 1 : index
    %c0_65 = arith.constant 0 : index
    %48 = vector.load %arg19[%c1_63, %c1_64, %c0_65] : memref<10x10x64xbf16, #tpu.memory_space<vmem>>, vector<8x8x64xbf16>
    tpu.vector_store %arg19[%c1_63, %c1_64, %c0_65], %47 {strides = array<i32>} : memref<10x10x64xbf16, #tpu.memory_space<vmem>>, vector<8x8x64xbf16>,
    %c0_66 = arith.constant 0 : index
    %c0_67 = arith.constant 0 : index
    %c0_68 = arith.constant 0 : index
    %49 = vector.load %arg19[%c0_66, %c0_67, %c0_68] : memref<10x10x64xbf16, #tpu.memory_space<vmem>>, vector<8x8x64xbf16>
    %50 = vector.shape_cast %49 : vector<8x8x64xbf16> to vector<64x64xbf16>
    %c0_69 = arith.constant 0 : index
    %c1_70 = arith.constant 1 : index
    %c0_71 = arith.constant 0 : index
    %51 = vector.load %arg19[%c0_69, %c1_70, %c0_71] : memref<10x10x64xbf16, #tpu.memory_space<vmem>>, vector<8x8x64xbf16>
    %52 = vector.shape_cast %51 : vector<8x8x64xbf16> to vector<64x64xbf16>
    %c0_72 = arith.constant 0 : index
    %c2_73 = arith.constant 2 : index
    %c0_74 = arith.constant 0 : index
    %53 = vector.load %arg19[%c0_72, %c2_73, %c0_74] : memref<10x10x64xbf16, #tpu.memory_space<vmem>>, vector<8x8x64xbf16>
    %54 = vector.shape_cast %53 : vector<8x8x64xbf16> to vector<64x64xbf16>
    %c1_75 = arith.constant 1 : index
    %c0_76 = arith.constant 0 : index
    %c0_77 = arith.constant 0 : index
    %55 = vector.load %arg19[%c1_75, %c0_76, %c0_77] : memref<10x10x64xbf16, #tpu.memory_space<vmem>>, vector<8x8x64xbf16>
    %56 = vector.shape_cast %55 : vector<8x8x64xbf16> to vector<64x64xbf16>
    %c1_78 = arith.constant 1 : index
    %c1_79 = arith.constant 1 : index
    %c0_80 = arith.constant 0 : index
    %57 = vector.load %arg19[%c1_78, %c1_79, %c0_80] : memref<10x10x64xbf16, #tpu.memory_space<vmem>>, vector<8x8x64xbf16>
    %58 = vector.shape_cast %57 : vector<8x8x64xbf16> to vector<64x64xbf16>
    %c1_81 = arith.constant 1 : index
    %c2_82 = arith.constant 2 : index
    %c0_83 = arith.constant 0 : index
    %59 = vector.load %arg19[%c1_81, %c2_82, %c0_83] : memref<10x10x64xbf16, #tpu.memory_space<vmem>>, vector<8x8x64xbf16>
    %60 = vector.shape_cast %59 : vector<8x8x64xbf16> to vector<64x64xbf16>
    %c2_84 = arith.constant 2 : index
    %c0_85 = arith.constant 0 : index
    %c0_86 = arith.constant 0 : index
    %61 = vector.load %arg19[%c2_84, %c0_85, %c0_86] : memref<10x10x64xbf16, #tpu.memory_space<vmem>>, vector<8x8x64xbf16>
    %62 = vector.shape_cast %61 : vector<8x8x64xbf16> to vector<64x64xbf16>
    %c2_87 = arith.constant 2 : index
    %c1_88 = arith.constant 1 : index
    %c0_89 = arith.constant 0 : index
    %63 = vector.load %arg19[%c2_87, %c1_88, %c0_89] : memref<10x10x64xbf16, #tpu.memory_space<vmem>>, vector<8x8x64xbf16>
    %64 = vector.shape_cast %63 : vector<8x8x64xbf16> to vector<64x64xbf16>
    %c2_90 = arith.constant 2 : index
    %c2_91 = arith.constant 2 : index
    %c0_92 = arith.constant 0 : index
    %65 = vector.load %arg19[%c2_90, %c2_91, %c0_92] : memref<10x10x64xbf16, #tpu.memory_space<vmem>>, vector<8x8x64xbf16>
    %66 = vector.shape_cast %65 : vector<8x8x64xbf16> to vector<64x64xbf16>
    %67 = tpu.concatenate %50, %52, %54, %56, %58, %60, %62, %64, %66 in 1 : vector<64x64xbf16>, vector<64x64xbf16>, vector<64x64xbf16>, vector<64x64xbf16>, vector<64x64xbf16>, vector<64x64xbf16>, vector<64x64xbf16>, vector<64x64xbf16>, vector<64x64xbf16> -> vector<64x576xbf16>
    %c0_93 = arith.constant 0 : index
    %c0_94 = arith.constant 0 : index
    %68 = vector.load %arg6[%c0_93, %c0_94] : memref<576x64xbf16, #tpu.memory_space<vmem>>, vector<576x64xbf16>
    %cst_95 = arith.constant dense<0.000000e+00> : vector<64x64xf32>
    %69 = tpu.matmul %67, %68, %cst_95 {dimension_numbers = #tpu.dot_dimension_numbers<[1], [0], [0], [1], [0, 0, 1, 1], [], []>} : vector<64x576xbf16>, vector<576x64xbf16>, vector<64x64xf32> -> vector<64x64xf32>
    %c0_96 = arith.constant 0 : index
    %c0_97 = arith.constant 0 : index
    %70 = vector.load %arg7[%c0_96, %c0_97] : memref<1x64xf32, #tpu.memory_space<vmem>>, vector<1x64xf32>
    %71 = vector.broadcast %70 : vector<1x64xf32> to vector<64x64xf32>
    %72 = arith.mulf %69, %71 : vector<64x64xf32>
    %c0_98 = arith.constant 0 : index
    %c0_99 = arith.constant 0 : index
    %73 = vector.load %arg8[%c0_98, %c0_99] : memref<1x64xf32, #tpu.memory_space<vmem>>, vector<1x64xf32>
    %74 = vector.broadcast %73 : vector<1x64xf32> to vector<64x64xf32>
    %75 = arith.addf %72, %74 : vector<64x64xf32>
    %cst_100 = arith.constant 0.000000e+00 : f32
    %76 = vector.broadcast %cst_100 : f32 to vector<64x64xf32>
    %77 = arith.maximumf %75, %76 : vector<64x64xf32>
    %78 = vector.shape_cast %77 : vector<64x64xf32> to vector<32x2x64xf32>
    %79 = vector.extract_strided_slice %78 {offsets = [0, 0, 0], sizes = [32, 1, 64], strides = [1, 1, 1]} : vector<32x2x64xf32> to vector<32x1x64xf32>
    %80 = vector.shape_cast %79 : vector<32x1x64xf32> to vector<32x64xf32>
    %81 = vector.shape_cast %80 : vector<32x64xf32> to vector<4x2x4x64xf32>
    %82 = vector.extract_strided_slice %81 {offsets = [0, 0, 0, 0], sizes = [4, 1, 4, 64], strides = [1, 1, 1, 1]} : vector<4x2x4x64xf32> to vector<4x1x4x64xf32>
    %83 = vector.shape_cast %82 : vector<4x1x4x64xf32> to vector<4x4x64xf32>
    %84 = vector.shape_cast %83 : vector<4x4x64xf32> to vector<16x64xf32>
    %85 = arith.truncf %84 : vector<16x64xf32> to vector<16x64xbf16>
    %c0_101 = arith.constant 0 : index
    %c0_102 = arith.constant 0 : index
    %86 = vector.load %arg15[%c0_101, %c0_102] : memref<64x96xbf16, #tpu.memory_space<vmem>>, vector<64x96xbf16>
    %cst_103 = arith.constant dense<0.000000e+00> : vector<16x96xf32>
    %87 = tpu.matmul %85, %86, %cst_103 {dimension_numbers = #tpu.dot_dimension_numbers<[1], [0], [0], [1], [0, 0, 1, 1], [], []>} : vector<16x64xbf16>, vector<64x96xbf16>, vector<16x96xf32> -> vector<16x96xf32>
    %c0_104 = arith.constant 0 : index
    %c0_105 = arith.constant 0 : index
    %88 = vector.load %arg16[%c0_104, %c0_105] : memref<1x96xf32, #tpu.memory_space<vmem>>, vector<1x96xf32>
    %89 = vector.broadcast %88 : vector<1x96xf32> to vector<16x96xf32>
    %90 = arith.addf %87, %89 : vector<16x96xf32>
    %91 = vector.extract_strided_slice %90 {offsets = [0, 0], sizes = [16, 32], strides = [1, 1]} : vector<16x96xf32> to vector<16x32xf32>
    %92 = arith.truncf %91 : vector<16x32xf32> to vector<16x32xbf16>
    %93 = vector.extract_strided_slice %90 {offsets = [0, 32], sizes = [16, 32], strides = [1, 1]} : vector<16x96xf32> to vector<16x32xf32>
    %94 = arith.truncf %93 : vector<16x32xf32> to vector<16x32xbf16>
    %95 = vector.extract_strided_slice %90 {offsets = [0, 64], sizes = [16, 32], strides = [1, 1]} : vector<16x96xf32> to vector<16x32xf32>
    %96 = arith.truncf %95 : vector<16x32xf32> to vector<16x32xbf16>
    %cst_106 = arith.constant dense<0.000000e+00> : vector<16x16xf32>
    %97 = tpu.matmul %92, %94, %cst_106 {dimension_numbers = #tpu.dot_dimension_numbers<[1], [1], [0], [0], [0, 0, 1, 0], [], []>} : vector<16x32xbf16>, vector<16x32xbf16>, vector<16x16xf32> -> vector<16x16xf32>
    %cst_107 = arith.constant dense<0xFF800000> : vector<16xf32>
    %98 = vector.multi_reduction <maximumf>, %97, %cst_107 [1] : vector<16x16xf32> to vector<16xf32>
    %99 = vector.shape_cast %98 : vector<16xf32> to vector<16x1xf32>
    %100 = vector.broadcast %99 : vector<16x1xf32> to vector<16x16xf32>
    %101 = arith.subf %97, %100 : vector<16x16xf32>
    %102 = math.exp %101 : vector<16x16xf32>
    %cst_108 = arith.constant dense<0.000000e+00> : vector<16xf32>
    %103 = vector.multi_reduction <add>, %102, %cst_108 [1] : vector<16x16xf32> to vector<16xf32>
    %104 = vector.shape_cast %103 : vector<16xf32> to vector<16x1xf32>
    %105 = tpu.reciprocal %104 {approx = true} : vector<16x1xf32> -> vector<16x1xf32>
    %106 = vector.broadcast %105 : vector<16x1xf32> to vector<16x16xf32>
    %107 = arith.mulf %102, %106 : vector<16x16xf32>
    %108 = arith.truncf %107 : vector<16x16xf32> to vector<16x16xbf16>
    %cst_109 = arith.constant dense<0.000000e+00> : vector<16x32xf32>
    %109 = tpu.matmul %108, %96, %cst_109 {dimension_numbers = #tpu.dot_dimension_numbers<[1], [0], [0], [1], [0, 0, 1, 1], [], []>} : vector<16x16xbf16>, vector<16x32xbf16>, vector<16x32xf32> -> vector<16x32xf32>
    %110 = vector.shape_cast %109 : vector<16x32xf32> to vector<16x1x32xf32>
    %111 = vector.shape_cast %110 : vector<16x1x32xf32> to vector<16x1x32xf32>
    %112 = vector.broadcast %111 : vector<16x1x32xf32> to vector<16x4x32xf32>
    %113 = vector.shape_cast %112 : vector<16x4x32xf32> to vector<4x16x32xf32>
    %114 = vector.shape_cast %113 : vector<4x16x32xf32> to vector<4x1x16x32xf32>
    %115 = vector.shape_cast %114 : vector<4x1x16x32xf32> to vector<4x1x16x32xf32>
    %116 = vector.broadcast %115 : vector<4x1x16x32xf32> to vector<4x4x16x32xf32>
    %117 = vector.shape_cast %116 : vector<4x4x16x32xf32> to vector<256x32xf32>
    %c0_110 = arith.constant 0 : index
    %c0_111 = arith.constant 0 : index
    %c0_112 = arith.constant 0 : index
    %c0_113 = arith.constant 0 : index
    %118 = vector.load %arg2[%c0_110, %c0_111, %c0_112, %c0_113] : memref<1x18x18x32xbf16, #tpu.memory_space<vmem>>, vector<1x16x16x32xbf16>
    %119 = vector.shape_cast %118 : vector<1x16x16x32xbf16> to vector<16x16x32xbf16>
    %120 = vector.shape_cast %119 : vector<16x16x32xbf16> to vector<256x32xbf16>
    %c0_114 = arith.constant 0 : index
    %c0_115 = arith.constant 0 : index
    %c1_116 = arith.constant 1 : index
    %c0_117 = arith.constant 0 : index
    %121 = vector.load %arg2[%c0_114, %c0_115, %c1_116, %c0_117] : memref<1x18x18x32xbf16, #tpu.memory_space<vmem>>, vector<1x16x16x32xbf16>
    %122 = vector.shape_cast %121 : vector<1x16x16x32xbf16> to vector<16x16x32xbf16>
    %123 = vector.shape_cast %122 : vector<16x16x32xbf16> to vector<256x32xbf16>
    %c0_118 = arith.constant 0 : index
    %c0_119 = arith.constant 0 : index
    %c2_120 = arith.constant 2 : index
    %c0_121 = arith.constant 0 : index
    %124 = vector.load %arg2[%c0_118, %c0_119, %c2_120, %c0_121] : memref<1x18x18x32xbf16, #tpu.memory_space<vmem>>, vector<1x16x16x32xbf16>
    %125 = vector.shape_cast %124 : vector<1x16x16x32xbf16> to vector<16x16x32xbf16>
    %126 = vector.shape_cast %125 : vector<16x16x32xbf16> to vector<256x32xbf16>
    %c0_122 = arith.constant 0 : index
    %c1_123 = arith.constant 1 : index
    %c0_124 = arith.constant 0 : index
    %c0_125 = arith.constant 0 : index
    %127 = vector.load %arg2[%c0_122, %c1_123, %c0_124, %c0_125] : memref<1x18x18x32xbf16, #tpu.memory_space<vmem>>, vector<1x16x16x32xbf16>
    %128 = vector.shape_cast %127 : vector<1x16x16x32xbf16> to vector<16x16x32xbf16>
    %129 = vector.shape_cast %128 : vector<16x16x32xbf16> to vector<256x32xbf16>
    %c0_126 = arith.constant 0 : index
    %c1_127 = arith.constant 1 : index
    %c1_128 = arith.constant 1 : index
    %c0_129 = arith.constant 0 : index
    %130 = vector.load %arg2[%c0_126, %c1_127, %c1_128, %c0_129] : memref<1x18x18x32xbf16, #tpu.memory_space<vmem>>, vector<1x16x16x32xbf16>
    %131 = vector.shape_cast %130 : vector<1x16x16x32xbf16> to vector<16x16x32xbf16>
    %132 = vector.shape_cast %131 : vector<16x16x32xbf16> to vector<256x32xbf16>
    %c0_130 = arith.constant 0 : index
    %c1_131 = arith.constant 1 : index
    %c2_132 = arith.constant 2 : index
    %c0_133 = arith.constant 0 : index
    %133 = vector.load %arg2[%c0_130, %c1_131, %c2_132, %c0_133] : memref<1x18x18x32xbf16, #tpu.memory_space<vmem>>, vector<1x16x16x32xbf16>
    %134 = vector.shape_cast %133 : vector<1x16x16x32xbf16> to vector<16x16x32xbf16>
    %135 = vector.shape_cast %134 : vector<16x16x32xbf16> to vector<256x32xbf16>
    %c0_134 = arith.constant 0 : index
    %c2_135 = arith.constant 2 : index
    %c0_136 = arith.constant 0 : index
    %c0_137 = arith.constant 0 : index
    %136 = vector.load %arg2[%c0_134, %c2_135, %c0_136, %c0_137] : memref<1x18x18x32xbf16, #tpu.memory_space<vmem>>, vector<1x16x16x32xbf16>
    %137 = vector.shape_cast %136 : vector<1x16x16x32xbf16> to vector<16x16x32xbf16>
    %138 = vector.shape_cast %137 : vector<16x16x32xbf16> to vector<256x32xbf16>
    %c0_138 = arith.constant 0 : index
    %c2_139 = arith.constant 2 : index
    %c1_140 = arith.constant 1 : index
    %c0_141 = arith.constant 0 : index
    %139 = vector.load %arg2[%c0_138, %c2_139, %c1_140, %c0_141] : memref<1x18x18x32xbf16, #tpu.memory_space<vmem>>, vector<1x16x16x32xbf16>
    %140 = vector.shape_cast %139 : vector<1x16x16x32xbf16> to vector<16x16x32xbf16>
    %141 = vector.shape_cast %140 : vector<16x16x32xbf16> to vector<256x32xbf16>
    %c0_142 = arith.constant 0 : index
    %c2_143 = arith.constant 2 : index
    %c2_144 = arith.constant 2 : index
    %c0_145 = arith.constant 0 : index
    %142 = vector.load %arg2[%c0_142, %c2_143, %c2_144, %c0_145] : memref<1x18x18x32xbf16, #tpu.memory_space<vmem>>, vector<1x16x16x32xbf16>
    %143 = vector.shape_cast %142 : vector<1x16x16x32xbf16> to vector<16x16x32xbf16>
    %144 = vector.shape_cast %143 : vector<16x16x32xbf16> to vector<256x32xbf16>
    %145 = tpu.concatenate %120, %123, %126, %129, %132, %135, %138, %141, %144 in 1 : vector<256x32xbf16>, vector<256x32xbf16>, vector<256x32xbf16>, vector<256x32xbf16>, vector<256x32xbf16>, vector<256x32xbf16>, vector<256x32xbf16>, vector<256x32xbf16>, vector<256x32xbf16> -> vector<256x288xbf16>
    %c0_146 = arith.constant 0 : index
    %c0_147 = arith.constant 0 : index
    %146 = vector.load %arg9[%c0_146, %c0_147] : memref<288x32xbf16, #tpu.memory_space<vmem>>, vector<288x32xbf16>
    %cst_148 = arith.constant dense<0.000000e+00> : vector<256x32xf32>
    %147 = tpu.matmul %145, %146, %cst_148 {dimension_numbers = #tpu.dot_dimension_numbers<[1], [0], [0], [1], [0, 0, 1, 1], [], []>} : vector<256x288xbf16>, vector<288x32xbf16>, vector<256x32xf32> -> vector<256x32xf32>
    %c0_149 = arith.constant 0 : index
    %c0_150 = arith.constant 0 : index
    %148 = vector.load %arg10[%c0_149, %c0_150] : memref<1x32xf32, #tpu.memory_space<vmem>>, vector<1x32xf32>
    %149 = vector.broadcast %148 : vector<1x32xf32> to vector<256x32xf32>
    %150 = arith.mulf %147, %149 : vector<256x32xf32>
    %c0_151 = arith.constant 0 : index
    %c0_152 = arith.constant 0 : index
    %151 = vector.load %arg11[%c0_151, %c0_152] : memref<1x32xf32, #tpu.memory_space<vmem>>, vector<1x32xf32>
    %152 = vector.broadcast %151 : vector<1x32xf32> to vector<256x32xf32>
    %153 = arith.addf %150, %152 : vector<256x32xf32>
    %cst_153 = arith.constant 0.000000e+00 : f32
    %154 = vector.broadcast %cst_153 : f32 to vector<256x32xf32>
    %155 = arith.maximumf %153, %154 : vector<256x32xf32>
    %cst_154 = arith.constant 0.000000e+00 : bf16
    %156 = vector.broadcast %cst_154 : bf16 to vector<1x18x32xbf16>
    %c0_155 = arith.constant 0 : index
    %c0_156 = arith.constant 0 : index
    %c0_157 = arith.constant 0 : index
    %157 = vector.load %arg20[%c0_155, %c0_156, %c0_157] : memref<18x18x32xbf16, #tpu.memory_space<vmem>>, vector<1x18x32xbf16>
    tpu.vector_store %arg20[%c0_155, %c0_156, %c0_157], %156 {strides = array<i32>} : memref<18x18x32xbf16, #tpu.memory_space<vmem>>, vector<1x18x32xbf16>,
    %cst_158 = arith.constant 0.000000e+00 : bf16
    %158 = vector.broadcast %cst_158 : bf16 to vector<1x18x32xbf16>
    %c17 = arith.constant 17 : index
    %c0_159 = arith.constant 0 : index
    %c0_160 = arith.constant 0 : index
    %159 = vector.load %arg20[%c17, %c0_159, %c0_160] : memref<18x18x32xbf16, #tpu.memory_space<vmem>>, vector<1x18x32xbf16>
    tpu.vector_store %arg20[%c17, %c0_159, %c0_160], %158 {strides = array<i32>} : memref<18x18x32xbf16, #tpu.memory_space<vmem>>, vector<1x18x32xbf16>,
    %cst_161 = arith.constant 0.000000e+00 : bf16
    %160 = vector.broadcast %cst_161 : bf16 to vector<18x1x32xbf16>
    %c0_162 = arith.constant 0 : index
    %c0_163 = arith.constant 0 : index
    %c0_164 = arith.constant 0 : index
    %161 = vector.load %arg20[%c0_162, %c0_163, %c0_164] : memref<18x18x32xbf16, #tpu.memory_space<vmem>>, vector<18x1x32xbf16>
    tpu.vector_store %arg20[%c0_162, %c0_163, %c0_164], %160 {strides = array<i32>} : memref<18x18x32xbf16, #tpu.memory_space<vmem>>, vector<18x1x32xbf16>,
    %cst_165 = arith.constant 0.000000e+00 : bf16
    %162 = vector.broadcast %cst_165 : bf16 to vector<18x1x32xbf16>
    %c0_166 = arith.constant 0 : index
    %c17_167 = arith.constant 17 : index
    %c0_168 = arith.constant 0 : index
    %163 = vector.load %arg20[%c0_166, %c17_167, %c0_168] : memref<18x18x32xbf16, #tpu.memory_space<vmem>>, vector<18x1x32xbf16>
    tpu.vector_store %arg20[%c0_166, %c17_167, %c0_168], %162 {strides = array<i32>} : memref<18x18x32xbf16, #tpu.memory_space<vmem>>, vector<18x1x32xbf16>,
    %164 = arith.truncf %155 : vector<256x32xf32> to vector<256x32xbf16>
    %165 = vector.shape_cast %164 : vector<256x32xbf16> to vector<16x16x32xbf16>
    %c1_169 = arith.constant 1 : index
    %c1_170 = arith.constant 1 : index
    %c0_171 = arith.constant 0 : index
    %166 = vector.load %arg20[%c1_169, %c1_170, %c0_171] : memref<18x18x32xbf16, #tpu.memory_space<vmem>>, vector<16x16x32xbf16>
    tpu.vector_store %arg20[%c1_169, %c1_170, %c0_171], %165 {strides = array<i32>} : memref<18x18x32xbf16, #tpu.memory_space<vmem>>, vector<16x16x32xbf16>,
    %c0_172 = arith.constant 0 : index
    %c0_173 = arith.constant 0 : index
    %c0_174 = arith.constant 0 : index
    %167 = vector.load %arg20[%c0_172, %c0_173, %c0_174] : memref<18x18x32xbf16, #tpu.memory_space<vmem>>, vector<16x16x32xbf16>
    %168 = vector.shape_cast %167 : vector<16x16x32xbf16> to vector<256x32xbf16>
    %c0_175 = arith.constant 0 : index
    %c1_176 = arith.constant 1 : index
    %c0_177 = arith.constant 0 : index
    %169 = vector.load %arg20[%c0_175, %c1_176, %c0_177] : memref<18x18x32xbf16, #tpu.memory_space<vmem>>, vector<16x16x32xbf16>
    %170 = vector.shape_cast %169 : vector<16x16x32xbf16> to vector<256x32xbf16>
    %c0_178 = arith.constant 0 : index
    %c2_179 = arith.constant 2 : index
    %c0_180 = arith.constant 0 : index
    %171 = vector.load %arg20[%c0_178, %c2_179, %c0_180] : memref<18x18x32xbf16, #tpu.memory_space<vmem>>, vector<16x16x32xbf16>
    %172 = vector.shape_cast %171 : vector<16x16x32xbf16> to vector<256x32xbf16>
    %c1_181 = arith.constant 1 : index
    %c0_182 = arith.constant 0 : index
    %c0_183 = arith.constant 0 : index
    %173 = vector.load %arg20[%c1_181, %c0_182, %c0_183] : memref<18x18x32xbf16, #tpu.memory_space<vmem>>, vector<16x16x32xbf16>
    %174 = vector.shape_cast %173 : vector<16x16x32xbf16> to vector<256x32xbf16>
    %c1_184 = arith.constant 1 : index
    %c1_185 = arith.constant 1 : index
    %c0_186 = arith.constant 0 : index
    %175 = vector.load %arg20[%c1_184, %c1_185, %c0_186] : memref<18x18x32xbf16, #tpu.memory_space<vmem>>, vector<16x16x32xbf16>
    %176 = vector.shape_cast %175 : vector<16x16x32xbf16> to vector<256x32xbf16>
    %c1_187 = arith.constant 1 : index
    %c2_188 = arith.constant 2 : index
    %c0_189 = arith.constant 0 : index
    %177 = vector.load %arg20[%c1_187, %c2_188, %c0_189] : memref<18x18x32xbf16, #tpu.memory_space<vmem>>, vector<16x16x32xbf16>
    %178 = vector.shape_cast %177 : vector<16x16x32xbf16> to vector<256x32xbf16>
    %c2_190 = arith.constant 2 : index
    %c0_191 = arith.constant 0 : index
    %c0_192 = arith.constant 0 : index
    %179 = vector.load %arg20[%c2_190, %c0_191, %c0_192] : memref<18x18x32xbf16, #tpu.memory_space<vmem>>, vector<16x16x32xbf16>
    %180 = vector.shape_cast %179 : vector<16x16x32xbf16> to vector<256x32xbf16>
    %c2_193 = arith.constant 2 : index
    %c1_194 = arith.constant 1 : index
    %c0_195 = arith.constant 0 : index
    %181 = vector.load %arg20[%c2_193, %c1_194, %c0_195] : memref<18x18x32xbf16, #tpu.memory_space<vmem>>, vector<16x16x32xbf16>
    %182 = vector.shape_cast %181 : vector<16x16x32xbf16> to vector<256x32xbf16>
    %c2_196 = arith.constant 2 : index
    %c2_197 = arith.constant 2 : index
    %c0_198 = arith.constant 0 : index
    %183 = vector.load %arg20[%c2_196, %c2_197, %c0_198] : memref<18x18x32xbf16, #tpu.memory_space<vmem>>, vector<16x16x32xbf16>
    %184 = vector.shape_cast %183 : vector<16x16x32xbf16> to vector<256x32xbf16>
    %185 = tpu.concatenate %168, %170, %172, %174, %176, %178, %180, %182, %184 in 1 : vector<256x32xbf16>, vector<256x32xbf16>, vector<256x32xbf16>, vector<256x32xbf16>, vector<256x32xbf16>, vector<256x32xbf16>, vector<256x32xbf16>, vector<256x32xbf16>, vector<256x32xbf16> -> vector<256x288xbf16>
    %c0_199 = arith.constant 0 : index
    %c0_200 = arith.constant 0 : index
    %186 = vector.load %arg12[%c0_199, %c0_200] : memref<288x32xbf16, #tpu.memory_space<vmem>>, vector<288x32xbf16>
    %cst_201 = arith.constant dense<0.000000e+00> : vector<256x32xf32>
    %187 = tpu.matmul %185, %186, %cst_201 {dimension_numbers = #tpu.dot_dimension_numbers<[1], [0], [0], [1], [0, 0, 1, 1], [], []>} : vector<256x288xbf16>, vector<288x32xbf16>, vector<256x32xf32> -> vector<256x32xf32>
    %c0_202 = arith.constant 0 : index
    %c0_203 = arith.constant 0 : index
    %188 = vector.load %arg13[%c0_202, %c0_203] : memref<1x32xf32, #tpu.memory_space<vmem>>, vector<1x32xf32>
    %189 = vector.broadcast %188 : vector<1x32xf32> to vector<256x32xf32>
    %190 = arith.mulf %187, %189 : vector<256x32xf32>
    %c0_204 = arith.constant 0 : index
    %c0_205 = arith.constant 0 : index
    %191 = vector.load %arg14[%c0_204, %c0_205] : memref<1x32xf32, #tpu.memory_space<vmem>>, vector<1x32xf32>
    %192 = vector.broadcast %191 : vector<1x32xf32> to vector<256x32xf32>
    %193 = arith.addf %190, %192 : vector<256x32xf32>
    %cst_206 = arith.constant 0.000000e+00 : f32
    %194 = vector.broadcast %cst_206 : f32 to vector<256x32xf32>
    %195 = arith.maximumf %193, %194 : vector<256x32xf32>
    %196 = arith.addf %195, %117 : vector<256x32xf32>
    %c0_207 = arith.constant 0 : index
    %c0_208 = arith.constant 0 : index
    %197 = vector.load %arg17[%c0_207, %c0_208] : memref<32x32xf32, #tpu.memory_space<vmem>>, vector<32x32xf32>
    %cst_209 = arith.constant dense<0.000000e+00> : vector<32x256xf32>
    %198 = tpu.matmul %197, %196, %cst_209 {dimension_numbers = #tpu.dot_dimension_numbers<[1], [1], [0], [0], [0, 0, 1, 0], [], []>} : vector<32x32xf32>, vector<256x32xf32>, vector<32x256xf32> -> vector<32x256xf32>
    %c0_210 = arith.constant 0 : index
    %c0_211 = arith.constant 0 : index
    %c0_212 = arith.constant 0 : index
    %199 = vector.load %arg18[%c0_210, %c0_211, %c0_212] : memref<1x32x256xf32, #tpu.memory_space<vmem>>, vector<1x32x256xf32>
    %200 = vector.shape_cast %199 : vector<1x32x256xf32> to vector<32x256xf32>
    %201 = vector.shape_cast %198 : vector<32x256xf32> to vector<1x32x256xf32>
    tpu.vector_store %arg18[%c0_210, %c0_211, %c0_212], %201 {strides = array<i32>} : memref<1x32x256xf32, #tpu.memory_space<vmem>>, vector<1x32x256xf32>,
    return
  }
  func.func @transform_0(%arg0: i32) -> (i32, i32, i32, i32, i32) {
    %c0_i32 = arith.constant 0 : i32
    %c0_i32_0 = arith.constant 0 : i32
    %c0_i32_1 = arith.constant 0 : i32
    %c0_i32_2 = arith.constant 0 : i32
    %c0_i32_3 = arith.constant 0 : i32
    return %arg0, %c0_i32, %c0_i32_0, %c0_i32_1, %c0_i32_2 : i32, i32, i32, i32, i32
  }
  func.func @transform_1(%arg0: i32) -> (i32, i32, i32, i32) {
    %c0_i32 = arith.constant 0 : i32
    %c0_i32_0 = arith.constant 0 : i32
    %c0_i32_1 = arith.constant 0 : i32
    %c0_i32_2 = arith.constant 0 : i32
    return %arg0, %c0_i32, %c0_i32_0, %c0_i32_1 : i32, i32, i32, i32
  }
  func.func @transform_2(%arg0: i32) -> (i32, i32) {
    %c0_i32 = arith.constant 0 : i32
    %c0_i32_0 = arith.constant 0 : i32
    %c0_i32_1 = arith.constant 0 : i32
    return %c0_i32, %c0_i32_0 : i32, i32
  }
  func.func @transform_3(%arg0: i32) -> (i32, i32) {
    %c0_i32 = arith.constant 0 : i32
    %c0_i32_0 = arith.constant 0 : i32
    %c0_i32_1 = arith.constant 0 : i32
    return %c0_i32, %c0_i32_0 : i32, i32
  }
  func.func @transform_4(%arg0: i32) -> (i32, i32) {
    %c0_i32 = arith.constant 0 : i32
    %c0_i32_0 = arith.constant 0 : i32
    %c0_i32_1 = arith.constant 0 : i32
    return %c0_i32, %c0_i32_0 : i32, i32
  }
  func.func @transform_5(%arg0: i32) -> (i32, i32) {
    %c0_i32 = arith.constant 0 : i32
    %c0_i32_0 = arith.constant 0 : i32
    %c0_i32_1 = arith.constant 0 : i32
    return %c0_i32, %c0_i32_0 : i32, i32
  }
  func.func @transform_6(%arg0: i32) -> (i32, i32) {
    %c0_i32 = arith.constant 0 : i32
    %c0_i32_0 = arith.constant 0 : i32
    %c0_i32_1 = arith.constant 0 : i32
    return %c0_i32, %c0_i32_0 : i32, i32
  }
  func.func @transform_7(%arg0: i32) -> (i32, i32) {
    %c0_i32 = arith.constant 0 : i32
    %c0_i32_0 = arith.constant 0 : i32
    %c0_i32_1 = arith.constant 0 : i32
    return %c0_i32, %c0_i32_0 : i32, i32
  }
  func.func @transform_8(%arg0: i32) -> (i32, i32) {
    %c0_i32 = arith.constant 0 : i32
    %c0_i32_0 = arith.constant 0 : i32
    %c0_i32_1 = arith.constant 0 : i32
    return %c0_i32, %c0_i32_0 : i32, i32
  }
  func.func @transform_9(%arg0: i32) -> (i32, i32) {
    %c0_i32 = arith.constant 0 : i32
    %c0_i32_0 = arith.constant 0 : i32
    %c0_i32_1 = arith.constant 0 : i32
    return %c0_i32, %c0_i32_0 : i32, i32
  }
  func.func @transform_10(%arg0: i32) -> (i32, i32) {
    %c0_i32 = arith.constant 0 : i32
    %c0_i32_0 = arith.constant 0 : i32
    %c0_i32_1 = arith.constant 0 : i32
    return %c0_i32, %c0_i32_0 : i32, i32
  }
  func.func @transform_11(%arg0: i32) -> (i32, i32) {
    %c0_i32 = arith.constant 0 : i32
    %c0_i32_0 = arith.constant 0 : i32
    %c0_i32_1 = arith.constant 0 : i32
    return %c0_i32, %c0_i32_0 : i32, i32
  }
  func.func @transform_12(%arg0: i32) -> (i32, i32) {
    %c0_i32 = arith.constant 0 : i32
    %c0_i32_0 = arith.constant 0 : i32
    %c0_i32_1 = arith.constant 0 : i32
    return %c0_i32, %c0_i32_0 : i32, i32
  }
  func.func @transform_13(%arg0: i32) -> (i32, i32) {
    %c0_i32 = arith.constant 0 : i32
    %c0_i32_0 = arith.constant 0 : i32
    %c0_i32_1 = arith.constant 0 : i32
    return %c0_i32, %c0_i32_0 : i32, i32
  }
  func.func @transform_14(%arg0: i32) -> (i32, i32) {
    %c0_i32 = arith.constant 0 : i32
    %c0_i32_0 = arith.constant 0 : i32
    %c0_i32_1 = arith.constant 0 : i32
    return %c0_i32, %c0_i32_0 : i32, i32
  }
  func.func @transform_15(%arg0: i32) -> (i32, i32) {
    %c0_i32 = arith.constant 0 : i32
    %c0_i32_0 = arith.constant 0 : i32
    %c0_i32_1 = arith.constant 0 : i32
    return %c0_i32, %c0_i32_0 : i32, i32
  }
  func.func @transform_16(%arg0: i32) -> (i32, i32) {
    %c0_i32 = arith.constant 0 : i32
    %c0_i32_0 = arith.constant 0 : i32
    %c0_i32_1 = arith.constant 0 : i32
    return %c0_i32, %c0_i32_0 : i32, i32
  }
  func.func @transform_17(%arg0: i32) -> (i32, i32, i32) {
    %c0_i32 = arith.constant 0 : i32
    %c0_i32_0 = arith.constant 0 : i32
    %c0_i32_1 = arith.constant 0 : i32
    return %arg0, %c0_i32, %c0_i32_0 : i32, i32, i32
  }
}

</mosaic_0001>

<bundles_post_ra>
// kernel: tpu_custom_call.1
= control target key start
LH: loop header
LB: loop body
LE: loop exit
PB: predicated region body
PF: predicated region fallthrough
CT: control target
= control target key end

     0   :  { %s19632_s0 = inlined_call_operand.vmem [shape: bf16[2,4,9,9,64], index: 0, kind: input, shape index: {}]   ;;  %s19633_s1 = inlined_call_operand.vmem [shape: bf16[2,18,18,32], index: 1, kind: input, shape index: {}]   ;;  %s19634_s2 = inlined_call_operand.vmem [shape: bf16[576,64], index: 2, kind: input, shape index: {}]   ;;  %s19635_s3 = inlined_call_operand.vmem [shape: f32[1,64], index: 3, kind: input, shape index: {}]   ;;  %s19636_s4 = inlined_call_operand.vmem [shape: f32[1,64], index: 4, kind: input, shape index: {}]   ;;  %s19637_s5 = inlined_call_operand.vmem [shape: bf16[576,64], index: 5, kind: input, shape index: {}]   ;;  %s19638_s6 = inlined_call_operand.vmem [shape: f32[1,64], index: 6, kind: input, shape index: {}]   ;;  %s19639_s7 = inlined_call_operand.vmem [shape: f32[1,64], index: 7, kind: input, shape index: {}]   ;;  %s19640_s8 = inlined_call_operand.vmem [shape: bf16[288,32], index: 8, kind: input, shape index: {}]   ;;  %s19641_s9 = inlined_call_operand.vmem [shape: f32[1,32], index: 9, kind: input, shape index: {}]   ;;  %s19642_s10 = inlined_call_operand.vmem [shape: f32[1,32], index: 10, kind: input, shape index: {}]   ;;  %s19643_s11 = inlined_call_operand.vmem [shape: bf16[288,32], index: 11, kind: input, shape index: {}]   ;;  %s19644_s12 = inlined_call_operand.vmem [shape: f32[1,32], index: 12, kind: input, shape index: {}]   ;;  %s19645_s13 = inlined_call_operand.vmem [shape: f32[1,32], index: 13, kind: input, shape index: {}]   ;;  %s19646_s14 = inlined_call_operand.vmem [shape: bf16[64,96], index: 14, kind: input, shape index: {}]   ;;  %s19647_s15 = inlined_call_operand.vmem [shape: f32[1,96], index: 15, kind: input, shape index: {}]   ;;  %s19648_s16 = inlined_call_operand.vmem [shape: f32[32,32], index: 16, kind: input, shape index: {}]   ;;  %s19649_s17 = inlined_call_operand.hbm [shape: f32[2,32,256], index: 17, kind: output, shape index: {}]  }
   0x1   :  { %19744 = sst [smem:[#allocation52_spill]] %s19632_s0 }
   0x2   :  { %19745 = sst [smem:[#allocation53_spill]] %s19633_s1 }
   0x3   :  { %22 = vsyncpa [#allocation5], 0 }
   0x4   :  { %24 = vsyncpa [#allocation5 + $0x1], 0  ;;  %s13778_s24 = smov 0   ;;  %s13780_s25 = smov 0  }
   0x5   :  { %s13782_s26 = smov 0   ;;  %s13784_s27 = smov 0  }
   0x6 LB: > { %19746 = sst [smem:[#allocation7_spill]] %s13663_s24  ;;  %s13799_s28 = sadd.s32 4294967295, %s13675_s27   ;;  %s13675_s27 = sphi %s13784_s27, %s20146_s27   ;;  %s13671_s26 = sphi %s13782_s26, %s20148_s26   ;;  %s13667_s25 = sphi %s13780_s25, %s20150_s25   ;;  %s13663_s24 = sphi %s13778_s24, %s20149_s24  }
   0x7   : > { %19747 = sst [smem:[#allocation8_spill]] %s13671_s26  ;;  %s11586_s29 = sadd.s32 4294967294, %s13675_s27  }
   0x8   : > { %19748 = sst [smem:[#allocation9_spill]] %s13675_s27  ;;  %s13803_s0 = sadd.s32 1, %s13675_s27  }
   0x9   : > { %19749 = sst [smem:[#allocation10_spill]] %s13803_s0  ;;  %s404_s30 = sadd.s32 1, %s13671_s26 }
   0xa   : > { %s401_s18 = ssub.s32 %s13675_s27, %s13803_s0  ;;  %p414_p0 = scmp.ne.s32.totalorder %s13671_s26, %s13667_s25 }
   0xb   : > { %p402_p1 = scmp.eq.s32.totalorder %s401_s18, 0  ;;  %p415_p2 = scmp.eq.s32.totalorder %s13799_s28, 1 }
   0xc   : > { %p420_p3 = scmp.ne.s32.totalorder %s13667_s25, %s13663_s24  ;;  %p421_p4 = scmp.eq.s32.totalorder %s11586_s29, 1 }
   0xd   : > { %s13814_s19 = scalar_select %p402_p1, %s13671_s26, %s404_s30  }
   0xe   : > { %p13816_p5 = por %p415_p2, %p414_p0  ;;  %p13820_p6 = por %p421_p4, %p420_p3 }
   0xf   : > { %19750 = sst [smem:[#allocation11_spill]] %s13814_s19  ;;  %p11589_p7 = scmp.ge.s32.totalorder %s13675_s27, 1 }
  0x10   : > { %s19752_s20 = scalar_select %p13820_p6, 1, 0 }
  0x11   : > { %p500_p8 = scmp.lt.s32.totalorder %s13675_s27, 3 }
  0x12   : > { %19753 = sst [smem:[#allocation12_spill]] %s19752_s20 }
  0x13   : > { %p501_p9 = pnand %p11589_p7, %p500_p8 }
  0x15   : > { %504 = sbr.rel (%p501_p9) target bundleno = 2926 (0xb6e), region = 88 }
  0x1c   : > { %p557_p10 = scmp.lt.s32.totalorder %s13799_s28, 1  ;;  %v13267_v0 = vld [vmem:[%s19634_s2 + $0x40] sm:$0xff]   ;;  %v13269_v2 = vld [vmem:[%s19634_s2 + $0x48] sm:$0xff]   ;;  %s19754_s22 = sld [smem:[#allocation52_spill]]  ;;  %v13271_v4 = vld [vmem:[%s19634_s2 + $0x50] sm:$0xff]   ;;  %vm1172_vm3 = vcmask 523264  }
  0x1d   : > { %v13268_v1 = vld [vmem:[%s19634_s2] sm:$0xff]   ;;  %12543 = vmatprep.subr.bf16.mxu0 %v13267_v0  ;;  %v13270_v3 = vld [vmem:[%s19634_s2 + $0x8] sm:$0xff]   ;;  %v13272_v13 = vld [vmem:[%s19634_s2 + $0x10] sm:$0xff]   ;;  %s19664_s19 = smov 64   ;;  %vm593_vm0 = vsmask.f32 3328 }
  0x1e   : > { %s13828_s21 = scalar_select %p557_p10, %s13799_s28, 1  ;;  %12544 = vmatpush3.bf16.msra.mxu0 %v13268_v1  ;;  %v13273_v18 = vld [vmem:[%s19634_s2 + $0x58] sm:$0xff]   ;;  %vm594_vm1 = vsmask.f32 7440  ;;  %v13275_v34 = vld [vmem:[%s19634_s2 + $0xc0] sm:$0xff]   ;;  %v13279_v57 = vld [vmem:[%s19634_s2 + $0xc8] sm:$0xff]  }
  0x1f   : > { %12545 = vmatprep.subr.bf16.mxu0 %v13269_v2  ;;  %v13274_v29 = vld [vmem:[%s19634_s2 + $0x18] sm:$0xff]   ;;  %v13276_v39 = vld [vmem:[%s19634_s2 + $0x80] sm:$0xff]   ;;  %12583 = vmatprep.subr.bf16.mxu1 %v13275_v34  ;;  %vm13904_vm2 = vmor %vm593_vm0, %vm594_vm1  ;;  %vm1770_vm4 = vcmask 519168   ;;  %vm1772_vm5 = vcmask 516096   ;;  %vm1778_vm6 = vsmask.f32 256 }
  0x20   : > { %s13204_s18 = smul.u32 288, %s13828_s21  ;;  %v13277_v43 = vld [vmem:[%s19634_s2 + $0x60] sm:$0xff]   ;;  %12584 = vmatpush3.bf16.msra.mxu1 %v13276_v39  ;;  %vm14239_vm7 = vmand %vm1772_vm5, %vm1778_vm6  ;;  %vm1810_vm8 = vsmask.f32 7938  ;;  %vm7211_vm11 = vcmask 257024   ;;  %vm7214_vm12 = vcmask 253952  }
  0x21   : > { %v13278_v51 = vld [vmem:[%s19634_s2 + $0x20] sm:$0xff]   ;;  %12585 = vmatprep.subr.bf16.mxu1 %v13279_v57  ;;  %vm14246_vm9 = vmand %vm1772_vm5, %vm1810_vm8  ;;  %vm2149_vm13 = vcmask 1042432   ;;  %vm2150_vm14 = vcmask 1046532   ;;  %vm13680_vm0 = vmmov 0   ;;  %vm3442_vm1 = vcmask 1041409   ;;  %s19799_s30 = sld [smem:[#allocation53_spill]] }
  0x22   : > { %s13846_s23 = scalar_lea.vmem %s19754_s22, %s13204_s18  ;;  %12546 = vmatpush3.bf16.msra.mxu0 %v13270_v3  ;;  %vm14266_vm10 = vmand %vm1770_vm4, %vm1810_vm8  ;;  %s13205_s22 = smul.u32 216, %s13828_s21 }
  0x23   : > { %v11601_v5 = vld [vmem:[%s13846_s23 + $0x90] sm:$0xf]  ;;  %v11602_v6 = vld [vmem:[%s13846_s23 + $0x98] sm:$0xf]  ;;  %v11603_v7 = vld [vmem:[%s13846_s23 + $0xa0] sm:$0xf]  ;;  %12547 = vmatprep.subr.bf16.mxu0 %v13271_v4 }
  0x24   : > { %v749_v8 = vshrl.u32 %v11602_v6, 16  ;;  %v752_v9 = vshll.u32 %v11602_v6, 16  ;;  %v11661_v10 = vcombine.low %v11601_v5, %v11602_v6  ;;  %v735_v11 = vshrl.u32 %v11601_v5, 16  ;;  %v11604_v12 = vld [vmem:[%s13846_s23 + $0xa8] sm:$0xf]  ;;  %vm14431_vm15 = vmor %vm2149_vm13, %vm2150_vm14  ;;  %s13682_s27 = smov 96  }
  0x25   : > { %v738_v14 = vshll.u32 %v11601_v5, 16  ;;  %v777_v15 = vshrl.u32 %v11604_v12, 16  ;;  %v780_v16 = vshll.u32 %v11604_v12, 16  ;;  %v11662_v17 = vcombine.low %v11603_v7, %v11604_v12  ;;  %v13257_v26 = vld [vmem:[%s13846_s23 + $0x48] ss:$8 sps:$4 sm:$0xff]   ;;  %s19666_s0 = smov 32  }
  0x26   : > { %v751_v19 = vrot.slane %v749_v8, 4  ;;  %v754_v20 = vrot.slane %v752_v9, 5  ;;  %1064 = vrot.lane.b32.xlu0 %v11661_v10, %s19664_s19  ;;  %v737_v21 = vrot.slane %v735_v11, 4  ;;  %v763_v22 = vshrl.u32 %v11603_v7, 16  ;;  %v13258_v32 = vld [vmem:[%s13846_s23 + $0x58] ss:$8 sps:$4 sm:$0xff]   ;;  %12548 = vmatpush3.bf16.msra.mxu0 %v13272_v13 }
  0x27   : > { %v740_v23 = vrot.slane %v738_v14, 5  ;;  %v779_v24 = vrot.slane %v777_v15, 4  ;;  %1066 = vrot.lane.b32.xlu1 %v11662_v17, %s19664_s19  ;;  %v766_v25 = vshll.u32 %v11603_v7, 16  ;;  %v782_v28 = vrot.slane %v780_v16, 5  ;;  %v11605_v33 = vld [vmem:[%s13846_s23 + $0xb0] sm:$0xf]  ;;  %12549 = vmatprep.subr.bf16.mxu0 %v13273_v18  ;;  %s15046_s24 = scalar_lea.vmem %s19799_s30, %s13205_s22 }
  0x28   : > { %v755_v27 = vor.u32 %v754_v20, %v751_v19  ;;  %v765_v31 = vrot.slane %v763_v22, 4  ;;  %v11606_v36 = vld [vmem:[%s13846_s23 + $0xb8] sm:$0xf]  ;;  %v791_v37 = vshrl.u32 %v11605_v33, 16  ;;  %v794_v38 = vshll.u32 %v11605_v33, 16  ;;  %s19809_s22 = smov 32  }
  0x29   : > { %v741_v30 = vor.u32 %v740_v23, %v737_v21  ;;  %v768_v35 = vrot.slane %v766_v25, 5  ;;  %v805_v42 = vshrl.u32 %v11606_v36, 16  ;;  %v808_v46 = vshll.u32 %v11606_v36, 16  ;;  %v13260_v49 = vld [vmem:[%s13846_s23 + $0x68] ss:$8 sps:$4 sm:$0xff]   ;;  %s19810_s29 = smov 64  }
  0x2a   : > { %1024 = vrot.lane.b32.xlu0 %v13257_v26, %s19664_s19  ;;  %v13877_v40 = vrot.slane %v755_v27, 4  ;;  %v793_v44 = vrot.slane %v791_v37, 4  ;;  %v796_v45 = vrot.slane %v794_v38, 5  ;;  %v11663_v47 = vcombine.low %v11605_v33, %v11606_v36  ;;  %v11607_v50 = vld [vmem:[%s13846_s23 + $0xc0] sm:$0xf]  ;;  %12550 = vmatpush3.bf16.msra.mxu0 %v13274_v29  ;;  %v13280_v33 = vld [vmem:[%s19634_s2 + $0x88] sm:$0xff]  }
  0x2b   : > { %v13879_v41 = vrot.slane %v741_v30, 4  ;;  %1026 = vrot.lane.b32.xlu1 %v13258_v32, %s19664_s19  ;;  %v807_v48 = vrot.slane %v805_v42, 4  ;;  %v783_v52 = vor.u32 %v782_v28, %v779_v24  ;;  %v810_v53 = vrot.slane %v808_v46, 5  ;;  %v11608_v54 = vld [vmem:[%s13846_s23 + $0xc8] sm:$0xf]  ;;  %12551 = vmatprep.subr.bf16.mxu0 %v13277_v43  ;;  %s12542_s30 = sshll.u32 %s13799_s28, 10 }
  0x2c   : > { %v819_v55 = vshrl.u32 %v11607_v50, 16  ;;  %v822_v56 = vshll.u32 %v11607_v50, 16  ;;  %v769_v58 = vor.u32 %v768_v35, %v765_v31  ;;  %v833_v59 = vshrl.u32 %v11608_v54, 16  ;;  %v13262_v0 = vld [vmem:[%s13846_s23 + $0x78] ss:$8 sps:$4 sm:$0xff]   ;;  %12586 = vmatpush3.bf16.msra.mxu1 %v13280_v33  ;;  %s13685_s28 = smov [#allocation4]  }
  0x2d   : > { %v836_v60 = vshll.u32 %v11608_v54, 16  ;;  %v11664_v61 = vcombine.low %v11607_v50, %v11608_v54  ;;  %v13263_v3 = vld [vmem:[%s13846_s23 + $0x50] ss:$8 sps:$4 sm:$0xff]   ;;  %v11617_v4 = vld [vmem:[%s13846_s23 + $0x94] sm:$0x1]  ;;  %v784_v6 = vrot.slane %v783_v52, 4  ;;  %v797_v13 = vor.u32 %v796_v45, %v793_v44 }
  0x2e   : > { %1068 = vrot.lane.b32.xlu0 %v11663_v47, %s19664_s19  ;;  %v821_v62 = vrot.slane %v819_v55, 4  ;;  %v824_v63 = vrot.slane %v822_v56, 5  ;;  %v835_v1 = vrot.slane %v833_v59, 4  ;;  %12552 = vmatpush3.bf16.msra.mxu0 %v13278_v51  ;;  %v11618_v5 = vld [vmem:[%s13846_s23 + $0x9c] sm:$0x1]  ;;  %v770_v7 = vrot.slane %v769_v58, 4 }
  0x2f   : > { %1028 = vrot.lane.b32.xlu1 %v13260_v49, %s19664_s19  ;;  %v838_v2 = vrot.slane %v836_v60, 5  ;;  %v744_v9 = vshll.u32 %v11617_v4, 16  ;;  %v758_v10 = vshll.u32 %v11618_v5, 16  ;;  %v11619_v11 = vld [vmem:[%s13846_s23 + $0xa4] sm:$0x1]  ;;  %v811_v14 = vor.u32 %v810_v53, %v807_v48  ;;  %v13281_v44 = vld [vmem:[%s19634_s2 + $0x68] sm:$0xff]  }
  0x30   : > { %v11620_v12 = vld [vmem:[%s13846_s23 + $0xac] sm:$0x1]  ;;  %v825_v15 = vor.u32 %v824_v63, %v821_v62  ;;  %v772_v18 = vshll.u32 %v11619_v11, 16  ;;  %v13264_v20 = vld [vmem:[%s13846_s23 + $0x60] ss:$8 sps:$4 sm:$0xff]   ;;  %v798_v30 = vrot.slane %v797_v13, 4  ;;  %12553 = vmatprep.subr.bf16.mxu0 %v13281_v44 }
  0x31   : > { %v746_v16 = vrot.slane %v744_v9, 5  ;;  %v760_v17 = vrot.slane %v758_v10, 5  ;;  %v786_v19 = vshll.u32 %v11620_v12, 16  ;;  %v11621_v21 = vld [vmem:[%s13846_s23 + $0xb4] sm:$0x1]  ;;  %v839_v23 = vor.u32 %v838_v2, %v835_v1  ;;  %v13282_v50 = vld [vmem:[%s19634_s2 + $0x28] sm:$0xff]  }
  0x32   : > { %1070 = vrot.lane.b32.xlu0 %v11664_v61, %s19664_s19  ;;  %v11622_v22 = vld [vmem:[%s13846_s23 + $0xbc] sm:$0x1]  ;;  %v774_v26 = vrot.slane %v772_v18, 5  ;;  %v13265_v29 = vld [vmem:[%s13846_s23 + $0x70] ss:$8 sps:$4 sm:$0xff]   ;;  %v800_v31 = vshll.u32 %v11621_v21, 16  ;;  %12554 = vmatpush3.bf16.msra.mxu0 %v13282_v50 }
  0x33   : > { %1030 = vrot.lane.b32.xlu1 %v13262_v0, %s19664_s19  ;;  %v747_v24 = vsel %vm13904_vm2, %v13879_v41, %v746_v16  ;;  %v761_v25 = vsel %vm13904_vm2, %v13877_v40, %v760_v17  ;;  %v788_v27 = vrot.slane %v786_v19, 5  ;;  %v812_v32 = vrot.slane %v811_v14, 4  ;;  %v11623_v37 = vld [vmem:[%s13846_s23 + $0xc4] sm:$0x1]  ;;  %v11624_v38 = vld [vmem:[%s13846_s23 + $0xcc] sm:$0x1] }
  0x34   : > { %v11669_v28 = vcombine.low %v747_v24, %v761_v25  ;;  %v775_v34 = vsel %vm13904_vm2, %v770_v7, %v774_v26  ;;  %v814_v36 = vshll.u32 %v11622_v22, 16  ;;  %v826_v39 = vrot.slane %v825_v15, 4  ;;  %v13266_v48 = vld [vmem:[%s13846_s23 + $0x80] ss:$8 sps:$4 sm:$0xff]   ;;  %v13283_v53 = vld [vmem:[%s19634_s2 + $0xd0] sm:$0xff]   ;;  %v13287_v61 = vld [vmem:[%s19634_s2 + $0xd8] sm:$0xff]  }
  0x35   : > { %v789_v35 = vsel %vm13904_vm2, %v784_v6, %v788_v27  ;;  %v802_v41 = vrot.slane %v800_v31, 5  ;;  %v828_v42 = vshll.u32 %v11623_v37, 16  ;;  %v840_v43 = vrot.slane %v839_v23, 4  ;;  %12587 = vmatprep.subr.bf16.mxu1 %v13283_v53  ;;  %v13284_v58 = vld [vmem:[%s19634_s2 + $0x90] sm:$0xff]   ;;  %v13288_v62 = vld [vmem:[%s19634_s2 + $0x98] sm:$0xff]   ;;  %v13291_v1 = vld [vmem:[%s19634_s2 + $0xe0] sm:$0xff]  }
  0x36   : > { %1152 = vrot.lane.b32.xlu0 %v13263_v3, %s19664_s19  ;;  %v11670_v40 = vcombine.low %v775_v34, %v789_v35  ;;  %v816_v45 = vrot.slane %v814_v36, 5  ;;  %v842_v46 = vshll.u32 %v11624_v38, 16  ;;  %v13285_v59 = vld [vmem:[%s19634_s2 + $0x70] sm:$0xff]   ;;  %12588 = vmatpush3.bf16.msra.mxu1 %v13284_v58  ;;  %v13289_v63 = vld [vmem:[%s19634_s2 + $0x78] sm:$0xff]   ;;  %v13292_v2 = vld [vmem:[%s19634_s2 + $0xa0] sm:$0xff]   ;;  %vm3460_vm13 = vcmask 1047559  }
  0x37   : > { %1104 = vrot.lane.b32.xlu1 %v11669_v28, %s19664_s19  ;;  %v803_v47 = vsel %vm13904_vm2, %v798_v30, %v802_v41  ;;  %v830_v49 = vrot.slane %v828_v42, 5  ;;  %v13286_v60 = vld [vmem:[%s19634_s2 + $0x30] sm:$0xff]   ;;  %12555 = vmatprep.subr.bf16.mxu0 %v13285_v59  ;;  %v13290_v0 = vld [vmem:[%s19634_s2 + $0x38] sm:$0xff]   ;;  %v13294_v3 = vld [vmem:[%s19634_s2 + $0xe8] sm:$0xff]   ;;  %vm3549_vm14 = vcmask 261120   ;;  %s13617_s20 = sshll.u32 %s13685_s28, 4  ;;  %s13618_s20 = int_to_ptr.vmem [resolvable:$false] %s13617_s20 }
  0x38   : > { %v817_v51 = vsel %vm13904_vm2, %v812_v32, %v816_v45  ;;  %v844_v52 = vrot.slane %v842_v46, 5  ;;  %12556 = vmatpush3.bf16.msra.mxu0 %v13286_v60  ;;  %12589 = vmatprep.subr.bf16.mxu1 %v13287_v61  ;;  %v13295_v4 = vld [vmem:[%s19634_s2 + $0xa8] sm:$0xff]   ;;  %v13296_v5 = vld [vmem:[%s19634_s2 + $0xf0] sm:$0xff]   ;;  %v13992_v6 = vld [vmem:[%s13846_s23] sm:$0xf]  ;;  %s13619_s18 = scalar_lea.vmem %s13618_s20, 2048 }
  0x39   : > { %v11671_v54 = vcombine.low %v803_v47, %v817_v51  ;;  %v831_v55 = vsel %vm13904_vm2, %v826_v39, %v830_v49  ;;  %12557 = vmatprep.subr.bf16.mxu0 %v13289_v63  ;;  %v13995_v7 = vld [vmem:[%s13846_s23 + $0x8] sm:$0xf]  ;;  %v13297_v9 = vld [vmem:[%s19634_s2 + $0xb0] sm:$0xff]   ;;  %v13299_v10 = vld [vmem:[%s19634_s2 + $0xf8] sm:$0xff]   ;;  %v597_v12 = vshrl.u32 %v13992_v6, 16  ;;  %v600_v13 = vshll.u32 %v13992_v6, 16 }
  0x3a   : > { %1154 = vrot.lane.b32.xlu0 %v13264_v20, %s19664_s19  ;;  %v845_v56 = vsel %vm13904_vm2, %v840_v43, %v844_v52  ;;  %12590 = vmatpush3.bf16.msra.mxu1 %v13288_v62  ;;  %v585_v11 = vld [vmem:[%s13846_s23 + $0x4] sm:$0x1]  ;;  %v14007_v14 = vld [vmem:[%s13846_s23 + $0x10] sm:$0xf]  ;;  %v611_v15 = vshrl.u32 %v13995_v7, 16  ;;  %v614_v16 = vshll.u32 %v13995_v7, 16 }
  0x3b   : > { %1106 = vrot.lane.b32.xlu1 %v11670_v40, %s19664_s19  ;;  %v11672_v57 = vcombine.low %v831_v55, %v845_v56  ;;  %12591 = vmatprep.subr.bf16.mxu1 %v13291_v1  ;;  %v14012_v17 = vld [vmem:[%s13846_s23 + $0x18] sm:$0xf]  ;;  %v14020_v19 = vld [vmem:[%s19634_s2 + $0x100] sm:$0xff]   ;;  %v586_v20 = vld [vmem:[%s13846_s23 + $0xc] sm:$0x1]  ;;  %v625_v21 = vshrl.u32 %v14007_v14, 16 }
  0x3c   : > { %12558 = vmatpush3.bf16.msra.mxu0 %v13290_v0  ;;  %v13300_v18 = vld [vmem:[%s19634_s2 + $0xb8] sm:$0xff]   ;;  %v628_v22 = vshll.u32 %v14007_v14, 16  ;;  %v606_v23 = vshll.u32 %v585_v11, 16  ;;  %v639_v24 = vshrl.u32 %v14012_v17, 16  ;;  %v642_v25 = vshll.u32 %v14012_v17, 16 }
  0x3d   : > { %13028 = vmatprep.subr.bf16.mxu0 %v14020_v19  ;;  %v599_v26 = vrot.slane %v597_v12, 4  ;;  %v602_v27 = vrot.slane %v600_v13, 5  ;;  %v613_v28 = vrot.slane %v611_v15, 4  ;;  %v620_v30 = vshll.u32 %v586_v20, 16  ;;  %v587_v31 = vld [vmem:[%s13846_s23 + $0x14] sm:$0x1] }
  0x3e   : > { %1156 = vrot.lane.b32.xlu0 %v13265_v29, %s19664_s19  ;;  %12592 = vmatpush3.bf16.msra.mxu1 %v13292_v2  ;;  %v616_v29 = vrot.slane %v614_v16, 5  ;;  %v627_v32 = vrot.slane %v625_v21, 4  ;;  %v630_v33 = vrot.slane %v628_v22, 5  ;;  %v588_v34 = vld [vmem:[%s13846_s23 + $0x1c] sm:$0x1]  ;;  %v641_v35 = vrot.slane %v639_v24, 4 }
  0x3f   : > { %1108 = vrot.lane.b32.xlu1 %v11671_v54, %s19664_s19  ;;  %12593 = vmatprep.subr.bf16.mxu1 %v13294_v3  ;;  %v644_v36 = vrot.slane %v642_v25, 5  ;;  %v603_v37 = vor.u32 %v602_v27, %v599_v26  ;;  %v14030_v38 = vrot.slane %v606_v23, 5  ;;  %v14032_v40 = vrot.slane %v620_v30, 5  ;;  %v14035_v42 = vld [vmem:[%s13846_s23 + $0x8] sm:$0xf] }
  0x40   : > { %v617_v39 = vor.u32 %v616_v29, %v613_v28  ;;  %v634_v41 = vshll.u32 %v587_v31, 16  ;;  %v14038_v43 = vld [vmem:[%s13846_s23 + $0x10] sm:$0xf]  ;;  %v631_v44 = vor.u32 %v630_v33, %v627_v32  ;;  %v648_v45 = vshll.u32 %v588_v34, 16  ;;  %v14042_v47 = vld [vmem:[%s13846_s23 + $0x20] sm:$0xf] }
  0x41   : > { %v873_v46 = vshrl.u32 %v14035_v42, 16  ;;  %v876_v49 = vshll.u32 %v14035_v42, 16  ;;  %v887_v50 = vshrl.u32 %v14038_v43, 16  ;;  %v14047_v51 = vld [vmem:[%s13846_s23 + $0x28] sm:$0xf]  ;;  %v14049_v52 = vrot.slane %v603_v37, 4 }
  0x42   : > { %1158 = vrot.lane.b32.xlu0 %v13266_v48, %s19664_s19  ;;  %12594 = vmatpush3.bf16.msra.mxu1 %v13295_v4  ;;  %v645_v48 = vor.u32 %v644_v36, %v641_v35  ;;  %v14051_v53 = vrot.slane %v617_v39, 4  ;;  %v14053_v54 = vrot.slane %v634_v41, 5  ;;  %v890_v55 = vshll.u32 %v14038_v43, 16  ;;  %v589_v60 = vld [vmem:[%s13846_s23 + $0x24] sm:$0x1] }
  0x43   : > { %1110 = vrot.lane.b32.xlu1 %v11672_v57, %s19664_s19  ;;  %12595 = vmatprep.subr.bf16.mxu1 %v13296_v5  ;;  %v653_v56 = vshrl.u32 %v14042_v47, 16  ;;  %v656_v57 = vshll.u32 %v14042_v47, 16  ;;  %v14058_v58 = vrot.slane %v631_v44, 4  ;;  %v14060_v59 = vrot.slane %v648_v45, 5  ;;  %v14068_v3 = vld [vmem:[%s13846_s23 + $0x30] sm:$0xf] }
  0x44   : > { %v667_v61 = vshrl.u32 %v14047_v51, 16  ;;  %v670_v62 = vshll.u32 %v14047_v51, 16  ;;  %v14065_v63 = vrot.slane %v645_v48, 4  ;;  %v875_v0 = vrot.slane %v873_v46, 4  ;;  %v14071_v4 = vld [vmem:[%s13846_s23 + $0x38] sm:$0xf] }
  0x45   : > { %v878_v1 = vrot.slane %v876_v49, 5  ;;  %v889_v2 = vrot.slane %v887_v50, 4  ;;  %v892_v5 = vrot.slane %v890_v55, 5  ;;  %v658_v11 = vrot.slane %v656_v57, 5  ;;  %v14075_v16 = vld [vmem:[%s13846_s23 + $0x18] sm:$0xf] }
  0x46   : > { %12596 = vmatpush3.bf16.msra.mxu1 %v13297_v9  ;;  %v590_v9 = vld [vmem:[%s13846_s23 + $0x2c] sm:$0x1]  ;;  %v662_v12 = vshll.u32 %v589_v60, 16  ;;  %v669_v13 = vrot.slane %v667_v61, 4  ;;  %v672_v15 = vrot.slane %v670_v62, 5  ;;  %v684_v20 = vshll.u32 %v14068_v3, 16 }
  0x47   : > { %12597 = vmatprep.subr.bf16.mxu1 %v13299_v10  ;;  %v655_v10 = vrot.slane %v653_v56, 4  ;;  %v695_v21 = vshrl.u32 %v14071_v4, 16  ;;  %v698_v22 = vshll.u32 %v14071_v4, 16  ;;  %v879_v23 = vor.u32 %v878_v1, %v875_v0  ;;  %v14082_v24 = vld [vmem:[%s13846_s23 + $0x20] sm:$0xf] }
  0x48   : > { %v893_v25 = vor.u32 %v892_v5, %v889_v2  ;;  %v676_v27 = vshll.u32 %v590_v9, 16  ;;  %v901_v28 = vshrl.u32 %v14075_v16, 16  ;;  %v591_v29 = vld [vmem:[%s13846_s23 + $0x34] sm:$0x1]  ;;  %v592_v30 = vld [vmem:[%s13846_s23 + $0x3c] sm:$0x1]  ;;  %v673_v31 = vor.u32 %v672_v15, %v669_v13 }
  0x49   : > { %v659_v26 = vor.u32 %v658_v11, %v655_v10  ;;  %v904_v32 = vshll.u32 %v14075_v16, 16  ;;  %v915_v33 = vshrl.u32 %v14082_v24, 16  ;;  %v918_v34 = vshll.u32 %v14082_v24, 16  ;;  %v14103_v1 = vld [vmem:[%s13846_s23 + $0x28] sm:$0xf] }
  0x4a   : > { %12598 = vmatpush3.bf16.msra.mxu1 %v13300_v18  ;;  %v681_v18 = vshrl.u32 %v14068_v3, 16  ;;  %v686_v36 = vrot.slane %v684_v20, 5  ;;  %v697_v37 = vrot.slane %v695_v21, 4  ;;  %v700_v39 = vrot.slane %v698_v22, 5  ;;  %v14106_v9 = vld [vmem:[%s13846_s23 + $0xc] sm:$0x1] }
  0x4b   : > { %v690_v41 = vshll.u32 %v591_v29, 16  ;;  %v704_v44 = vshll.u32 %v592_v30, 16  ;;  %v14090_v45 = vrot.slane %v879_v23, 4  ;;  %v14092_v46 = vrot.slane %v893_v25, 4  ;;  %v14109_v10 = vld [vmem:[%s13846_s23 + $0x14] sm:$0x1] }
  0x4c   : > { %v683_v35 = vrot.slane %v681_v18, 4  ;;  %v664_v48 = vrot.slane %v662_v12, 5  ;;  %v678_v49 = vrot.slane %v676_v27, 5  ;;  %v660_v50 = vrot.slane %v659_v26, 4  ;;  %v14112_v11 = vld [vmem:[%s13846_s23 + $0x30] sm:$0xf] }
  0x4d   : > { %v674_v55 = vrot.slane %v673_v31, 4  ;;  %v14094_v56 = vrot.slane %v901_v28, 4  ;;  %v14096_v57 = vrot.slane %v904_v32, 5  ;;  %v14098_v60 = vrot.slane %v915_v33, 4 }
  0x4e   : > { %v14100_v61 = vrot.slane %v918_v34, 5  ;;  %v687_v62 = vor.u32 %v686_v36, %v683_v35  ;;  %v701_v0 = vor.u32 %v700_v39, %v697_v37  ;;  %v692_v2 = vrot.slane %v690_v41, 5  ;;  %v13311_v37 = vld [vmem:[%s19634_s2 + $0x118] sm:$0xff]  }
  0x4f   : > { %v706_v5 = vrot.slane %v704_v44, 5  ;;  %v929_v12 = vshrl.u32 %v14103_v1, 16  ;;  %v932_v13 = vshll.u32 %v14103_v1, 16  ;;  %v943_v20 = vshrl.u32 %v14112_v11, 16 }
  0x50   : > { %v688_v15 = vrot.slane %v687_v62, 4  ;;  %v702_v18 = vrot.slane %v701_v0, 4  ;;  %v946_v21 = vshll.u32 %v14112_v11, 16  ;;  %v882_v22 = vshll.u32 %v14106_v9, 16 }
  0x51   : > { %v896_v23 = vshll.u32 %v14109_v10, 16  ;;  %v609_v25 = vsel %vm13904_vm2, %v14049_v52, %v14030_v38  ;;  %v623_v26 = vsel %vm13904_vm2, %v14051_v53, %v14032_v40  ;;  %v637_v28 = vsel %vm13904_vm2, %v14058_v58, %v14053_v54  ;;  %v13306_v40 = vld [vmem:[%s19634_s2 + $0x108] sm:$0xff]  }
  0x52   : > { %v11657_v27 = vcombine.low %v609_v25, %v623_v26  ;;  %v651_v29 = vsel %vm13904_vm2, %v14065_v63, %v14060_v59  ;;  %v11649_v52 = vcombine.low %v13992_v6, %v13995_v7  ;;  %v665_v59 = vsel %vm13904_vm2, %v660_v50, %v664_v48  ;;  %v13309_v6 = vld [vmem:[%s19634_s2 + $0x110] sm:$0xff]  }
  0x53   : > { %v11658_v31 = vcombine.low %v637_v28, %v651_v29  ;;  %v679_v63 = vsel %vm13904_vm2, %v674_v55, %v678_v49  ;;  %v11650_v7 = vcombine.low %v14007_v14, %v14012_v17  ;;  %v11673_v14 = vcombine.low %v14035_v42, %v14038_v43  ;;  %v11643_v17 = vld [vmem:[%s13846_s23 + $0x1c] sm:$0x1]  ;;  %v13302_v55 = vld [vmem:[%s13846_s23 + $0xd8] ss:$8 sps:$4 sm:$0xff]  }
  0x54   : > { %v11659_v35 = vcombine.low %v665_v59, %v679_v63  ;;  %v693_v48 = vsel %vm13904_vm2, %v688_v15, %v692_v2  ;;  %v707_v49 = vsel %vm13904_vm2, %v702_v18, %v706_v5  ;;  %v11651_v62 = vcombine.low %v14042_v47, %v14047_v51  ;;  %v14178_v28 = vld [vmem:[%s13846_s23 + $0x40] sm:$0xf] }
  0x55   : > { %v11660_v42 = vcombine.low %v693_v48, %v707_v49  ;;  %v11674_v2 = vcombine.low %v14075_v16, %v14082_v24  ;;  %v910_v5 = vshll.u32 %v11643_v17, 16  ;;  %v931_v18 = vrot.slane %v929_v12, 4  ;;  %v11648_v17 = vld [vmem:[%s13846_s23 + $0x44] sm:$0x1] }
  0x56   : > { %v934_v25 = vrot.slane %v932_v13, 5  ;;  %v945_v47 = vrot.slane %v943_v20, 4  ;;  %v948_v51 = vrot.slane %v946_v21, 5  ;;  %v907_v16 = vor.u32 %v14096_v57, %v14094_v56  ;;  %v11645_v56 = vld [vmem:[%s13846_s23 + $0x2c] sm:$0x1] }
  0x57   : > { %v884_v12 = vrot.slane %v882_v22, 5  ;;  %v898_v13 = vrot.slane %v896_v23, 5  ;;  %v921_v21 = vor.u32 %v14100_v61, %v14098_v60  ;;  %v11646_v57 = vld [vmem:[%s13846_s23 + $0x34] sm:$0x1]  ;;  %v971_v10 = vshrl.u32 %v14178_v28, 16 }
  0x58   : > { %v974_v23 = vshll.u32 %v14178_v28, 16  ;;  %v935_v60 = vor.u32 %v934_v25, %v931_v18  ;;  %v949_v61 = vor.u32 %v948_v51, %v945_v47 }
  0x59   : > { %v922_v59 = vrot.slane %v921_v21, 4  ;;  %v13678_v21 = vmov 0  }
  0x5a   : > { %1771 = vst.msk [vmem:[#allocation2] sm:$0xf] %vm1770_vm4, %v13678_v21  ;;  %1775 = vst.msk [vmem:[#allocation2 + $0x48] sm:$0xf] %vm1770_vm4, %v13678_v21  ;;  %vm3445_vm4 = vcmask 1042434  }
  0x5b   : > { %1773 = vst.msk [vmem:[#allocation2 + $0x4] sm:$0x1] %vm1772_vm5, %v13678_v21  ;;  %1776 = vst.msk [vmem:[#allocation2 + $0x4c] sm:$0x1] %vm1772_vm5, %v13678_v21  ;;  %vm3448_vm5 = vcmask 1043459  }
  0x5c   : > { %7212 = vst.msk [vmem:[#allocation3] sm:$0xf] %vm7211_vm11, %v13678_v21  ;;  %7213 = vst.msk [vmem:[#allocation3 + $0x4] sm:$0xf] %vm7211_vm11, %v13678_v21 }
  0x5d   : > { %7215 = vst.msk [vmem:[#allocation3 + $0x8] sm:$0x1] %vm7214_vm12, %v13678_v21  ;;  %7219 = vst.msk [vmem:[#allocation3 + $0xd4] sm:$0x1] %vm7214_vm12, %v13678_v21 }
  0x5e   : > { %7217 = vst.msk [vmem:[#allocation3 + $0xcc] sm:$0xf] %vm7211_vm11, %v13678_v21  ;;  %7218 = vst.msk [vmem:[#allocation3 + $0xd0] sm:$0xf] %vm7211_vm11, %v13678_v21 }
  0x98   : > { %v1065_v30 = vpop.permute.xlu0 %1064 }
  0x99   : > { %v1067_v32 = vpop.permute.xlu1 %1066  ;;  %v1191_v38 = vsel %vm1172_vm3, %v11657_v27, %v1065_v30  ;;  %v14175_v27 = vld [vmem:[%s13846_s23 + $0x38] sm:$0xf] }
  0x9a   : > { %1569 = vmatprep.mubr.bf16.mxu0 %v1191_v38  ;;  %v1195_v54 = vsel %vm1172_vm3, %v11658_v31, %v1067_v32  ;;  %v11652_v32 = vcombine.low %v14068_v3, %v14071_v4  ;;  %v957_v9 = vshrl.u32 %v14175_v27, 16  ;;  %v960_v22 = vshll.u32 %v14175_v27, 16  ;;  %v13307_v38 = vld [vmem:[%s13846_s23 + $0xe8] ss:$8 sps:$4 sm:$0xff]  }
  0x9b   : > { %v11675_v3 = vcombine.low %v14103_v1, %v14112_v11  ;;  %v973_v11 = vrot.slane %v971_v10, 4  ;;  %v1783_v10 = vld [vmem:[#allocation2 + $0x8] sm:$0x1] }
  0x9c   : > { %v1025_v53 = vpop.permute.xlu0 %1024  ;;  %v962_v1 = vrot.slane %v960_v22, 5 }
  0x9d   : > { %v1027_v58 = vpop.permute.xlu1 %1026  ;;  %v1175_v33 = vsel %vm1172_vm3, %v11649_v52, %v1025_v53  ;;  %v885_v52 = vsel %vm13904_vm2, %v14090_v45, %v884_v12  ;;  %v938_v53 = vshll.u32 %v11645_v56, 16  ;;  %v1821_v56 = vld [vmem:[#allocation2 + $0x1c] sm:$0x1] }
  0x9e   : > { %1570 = vmatmul.mubr.bf16.vlgmr.msra.gmra.mrb[0].mxu0 %v1175_v33  ;;  %v1179_v39 = vsel %vm1172_vm3, %v11650_v7, %v1027_v58  ;;  %v908_v58 = vrot.slane %v907_v16, 4  ;;  %v912_v33 = vrot.slane %v910_v5, 5  ;;  %v959_v7 = vrot.slane %v957_v9, 4 }
  0x9f   : > { %1577 = vmatprep.mubr.bf16.mxu0 %v1195_v54  ;;  %13029 = vmatpush3.bf16.msra.mxu0 %v14020_v19  ;;  %v11644_v19 = vld [vmem:[%s13846_s23 + $0x24] sm:$0x1]  ;;  %v952_v54 = vshll.u32 %v11646_v57, 16  ;;  %v1822_v22 = vsel %vm14246_vm9, 0, %v1821_v56 }
  0xa0   : > { %v1069_v34 = vpop.permute.xlu0 %1068  ;;  %13030 = vmatprep.subr.bf16.mxu0 %v13306_v40  ;;  %v924_v15 = vshll.u32 %v11644_v19, 16  ;;  %v963_v19 = vor.u32 %v962_v1, %v959_v7  ;;  %v913_v49 = vsel %vm13904_vm2, %v908_v58, %v912_v33  ;;  %1823 = vst [vmem:[#allocation2 + $0x1c] sm:$0x1] %v1822_v22  ;;  %v1780_v33 = vld [vmem:[#allocation2] sm:$0x1]  ;;  %v13327_v22 = vld [vmem:[%s19637_s5 + $0x18] sm:$0xff]  }
  0xa1   : > { %v1029_v36 = vpop.permute.xlu1 %1028  ;;  %v1199_v44 = vsel %vm1172_vm3, %v11659_v35, %v1069_v34  ;;  %v976_v34 = vrot.slane %v974_v23, 5  ;;  %v1815_v23 = vld [vmem:[#allocation2 + $0xc] sm:$0x1]  ;;  %v1795_v1 = vld [vmem:[#allocation2 + $0x28] sm:$0x1] }
  0xa2   : > { %v1183_v26 = vsel %vm1172_vm3, %v11651_v62, %v1029_v36  ;;  %v926_v63 = vrot.slane %v924_v15, 5  ;;  %v964_v25 = vrot.slane %v963_v19, 4 }
  0xa3   : > { %13031 = vmatpush3.bf16.msra.mxu0 %v13306_v40  ;;  %v899_v40 = vsel %vm13904_vm2, %v14092_v46, %v898_v13  ;;  %v936_v46 = vrot.slane %v935_v60, 4  ;;  %v977_v62 = vor.u32 %v976_v34, %v973_v11  ;;  %v1816_v60 = vsel %vm14246_vm9, 0, %v1815_v23  ;;  %v1801_v11 = vld [vmem:[#allocation2 + $0x38] sm:$0x1]  ;;  %v1833_v34 = vld [vmem:[#allocation2 + $0x3c] sm:$0x1] }
  0xa4   : > { %v1071_v41 = vpop.permute.xlu0 %1070  ;;  %13032 = vmatprep.subr.bf16.mxu0 %v13309_v6  ;;  %v11681_v36 = vcombine.low %v885_v52, %v899_v40  ;;  %1817 = vst [vmem:[#allocation2 + $0xc] sm:$0x1] %v1816_v60  ;;  %v1786_v40 = vld [vmem:[#allocation2 + $0x10] sm:$0x1]  ;;  %v13329_v23 = vld [vmem:[%s19637_s5 + $0x60] sm:$0xff]  }
  0xa5   : > { %v1031_v50 = vpop.permute.xlu1 %1030  ;;  %v1203_v24 = vsel %vm1172_vm3, %v11660_v42, %v1071_v41  ;;  %v940_v41 = vrot.slane %v938_v53, 5  ;;  %v1818_v53 = vld [vmem:[#allocation2 + $0x14] sm:$0x1] }
  0xa6   : > { %1578 = vmatmul.mubr.bf16.gmra.mrb[4].mxu0 %v1179_v39  ;;  %v1187_v45 = vsel %vm1172_vm3, %v11652_v32, %v1031_v50  ;;  %v927_v50 = vsel %vm13904_vm2, %v922_v59, %v926_v63  ;;  %v1789_v32 = vld [vmem:[#allocation2 + $0x18] sm:$0x1]  ;;  %v1819_v58 = vsel %vm14246_vm9, 0, %v1818_v53  ;;  %v1807_v59 = vld [vmem:[#allocation2 + $0x48] sm:$0x1] }
  0xa7   : > { %1585 = vmatprep.mubr.bf16.mxu0 %v1199_v44  ;;  %13033 = vmatpush3.bf16.msra.mxu0 %v13309_v6  ;;  %v950_v44 = vrot.slane %v949_v61, 4  ;;  %v11682_v18 = vcombine.low %v913_v49, %v927_v50  ;;  %v1790_v57 = vsel %vm14239_vm7, 0, %v1789_v32  ;;  %v1792_v61 = vld [vmem:[#allocation2 + $0x20] sm:$0x1]  ;;  %1820 = vst [vmem:[#allocation2 + $0x14] sm:$0x1] %v1819_v58 }
  0xa8   : > { %v1153_v0 = vpop.permute.xlu0 %1152  ;;  %13034 = vmatprep.subr.bf16.mxu0 %v13311_v37  ;;  %1791 = vst [vmem:[#allocation2 + $0x18] sm:$0x1] %v1790_v57  ;;  %v1808_v7 = vsel %vm14239_vm7, 0, %v1807_v59  ;;  %v13336_v32 = vld [vmem:[%s19637_s5 + $0x90] sm:$0xff]  }
  0xa9   : > { %v1223_v43 = vsel %vm1172_vm3, %v11673_v14, %v1153_v0  ;;  %v1105_v29 = vpop.permute.xlu1 %1104  ;;  %v954_v14 = vrot.slane %v952_v54, 5  ;;  %v980_v0 = vshll.u32 %v11648_v17, 16  ;;  %v1787_v54 = vsel %vm14239_vm7, 0, %v1786_v40  ;;  %1809 = vst [vmem:[#allocation2 + $0x48] sm:$0x1] %v1808_v7 }
  0xaa   : > { %1634 = vmatprep.mubr.bf16.mxu1 %v1223_v43  ;;  %v1207_v20 = vsel %vm1172_vm3, %v13302_v55, %v1105_v29  ;;  %v13312_v55 = vld [vmem:[%s13846_s23 + $0xf8] ss:$8 sps:$4 sm:$0xff]   ;;  %v11676_v43 = vcombine.low %v14175_v27, %v14178_v28  ;;  %v978_v29 = vrot.slane %v977_v62, 4  ;;  %v13314_v27 = vld [vmem:[%s13846_s23 + $0x108] ss:$8 sps:$4 sm:$0xff]  }
  0xab   : > { %13035 = vmatpush3.bf16.msra.mxu0 %v13311_v37  ;;  %1635 = vmatmul.mubr.bf16.vlgmr.msra.gmra.mrb[0].mxu1 %v1207_v20  ;;  %v11647_v37 = vld [vmem:[%s13846_s23 + $0x3c] sm:$0x1]  ;;  %v955_v5 = vsel %vm13904_vm2, %v950_v44, %v954_v14  ;;  %1788 = vst [vmem:[#allocation2 + $0x10] sm:$0x1] %v1787_v54  ;;  %v1812_v44 = vld [vmem:[#allocation2 + $0x4] sm:$0x1] }
  0xac   : > { %v1155_v30 = vpop.permute.xlu0 %1154  ;;  %v966_v48 = vshll.u32 %v11647_v37, 16  ;;  %v1804_v14 = vld [vmem:[#allocation2 + $0x40] sm:$0x1]  ;;  %v1836_v17 = vld [vmem:[#allocation2 + $0x44] sm:$0x1] }
  0xad   : > { %v1227_v31 = vsel %vm1172_vm3, %v11674_v2, %v1155_v30  ;;  %v1107_v4 = vpop.permute.xlu1 %1106  ;;  %v941_v2 = vsel %vm13904_vm2, %v936_v46, %v940_v41  ;;  %v982_v30 = vrot.slane %v980_v0, 5  ;;  %v1827_v46 = vld [vmem:[#allocation2 + $0x2c] sm:$0x1]  ;;  %v1830_v41 = vld [vmem:[#allocation2 + $0x34] sm:$0x1]  ;;  %v1805_v49 = vsel %vm14239_vm7, 0, %v1804_v14 }
  0xae   : > { %1586 = vmatmul.mubr.bf16.gmra.mrb[8].mxu0 %v1183_v26  ;;  %1642 = vmatprep.mubr.bf16.mxu1 %v1227_v31  ;;  %v1211_v35 = vsel %vm1172_vm3, %v13307_v38, %v1107_v4  ;;  %v968_v26 = vrot.slane %v966_v48, 5  ;;  %v11683_v51 = vcombine.low %v941_v2, %v955_v5  ;;  %v1784_v38 = vsel %vm14239_vm7, 0, %v1783_v10  ;;  %1806 = vst [vmem:[#allocation2 + $0x40] sm:$0x1] %v1805_v49  ;;  %v1839_v62 = vld [vmem:[#allocation2 + $0x4c] sm:$0x1] }
  0xaf   : > { %1593 = vmatprep.mubr.bf16.mxu0 %v1203_v24  ;;  %v983_v24 = vsel %vm13904_vm2, %v978_v29, %v982_v30  ;;  %1785 = vst [vmem:[#allocation2 + $0x8] sm:$0x1] %v1784_v38  ;;  %v1793_v4 = vsel %vm14239_vm7, 0, %v1792_v61  ;;  %v1828_v37 = vsel %vm14246_vm9, 0, %v1827_v46  ;;  %v1831_v48 = vsel %vm14246_vm9, 0, %v1830_v41  ;;  %v13320_v2 = vld [vmem:[%s19637_s5] sm:$0xff]  }
  0xb0   : > { %v1157_v6 = vpop.permute.xlu0 %1156  ;;  %v969_v28 = vsel %vm13904_vm2, %v964_v25, %v968_v26  ;;  %1794 = vst [vmem:[#allocation2 + $0x20] sm:$0x1] %v1793_v4  ;;  %1829 = vst [vmem:[#allocation2 + $0x2c] sm:$0x1] %v1828_v37  ;;  %v1837_v50 = vsel %vm14246_vm9, 0, %v1836_v17  ;;  %v1840_v0 = vsel %vm14246_vm9, 0, %v1839_v62 }
  0xb1   : > { %v1231_v39 = vsel %vm1172_vm3, %v11675_v3, %v1157_v6  ;;  %v1109_v42 = vpop.permute.xlu1 %1108  ;;  %v11684_v13 = vcombine.low %v969_v28, %v983_v24  ;;  %v1824_v3 = vld [vmem:[#allocation2 + $0x24] sm:$0x1]  ;;  %v1781_v6 = vsel %vm14239_vm7, 0, %v1780_v33  ;;  %1832 = vst [vmem:[#allocation2 + $0x34] sm:$0x1] %v1831_v48  ;;  %v13321_v5 = vld [vmem:[%s19637_s5 + $0x48] sm:$0xff]  }
  0xb2   : > { %v1215_v47 = vsel %vm1172_vm3, %v13312_v55, %v1109_v42  ;;  %v1825_v52 = vsel %vm14246_vm9, 0, %v1824_v3  ;;  %1782 = vst [vmem:[#allocation2] sm:$0x1] %v1781_v6  ;;  %v1813_v55 = vsel %vm14246_vm9, 0, %v1812_v44  ;;  %1838 = vst [vmem:[#allocation2 + $0x44] sm:$0x1] %v1837_v50 }
  0xb3   : > { %1643 = vmatmul.mubr.bf16.gmra.mrb[4].mxu1 %v1211_v35  ;;  %1826 = vst [vmem:[#allocation2 + $0x24] sm:$0x1] %v1825_v52  ;;  %v1796_v35 = vsel %vm14239_vm7, 0, %v1795_v1  ;;  %1814 = vst [vmem:[#allocation2 + $0x4] sm:$0x1] %v1813_v55  ;;  %v13326_v26 = vld [vmem:[%s19637_s5 + $0xc0] sm:$0xff]  }
  0xb4   : > { %1650 = vmatprep.mubr.bf16.mxu1 %v1231_v39  ;;  %v1159_v15 = vpop.permute.xlu0 %1158  ;;  %1797 = vst [vmem:[#allocation2 + $0x28] sm:$0x1] %v1796_v35  ;;  %v1798_v39 = vld [vmem:[#allocation2 + $0x30] sm:$0x1]  ;;  %1841 = vst [vmem:[#allocation2 + $0x4c] sm:$0x1] %v1840_v0  ;;  %12671 = vmatprep.subr.bf16.mxu0 %v13326_v26 }
  0xb5   : > { %v1235_v16 = vsel %vm1172_vm3, %v11676_v43, %v1159_v15  ;;  %v1111_v12 = vpop.permute.xlu1 %1110  ;;  %v1799_v19 = vsel %vm14239_vm7, 0, %v1798_v39  ;;  %v13319_v43 = vld [vmem:[%s19637_s5 + $0x40] sm:$0xff]   ;;  %v13330_v30 = vld [vmem:[%s19637_s5 + $0xc8] sm:$0xff]   ;;  %v13334_v24 = vld [vmem:[%s19637_s5 + $0xd0] sm:$0xff]  }
  0xb6   : > { %1594 = vmatmul.mubr.bf16.gmra.mrb[12].mxu0 %v1187_v45  ;;  %v1219_v20 = vsel %vm1172_vm3, %v13314_v27, %v1111_v12  ;;  %v1802_v45 = vsel %vm14239_vm7, 0, %v1801_v11  ;;  %1800 = vst [vmem:[#allocation2 + $0x30] sm:$0x1] %v1799_v19  ;;  %12631 = vmatprep.subr.bf16.mxu1 %v13319_v43  ;;  %v13328_v29 = vld [vmem:[%s19637_s5 + $0x80] sm:$0xff]   ;;  %v13323_v27 = vld [vmem:[%s19637_s5 + $0x50] sm:$0xff]   ;;  %v13332_v28 = vld [vmem:[%s19637_s5 + $0x88] sm:$0xff]  }
  0xb7   : > { %13036 = vmatprep.mubr.msk.bf16.mxu0 %vm1172_vm3, %v11681_v36  ;;  %v1834_v36 = vsel %vm14246_vm9, 0, %v1833_v34  ;;  %1803 = vst [vmem:[#allocation2 + $0x38] sm:$0x1] %v1802_v45  ;;  %12632 = vmatpush3.bf16.msra.mxu1 %v13320_v2  ;;  %v13324_v12 = vld [vmem:[%s19637_s5 + $0x10] sm:$0xff]   ;;  %v13331_v38 = vld [vmem:[%s19637_s5 + $0x20] sm:$0xff]   ;;  %v13333_v3 = vld [vmem:[%s19637_s5 + $0x68] sm:$0xff]  }
  0xb8   : > { %1835 = vst [vmem:[#allocation2 + $0x3c] sm:$0x1] %v1834_v36  ;;  %12633 = vmatprep.subr.bf16.mxu1 %v13321_v5  ;;  %v13335_v6 = vld [vmem:[%s19637_s5 + $0x28] sm:$0xff]   ;;  %v14366_v26 = vld [vmem:[%s19636_s4] ss:$0 sm:$0xff]  ;;  %vm3454_vm9 = vcmask 1045509  }
  0xb9   : > { %v1997_v36 = vld [vmem:[#allocation2] sm:$0xf] }
  0xba   : > { %v2014_v48 = vshrl.u32 %v1997_v36, 16  ;;  %v2017_v49 = vshll.u32 %v1997_v36, 16 }
  0xbb   : > { %1651 = vmatmul.mubr.bf16.gmra.mrb[8].mxu1 %v1215_v47 }
  0xbc   : > { %1658 = vmatprep.mubr.bf16.mxu1 %v1235_v16  ;;  %v2019_v43 = vrot.slane %v2017_v49, 5  ;;  %v14395_v49 = vld [vmem:[#allocation2 + $0x4c] sm:$0x1] }
  0xbd   : > { %19763 = vst [vmem:[#allocation13_spill] sm:$0xff] %v14395_v49 }
  0xbe   : > { %13037 = vmatmul.mubr.msk.bf16.vlgmr.msra.gmra.mrb[16].mxu0 %vm1172_vm3, %v11682_v18 }
  0xbf   : > { %13040 = vmatprep.mubr.msk.bf16.mxu0 %vm1172_vm3, %v11683_v51  ;;  %v13322_v51 = vld [vmem:[%s19637_s5 + $0x8] sm:$0xff]   ;;  %12672 = vmatpush3.bf16.msra.mxu0 %v13328_v29 }
  0xc0   : > { %12673 = vmatprep.subr.bf16.mxu0 %v13330_v30  ;;  %12634 = vmatpush3.bf16.msra.mxu1 %v13322_v51 }
  0xc1   : > { %12635 = vmatprep.subr.bf16.mxu1 %v13323_v27  ;;  %v14368_v27 = vld [vmem:[#allocation2 + $0x4] sm:$0x1] }
  0xc3   : > { %1659 = vmatmul.mubr.bf16.gmra.mrb[12].mxu1 %v1219_v20  ;;  %v13325_v20 = vld [vmem:[%s19637_s5 + $0x58] sm:$0xff]   ;;  %12674 = vmatpush3.bf16.msra.mxu0 %v13332_v28  ;;  %v2376_v28 = vld [vmem:[#allocation2 + $0x48] sm:$0xf] }
  0xc4   : > { %12675 = vmatprep.subr.bf16.mxu0 %v13334_v24  ;;  %12636 = vmatpush3.bf16.msra.mxu1 %v13324_v12 }
  0xc5   : > { %12637 = vmatprep.subr.bf16.mxu1 %v13325_v20 }
  0xc6   : > { %13041 = vmatmul.mubr.msk.bf16.gmra.mrb[20].mxu0 %vm1172_vm3, %v11684_v13 }
  0xc7   : > { %12676 = vmatpush3.bf16.msra.mxu0 %v13336_v32  ;;  %v2023_v32 = vshll.u32 %v14368_v27, 16 }
  0xc8   : > { %12638 = vmatpush3.bf16.msra.mxu1 %v13327_v22 }
  0xc9   : > { %12639 = vmatprep.subr.bf16.mxu1 %v13329_v23 }
  0xcc   : > { %12640 = vmatpush3.bf16.msra.mxu1 %v13331_v38  ;;  %v2484_v38 = vshrl.u32 %v2376_v28, 16 }
  0xcd   : > { %12641 = vmatprep.subr.bf16.mxu1 %v13333_v3 }
  0xd0   : > { %12642 = vmatpush3.bf16.msra.mxu1 %v13335_v6 }
 0x171   : > { %v12559_v42 = vpop.f32.mrb[0].mxu0 }
 0x172   : > { %v12560_v15 = vpop.f32.mrb[1].mxu0 }
 0x173   : > { %v12561_v18 = vadd.f32 %v12560_v15, %v12559_v42  ;;  %v12562_v25 = vpop.f32.mrb[2].mxu0  ;;  %v2016_v42 = vrot.slane %v2014_v48, 4  ;;  %v14361_v15 = vld [vmem:[%s19635_s3] ss:$0 sm:$0xff] }
 0x174   : > { %v12563_v47 = vpop.f32.mrb[3].mxu0 }
 0x175   : > { %v12564_v16 = vadd.f32 %v12563_v47, %v12562_v25 }
 0x179   : > { %v12565_v13 = vpop.f32.mrb[4].mxu0 }
 0x17a   : > { %v12566_v21 = vpop.f32.mrb[5].mxu0 }
 0x17b   : > { %v12567_v56 = vadd.f32 %v12566_v21, %v12565_v13  ;;  %v12568_v57 = vpop.f32.mrb[6].mxu0  ;;  %v2020_v21 = vor.u32 %v2019_v43, %v2016_v42 }
 0x17c   : > { %v12569_v9 = vpop.f32.mrb[7].mxu0 }
 0x17d   : > { %v12570_v10 = vadd.f32 %v12569_v9, %v12568_v57 }
 0x17e   : > { %v12599_v60 = vpop.f32.mrb[0].mxu1 }
 0x17f   : > { %v12600_v4 = vpop.f32.mrb[1].mxu1 }
 0x180   : > { %v12601_v40 = vadd.f32 %v12600_v4, %v12599_v60  ;;  %v12602_v53 = vpop.f32.mrb[2].mxu1  ;;  %v2487_v60 = vshll.u32 %v2376_v28, 16 }
 0x181   : > { %v12571_v61 = vpop.f32.mrb[8].mxu0  ;;  %v12603_v33 = vpop.f32.mrb[3].mxu1 }
 0x182   : > { %v12572_v52 = vpop.f32.mrb[9].mxu0  ;;  %v12604_v7 = vadd.f32 %v12603_v33, %v12602_v53  ;;  %v1637_v11 = vadd.f32 %v12601_v40, %v12561_v18 }
 0x183   : > { %v12573_v54 = vadd.f32 %v12572_v52, %v12571_v61  ;;  %v12574_v58 = vpop.f32.mrb[10].mxu0  ;;  %v14375_v61 = vld [vmem:[#allocation2] sm:$0xe] }
 0x184   : > { %v12575_v59 = vpop.f32.mrb[11].mxu0  ;;  %v1640_v34 = vadd.f32 %v12604_v7, %v12564_v16 }
 0x185   : > { %v12576_v1 = vadd.f32 %v12575_v59, %v12574_v58  ;;  %v14382_v58 = vrot.slane %v2020_v21, 4 }
 0x186   : > { %v12605_v35 = vpop.f32.mrb[4].mxu1 }
 0x187   : > { %v12606_v46 = vpop.f32.mrb[5].mxu1 }
 0x188   : > { %v12607_v39 = vadd.f32 %v12606_v46, %v12605_v35  ;;  %v12608_v41 = vpop.f32.mrb[6].mxu1  ;;  %v14389_v46 = vrot.slane %v2484_v38, 4 }
 0x189   : > { %v12577_v45 = vpop.f32.mrb[12].mxu0  ;;  %v12609_v17 = vpop.f32.mrb[7].mxu1 }
 0x18a   : > { %v12578_v37 = vpop.f32.mrb[13].mxu0  ;;  %v12610_v50 = vadd.f32 %v12609_v17, %v12608_v41  ;;  %v1645_v62 = vadd.f32 %v12607_v39, %v12567_v56 }
 0x18b   : > { %v14354_v44 = vadd.f32 %v12578_v37, %v12577_v45  ;;  %v12580_v14 = vpop.f32.mrb[14].mxu0  ;;  %v14391_v37 = vrot.slane %v2487_v60, 5  ;;  %v1967_v60 = vld [vmem:[#allocation2 + $0x20] sm:$0xf] }
 0x18c   : > { %v12581_v19 = vpop.f32.mrb[15].mxu0  ;;  %v1648_v0 = vadd.f32 %v12610_v50, %v12570_v10 }
 0x18d   : > { %v14356_v55 = vadd.f32 %v12581_v19, %v12580_v14 }
 0x18e   : > { %v12611_v2 = vpop.f32.mrb[8].mxu1 }
 0x18f   : > { %v12612_v18 = vpop.f32.mrb[9].mxu1 }
 0x190   : > { %v12613_v51 = vadd.f32 %v12612_v18, %v12611_v2  ;;  %v12614_v29 = vpop.f32.mrb[10].mxu1  ;;  %v2493_v2 = vshll.u32 %v14395_v49, 16 }
 0x191   : > { %v13038_v5 = vpop.f32.mrb[16].mxu0  ;;  %v12615_v24 = vpop.f32.mrb[11].mxu1 }
 0x192   : > { %v1710_v25 = vadd.f32 %v13038_v5, %v1645_v62  ;;  %v1701_v47 = vpop.f32.mrb[17].mxu0  ;;  %v12616_v56 = vadd.f32 %v12615_v24, %v12614_v29  ;;  %v1653_v22 = vadd.f32 %v12613_v51, %v12573_v54  ;;  %v14384_v54 = vrot.slane %v2023_v32, 5  ;;  %v1961_v29 = vld [vmem:[#allocation2 + $0x18] sm:$0xf]  ;;  %v1964_v24 = vld [vmem:[#allocation2 + $0x1c] sm:$0x1] }
 0x193   : > { %v1702_v30 = vadd.f32 %v1701_v47, %v1637_v11  ;;  %v13039_v16 = vpop.f32.mrb[18].mxu0  ;;  %v11735_v11 = vrot.slane %v14375_v61, 9 }
 0x194   : > { %v1741_v12 = vmul.f32 %v14361_v15, %v1710_v25  ;;  %v1713_v13 = vadd.f32 %v13039_v16, %v1648_v0  ;;  %v1704_v20 = vpop.f32.mrb[19].mxu0  ;;  %v14379_v52 = vadd.f32 %v12616_v56, %v12576_v1 }
 0x195   : > { %v1739_v57 = vmul.f32 %v14361_v15, %v1702_v30  ;;  %v1705_v9 = vadd.f32 %v1704_v20, %v1640_v34  ;;  %v2154_v34 = vrot.slane %v14368_v27, 5 }
 0x196   : > { %v1756_v10 = vadd.f32 %v14366_v26, %v1741_v12  ;;  %v1742_v23 = vmul.f32 %v14361_v15, %v1713_v13  ;;  %v12617_v6 = vpop.f32.mrb[12].mxu1 }
 0x197   : > { %v1754_v3 = vadd.f32 %v14366_v26, %v1739_v57  ;;  %v1740_v4 = vmul.f32 %v14361_v15, %v1705_v9  ;;  %v12618_v1 = vpop.f32.mrb[13].mxu1  ;;  %v1949_v57 = vld [vmem:[#allocation2 + $0x8] sm:$0xf]  ;;  %v1952_v9 = vld [vmem:[#allocation2 + $0xc] sm:$0x1] }
 0x198   : > { %v1764_v40 = vmax.f32 %v1756_v10, 0.0  ;;  %v1757_v53 = vadd.f32 %v14366_v26, %v1742_v23  ;;  %v12619_v14 = vadd.f32 %v12618_v1, %v12617_v6  ;;  %v12620_v17 = vpop.f32.mrb[14].mxu1  ;;  %v1955_v6 = vld [vmem:[#allocation2 + $0x10] sm:$0xf] }
 0x199   : > { %v1762_v33 = vmax.f32 %v1754_v3, 0.0  ;;  %v1755_v59 = vadd.f32 %v14366_v26, %v1740_v4  ;;  %v13042_v7 = vpop.f32.mrb[20].mxu0  ;;  %v12621_v42 = vpop.f32.mrb[15].mxu1  ;;  %v1970_v3 = vld [vmem:[#allocation2 + $0x24] sm:$0x1] }
 0x19a   : > { %v12504_v35 = vpack.c.bf16 %v1764_v40, %v1764_v40  ;;  %v1765_v45 = vmax.f32 %v1757_v53, 0.0  ;;  %v1717_v36 = vpop.f32.mrb[21].mxu0  ;;  %v12622_v47 = vadd.f32 %v12621_v42, %v12620_v17  ;;  %v1661_v28 = vadd.f32 %v12619_v14, %v14354_v44 }
 0x19b   : > { %v12502_v39 = vpack.c.bf16 %v1762_v33, %v1762_v33  ;;  %v1763_v41 = vmax.f32 %v1755_v59, 0.0  ;;  %v1718_v19 = vadd.f32 %v1717_v36, %v1653_v22  ;;  %v14393_v48 = vpop.f32.mrb[22].mxu0 }
 0x19c   : > { %v1883_v50 = vshrl.u32 %v12504_v35, 16  ;;  %v1886_v62 = vshll.u32 %v12504_v35, 16  ;;  %v12505_v0 = vpack.c.bf16 %v1765_v45, %v1765_v45  ;;  %v1720_v43 = vpop.f32.mrb[23].mxu0  ;;  %v1726_v10 = vadd.f32 %v13042_v7, %v1661_v28  ;;  %v1958_v35 = vld [vmem:[#allocation2 + $0x14] sm:$0x1] }
 0x19d   : > { %v1867_v5 = vshrl.u32 %v12502_v39, 16  ;;  %v1870_v18 = vshll.u32 %v12502_v39, 16  ;;  %v12503_v25 = vpack.c.bf16 %v1763_v41, %v1763_v41  ;;  %v1743_v21 = vmul.f32 %v14361_v15, %v1718_v19  ;;  %v13337_v19 = vld [vmem:[%s19637_s5 + $0x70] sm:$0xff]  }
 0x19e   : > { %v1885_v51 = vrot.slane %v1883_v50, 7  ;;  %v1891_v30 = vshrl.u32 %v12505_v0, 16  ;;  %v1894_v16 = vshll.u32 %v12505_v0, 16  ;;  %v1745_v14 = vmul.f32 %v14361_v15, %v1726_v10  ;;  %v13338_v50 = vld [vmem:[%s19637_s5 + $0xd8] sm:$0xff]   ;;  %12643 = vmatprep.subr.bf16.mxu1 %v13337_v19 }
 0x19f   : > { %v1869_v12 = vrot.slane %v1867_v5, 7  ;;  %v1875_v13 = vshrl.u32 %v12503_v25, 16  ;;  %v1878_v20 = vshll.u32 %v12503_v25, 16  ;;  %v1758_v40 = vadd.f32 %v14366_v26, %v1743_v21  ;;  %12677 = vmatprep.subr.bf16.mxu0 %v13338_v50 }
 0x1a0   : > { %v1888_v32 = vor.u32 %v1886_v62, %v1885_v51  ;;  %v1889_v56 = vrot.slane %v1885_v51, 4  ;;  %v1893_v22 = vrot.slane %v1891_v30, 7  ;;  %v13339_v62 = vld [vmem:[%s19637_s5 + $0x30] sm:$0xff]   ;;  %v1664_v5 = vadd.f32 %v12622_v47, %v14356_v55  ;;  %v13340_v55 = vld [vmem:[%s19637_s5 + $0x98] sm:$0xff]  }
 0x1a1   : > { %v1872_v23 = vor.u32 %v1870_v18, %v1869_v12  ;;  %v1873_v38 = vrot.slane %v1869_v12, 4  ;;  %v1877_v4 = vrot.slane %v1875_v13, 7  ;;  %v1766_v17 = vmax.f32 %v1758_v40, 0.0  ;;  %12644 = vmatpush3.bf16.msra.mxu1 %v13339_v62  ;;  %12678 = vmatpush3.bf16.msra.mxu0 %v13340_v55 }
 0x1a2   : > { %v1962_v44 = vsel %vm14266_vm10, %v1888_v32, %v1961_v29  ;;  %v1965_v53 = vsel %vm14239_vm7, %v1889_v56, %v1964_v24  ;;  %v1896_v33 = vor.u32 %v1894_v16, %v1893_v22  ;;  %v1897_v59 = vrot.slane %v1893_v22, 4 }
 0x1a3   : > { %1963 = vst [vmem:[#allocation2 + $0x18] sm:$0xf] %v1962_v44  ;;  %1966 = vst [vmem:[#allocation2 + $0x1c] sm:$0x1] %v1965_v53  ;;  %v1950_v7 = vsel %vm14266_vm10, %v1872_v23, %v1949_v57  ;;  %v1953_v45 = vsel %vm14239_vm7, %v1873_v38, %v1952_v9  ;;  %v1880_v1 = vor.u32 %v1878_v20, %v1877_v4  ;;  %v1881_v36 = vrot.slane %v1877_v4, 4  ;;  %v13343_v53 = vld [vmem:[%s19637_s5 + $0x38] sm:$0xff]  }
 0x1a4   : > { %1951 = vst [vmem:[#allocation2 + $0x8] sm:$0xf] %v1950_v7  ;;  %1954 = vst [vmem:[#allocation2 + $0xc] sm:$0x1] %v1953_v45  ;;  %v1968_v39 = vsel %vm14266_vm10, %v1896_v33, %v1967_v60  ;;  %v1971_v41 = vsel %vm14239_vm7, %v1897_v59, %v1970_v3  ;;  %v1721_v18 = vadd.f32 %v1720_v43, %v14379_v52  ;;  %v14459_v13 = vrot.slane %v2493_v2, 5  ;;  %v13341_v2 = vld [vmem:[%s19637_s5 + $0x78] sm:$0xff]  }
 0x1a5   : > { %1969 = vst [vmem:[#allocation2 + $0x20] sm:$0xf] %v1968_v39  ;;  %1972 = vst [vmem:[#allocation2 + $0x24] sm:$0x1] %v1971_v41  ;;  %v1956_v0 = vsel %vm14266_vm10, %v1880_v1, %v1955_v6  ;;  %v1959_v42 = vsel %vm14239_vm7, %v1881_v36, %v1958_v35  ;;  %v1760_v51 = vadd.f32 %v14366_v26, %v1745_v14  ;;  %v13342_v60 = vld [vmem:[%s19637_s5 + $0xe0] sm:$0xff]   ;;  %12645 = vmatprep.subr.bf16.mxu1 %v13341_v2 }
 0x1a6   : > { %1957 = vst [vmem:[#allocation2 + $0x10] sm:$0xf] %v1956_v0  ;;  %1960 = vst [vmem:[#allocation2 + $0x14] sm:$0x1] %v1959_v42  ;;  %v12506_v29 = vpack.c.bf16 %v1766_v17, %v1766_v17  ;;  %v2490_v30 = vor.u32 %v14391_v37, %v14389_v46  ;;  %v1729_v52 = vadd.f32 %v14393_v48, %v1664_v5  ;;  %v1973_v37 = vld [vmem:[#allocation2 + $0x28] sm:$0xf]  ;;  %12679 = vmatprep.subr.bf16.mxu0 %v13342_v60 }
 0x1a7   : > { %v1744_v43 = vmul.f32 %v14361_v15, %v1721_v18  ;;  %v1768_v47 = vmax.f32 %v1760_v51, 0.0  ;;  %v2026_v28 = vsel %vm13904_vm2, %v14382_v58, %v14384_v54  ;;  %v14453_v46 = vsel %vm14431_vm15, %v11735_v11, %v2154_v34  ;;  %v1976_v48 = vld [vmem:[#allocation2 + $0x2c] sm:$0x1]  ;;  %v1985_v59 = vld [vmem:[#allocation2 + $0x38] sm:$0xf]  ;;  %12646 = vmatpush3.bf16.msra.mxu1 %v13343_v53  ;;  %v13344_v14 = vld [vmem:[%s19637_s5 + $0xa0] sm:$0xff]  }
 0x1a8   : > { %v1899_v16 = vshrl.u32 %v12506_v29, 16  ;;  %v1746_v24 = vmul.f32 %v14361_v15, %v1729_v52  ;;  %v1902_v61 = vshll.u32 %v12506_v29, 16  ;;  %v14464_v11 = vrot.slane %v2490_v30, 4  ;;  %v1988_v45 = vld [vmem:[#allocation2 + $0x3c] sm:$0x1]  ;;  %12680 = vmatpush3.bf16.msra.mxu0 %v13344_v14 }
 0x1a9   : > { %v1759_v12 = vadd.f32 %v14366_v26, %v1744_v43  ;;  %v12508_v27 = vpack.c.bf16 %v1768_v47, %v1768_v47  ;;  %v14485_v0 = vld [vmem:[#allocation2 + $0x48] sm:$0xe]  ;;  %v1979_v52 = vld [vmem:[#allocation2 + $0x30] sm:$0xf]  ;;  %v1982_v43 = vld [vmem:[#allocation2 + $0x34] sm:$0x1] }
 0x1aa   : > { %v1901_v21 = vrot.slane %v1899_v16, 7  ;;  %v14462_v32 = vld [vmem:[#allocation2 + $0x18] sm:$0xf]  ;;  %v1761_v34 = vadd.f32 %v14366_v26, %v1746_v24  ;;  %19766 = vst [vmem:[#allocation14_spill] sm:$0xff] %v14485_v0 }
 0x1ab   : > { %v1767_v56 = vmax.f32 %v1759_v12, 0.0  ;;  %v2184_v57 = vld [vmem:[#allocation2 + $0x8] sm:$0xf]  ;;  %v2229_v15 = vshrl.u32 %v14462_v32, 16  ;;  %v2232_v9 = vshll.u32 %v14462_v32, 16  ;;  %v1915_v22 = vshrl.u32 %v12508_v27, 16 }
 0x1ac   : > { %v1918_v10 = vshll.u32 %v12508_v27, 16  ;;  %v1904_v23 = vor.u32 %v1902_v61, %v1901_v21  ;;  %v1905_v38 = vrot.slane %v1901_v21, 4  ;;  %v1769_v3 = vmax.f32 %v1761_v34, 0.0  ;;  %v2187_v29 = vld [vmem:[#allocation2 + $0x20] sm:$0xf] }
 0x1ad   : > { %v12507_v26 = vpack.c.bf16 %v1767_v56, %v1767_v56  ;;  %v2185_v4 = vld [vmem:[#allocation2 + $0x10] sm:$0xf]  ;;  %v2201_v40 = vshrl.u32 %v2184_v57, 16  ;;  %v2204_v44 = vshll.u32 %v2184_v57, 16  ;;  %v1917_v33 = vrot.slane %v1915_v22, 7 }
 0x1ae   : > { %v1974_v6 = vsel %vm14266_vm10, %v1904_v23, %v1973_v37  ;;  %v1977_v35 = vsel %vm14239_vm7, %v1905_v38, %v1976_v48  ;;  %v2215_v7 = vshrl.u32 %v2185_v4, 16  ;;  %v12509_v1 = vpack.c.bf16 %v1769_v3, %v1769_v3  ;;  %v1991_v48 = vld [vmem:[#allocation2 + $0x40] sm:$0xf]  ;;  %v1994_v21 = vld [vmem:[#allocation2 + $0x44] sm:$0x1] }
 0x1af   : > { %1975 = vst [vmem:[#allocation2 + $0x28] sm:$0xf] %v1974_v6  ;;  %1978 = vst [vmem:[#allocation2 + $0x2c] sm:$0x1] %v1977_v35  ;;  %v1907_v36 = vshrl.u32 %v12507_v26, 16  ;;  %v1910_v39 = vshll.u32 %v12507_v26, 16  ;;  %v1920_v17 = vor.u32 %v1918_v10, %v1917_v33  ;;  %v11771_v62 = vcombine.low %v2184_v57, %v2185_v4 }
 0x1b0   : > { %v2218_v41 = vshll.u32 %v2185_v4, 16  ;;  %v1921_v19 = vrot.slane %v1917_v33, 4  ;;  %v2217_v50 = vrot.slane %v2215_v7, 4  ;;  %v1923_v42 = vshrl.u32 %v12509_v1, 16  ;;  %v14492_v56 = vld [vmem:[#allocation2 + $0x8] sm:$0xf] }
 0x1b1   : > { %v1926_v5 = vshll.u32 %v12509_v1, 16  ;;  %v1909_v18 = vrot.slane %v1907_v36, 7  ;;  %v1986_v30 = vsel %vm14266_vm10, %v1920_v17, %v1985_v59  ;;  %2625 = vrot.lane.b32.xlu0 %v11771_v62, %s19664_s19  ;;  %v2203_v47 = vrot.slane %v2201_v40, 4  ;;  %19767 = vst [vmem:[#allocation15_spill] sm:$0xff] %v14492_v56  ;;  %v14503_v60 = vld [vmem:[#allocation2 + $0xc] sm:$0x1] }
 0x1b2   : > { %v2220_v51 = vrot.slane %v2218_v41, 5  ;;  %v1989_v55 = vsel %vm14239_vm7, %v1921_v19, %v1988_v45  ;;  %v2206_v16 = vrot.slane %v2204_v44, 5  ;;  %1987 = vst [vmem:[#allocation2 + $0x38] sm:$0xf] %v1986_v30  ;;  %v1925_v37 = vrot.slane %v1923_v42, 7  ;;  %v13346_v7 = vld [vmem:[%s19637_s5 + $0xe8] sm:$0xff]  }
 0x1b3   : > { %1990 = vst [vmem:[#allocation2 + $0x3c] sm:$0x1] %v1989_v55  ;;  %v1912_v24 = vor.u32 %v1910_v39, %v1909_v18  ;;  %v1913_v12 = vrot.slane %v1909_v18, 4  ;;  %v2243_v34 = vshrl.u32 %v2187_v29, 16  ;;  %v14505_v3 = vld [vmem:[#allocation2 + $0x10] sm:$0xf]  ;;  %v11772_v35 = vcombine.low %v14462_v32, %v2187_v29  ;;  %12681 = vmatprep.subr.bf16.mxu0 %v13346_v7 }
 0x1b4   : > { %v2221_v27 = vor.u32 %v2220_v51, %v2217_v50  ;;  %v2207_v61 = vor.u32 %v2206_v16, %v2203_v47  ;;  %v1928_v22 = vor.u32 %v1926_v5, %v1925_v37  ;;  %v1929_v10 = vrot.slane %v1925_v37, 4  ;;  %v14526_v1 = vld [vmem:[#allocation2 + $0x18] sm:$0xf]  ;;  %v14529_v39 = vld [vmem:[#allocation2 + $0x14] sm:$0x1] }
 0x1b5   : > { %v1980_v23 = vsel %vm14266_vm10, %v1912_v24, %v1979_v52  ;;  %v1983_v38 = vsel %vm14239_vm7, %v1913_v12, %v1982_v43  ;;  %v2231_v4 = vrot.slane %v2229_v15, 4  ;;  %v2234_v40 = vrot.slane %v2232_v9, 5  ;;  %2627 = vrot.lane.b32.xlu0 %v11772_v35, %s19664_s19  ;;  %v14532_v50 = vld [vmem:[#allocation2 + $0x1c] sm:$0x1]  ;;  %v13348_v47 = vld [vmem:[%s19637_s5 + $0xf0] sm:$0xff]  }
 0x1b6   : > { %1981 = vst [vmem:[#allocation2 + $0x30] sm:$0xf] %v1980_v23  ;;  %1984 = vst [vmem:[#allocation2 + $0x34] sm:$0x1] %v1983_v38  ;;  %v14507_v26 = vrot.slane %v2221_v27, 4  ;;  %v2245_v44 = vrot.slane %v2243_v34, 4  ;;  %v1992_v33 = vsel %vm14266_vm10, %v1928_v22, %v1991_v48  ;;  %v1995_v59 = vsel %vm14239_vm7, %v1929_v10, %v1994_v21 }
 0x1b7   : > { %v2188_v53 = vld [vmem:[#allocation2 + $0x28] sm:$0xf]  ;;  %v2246_v6 = vshll.u32 %v2187_v29, 16  ;;  %1993 = vst [vmem:[#allocation2 + $0x40] sm:$0xf] %v1992_v33  ;;  %v14521_v15 = vrot.slane %v2207_v61, 4  ;;  %v2235_v14 = vor.u32 %v2234_v40, %v2231_v4 }
 0x1b8   : > { %1996 = vst [vmem:[#allocation2 + $0x44] sm:$0x1] %v1995_v59  ;;  %v2028_v9 = vshrl.u32 %v14492_v56, 16  ;;  %v2031_v45 = vshll.u32 %v14492_v56, 16  ;;  %v2037_v63 = vshll.u32 %v14503_v60, 16  ;;  %v2257_v32 = vshrl.u32 %v2188_v53, 16 }
 0x1b9   : > { %v2248_v31 = vrot.slane %v2246_v6, 5  ;;  %v2260_v36 = vshll.u32 %v2188_v53, 16  ;;  %v2042_v41 = vshrl.u32 %v14505_v3, 16  ;;  %v2045_v62 = vshll.u32 %v14505_v3, 16  ;;  %v13347_v29 = vld [vmem:[%s19637_s5 + $0xa8] sm:$0xff]   ;;  %v13349_v27 = vld [vmem:[%s19637_s5 + $0xb0] sm:$0xff]  }
 0x1ba   : > { %v2030_v17 = vrot.slane %v2028_v9, 4  ;;  %v2033_v19 = vrot.slane %v2031_v45, 5  ;;  %v2259_v5 = vrot.slane %v2257_v32, 4  ;;  %v2039_v55 = vrot.slane %v2037_v63, 5  ;;  %12682 = vmatpush3.bf16.msra.mxu0 %v13347_v29  ;;  %v14548_v10 = vld [vmem:[#allocation2 + $0x20] sm:$0xf] }
 0x1bb   : > { %v2249_v42 = vor.u32 %v2248_v31, %v2245_v44  ;;  %v2262_v18 = vrot.slane %v2260_v36, 5  ;;  %v2044_v51 = vrot.slane %v2042_v41, 4  ;;  %v2047_v52 = vrot.slane %v2045_v62, 5  ;;  %12683 = vmatprep.subr.bf16.mxu0 %v13348_v47  ;;  %v14554_v44 = vld [vmem:[#allocation2 + $0x24] sm:$0x1] }
 0x1bc   : > { %v2034_v30 = vor.u32 %v2033_v19, %v2030_v17  ;;  %v2056_v43 = vshrl.u32 %v14526_v1, 16  ;;  %v2051_v48 = vshll.u32 %v14529_v39, 16  ;;  %v2059_v24 = vshll.u32 %v14526_v1, 16  ;;  %v14569_v31 = vld [vmem:[#allocation2 + $0x10] sm:$0xf] }
 0x1bd   : > { %v2189_v16 = vld [vmem:[#allocation2 + $0x30] sm:$0xf]  ;;  %v2263_v37 = vor.u32 %v2262_v18, %v2259_v5  ;;  %v2065_v12 = vshll.u32 %v14532_v50, 16  ;;  %v14550_v23 = vrot.slane %v2235_v14, 4  ;;  %v14552_v38 = vrot.slane %v2249_v42, 4 }
 0x1be   : > { %v2035_v21 = vrot.slane %v2034_v30, 4  ;;  %v2271_v61 = vshrl.u32 %v2189_v16, 16  ;;  %v2274_v34 = vshll.u32 %v2189_v16, 16  ;;  %v11773_v22 = vcombine.low %v2188_v53, %v2189_v16  ;;  %v14559_v53 = vld [vmem:[#allocation2 + $0x28] sm:$0xf]  ;;  %12684 = vmatpush3.bf16.msra.mxu0 %v13349_v27 }
 0x1bf   : > { %v2048_v4 = vor.u32 %v2047_v52, %v2044_v51  ;;  %v2058_v40 = vrot.slane %v2056_v43, 4  ;;  %v2061_v35 = vrot.slane %v2059_v24, 5  ;;  %v14566_v9 = vrot.slane %v2263_v37, 4  ;;  %v14571_v14 = vld [vmem:[#allocation2 + $0x2c] sm:$0x1] }
 0x1c0   : > { %v2040_v33 = vsel %vm13904_vm2, %v2035_v21, %v2039_v55  ;;  %v2273_v59 = vrot.slane %v2271_v61, 4  ;;  %v2276_v6 = vrot.slane %v2274_v34, 5  ;;  %2629 = vrot.lane.b32.xlu0 %v11773_v22, %s19664_s19  ;;  %v2070_v63 = vshrl.u32 %v14548_v10, 16  ;;  %v14577_v62 = vld [vmem:[#allocation2 + $0x14] sm:$0x1] }
 0x1c1   : > { %v11763_v7 = vcombine.low %v2026_v28, %v2040_v33  ;;  %v2049_v45 = vrot.slane %v2048_v4, 4  ;;  %v2053_v32 = vrot.slane %v2051_v48, 5  ;;  %v2062_v36 = vor.u32 %v2061_v35, %v2058_v40  ;;  %v14583_v52 = vld [vmem:[#allocation2 + $0x18] sm:$0xf]  ;;  %v14592_v21 = vld [vmem:[#allocation2 + $0x1c] sm:$0x1] }
 0x1c2   : > { %v2067_v41 = vrot.slane %v2065_v12, 5  ;;  %v2073_v17 = vshll.u32 %v14548_v10, 16  ;;  %v2277_v19 = vor.u32 %v2276_v6, %v2273_v59  ;;  %v2072_v58 = vrot.slane %v2070_v63, 4  ;;  %v2190_v33 = vld [vmem:[#allocation2 + $0x38] sm:$0xf] }
 0x1c3   : > { %2585 = vrot.lane.b32.xlu1 %v11763_v7, %s19664_s19  ;;  %v2084_v54 = vshrl.u32 %v14559_v53, 16  ;;  %v2087_v28 = vshll.u32 %v14559_v53, 16  ;;  %v2054_v42 = vsel %vm13904_vm2, %v2049_v45, %v2053_v32  ;;  %v2063_v5 = vrot.slane %v2062_v36, 4  ;;  %v2191_v45 = vld [vmem:[#allocation2 + $0x40] sm:$0xf] }
 0x1c4   : > { %v2075_v18 = vrot.slane %v2073_v17, 5  ;;  %v2079_v51 = vshll.u32 %v14554_v44, 16  ;;  %v2093_v55 = vshll.u32 %v14571_v14, 16  ;;  %v2386_v43 = vshrl.u32 %v14569_v31, 16 }
 0x1c5   : > { %v2086_v29 = vrot.slane %v2084_v54, 4  ;;  %v2089_v30 = vrot.slane %v2087_v28, 5  ;;  %v2068_v47 = vsel %vm13904_vm2, %v2063_v5, %v2067_v41  ;;  %v2389_v37 = vshll.u32 %v14569_v31, 16  ;;  %v14603_v28 = vld [vmem:[#allocation2 + $0xc] sm:$0x1]  ;;  %v13351_v5 = vld [vmem:[%s19637_s5 + $0xf8] sm:$0xff]  }
 0x1c6   : > { %v2076_v16 = vor.u32 %v2075_v18, %v2072_v58  ;;  %v2395_v48 = vshll.u32 %v14577_v62, 16  ;;  %v14590_v24 = vrot.slane %v2277_v19, 4  ;;  %v11764_v12 = vcombine.low %v2054_v42, %v2068_v47  ;;  %v14605_v42 = vld [vmem:[#allocation2 + $0x14] sm:$0x1]  ;;  %12685 = vmatprep.subr.bf16.mxu0 %v13351_v5 }
 0x1c7   : > { %v2090_v27 = vor.u32 %v2089_v30, %v2086_v29  ;;  %v2388_v61 = vrot.slane %v2386_v43, 4  ;;  %v2081_v22 = vrot.slane %v2079_v51, 5  ;;  %v2391_v4 = vrot.slane %v2389_v37, 5  ;;  %v13353_v43 = vld [vmem:[%s19637_s5 + $0xb8] sm:$0xff]  }
 0x1c8   : > { %v2077_v34 = vrot.slane %v2076_v16, 4  ;;  %v2400_v40 = vshrl.u32 %v14583_v52, 16  ;;  %2587 = vrot.lane.b32.xlu1 %v11764_v12, %s19664_s19  ;;  %v2095_v6 = vrot.slane %v2093_v55, 5  ;;  %v2397_v35 = vrot.slane %v2395_v48, 5  ;;  %v2312_v55 = vld [vmem:[#allocation2 + $0x8] sm:$0xe]  ;;  %12686 = vmatpush3.bf16.msra.mxu0 %v13353_v43 }
 0x1c9   : > { %v2091_v59 = vrot.slane %v2090_v27, 4  ;;  %v2403_v7 = vshll.u32 %v14583_v52, 16  ;;  %v2392_v63 = vor.u32 %v2391_v4, %v2388_v61  ;;  %v2409_v36 = vshll.u32 %v14592_v21, 16  ;;  %v2313_v12 = vld [vmem:[#allocation2 + $0x10] sm:$0xe] }
 0x1ca   : > { %v2402_v32 = vrot.slane %v2400_v40, 4  ;;  %v2082_v17 = vsel %vm13904_vm2, %v2077_v34, %v2081_v22  ;;  %v2285_v54 = vshrl.u32 %v2190_v33, 16  ;;  %v2288_v29 = vshll.u32 %v2190_v33, 16  ;;  %v14615_v4 = vld [vmem:[#allocation2 + $0x30] sm:$0xf] }
 0x1cb   : > { %v2096_v19 = vsel %vm13904_vm2, %v2091_v59, %v2095_v6  ;;  %v2405_v58 = vrot.slane %v2403_v7, 5  ;;  %v2393_v51 = vrot.slane %v2392_v63, 4  ;;  %v2299_v30 = vshrl.u32 %v2191_v45, 16 }
 0x1cc   : > { %v11765_v18 = vcombine.low %v2082_v17, %v2096_v19  ;;  %v2287_v37 = vrot.slane %v2285_v54, 4  ;;  %v2302_v48 = vshll.u32 %v2191_v45, 16  ;;  %v2411_v27 = vrot.slane %v2409_v36, 5  ;;  %v14625_v36 = vld [vmem:[#allocation2 + $0x34] sm:$0x1] }
 0x1cd   : > { %v2406_v47 = vor.u32 %v2405_v58, %v2402_v32  ;;  %v2290_v61 = vrot.slane %v2288_v29, 5  ;;  %v2301_v34 = vrot.slane %v2299_v30, 4  ;;  %v11774_v22 = vcombine.low %v2190_v33, %v2191_v45  ;;  %v14621_v58 = vld [vmem:[#allocation2 + $0x38] sm:$0xf]  ;;  %v14627_v54 = vld [vmem:[#allocation2 + $0x3c] sm:$0x1] }
 0x1ce   : > { %2589 = vrot.lane.b32.xlu0 %v11765_v18, %s19664_s19  ;;  %v2398_v40 = vsel %vm13904_vm2, %v2393_v51, %v2397_v35  ;;  %v2304_v6 = vrot.slane %v2302_v48, 5  ;;  %v11743_v7 = vrot.slane %v2312_v55, 9  ;;  %v2338_v32 = vrot.slane %v14603_v28, 5  ;;  %v14636_v55 = vld [vmem:[#allocation2 + $0x20] sm:$0xf] }
 0x1cf   : > { %v2407_v59 = vrot.slane %v2406_v47, 4  ;;  %v2291_v63 = vor.u32 %v2290_v61, %v2287_v37  ;;  %v11744_v17 = vrot.slane %v2313_v12, 9  ;;  %v2342_v19 = vrot.slane %v14605_v42, 5  ;;  %v2379_v12 = vld [vmem:[#allocation2 + $0x24] sm:$0x1] }
 0x1d0   : > { %v2305_v45 = vor.u32 %v2304_v6, %v2301_v34  ;;  %v2098_v35 = vshrl.u32 %v14615_v4, 16  ;;  %v2101_v5 = vshll.u32 %v14615_v4, 16  ;;  %v2339_v43 = vsel %vm14431_vm15, %v11743_v7, %v2338_v32  ;;  %v2380_v7 = vld [vmem:[#allocation2 + $0x2c] sm:$0x1] }
 0x1d1   : > { %v2412_v33 = vsel %vm13904_vm2, %v2407_v59, %v2411_v27  ;;  %v14631_v51 = vrot.slane %v2291_v63, 4  ;;  %v2343_v47 = vsel %vm14431_vm15, %v11744_v17, %v2342_v19  ;;  %v2107_v27 = vshll.u32 %v14625_v36, 16 }
 0x1d2   : > { %v11787_v18 = vcombine.low %v2398_v40, %v2412_v33  ;;  %2631 = vrot.lane.b32.xlu0 %v11774_v22, %s19664_s19  ;;  %v2100_v37 = vrot.slane %v2098_v35, 4  ;;  %v2103_v48 = vrot.slane %v2101_v5, 5  ;;  %v2112_v61 = vshrl.u32 %v14621_v58, 16  ;;  %v14647_v40 = vld [vmem:[#allocation2 + $0x28] sm:$0xf] }
 0x1d3   : > { %19768 = vst [vmem:[#allocation16_spill] sm:$0xff] %v14631_v51  ;;  %v2115_v34 = vshll.u32 %v14621_v58, 16  ;;  %v2121_v22 = vshll.u32 %v14627_v54, 16  ;;  %v14649_v59 = vrot.slane %v2305_v45, 4  ;;  %v2414_v63 = vshrl.u32 %v14636_v55, 16  ;;  %v14656_v45 = vld [vmem:[%s19637_s5 + $0x100] sm:$0xff]  }
 0x1d4   : > { %2697 = vrot.lane.b32.xlu1 %v11787_v18, %s19664_s19  ;;  %v2104_v6 = vor.u32 %v2103_v48, %v2100_v37  ;;  %v2417_v32 = vshll.u32 %v14636_v55, 16  ;;  %v11779_v17 = vcombine.low %v2339_v43, %v2343_v47  ;;  %v2114_v19 = vrot.slane %v2112_v61, 4  ;;  %v2499_v5 = vld [vmem:[#allocation2 + $0x20] sm:$0xe]  ;;  %19770 = vst [vmem:[#allocation18_spill] sm:$0xff] %v14656_v45  ;;  %13044 = vmatprep.subr.bf16.mxu1 %v14656_v45 }
 0x1d5   : > { %19769 = vst [vmem:[#allocation17_spill] sm:$0xff] %v14649_v59  ;;  %v2117_v33 = vrot.slane %v2115_v34, 5  ;;  %v2423_v35 = vshll.u32 %v2379_v12, 16  ;;  %v2109_v2 = vrot.slane %v2107_v27, 5  ;;  %v2416_v20 = vrot.slane %v2414_v63, 4 }
 0x1d6   : > { %v2105_v18 = vrot.slane %v2104_v6, 4  ;;  %v2419_v16 = vrot.slane %v2417_v32, 5  ;;  %v2123_v48 = vrot.slane %v2121_v22, 5  ;;  %v2428_v41 = vshrl.u32 %v14647_v40, 16  ;;  %v2500_v47 = vld [vmem:[#allocation2 + $0x28] sm:$0xe] }
 0x1d7   : > { %v2118_v37 = vor.u32 %v2117_v33, %v2114_v19  ;;  %v2431_v43 = vshll.u32 %v14647_v40, 16  ;;  %v2437_v34 = vshll.u32 %v2380_v7, 16  ;;  %v11753_v6 = vrot.slane %v2499_v5, 9  ;;  %v14661_v63 = vld [vmem:[#allocation2 + $0x30] sm:$0xf] }
 0x1d8   : > { %2657 = vrot.lane.b32.xlu1 %v11779_v17, %s19664_s19  ;;  %v2420_v61 = vor.u32 %v2419_v16, %v2416_v20  ;;  %v2531_v27 = vrot.slane %v2379_v12, 5  ;;  %v2110_v32 = vsel %vm13904_vm2, %v2105_v18, %v2109_v2  ;;  %v2430_v17 = vrot.slane %v2428_v41, 4  ;;  %v14666_v22 = vld [vmem:[#allocation2 + $0x34] sm:$0x1]  ;;  %v14668_v20 = vld [vmem:[#allocation2 + $0x38] sm:$0xf] }
 0x1d9   : > { %v2119_v30 = vrot.slane %v2118_v37, 4  ;;  %v2433_v19 = vrot.slane %v2431_v43, 5  ;;  %19771 = vst [vmem:[#allocation19_spill] sm:$0xff] %v14666_v22  ;;  %v2425_v29 = vrot.slane %v2423_v35, 5  ;;  %v11754_v57 = vrot.slane %v2500_v47, 9 }
 0x1da   : > { %v2421_v33 = vrot.slane %v2420_v61, 4  ;;  %v2535_v56 = vrot.slane %v2380_v7, 5  ;;  %v14672_v5 = vld [vmem:[#allocation2 + $0x3c] sm:$0x1]  ;;  %v2442_v45 = vshrl.u32 %v14661_v63, 16  ;;  %v2445_v2 = vshll.u32 %v14661_v63, 16 }
 0x1db   : > { %v2124_v16 = vsel %vm13904_vm2, %v2119_v30, %v2123_v48  ;;  %v2434_v12 = vor.u32 %v2433_v19, %v2430_v17  ;;  %19772 = vst [vmem:[#allocation20_spill] sm:$0xff] %v14672_v5  ;;  %v2439_v18 = vrot.slane %v2437_v34, 5  ;;  %v14678_v37 = vsel %vm14431_vm15, %v11753_v6, %v2531_v27  ;;  %v14682_v48 = vld [vmem:[#allocation2 + $0x1c] sm:$0x1]  ;;  %v14701_v59 = vld [vmem:[#allocation2 + $0x44] sm:$0x1] }
 0x1dc   : > { %v11766_v41 = vcombine.low %v2110_v32, %v2124_v16  ;;  %19773 = vst [vmem:[#allocation21_spill] sm:$0xff] %v14678_v37  ;;  %v2451_v7 = vshll.u32 %v14666_v22, 16  ;;  %v2444_v43 = vrot.slane %v2442_v45, 4  ;;  %v2447_v47 = vrot.slane %v2445_v2, 5  ;;  %v14693_v32 = vld [vmem:[#allocation2 + $0x24] sm:$0x1] }
 0x1dd   : > { %v2435_v35 = vrot.slane %v2434_v12, 4  ;;  %v2456_v30 = vshrl.u32 %v14668_v20, 16  ;;  %v2426_v61 = vsel %vm13904_vm2, %v2421_v33, %v2425_v29  ;;  %v14689_v34 = vsel %vm14431_vm15, %v11754_v57, %v2535_v56  ;;  %v2314_v45 = vld [vmem:[#allocation2 + $0x18] sm:$0xe]  ;;  %v2315_v2 = vld [vmem:[#allocation2 + $0x20] sm:$0xe] }
 0x1de   : > { %2591 = vrot.lane.b32.xlu0 %v11766_v41, %s19664_s19  ;;  %v2459_v6 = vshll.u32 %v14668_v20, 16  ;;  %v2465_v27 = vshll.u32 %v14672_v5, 16  ;;  %v2448_v19 = vor.u32 %v2447_v47, %v2444_v43  ;;  %v2453_v16 = vrot.slane %v2451_v7, 5  ;;  %v14697_v41 = vld [vmem:[#allocation2 + $0x40] sm:$0xf] }
 0x1df   : > { %v2440_v17 = vsel %vm13904_vm2, %v2435_v35, %v2439_v18  ;;  %v2458_v12 = vrot.slane %v2456_v30, 4  ;;  %19774 = vst [vmem:[#allocation22_spill] sm:$0xff] %v14697_v41  ;;  %v11745_v49 = vrot.slane %v2314_v45, 9  ;;  %v2346_v37 = vrot.slane %v14682_v48, 5  ;;  %v14704_v18 = vld [vmem:[#allocation2 + $0x2c] sm:$0x1] }
 0x1e0   : > { %v11788_v29 = vcombine.low %v2426_v61, %v2440_v17  ;;  %v2461_v33 = vrot.slane %v2459_v6, 5  ;;  %v2449_v51 = vrot.slane %v2448_v19, 4  ;;  %v2467_v0 = vrot.slane %v2465_v27, 5  ;;  %v14709_v30 = vld [vmem:[#allocation2 + $0x34] sm:$0x1] }
 0x1e1   : > { %v11746_v35 = vrot.slane %v2315_v2, 9  ;;  %v2350_v43 = vrot.slane %v14693_v32, 5  ;;  %v2470_v47 = vshrl.u32 %v14697_v41, 16  ;;  %v2473_v27 = vshll.u32 %v14697_v41, 16  ;;  %v2316_v17 = vld [vmem:[#allocation2 + $0x28] sm:$0xe] }
 0x1e2   : > { %2699 = vrot.lane.b32.xlu1 %v11788_v29, %s19664_s19  ;;  %v2462_v7 = vor.u32 %v2461_v33, %v2458_v12  ;;  %v2454_v61 = vsel %vm13904_vm2, %v2449_v51, %v2453_v16  ;;  %v2479_v45 = vshll.u32 %v14701_v59, 16  ;;  %v2347_v12 = vsel %vm14431_vm15, %v11745_v49, %v2346_v37  ;;  %v2317_v33 = vld [vmem:[#allocation2 + $0x30] sm:$0xe]  ;;  %v14720_v57 = vld [vmem:[#allocation2 + $0x3c] sm:$0x1] }
 0x1e3   : > { %v2351_v2 = vsel %vm14431_vm15, %v11746_v35, %v2350_v43  ;;  %v2472_v29 = vrot.slane %v2470_v47, 4  ;;  %v2475_v56 = vrot.slane %v2473_v27, 5  ;;  %v2318_v41 = vld [vmem:[#allocation2 + $0x38] sm:$0xe]  ;;  %v11747_v22 = vrot.slane %v2316_v17, 9 }
 0x1e4   : > { %v2463_v19 = vrot.slane %v2462_v7, 4  ;;  %v11780_v16 = vcombine.low %v2347_v12, %v2351_v2  ;;  %v2481_v6 = vrot.slane %v2479_v45, 5  ;;  %v2354_v49 = vrot.slane %v14704_v18, 5  ;;  %v2319_v37 = vld [vmem:[#allocation2 + $0x40] sm:$0xe] }
 0x1e5   : > { %v2476_v43 = vor.u32 %v2475_v56, %v2472_v29  ;;  %v11748_v47 = vrot.slane %v2317_v33, 9  ;;  %v2358_v51 = vrot.slane %v14709_v30, 5  ;;  %v14729_v12 = vld [vmem:[#allocation2 + $0x44] sm:$0x1]  ;;  %v2126_v27 = vld [vmem:[#allocation2 + $0x8] sm:$0xe] }
 0x1e6   : > { %v2468_v5 = vsel %vm13904_vm2, %v2463_v19, %v2467_v0  ;;  %2659 = vrot.lane.b32.xlu1 %v11780_v16, %s19664_s19  ;;  %v2355_v0 = vsel %vm14431_vm15, %v11747_v22, %v2354_v49  ;;  %v2294_v17 = vshll.u32 %v14720_v57, 16  ;;  %v11749_v19 = vrot.slane %v2318_v41, 9  ;;  %v2127_v2 = vld [vmem:[#allocation2 + $0x10] sm:$0xe]  ;;  %v2128_v22 = vld [vmem:[#allocation2 + $0x18] sm:$0xe] }
 0x1e7   : > { %v11789_v35 = vcombine.low %v2454_v61, %v2468_v5  ;;  %v2477_v5 = vrot.slane %v2476_v43, 4  ;;  %v2359_v56 = vsel %vm14431_vm15, %v11748_v47, %v2358_v51  ;;  %v2362_v61 = vrot.slane %v14720_v57, 5  ;;  %v2129_v51 = vld [vmem:[#allocation2 + $0x20] sm:$0xe] }
 0x1e8   : > { %v11750_v29 = vrot.slane %v2319_v37, 9  ;;  %v11781_v33 = vcombine.low %v2355_v0, %v2359_v56  ;;  %v2366_v16 = vrot.slane %v14729_v12, 5  ;;  %v11736_v45 = vrot.slane %v2126_v27, 9  ;;  %v2130_v0 = vld [vmem:[#allocation2 + $0x28] sm:$0xe] }
 0x1e9   : > { %2701 = vrot.lane.b32.xlu0 %v11789_v35, %s19664_s19  ;;  %v2158_v7 = vrot.slane %v14503_v60, 5  ;;  %v2482_v41 = vsel %vm13904_vm2, %v2477_v5, %v2481_v6  ;;  %v2308_v49 = vshll.u32 %v14729_v12, 16  ;;  %v2363_v35 = vsel %vm14431_vm15, %v11749_v19, %v2362_v61  ;;  %v2131_v56 = vld [vmem:[#allocation2 + $0x30] sm:$0xe] }
 0x1ea   : > { %v11737_v43 = vrot.slane %v2127_v2, 9  ;;  %v19775_v37 = vsel %vm13904_vm2, %v14464_v11, %v14459_v13  ;;  %2661 = vrot.lane.b32.xlu1 %v11781_v33, %s19664_s19  ;;  %v2367_v60 = vsel %vm14431_vm15, %v11750_v29, %v2366_v16  ;;  %v2162_v27 = vrot.slane %v14529_v39, 5 }
 0x1eb   : > { %v11790_v47 = vcombine.low %v2482_v41, %v19775_v37  ;;  %v14756_v6 = vsel %vm14431_vm15, %v11736_v45, %v2158_v7  ;;  %v11782_v19 = vcombine.low %v2363_v35, %v2367_v60  ;;  %v11738_v5 = vrot.slane %v2128_v22, 9  ;;  %v2132_v37 = vld [vmem:[#allocation2 + $0x38] sm:$0xe] }
 0x1ec   : > { %v11767_v2 = vcombine.low %v14453_v46, %v14756_v6  ;;  %v2166_v13 = vrot.slane %v14532_v50, 5  ;;  %v14765_v11 = vsel %vm14431_vm15, %v11737_v43, %v2162_v27  ;;  %v11760_v7 = vcombine.low %v14505_v3, %v14526_v1  ;;  %v19796_v6 = vld [vmem:[#allocation18_spill] sm:$0xff] }
 0x1ed   : > { %2703 = vrot.lane.b32.xlu0 %v11790_v47, %s19664_s19  ;;  %v11783_v39 = vcombine.low %v14569_v31, %v14583_v52  ;;  %v11739_v45 = vrot.slane %v2129_v51, 9  ;;  %v2170_v50 = vrot.slane %v14554_v44, 5  ;;  %v11740_v29 = vrot.slane %v2130_v0, 9 }
 0x1ee   : > { %v14773_v61 = vsel %vm14431_vm15, %v11738_v5, %v2166_v13  ;;  %v2174_v33 = vrot.slane %v14571_v14, 5  ;;  %2663 = vrot.lane.b32.xlu1 %v11782_v19, %s19664_s19  ;;  %v19776_v22 = vshll.u32 %v14603_v28, 16  ;;  %v19777_v35 = vshll.u32 %v14605_v42, 16  ;;  %v2497_v19 = vld [vmem:[#allocation2 + $0x10] sm:$0xe] }
 0x1ef   : > { %v11768_v16 = vcombine.low %v14765_v11, %v14773_v61  ;;  %v11761_v51 = vcombine.low %v14548_v10, %v14559_v53  ;;  %v14788_v44 = vsel %vm14431_vm15, %v11739_v45, %v2170_v50  ;;  %v11784_v47 = vcombine.low %v14636_v55, %v14647_v40  ;;  %v2498_v5 = vld [vmem:[#allocation2 + $0x18] sm:$0xe] }
 0x1f0   : > { %v2212_v41 = vrot.slane %v19776_v22, 5  ;;  %v2226_v43 = vrot.slane %v19777_v35, 5  ;;  %v14792_v14 = vsel %vm14431_vm15, %v11740_v29, %v2174_v33  ;;  %v11741_v28 = vrot.slane %v2131_v56, 9 }
 0x1f1   : > { %v11769_v42 = vcombine.low %v14788_v44, %v14792_v14  ;;  %v2178_v0 = vrot.slane %v14625_v36, 5  ;;  %v11742_v45 = vrot.slane %v2132_v37, 9  ;;  %v2182_v56 = vrot.slane %v14627_v54, 5 }
 0x1f2   : > { %v2213_v60 = vsel %vm13904_vm2, %v14521_v15, %v2212_v41  ;;  %v2227_v27 = vsel %vm13904_vm2, %v14507_v26, %v2226_v43  ;;  %v19778_v50 = vshll.u32 %v14682_v48, 16  ;;  %v19779_v15 = vshll.u32 %v14693_v32, 16 }
 0x1f3   : > { %v14805_v13 = vcombine.low %v2213_v60, %v2227_v27  ;;  %v14812_v33 = vsel %vm14431_vm15, %v11741_v28, %v2178_v0  ;;  %v11785_v26 = vcombine.low %v14661_v63, %v14668_v20  ;;  %v11762_v36 = vcombine.low %v14615_v4, %v14621_v58  ;;  %v2501_v0 = vld [vmem:[#allocation2 + $0x30] sm:$0xe]  ;;  %v13363_v20 = vld [vmem:[%s19646_s14] sm:$0xff]  }
 0x1f4   : > { %v2240_v29 = vrot.slane %v19778_v50, 5  ;;  %v2254_v22 = vrot.slane %v19779_v15, 5  ;;  %v14822_v41 = vsel %vm14431_vm15, %v11742_v45, %v2182_v56  ;;  %v11751_v48 = vrot.slane %v2497_v19, 9  ;;  %v2502_v45 = vld [vmem:[#allocation2 + $0x38] sm:$0xe] }
 0x1f5   : > { %v11752_v35 = vrot.slane %v2498_v5, 9  ;;  %v11770_v32 = vcombine.low %v14812_v33, %v14822_v41  ;;  %v19780_v37 = vshll.u32 %v14704_v18, 16  ;;  %v19781_v60 = vshll.u32 %v14709_v30, 16  ;;  %v2503_v30 = vld [vmem:[#allocation2 + $0x40] sm:$0xe]  ;;  %v13364_v41 = vld [vmem:[%s19646_s14 + $0x8] sm:$0xff]  }
 0x1f6   : > { %v2241_v54 = vsel %vm13904_vm2, %v14550_v23, %v2240_v29  ;;  %v2255_v43 = vsel %vm13904_vm2, %v14552_v38, %v2254_v22  ;;  %v2547_v56 = vrot.slane %v14701_v59, 5  ;;  %v19782_v19 = vrot.slane %v14577_v62, 5  ;;  %v19784_v29 = vld [vmem:[#allocation21_spill] sm:$0xff] }
 0x1f7   : > { %v2268_v28 = vrot.slane %v19780_v37, 5  ;;  %v2282_v27 = vrot.slane %v19781_v60, 5  ;;  %v14837_v23 = vcombine.low %v2241_v54, %v2255_v43  ;;  %v19783_v38 = vrot.slane %v14592_v21, 5  ;;  %v19785_v37 = vld [vmem:[#allocation13_spill] sm:$0xff] }
 0x1f8   : > { %v14843_v5 = vsel %vm14431_vm15, %v11751_v48, %v19782_v19  ;;  %v11792_v15 = vcombine.low %v19784_v29, %v14689_v34  ;;  %v11755_v22 = vrot.slane %v2501_v0, 9  ;;  %v11756_v54 = vrot.slane %v2502_v45, 9  ;;  %v19791_v45 = vld [vmem:[#allocation20_spill] sm:$0xff] }
 0x1f9   : > { %v14849_v18 = vsel %vm14431_vm15, %v11752_v35, %v19783_v38  ;;  %v2269_v59 = vsel %vm13904_vm2, %v14566_v9, %v2268_v28  ;;  %v2283_v62 = vsel %vm13904_vm2, %v14590_v24, %v2282_v27  ;;  %v2296_v48 = vrot.slane %v2294_v17, 5  ;;  %v19787_v28 = vld [vmem:[#allocation14_spill] sm:$0xff]  ;;  %v19789_v27 = vld [vmem:[#allocation19_spill] sm:$0xff]  ;;  %v19793_v17 = vld [vmem:[#allocation16_spill] sm:$0xff] }
 0x1fa   : > { %v11791_v50 = vcombine.low %v14843_v5, %v14849_v18  ;;  %v14861_v21 = vcombine.low %v2269_v59, %v2283_v62  ;;  %v2310_v35 = vrot.slane %v2308_v49, 5  ;;  %v11757_v43 = vrot.slane %v2503_v30, 9  ;;  %v19794_v38 = vld [vmem:[#allocation17_spill] sm:$0xff] }
 0x1fb   : > { %v19786_v9 = vrot.slane %v19785_v37, 5  ;;  %v19788_v60 = vrot.slane %v19787_v28, 9  ;;  %v19790_v19 = vrot.slane %v19789_v27, 5  ;;  %v19792_v57 = vrot.slane %v19791_v45, 5  ;;  %v13488_v37 = vld [vmem:[#allocation2] sm:$0xf] }
 0x1fc   : > { %v2297_v49 = vsel %vm13904_vm2, %v19793_v17, %v2296_v48  ;;  %v2311_v18 = vsel %vm13904_vm2, %v19794_v38, %v2310_v35  ;;  %v14891_v30 = vsel %vm14431_vm15, %v11757_v43, %v2547_v56  ;;  %v13357_v56 = vld [vmem:[%s19637_s5 + $0x108] sm:$0xff]   ;;  %v13361_v27 = vld [vmem:[%s19637_s5 + $0x118] sm:$0xff]   ;;  %vm3451_vm7 = vcmask 1044484  }
 0x1fd   : > { %v14873_v24 = vsel %vm14431_vm15, %v19788_v60, %v19786_v9  ;;  %v2540_v0 = vsel %vm14431_vm15, %v11755_v22, %v19790_v19  ;;  %v2544_v12 = vsel %vm14431_vm15, %v11756_v54, %v19792_v57  ;;  %v14893_v59 = vcombine.low %v2297_v49, %v2311_v18  ;;  %v19795_v9 = vld [vmem:[#allocation15_spill] sm:$0xff] }
 0x1fe   : > { %v11793_v5 = vcombine.low %v2540_v0, %v2544_v12  ;;  %v11794_v62 = vcombine.low %v14891_v30, %v14873_v24  ;;  %v11759_v35 = vcombine.low %v13488_v37, %v19795_v9  ;;  %vm3457_vm10 = vcmask 1046534  }
 0x223   : > { %v2626_v22 = vpop.permute.xlu0 %2625 }
 0x224   : > { %v2735_v54 = vsel %vm1172_vm3, %v11767_v2, %v2626_v22  ;;  %v13360_v2 = vld [vmem:[%s19637_s5 + $0x110] sm:$0xff]  }
 0x225   : > { %3113 = vmatprep.mubr.bf16.mxu1 %v2735_v54 }
 0x227   : > { %v2628_v48 = vpop.permute.xlu0 %2627 }
 0x228   : > { %v2739_v46 = vsel %vm1172_vm3, %v11768_v16, %v2628_v48 }
 0x232   : > { %v2630_v24 = vpop.permute.xlu0 %2629 }
 0x233   : > { %v2743_v61 = vsel %vm1172_vm3, %v11769_v42, %v2630_v24  ;;  %v19797_v42 = vld [vmem:[#allocation22_spill] sm:$0xff]  ;;  %v3298_v24 = vlaneseq }
 0x235   : > { %v2586_v28 = vpop.permute.xlu1 %2585 }
 0x236   : > { %v2719_v43 = vsel %vm1172_vm3, %v11759_v35, %v2586_v28 }
 0x237   : > { %3114 = vmatmul.mubr.bf16.vlgmr.msra.gmra.mrb[16].mxu1 %v2719_v43 }
 0x238   : > { %3120 = vmatprep.mubr.bf16.mxu1 %v2739_v46  ;;  %13045 = vmatpush3.bf16.msra.mxu1 %v19796_v6 }
 0x239   : > { %13046 = vmatprep.subr.bf16.mxu1 %v13357_v56 }
 0x23a   : > { %v2588_v60 = vpop.permute.xlu1 %2587 }
 0x23b   : > { %v2723_v11 = vsel %vm1172_vm3, %v11760_v7, %v2588_v60 }
 0x23c   : > { %13047 = vmatpush3.bf16.msra.mxu1 %v13357_v56 }
 0x23d   : > { %13048 = vmatprep.subr.bf16.mxu1 %v13360_v2 }
 0x23f   : > { %3121 = vmatmul.mubr.bf16.gmra.mrb[20].mxu1 %v2723_v11 }
 0x240   : > { %v2590_v16 = vpop.permute.xlu0 %2589  ;;  %3127 = vmatprep.mubr.bf16.mxu1 %v2743_v61  ;;  %13049 = vmatpush3.bf16.msra.mxu1 %v13360_v2  ;;  %v13681_v2 = vmov 1983009808   ;;  %v14993_v61 = vld [vmem:[%s19638_s6] ss:$0 sm:$0xff] }
 0x241   : > { %13050 = vmatprep.subr.bf16.mxu1 %v13361_v27  ;;  %v2727_v3 = vsel %vm1172_vm3, %v11761_v51, %v2590_v16  ;;  %v3296_v60 = vunpack.c.l.s4 %v13681_v2 }
 0x244   : > { %v2632_v19 = vpop.permute.xlu0 %2631  ;;  %13051 = vmatpush3.bf16.msra.mxu1 %v13361_v27 }
 0x245   : > { %v2747_v7 = vsel %vm1172_vm3, %v11770_v32, %v2632_v19  ;;  %v13365_v32 = vld [vmem:[%s19646_s14 + $0x10] sm:$0xff]  }
 0x246   : > { %v2698_v0 = vpop.permute.xlu1 %2697 }
 0x247   : > { %v2767_v1 = vsel %vm1172_vm3, %v11783_v39, %v2698_v0  ;;  %3128 = vmatmul.mubr.bf16.gmra.mrb[24].mxu1 %v2727_v3  ;;  %v3297_v0 = vunpack.c.0.s8 %v3296_v60  ;;  %v14995_v3 = vshrl.u32 %v3298_v24, 7 }
 0x248   : > { %3174 = vmatprep.mubr.bf16.mxu0 %v2767_v1  ;;  %3134 = vmatprep.mubr.bf16.mxu1 %v2747_v7 }
 0x249   : > { %19798 = vst [vmem:[#allocation21_spill] sm:$0xff] %v14995_v3 }
 0x24a   : > { %v2658_v44 = vpop.permute.xlu1 %2657 }
 0x24b   : > { %v2751_v14 = vsel %vm1172_vm3, %v14805_v13, %v2658_v44 }
 0x24c   : > { %3175 = vmatmul.mubr.bf16.vlgmr.msra.gmra.mrb[24].mxu0 %v2751_v14 }
 0x250   : > { %v2592_v10 = vpop.permute.xlu0 %2591 }
 0x251   : > { %v2731_v53 = vsel %vm1172_vm3, %v11762_v36, %v2592_v10  ;;  %v15000_v10 = vld [vmem:[%s19639_s7] ss:$0 sm:$0xff] }
 0x252   : > { %3135 = vmatmul.mubr.bf16.gmra.mrb[28].mxu1 %v2731_v53 }
 0x253   : > { %13052 = vmatprep.mubr.msk.bf16.mxu1 %vm1172_vm3, %v11791_v50 }
 0x254   : > { %v2700_v31 = vpop.permute.xlu1 %2699 }
 0x255   : > { %v2771_v52 = vsel %vm1172_vm3, %v11784_v47, %v2700_v31  ;;  %v13489_v47 = vld [vmem:[#allocation2 + $0x48] sm:$0xf] }
 0x256   : > { %3181 = vmatprep.mubr.bf16.mxu0 %v2771_v52  ;;  %v11786_v13 = vcombine.low %v19797_v42, %v13489_v47 }
 0x258   : > { %v2660_v39 = vpop.permute.xlu1 %2659 }
 0x259   : > { %v2755_v51 = vsel %vm1172_vm3, %v14837_v23, %v2660_v39  ;;  %v13366_v23 = vld [vmem:[%s19646_s14 + $0x18] sm:$0xff]  }
 0x25a   : > { %13053 = vmatmul.mubr.msk.bf16.vlgmr.msra.gmra.mrb[32].mxu1 %vm1172_vm3, %v11792_v15  ;;  %3182 = vmatmul.mubr.bf16.gmra.mrb[28].mxu0 %v2755_v51  ;;  %v15004_v51 = vsub.s32 %v3297_v0, %v14995_v3 }
 0x25b   : > { %v2702_v4 = vpop.permute.xlu0 %2701  ;;  %13056 = vmatprep.mubr.msk.bf16.mxu1 %vm1172_vm3, %v11793_v5 }
 0x25c   : > { %v2775_v58 = vsel %vm1172_vm3, %v11785_v26, %v2702_v4  ;;  %v2662_v55 = vpop.permute.xlu1 %2661  ;;  %v13679_v26 = vmov 0.0  }
 0x25d   : > { %3188 = vmatprep.mubr.bf16.mxu0 %v2775_v58  ;;  %v2759_v34 = vsel %vm1172_vm3, %v14861_v21, %v2662_v55  ;;  %13060 = vmatprep.subr.bf16.mxu1 %v13679_v26 }
 0x25e   : > { %13061 = vmatpush3.bf16.msra.mxu1 %v13363_v20  ;;  %13078 = vmatprep.subr.bf16.mxu0 %v13679_v26 }
 0x25f   : > { %v2704_v40 = vpop.permute.xlu0 %2703  ;;  %13062 = vmatprep.subr.bf16.mxu1 %v13679_v26 }
 0x260   : > { %v2779_v33 = vsel %vm1172_vm3, %v11786_v13, %v2704_v40  ;;  %v2664_v36 = vpop.permute.xlu1 %2663 }
 0x261   : > { %v2763_v63 = vsel %vm1172_vm3, %v14893_v59, %v2664_v36 }
 0x262   : > { %13057 = vmatmul.mubr.msk.bf16.gmra.mrb[36].mxu1 %vm1172_vm3, %v11794_v62  ;;  %3189 = vmatmul.mubr.bf16.gmra.mrb[32].mxu0 %v2759_v34 }
 0x263   : > { %3195 = vmatprep.mubr.bf16.mxu0 %v2779_v33  ;;  %13068 = vmatprep.mubr.msk.bf16.mxu1 %vm13680_vm0, %v13679_v26 }
 0x264   : > { %13063 = vmatpush3.bf16.msra.mxu1 %v13364_v41 }
 0x265   : > { %13064 = vmatprep.subr.bf16.mxu1 %v13679_v26 }
 0x268   : > { %13065 = vmatpush3.bf16.msra.mxu1 %v13365_v32 }
 0x269   : > { %13066 = vmatprep.subr.bf16.mxu1 %v13679_v26 }
 0x26a   : > { %3196 = vmatmul.mubr.bf16.gmra.mrb[36].mxu0 %v2763_v63 }
 0x26b   : > { %13080 = vmatprep.mubr.msk.bf16.mxu0 %vm13680_vm0, %v13679_v26 }
 0x26c   : > { %13067 = vmatpush3.bf16.msra.mxu1 %v13366_v23 }
 0x26d   : > { %13072 = vmatprep.subr.bf16.mxu1 %v13679_v26 }
 0x30a   : > { %v12647_v50 = vpop.f32.mrb[16].mxu1 }
 0x30b   : > { %v12648_v29 = vpop.f32.mrb[17].mxu1 }
 0x30c   : > { %v12649_v15 = vadd.f32 %v12648_v29, %v12647_v50  ;;  %v12650_v21 = vpop.f32.mrb[18].mxu1 }
 0x30d   : > { %v12651_v45 = vpop.f32.mrb[19].mxu1 }
 0x312   : > { %v12653_v57 = vpop.f32.mrb[20].mxu1 }
 0x313   : > { %v12654_v12 = vpop.f32.mrb[21].mxu1 }
 0x314   : > { %v12655_v17 = vadd.f32 %v12654_v12, %v12653_v57  ;;  %v12656_v49 = vpop.f32.mrb[22].mxu1 }
 0x315   : > { %v12657_v5 = vpop.f32.mrb[23].mxu1 }
 0x31a   : > { %v12659_v38 = vpop.f32.mrb[24].mxu1 }
 0x31b   : > { %v12660_v18 = vpop.f32.mrb[25].mxu1 }
 0x31c   : > { %v12661_v30 = vadd.f32 %v12660_v18, %v12659_v38  ;;  %v12662_v59 = vpop.f32.mrb[26].mxu1 }
 0x31d   : > { %v12663_v62 = vpop.f32.mrb[27].mxu1 }
 0x31f   : > { %v12687_v22 = vpop.f32.mrb[24].mxu0 }
 0x320   : > { %v12688_v54 = vpop.f32.mrb[25].mxu0 }
 0x321   : > { %v12689_v48 = vadd.f32 %v12688_v54, %v12687_v22  ;;  %v12690_v37 = vpop.f32.mrb[26].mxu0 }
 0x322   : > { %v12691_v9 = vpop.f32.mrb[27].mxu0 }
 0x323   : > { %v3177_v35 = vadd.f32 %v12689_v48, %v12649_v15 }
 0x325   : > { %v12665_v28 = vpop.f32.mrb[28].mxu1 }
 0x326   : > { %v12666_v56 = vpop.f32.mrb[29].mxu1 }
 0x327   : > { %v14988_v43 = vadd.f32 %v12666_v56, %v12665_v28  ;;  %v12668_v46 = vpop.f32.mrb[30].mxu1 }
 0x328   : > { %v12669_v6 = vpop.f32.mrb[31].mxu1 }
 0x32d   : > { %v13054_v27 = vpop.f32.mrb[32].mxu1  ;;  %v12693_v11 = vpop.f32.mrb[28].mxu0 }
 0x32e   : > { %v3237_v16 = vpop.f32.mrb[33].mxu1  ;;  %v12694_v19 = vpop.f32.mrb[29].mxu0 }
 0x32f   : > { %v3238_v1 = vadd.f32 %v3237_v16, %v3177_v35  ;;  %v13055_v7 = vpop.f32.mrb[34].mxu1  ;;  %v12695_v44 = vadd.f32 %v12694_v19, %v12693_v11  ;;  %v12696_v14 = vpop.f32.mrb[30].mxu0 }
 0x330   : > { %v3240_v53 = vpop.f32.mrb[35].mxu1  ;;  %v12697_v31 = vpop.f32.mrb[31].mxu0 }
 0x331   : > { %v3271_v52 = vmul.f32 %v14993_v61, %v3238_v1  ;;  %v3184_v39 = vadd.f32 %v12695_v44, %v12655_v17 }
 0x333   : > { %v3282_v4 = vadd.f32 %v15000_v10, %v3271_v52  ;;  %v3245_v58 = vadd.f32 %v13054_v27, %v3184_v39 }
 0x335   : > { %v3286_v55 = vmax.f32 %v3282_v4, 0.0  ;;  %v15007_v40 = vpop.f32.mrb[36].mxu1  ;;  %v12699_v47 = vpop.f32.mrb[32].mxu0  ;;  %v3272_v42 = vmul.f32 %v14993_v61, %v3245_v58 }
 0x336   : > { %v3251_v13 = vpop.f32.mrb[37].mxu1  ;;  %v12700_v34 = vpop.f32.mrb[33].mxu0 }
 0x337   : > { %v3294_v33 = vcombine.high %v3286_v55, %v3286_v55  ;;  %v3301_v36 = vrot.slane %v3286_v55, %v15004_v51  ;;  %v13059_v63 = vpop.f32.mrb[38].mxu1  ;;  %v12701_v20 = vadd.f32 %v12700_v34, %v12699_v47  ;;  %v12702_v41 = vpop.f32.mrb[34].mxu0  ;;  %v3283_v32 = vadd.f32 %v15000_v10, %v3272_v42 }
 0x338   : > { %v3254_v23 = vpop.f32.mrb[39].mxu1  ;;  %v12703_v50 = vpop.f32.mrb[35].mxu0 }
 0x339   : > { %v3308_v29 = vrot.slane %v3294_v33, %v15004_v51  ;;  %v3309_v15 = vcombine.high %v3301_v36, %v3301_v36  ;;  %v3287_v21 = vmax.f32 %v3283_v32, 0.0  ;;  %v3191_v45 = vadd.f32 %v12701_v20, %v12661_v30 }
 0x33a   : > { %v3378_v12 = vpack.c.bf16 %v3301_v36, %v3301_v36 }
 0x33b   : > { %v3310_v57 = vcombine.high %v3308_v29, %v3308_v29  ;;  %v3379_v17 = vpack.c.bf16 %v3309_v15, %v3309_v15  ;;  %v3380_v49 = vpack.c.bf16 %v3308_v29, %v3308_v29  ;;  %v3311_v5 = vcombine.high %v3287_v21, %v3287_v21 }
 0x33c   : > { %v3318_v38 = vrot.slane %v3287_v21, %v15004_v51  ;;  %v3252_v18 = vadd.f32 %v3251_v13, %v3191_v45  ;;  %v3425_v35 = vunpack.c.l.b16 %v3378_v12 }
 0x33d   : > { %v3381_v59 = vpack.c.bf16 %v3310_v57, %v3310_v57  ;;  %v3426_v62 = vunpack.c.l.b16 %v3379_v17  ;;  %v3427_v22 = vunpack.c.l.b16 %v3380_v49  ;;  %v3325_v54 = vrot.slane %v3311_v5, %v15004_v51  ;;  %v12705_v9 = vpop.f32.mrb[36].mxu0 }
 0x33e   : > { %v3326_v48 = vcombine.high %v3318_v38, %v3318_v38  ;;  %v3382_v37 = vpack.c.bf16 %v3318_v38, %v3318_v38  ;;  %v3273_v30 = vmul.f32 %v14993_v61, %v3252_v18  ;;  %v12706_v6 = vpop.f32.mrb[37].mxu0 }
 0x33f   : > { %v3428_v28 = vunpack.c.l.b16 %v3381_v59  ;;  %v3441_v56 = vrot.slane %v3426_v62, 7  ;;  %v3444_v46 = vrot.slane %v3427_v22, 6  ;;  %v3327_v2 = vcombine.high %v3325_v54, %v3325_v54  ;;  %v12708_v11 = vpop.f32.mrb[38].mxu0 }
 0x340   : > { %v3383_v60 = vpack.c.bf16 %v3326_v48, %v3326_v48  ;;  %v3384_v24 = vpack.c.bf16 %v3325_v54, %v3325_v54  ;;  %v3429_v27 = vunpack.c.l.b16 %v3382_v37  ;;  %v12707_v0 = vadd.f32 %v12706_v6, %v12705_v9  ;;  %v12709_v1 = vpop.f32.mrb[39].mxu0 }
 0x341   : > { %v3443_v16 = vsel %vm3442_vm1, %v3441_v56, %v3425_v35  ;;  %v3447_v19 = vrot.slane %v3428_v28, 5  ;;  %v3284_v7 = vadd.f32 %v15000_v10, %v3273_v30  ;;  %v3385_v44 = vpack.c.bf16 %v3327_v2, %v3327_v2 }
 0x342   : > { %v3430_v14 = vunpack.c.l.b16 %v3383_v60  ;;  %v3431_v53 = vunpack.c.l.b16 %v3384_v24  ;;  %v3450_v31 = vrot.slane %v3429_v27, 4  ;;  %v3446_v52 = vsel %vm3445_vm4, %v3444_v46, %v3443_v16 }
 0x343   : > { %v3198_v39 = vadd.f32 %v12707_v0, %v14988_v43  ;;  %v3288_v4 = vmax.f32 %v3284_v7, 0.0  ;;  %v3432_v58 = vunpack.c.l.b16 %v3385_v44  ;;  %v3449_v47 = vsel %vm3448_vm5, %v3447_v19, %v3446_v52  ;;  %v11893_v52 = vld [vmem:[%s15046_s24 + $0x14] sm:$0x1] }
 0x344   : > { %v3453_v55 = vrot.slane %v3430_v14, 3  ;;  %v3452_v42 = vsel %vm3451_vm7, %v3450_v31, %v3449_v47  ;;  %v3456_v36 = vrot.slane %v3431_v53, 2  ;;  %v15049_v14 = vld [vmem:[%s15046_s24 + $0x10] sm:$0xf]  ;;  %v11909_v53 = vld [vmem:[%s15046_s24 + $0xc] sm:$0xe] }
 0x345   : > { %v3259_v13 = vadd.f32 %v15007_v40, %v3198_v39  ;;  %v3328_v34 = vcombine.high %v3288_v4, %v3288_v4  ;;  %v3335_v33 = vrot.slane %v3288_v4, %v15004_v51  ;;  %v3459_v32 = vrot.slane %v3432_v58, 1  ;;  %v4264_v58 = vld [vmem:[%s15046_s24] sm:$0xe] }
 0x346   : > { %v3455_v63 = vsel %vm3454_vm9, %v3453_v55, %v3452_v42  ;;  %v4939_v31 = vrot.slane %v15049_v14, 5  ;;  %v4942_v4 = vrot.slane %v11893_v52, 5  ;;  %v15056_v55 = vld [vmem:[%s15046_s24 + $0x4] sm:$0xf]  ;;  %v4509_v47 = vshll.u32 %v11893_v52, 16 }
 0x347   : > { %v3274_v20 = vmul.f32 %v14993_v61, %v3259_v13  ;;  %v3342_v43 = vrot.slane %v3328_v34, %v15004_v51  ;;  %v3343_v41 = vcombine.high %v3335_v33, %v3335_v33  ;;  %v3386_v23 = vpack.c.bf16 %v3335_v33, %v3335_v33  ;;  %v15059_v42 = vld [vmem:[%s15046_s24 + $0x8] sm:$0x1]  ;;  %v15066_v33 = vld [vmem:[%s15046_s24 + $0xc] sm:$0xf] }
 0x348   : > { %v3458_v50 = vsel %vm3457_vm10, %v3456_v36, %v3455_v63  ;;  %v4941_v39 = vrot.slane %v4939_v31, 4  ;;  %v11845_v34 = vrot.slane %v4264_v58, 9  ;;  %v4499_v36 = vshll.u32 %v15049_v14, 16 }
 0x349   : > { %v3285_v29 = vadd.f32 %v15000_v10, %v3274_v20  ;;  %v3344_v15 = vcombine.high %v3342_v43, %v3342_v43  ;;  %v3387_v40 = vpack.c.bf16 %v3343_v41, %v3343_v41  ;;  %v3388_v21 = vpack.c.bf16 %v3342_v43, %v3342_v43 }
 0x34a   : > { %v3461_v45 = vsel %vm3460_vm13, %v3459_v32, %v3458_v50  ;;  %v3433_v61 = vunpack.c.l.b16 %v3386_v23  ;;  %v4503_v63 = vshrl.u32 %v15049_v14, 16  ;;  %v15072_v20 = vsel %vm14431_vm15, %v4941_v39, %v4942_v4  ;;  %v15079_v50 = vld [vmem:[%s15046_s24 + $0x1c] sm:$0xf] }
 0x34b   : > { %v3289_v57 = vmax.f32 %v3285_v29, 0.0  ;;  %v3389_v12 = vpack.c.bf16 %v3344_v15, %v3344_v15  ;;  %v3434_v17 = vunpack.c.l.b16 %v3387_v40  ;;  %v3435_v49 = vunpack.c.l.b16 %v3388_v21  ;;  %v15082_v40 = vld [vmem:[%s15046_s24 + $0x24] sm:$0xf]  ;;  %v15085_v21 = vld [vmem:[%s15046_s24 + $0x28] sm:$0xf] }
 0x34c   : > { %v4330_v43 = vrot.slane %v15056_v55, 5  ;;  %v4490_v41 = vshrl.u32 %v15066_v33, 16  ;;  %v4493_v32 = vshll.u32 %v15066_v33, 16  ;;  %v4333_v23 = vrot.slane %v15059_v42, 5 }
 0x34d   : > { %v3345_v5 = vcombine.high %v3289_v57, %v3289_v57  ;;  %v3352_v38 = vrot.slane %v3289_v57, %v15004_v51  ;;  %v3436_v18 = vunpack.c.l.b16 %v3389_v12  ;;  %v3462_v59 = vrot.slane %v3434_v17, 7  ;;  %v11837_v12 = vld [vmem:[%s19647_s15] ss:$0 sm:$0xff] }
 0x34e   : > { %v3464_v62 = vrot.slane %v3435_v49, 6  ;;  %v4501_v29 = vrot.slane %v4499_v36, 5  ;;  %v4505_v15 = vrot.slane %v4503_v63, 4  ;;  %v4495_v57 = vrot.slane %v4493_v32, 5  ;;  %v11974_v32 = vld [vmem:[%s15046_s24 + $0x2c] sm:$0x1] }
 0x34f   : > { %v3359_v22 = vrot.slane %v3345_v5, %v15004_v51  ;;  %v3360_v54 = vcombine.high %v3352_v38, %v3352_v38  ;;  %v3390_v10 = vpack.c.bf16 %v3352_v38, %v3352_v38  ;;  %v3463_v48 = vsel %vm3442_vm1, %v3462_v59, %v3433_v61  ;;  %v11894_v61 = vld [vmem:[%s15046_s24 + $0x20] sm:$0x1] }
 0x350   : > { %v3465_v37 = vsel %vm3445_vm4, %v3464_v62, %v3463_v48  ;;  %v3466_v9 = vrot.slane %v3436_v18, 5  ;;  %v4331_v49 = vsel %vm14431_vm15, %v11845_v34, %v4330_v43  ;;  %v4506_v5 = vor.u32 %v4505_v15, %v4501_v29  ;;  %vm17244_vm4 = vmand %vm7214_vm12, %vm1778_vm6 }
 0x351   : > { %v3361_v30 = vcombine.high %v3359_v22, %v3359_v22  ;;  %v3391_v35 = vpack.c.bf16 %v3360_v54, %v3360_v54  ;;  %v3392_v28 = vpack.c.bf16 %v3359_v22, %v3359_v22  ;;  %v3437_v56 = vunpack.c.l.b16 %v3390_v10 }
 0x352   : > { %v3467_v46 = vsel %vm3448_vm5, %v3466_v9, %v3465_v37  ;;  %v4511_v38 = vrot.slane %v4509_v47, 5  ;;  %v4332_v59 = vrot.slane %v4330_v43, 4  ;;  %v4533_v62 = vshll.u32 %v11894_v61, 16  ;;  %vm17252_vm5 = vmand %vm7214_vm12, %vm1810_vm8 }
 0x353   : > { %v3393_v6 = vpack.c.bf16 %v3361_v30, %v3361_v30  ;;  %v3438_v2 = vunpack.c.l.b16 %v3391_v35  ;;  %v3439_v60 = vunpack.c.l.b16 %v3392_v28  ;;  %v3468_v24 = vrot.slane %v3437_v56, 4 }
 0x354   : > { %v4946_v22 = vrot.slane %v15079_v50, 5  ;;  %v5123_v48 = vshrl.u32 %v15082_v40, 16  ;;  %v5126_v37 = vshll.u32 %v15082_v40, 16  ;;  %v5136_v9 = vshrl.u32 %v15085_v21, 16 }
 0x355   : > { %v3440_v27 = vunpack.c.l.b16 %v3393_v6  ;;  %v3470_v51 = vrot.slane %v3438_v2, 3  ;;  %v3469_v11 = vsel %vm3451_vm7, %v3468_v24, %v3467_v46  ;;  %v3472_v16 = vrot.slane %v3439_v60, 2  ;;  %v15100_v46 = vld [vmem:[%s15046_s24 + $0x18] sm:$0xf]  ;;  %vm17386_vm7 = vmand %vm7211_vm11, %vm1810_vm8 }
 0x356   : > { %v4507_v30 = vrot.slane %v4506_v5, 4  ;;  %v4523_v6 = vshll.u32 %v15079_v50, 16  ;;  %v4527_v2 = vshrl.u32 %v15079_v50, 16  ;;  %v4535_v58 = vrot.slane %v4533_v62, 5 }
 0x357   : > { %v3474_v19 = vrot.slane %v3440_v27, 1  ;;  %v3471_v0 = vsel %vm3454_vm9, %v3470_v51, %v3469_v11  ;;  %v11910_v27 = vld [vmem:[%s15046_s24 + $0x18] sm:$0xe]  ;;  %v4514_v11 = vshrl.u32 %v15100_v46, 16  ;;  %v4949_v47 = vrot.slane %v11894_v61, 5 }
 0x358   : > { %v3473_v1 = vsel %vm3457_vm10, %v3472_v16, %v3471_v0  ;;  %v4512_v51 = vsel %vm13904_vm2, %v4507_v30, %v4511_v38  ;;  %v4517_v16 = vshll.u32 %v15100_v46, 16  ;;  %v11926_v39 = vrot.slane %v11910_v27, 9 }
 0x359   : > { %v3475_v7 = vsel %vm3460_vm13, %v3474_v19, %v3473_v1  ;;  %v5132_v19 = vshll.u32 %v15085_v21, 16  ;;  %v4525_v1 = vrot.slane %v4523_v6, 5  ;;  %v5128_v34 = vrot.slane %v5126_v37, 5 }
 0x35a   : > { %v3476_v44 = vpack.c.b16 %v3475_v7, %v3461_v45  ;;  %v4492_v45 = vrot.slane %v4490_v41, 4  ;;  %v4529_v7 = vrot.slane %v4527_v2, 4  ;;  %v4519_v52 = vrot.slane %v4517_v16, 5 }
 0x35b   : > { %v4948_v63 = vrot.slane %v4946_v22, 4  ;;  %v5138_v43 = vrot.slane %v5136_v9, 4  ;;  %v5142_v38 = vshll.u32 %v11974_v32, 16  ;;  %v12118_v37 = vcombine.low %v15082_v40, %v15085_v21  ;;  %v15155_v21 = vld [vmem:[%s15046_s24 + $0x30] sm:$0xf] }
 0x35c   : > { %13069 = vmatmul.mubr.msk.bf16.vlgmr.msra.gmra.mrb[40].mxu1 %vm1172_vm3, %v3476_v44  ;;  %v4496_v54 = vor.u32 %v4495_v57, %v4492_v45  ;;  %v4530_v4 = vor.u32 %v4529_v7, %v4525_v1  ;;  %v4947_v45 = vsel %vm14431_vm15, %v11926_v39, %v4946_v22  ;;  %v3890_v27 = vshll.u32 %v15056_v55, 16  ;;  %v15171_v7 = vld [vmem:[%s15046_s24 + $0x1c] sm:$0xf]  ;;  %v15174_v39 = vld [vmem:[%s15046_s24 + $0x20] sm:$0x1] }
 0x35d   : > { %13074 = vmatprep.mubr.msk.bf16.mxu1 %vm13680_vm0, %v13679_v26  ;;  %v11925_v26 = vrot.slane %v11909_v53, 9  ;;  %v4950_v61 = vsel %vm14431_vm15, %v4948_v63, %v4949_v47  ;;  %v5144_v22 = vrot.slane %v5142_v38, 5  ;;  %19800 = vst [vmem:[#allocation13_spill] sm:$0xff] %v15171_v7  ;;  %19801 = vst [vmem:[#allocation14_spill] sm:$0xff] %v15174_v39  ;;  %v5108_v32 = vshll.u32 %v15171_v7, 16 }
 0x35e   : > { %v4497_v56 = vrot.slane %v4496_v54, 4  ;;  %v4531_v41 = vrot.slane %v4530_v4, 4  ;;  %vm6410_vm0 = vcmask 785408   ;;  %vm3597_vm1 = vcmask 130048  }
 0x35f   : > { %v15063_v13 = vsel %vm14431_vm15, %v11925_v26, %v4939_v31  ;;  %v4516_v31 = vrot.slane %v4514_v11, 4  ;;  %v4334_v26 = vsel %vm14431_vm15, %v4332_v59, %v4333_v23  ;;  %v15133_v59 = vld [vmem:[%s15046_s24 + $0x28] sm:$0xf]  ;;  %v3900_v11 = vshll.u32 %v15059_v42, 16 }
 0x360   : > { %v12101_v17 = vcombine.low %v15063_v13, %v15072_v20  ;;  %v4502_v0 = vsel %vm13904_vm2, %v4497_v56, %v4501_v29  ;;  %v5125_v13 = vrot.slane %v5123_v48, 4  ;;  %v5134_v20 = vrot.slane %v5132_v19, 5  ;;  %v11911_v48 = vld [vmem:[%s15046_s24 + $0x24] sm:$0xe] }
 0x361   : > { %v15114_v53 = vcombine.low %v4502_v0, %v4512_v51  ;;  %v4520_v36 = vor.u32 %v4519_v52, %v4516_v31  ;;  %v4536_v23 = vsel %vm13904_vm2, %v4531_v41, %v4535_v58  ;;  %v12053_v15 = vcombine.low %v4331_v49, %v4334_v26 }
 0x362   : > { %v5129_v57 = vor.u32 %v5128_v34, %v5125_v13  ;;  %v5139_v5 = vor.u32 %v5138_v43, %v5134_v20  ;;  %v4953_v54 = vrot.slane %v15133_v59, 5  ;;  %v3894_v51 = vshrl.u32 %v15056_v55, 16  ;;  %v15178_v13 = vld [vmem:[%s15046_s24 + $0xc] sm:$0xf] }
 0x363   : > { %v4521_v29 = vrot.slane %v4520_v36, 4  ;;  %v3892_v31 = vrot.slane %v3890_v27, 5  ;;  %v5112_v42 = vshrl.u32 %v15171_v7, 16  ;;  %v3902_v63 = vrot.slane %v3900_v11, 5 }
 0x364   : > { %v5130_v49 = vrot.slane %v5129_v57, 4  ;;  %v5140_v62 = vrot.slane %v5139_v5, 4  ;;  %v3896_v52 = vrot.slane %v3894_v51, 4  ;;  %v3905_v57 = vshrl.u32 %v15178_v13, 16 }
 0x365   : > { %v5110_v5 = vrot.slane %v5108_v32, 5  ;;  %v3908_v38 = vshll.u32 %v15178_v13, 16  ;;  %vm7427_vm12 = vsmask.f32 4368 }
 0x366   : > { %v5135_v9 = vsel %vm13904_vm2, %v5130_v49, %v5134_v20  ;;  %v5145_v30 = vsel %vm13904_vm2, %v5140_v62, %v5144_v22  ;;  %v3897_v36 = vor.u32 %v3896_v52, %v3892_v31  ;;  %v3865_v62 = vld [vmem:[%s15046_s24 + $0x14] sm:$0x1]  ;;  %v3907_v22 = vrot.slane %v3905_v57, 4  ;;  %vm17392_vm9 = vmor %vm1778_vm6, %vm7427_vm12 }
 0x367   : > { %v12134_v6 = vcombine.low %v5135_v9, %v5145_v30  ;;  %v3910_v30 = vrot.slane %v3908_v38, 5 }
 0x369   : > { %v3911_v27 = vor.u32 %v3910_v30, %v3907_v22 }
 0x42f   : > { %v3538_v18 = vpop.f32.mrb[40].mxu1 }
 0x430   : > { %v13070_v10 = vpop.f32.mrb[41].mxu1  ;;  %v3539_v35 = vadd.f32 %v11837_v12, %v3538_v18 }
 0x431   : > { %v3541_v28 = vpop.f32.mrb[42].mxu1  ;;  %v15138_v10 = vld [vmem:[%s15046_s24 + $0x2c] sm:$0x1] }
 0x432   : > { %v3542_v60 = vadd.f32 %v11837_v12, %v3541_v28  ;;  %v13071_v24 = vpop.f32.mrb[43].mxu1  ;;  %v4526_v12 = vsel %vm13904_vm2, %v4521_v29, %v4525_v1  ;;  %v4955_v28 = vrot.slane %v4953_v54, 4  ;;  %v4956_v56 = vrot.slane %v15138_v10, 5  ;;  %v11941_v1 = vld [vmem:[%s15046_s24 + $0x18] sm:$0xf] }
 0x433   : > { %v15130_v18 = vcombine.low %v4526_v12, %v4536_v23  ;;  %v15161_v24 = vld [vmem:[%s15046_s24] sm:$0xf]  ;;  %v5099_v26 = vshrl.u32 %v11941_v1, 16  ;;  %v5102_v47 = vshll.u32 %v11941_v1, 16  ;;  %v5114_v29 = vrot.slane %v5112_v42, 4 }
 0x434   : > { %v15112_v44 = vpack.c.bf16 %v3542_v60, %v3539_v35  ;;  %v11927_v35 = vrot.slane %v11911_v48, 9  ;;  %v4957_v40 = vsel %vm14431_vm15, %v4955_v28, %v4956_v56  ;;  %v15158_v60 = vld [vmem:[%s15046_s24 + $0x34] sm:$0xf]  ;;  %v3881_v19 = vshrl.u32 %v15161_v24, 16  ;;  %v15185_v23 = vld [vmem:[%s15046_s24 + $0x10] sm:$0xf] }
 0x435   : > { %v3884_v0 = vshll.u32 %v15161_v24, 16  ;;  %v12119_v34 = vcombine.low %v15155_v21, %v15158_v60  ;;  %v5101_v20 = vrot.slane %v5099_v26, 4  ;;  %v5104_v41 = vrot.slane %v5102_v47, 5 }
 0x436   : > { %3547 = vrot.lane.b32.xlu0 %v15112_v44, %s13682_s27  ;;  %v4954_v2 = vsel %vm14431_vm15, %v11927_v35, %v4953_v54  ;;  %v3883_v4 = vrot.slane %v3881_v19, 4  ;;  %v3914_v54 = vshll.u32 %v15185_v23, 16  ;;  %v5115_v9 = vor.u32 %v5114_v29, %v5110_v5  ;;  %v15207_v19 = vld [vmem:[%s15046_s24 + $0x18] sm:$0xf] }
 0x437   : > { %v12103_v16 = vcombine.low %v4954_v2, %v4957_v40  ;;  %v3886_v58 = vrot.slane %v3884_v0, 5  ;;  %v3918_v56 = vshrl.u32 %v15185_v23, 16  ;;  %v3924_v2 = vshll.u32 %v3865_v62, 16 }
 0x438   : > { %v3916_v28 = vrot.slane %v3914_v54, 5  ;;  %v12117_v40 = vcombine.low %v11941_v1, %v15171_v7  ;;  %v3912_v26 = vrot.slane %v3911_v27, 4  ;;  %v3929_v47 = vshrl.u32 %v15207_v19, 16 }
 0x439   : > { %v3887_v43 = vor.u32 %v3886_v58, %v3883_v4  ;;  %v3920_v51 = vrot.slane %v3918_v56, 4  ;;  %v3926_v52 = vrot.slane %v3924_v2, 5  ;;  %v4265_v4 = vld [vmem:[%s15046_s24 + $0xc] sm:$0xe]  ;;  %v4337_v58 = vrot.slane %v15185_v23, 5 }
 0x43a   : > { %6074 = vrot.lane.b32.xlu0 %v12101_v17, %s19666_s0  ;;  %v12102_v17 = vcombine.low %v4947_v45, %v4950_v61  ;;  %v5118_v45 = vshll.u32 %v15174_v39, 16  ;;  %v5105_v61 = vor.u32 %v5104_v41, %v5101_v20  ;;  %v12069_v20 = vcombine.low %v15066_v33, %v15049_v14 }
 0x43b   : > { %v3888_v12 = vrot.slane %v3887_v43, 4  ;;  %v3921_v0 = vor.u32 %v3920_v51, %v3916_v28  ;;  %v11846_v43 = vrot.slane %v4265_v4, 9  ;;  %v3917_v41 = vsel %vm13904_vm2, %v3912_v26, %v3916_v28 }
 0x43c   : > { %v5120_v49 = vrot.slane %v5118_v45, 5  ;;  %v4339_v32 = vrot.slane %v4337_v58, 4  ;;  %v4340_v29 = vrot.slane %v3865_v62, 5 }
 0x43d   : > { %v3893_v48 = vsel %vm13904_vm2, %v3888_v12, %v3892_v31  ;;  %v15210_v31 = vld [vmem:[%s15046_s24 + $0x1c] sm:$0xf]  ;;  %v3922_v42 = vrot.slane %v3921_v0, 4  ;;  %v4338_v33 = vsel %vm14431_vm15, %v11846_v43, %v4337_v58  ;;  %v13377_v43 = vld [vmem:[%s19640_s8 + $0x10] sm:$0xff]  }
 0x43e   : > { %5850 = vrot.lane.b32.xlu0 %v12053_v15, %s19664_s19  ;;  %v3898_v15 = vrot.slane %v3897_v36, 4  ;;  %v3938_v36 = vshll.u32 %v15210_v31, 16  ;;  %v4341_v38 = vsel %vm14431_vm15, %v4339_v32, %v4340_v29  ;;  %v4344_v30 = vrot.slane %v15210_v31, 5  ;;  %v13379_v32 = vld [vmem:[%s19640_s8 + $0x18] sm:$0xff]   ;;  %v13381_v29 = vld [vmem:[%s19640_s8 + $0x60] sm:$0xff]  }
 0x43f   : > { %v3927_v45 = vsel %vm13904_vm2, %v3922_v42, %v3926_v52  ;;  %v12054_v22 = vcombine.low %v4338_v33, %v4341_v38 }
 0x440   : > { %v3940_v12 = vrot.slane %v3938_v36, 5  ;;  %v12038_v14 = vcombine.low %v3917_v41, %v3927_v45  ;;  %v4346_v2 = vrot.slane %v4344_v30, 4  ;;  %v13373_v36 = vld [vmem:[%s19640_s8] sm:$0xff]   ;;  %v13378_v41 = vld [vmem:[%s19640_s8 + $0x58] sm:$0xff]  }
 0x442   : > { %6076 = vrot.lane.b32.xlu0 %v12102_v17, %s19666_s0  ;;  %v3903_v17 = vsel %vm13904_vm2, %v3898_v15, %v3902_v63  ;;  %v3942_v63 = vshrl.u32 %v15210_v31, 16  ;;  %v3931_v15 = vrot.slane %v3929_v47, 4 }
 0x443   : > { %v12037_v35 = vcombine.low %v3893_v48, %v3903_v17 }
 0x445   : > { %5770 = vrot.lane.b32.xlu1 %v12037_v35, %s19666_s0  ;;  %v12070_v35 = vcombine.low %v15100_v46, %v15079_v50 }
 0x446   : > { %6172 = vrot.lane.b32.xlu0 %v12118_v37, %s19664_s19  ;;  %v5106_v37 = vrot.slane %v5105_v61, 4  ;;  %v3944_v61 = vrot.slane %v3942_v63, 4  ;;  %v13375_v63 = vld [vmem:[%s19640_s8 + $0x8] sm:$0xff]  }
 0x448   : > { %v5111_v11 = vsel %vm13904_vm2, %v5106_v37, %v5110_v5  ;;  %v3866_v5 = vld [vmem:[%s15046_s24 + $0x20] sm:$0x1] }
 0x449   : > { %6170 = vrot.lane.b32.xlu1 %v12117_v40, %s19664_s19  ;;  %v3948_v62 = vshll.u32 %v3866_v5, 16  ;;  %v4347_v40 = vrot.slane %v3866_v5, 5  ;;  %v13386_v5 = vld [vmem:[%s19640_s8 + $0x70] sm:$0xff]  }
 0x44a   : > { %6252 = vrot.lane.b32.xlu0 %v12134_v6, %s13682_s27  ;;  %v5116_v6 = vrot.slane %v5115_v9, 4  ;;  %v4266_v9 = vld [vmem:[%s15046_s24 + $0x18] sm:$0xe] }
 0x44b   : > { %v3950_v37 = vrot.slane %v3948_v62, 5  ;;  %v11847_v28 = vrot.slane %v4266_v9, 9 }
 0x44d   : > { %v4345_v51 = vsel %vm14431_vm15, %v11847_v28, %v4344_v30 }
 0x44e   : > { %6078 = vrot.lane.b32.xlu0 %v12103_v16, %s19666_s0  ;;  %v5121_v16 = vsel %vm13904_vm2, %v5116_v6, %v5120_v49  ;;  %v3945_v49 = vor.u32 %v3944_v61, %v3940_v12 }
 0x44f   : > { %v12133_v1 = vcombine.low %v5111_v11, %v5121_v16  ;;  %v4348_v11 = vsel %vm14431_vm15, %v4346_v2, %v4347_v40 }
 0x450   : > { %v3946_v48 = vrot.slane %v3945_v49, 4  ;;  %v12055_v50 = vcombine.low %v4345_v51, %v4348_v11  ;;  %v5156_v51 = vshll.u32 %v15158_v60, 16 }
 0x451   : > { %6250 = vrot.lane.b32.xlu1 %v12133_v1, %s13682_s27 }
 0x452   : > { %6174 = vrot.lane.b32.xlu0 %v12119_v34, %s19664_s19  ;;  %v3932_v34 = vshll.u32 %v15207_v19, 16  ;;  %v3951_v6 = vsel %vm13904_vm2, %v3946_v48, %v3950_v37 }
 0x454   : > { %v3934_v57 = vrot.slane %v3932_v34, 5  ;;  %v13372_v34 = vld [vmem:[%s19640_s8 + $0x40] sm:$0xff]  }
 0x455   : > { %5946 = vrot.lane.b32.xlu1 %v12069_v20, %s13682_s27  ;;  %v13376_v20 = vld [vmem:[%s19640_s8 + $0x50] sm:$0xff]  }
 0x456   : > { %3621 = vrot.lane.b32.xlu0 %v15112_v44, %s19664_s19  ;;  %v3935_v17 = vor.u32 %v3934_v57, %v3931_v15  ;;  %v13382_v15 = vld [vmem:[%s19640_s8 + $0x20] sm:$0xff]   ;;  %v13384_v57 = vld [vmem:[%s19640_s8 + $0x68] sm:$0xff]  }
 0x458   : > { %v3936_v54 = vrot.slane %v3935_v17, 4  ;;  %v13387_v17 = vld [vmem:[%s19640_s8 + $0x30] sm:$0xff]  }
 0x459   : > { %5772 = vrot.lane.b32.xlu1 %v12038_v14, %s19666_s0  ;;  %v12021_v14 = vcombine.low %v15161_v24, %v15056_v55 }
 0x45a   : > { %v3941_v56 = vsel %vm13904_vm2, %v3936_v54, %v3940_v12  ;;  %v13385_v12 = vld [vmem:[%s19640_s8 + $0x28] sm:$0xff]  }
 0x45b   : > { %v12039_v27 = vcombine.low %v3941_v56, %v3951_v6 }
 0x45d   : > { %5852 = vrot.lane.b32.xlu1 %v12054_v22, %s19664_s19  ;;  %v13389_v22 = vld [vmem:[%s19640_s8 + $0x38] sm:$0xff]  }
 0x461   : > { %5948 = vrot.lane.b32.xlu1 %v12070_v35, %s13682_s27 }
 0x465   : > { %5774 = vrot.lane.b32.xlu1 %v12039_v27, %s19666_s0  ;;  %v5147_v27 = vshrl.u32 %v15155_v21, 16  ;;  %s19589_s0 = scalar_lea.hbm %s19649_s17, %s12542_s30 }
 0x467   : > { %v5149_v11 = vrot.slane %v5147_v27, 4 }
 0x469   : > { %5854 = vrot.lane.b32.xlu1 %v12055_v50, %s19664_s19 }
 0x4a8   : > { %v3548_v46 = vpop.permute.xlu0 %3547 }
 0x4a9   : > { %v3554_v16 = vsel %vm3549_vm14, %v3548_v46, 0  ;;  %v15327_v46 = vld [vmem:[%s15046_s24 + $0x24] sm:$0xf] }
 0x4aa   : > { %13073 = vmatpush3.bf16.xpose.msra.mxu1 %v3554_v16  ;;  %v15330_v16 = vld [vmem:[%s15046_s24 + $0x28] sm:$0xf] }
 0x4ab   : > { %12728 = vmatprep.subr.bf16.mxu1 %v13372_v34 }
 0x4ac   : > { %v6075_v0 = vpop.permute.xlu0 %6074 }
 0x4ad   : > { %v6461_v61 = vsel %vm3549_vm14, %v15114_v53, %v6075_v0  ;;  %v13388_v53 = vld [vmem:[%s19640_s8 + $0x78] sm:$0xff]  }
 0x4ae   : > { %v11975_v0 = vld [vmem:[%s15046_s24 + $0x38] sm:$0x1] }
 0x4b0   : > { %v5851_v52 = vpop.permute.xlu0 %5850 }
 0x4b1   : > { %13075 = vmatmul.mubr.msk.bf16.vlgmr.msra.gmra.mrb[44].mxu1 %vm3549_vm14, %v15112_v44  ;;  %v13374_v44 = vld [vmem:[%s19640_s8 + $0x48] sm:$0xff]  }
 0x4b2   : > { %12729 = vmatpush3.bf16.msra.mxu1 %v13373_v36 }
 0x4b3   : > { %12730 = vmatprep.subr.bf16.mxu1 %v13374_v44 }
 0x4b4   : > { %v6077_v1 = vpop.permute.xlu0 %6076 }
 0x4b5   : > { %v6464_v55 = vsel %vm3549_vm14, %v15130_v18, %v6077_v1  ;;  %v12022_v18 = vcombine.low %v15178_v13, %v15185_v23  ;;  %v5150_v13 = vshll.u32 %v15155_v21, 16  ;;  %v5160_v23 = vshrl.u32 %v15158_v60, 16 }
 0x4b6   : > { %12731 = vmatpush3.bf16.msra.mxu1 %v13375_v63  ;;  %v3953_v21 = vshrl.u32 %v15327_v46, 16  ;;  %v3962_v60 = vshll.u32 %v15330_v16, 16 }
 0x4b7   : > { %12732 = vmatprep.subr.bf16.mxu1 %v13376_v20  ;;  %v5771_v45 = vpop.permute.xlu1 %5770  ;;  %v5152_v50 = vrot.slane %v5150_v13, 5  ;;  %v5162_v1 = vrot.slane %v5160_v23, 4  ;;  %v5166_v20 = vshll.u32 %v11975_v0, 16 }
 0x4b8   : > { %v6173_v26 = vpop.permute.xlu0 %6172  ;;  %v6332_v49 = vsel %vm3549_vm14, %v12021_v14, %v5771_v45  ;;  %v3867_v14 = vld [vmem:[%s15046_s24 + $0x2c] sm:$0x1] }
 0x4b9   : > { %v6379_v54 = vsel %vm1172_vm3, %v6332_v49, %v5851_v52  ;;  %v6510_v48 = vsel %vm1172_vm3, %v6464_v55, %v6173_v26  ;;  %v15333_v52 = vrot.slane %v5156_v51, 5  ;;  %v5153_v44 = vor.u32 %v5152_v50, %v5149_v11  ;;  %v15369_v55 = vld [vmem:[%s15046_s24 + $0x30] sm:$0xf]  ;;  %v15386_v50 = vld [vmem:[%s15046_s24 + $0x24] sm:$0xf] }
 0x4ba   : > { %12733 = vmatpush3.bf16.msra.mxu1 %v13377_v43 }
 0x4bb   : > { %12734 = vmatprep.subr.bf16.mxu1 %v13378_v41  ;;  %v6171_v33 = vpop.permute.xlu1 %6170 }
 0x4bc   : > { %v6253_v4 = vpop.permute.xlu0 %6252  ;;  %v6508_v38 = vsel %vm1172_vm3, %v6461_v61, %v6171_v33  ;;  %v15354_v61 = vld [vmem:[%s15046_s24 + $0x3c] sm:$0xf]  ;;  %v5168_v33 = vrot.slane %v5166_v20, 5 }
 0x4bd   : > { %v6543_v30 = vsel %vm6410_vm0, %v6510_v48, %v6253_v4  ;;  %v3956_v4 = vshll.u32 %v15327_v46, 16  ;;  %v5171_v49 = vshrl.u32 %v15354_v61, 16 }
 0x4be   : > { %12735 = vmatpush3.bf16.msra.mxu1 %v13379_v32  ;;  %v5163_v32 = vor.u32 %v5162_v1, %v15333_v52 }
 0x4bf   : > { %12736 = vmatprep.subr.bf16.mxu1 %v13381_v29  ;;  %v15349_v29 = vld [vmem:[%s15046_s24 + $0x34] sm:$0xf]  ;;  %v3958_v45 = vrot.slane %v3956_v4, 5  ;;  %v5173_v51 = vrot.slane %v5171_v49, 4  ;;  %v15404_v49 = vld [vmem:[%s15046_s24 + $0x38] sm:$0x1] }
 0x4c0   : > { %v15252_v58 = vpop.permute.xlu0 %6078 }
 0x4c2   : > { %12737 = vmatpush3.bf16.msra.mxu1 %v13382_v15  ;;  %v3955_v15 = vrot.slane %v3953_v21, 4 }
 0x4c3   : > { %12738 = vmatprep.subr.bf16.mxu1 %v13384_v57  ;;  %v6251_v62 = vpop.permute.xlu1 %6250  ;;  %v15351_v57 = vrot.slane %v3962_v60, 5 }
 0x4c4   : > { %v15254_v47 = vpop.permute.xlu0 %6174  ;;  %v6540_v24 = vsel %vm6410_vm0, %v6508_v38, %v6251_v62  ;;  %v15360_v38 = vld [vmem:[%s15046_s24 + $0x38] sm:$0x1]  ;;  %v5174_v62 = vshll.u32 %v15354_v61, 16  ;;  %v3959_v48 = vor.u32 %v3958_v45, %v3955_v15  ;;  %v12071_v15 = vcombine.low %v15386_v50, %v15133_v59 }
 0x4c5   : > { %6811 = vmatprep.mubr.bf16.mxu1 %v6540_v24  ;;  %v15372_v24 = vld [vmem:[%s15046_s24 + $0x34] sm:$0xf] }
 0x4c6   : > { %12739 = vmatpush3.bf16.msra.mxu1 %v13385_v12  ;;  %v3990_v27 = vshrl.u32 %v15372_v24, 16  ;;  %v5176_v11 = vrot.slane %v5174_v62, 5  ;;  %v3960_v0 = vrot.slane %v3959_v48, 4  ;;  %v15429_v48 = vld [vmem:[%s15046_s24 + $0x30] sm:$0xf] }
 0x4c7   : > { %12740 = vmatprep.subr.bf16.mxu1 %v13386_v5  ;;  %v5947_v37 = vpop.permute.xlu1 %5946  ;;  %v15356_v5 = vrot.slane %v5153_v44, 4 }
 0x4c8   : > { %v3622_v42 = vpop.permute.xlu0 %3621  ;;  %v6412_v9 = vsel %vm6410_vm0, %v6379_v54, %v5947_v37  ;;  %v11912_v54 = vld [vmem:[%s15046_s24 + $0x30] sm:$0xe]  ;;  %v3965_v59 = vsel %vm13904_vm2, %v3960_v0, %v15351_v57 }
 0x4c9   : > { %13079 = vmatpush3.bf16.msra.mxu0 %v3622_v42  ;;  %v3966_v42 = vshrl.u32 %v15330_v16, 16  ;;  %v11928_v13 = vrot.slane %v11912_v54, 9  ;;  %v5159_v45 = vsel %vm13904_vm2, %v15356_v5, %v15333_v52 }
 0x4ca   : > { %12741 = vmatpush3.bf16.msra.mxu1 %v13387_v17  ;;  %v4960_v17 = vrot.slane %v15349_v29, 5 }
 0x4cb   : > { %12742 = vmatprep.subr.bf16.mxu1 %v13388_v53  ;;  %v5773_v35 = vpop.permute.xlu1 %5772  ;;  %v3968_v12 = vrot.slane %v3966_v42, 4  ;;  %v15364_v53 = vld [vmem:[%s15046_s24 + $0x40] sm:$0xf]  ;;  %v4354_v42 = vrot.slane %v3867_v14, 5 }
 0x4cc   : > { %v6335_v28 = vsel %vm3549_vm14, %v12022_v18, %v5773_v35  ;;  %19804 = vst [vmem:[#allocation16_spill] sm:$0xff] %v15364_v53  ;;  %v4963_v18 = vrot.slane %v15360_v38, 5  ;;  %v4267_v35 = vld [vmem:[%s15046_s24 + $0x24] sm:$0xe]  ;;  %v4962_v23 = vrot.slane %v4960_v17, 4  ;;  %v15408_v62 = vsel %vm14431_vm15, %v11928_v13, %v4960_v17 }
 0x4cd   : > { %v3969_v37 = vor.u32 %v3968_v12, %v15351_v57  ;;  %v11848_v4 = vrot.slane %v4267_v35, 9  ;;  %v15426_v57 = vld [vmem:[%s15046_s24 + $0x40] sm:$0xf] }
 0x4ce   : > { %12743 = vmatpush3.bf16.msra.mxu1 %v13389_v22  ;;  %v5164_v22 = vrot.slane %v5163_v32, 4  ;;  %v3992_v32 = vrot.slane %v3990_v27, 4  ;;  %v15418_v5 = vsel %vm14431_vm15, %v4962_v23, %v4963_v18  ;;  %v3996_v18 = vshll.u32 %v15404_v49, 16 }
 0x4cf   : > { %v5853_v56 = vpop.permute.xlu1 %5852  ;;  %v3970_v1 = vrot.slane %v3969_v37, 4  ;;  %v4967_v23 = vrot.slane %v15426_v57, 5 }
 0x4d0   : > { %v6381_v6 = vsel %vm1172_vm3, %v6335_v28, %v5853_v56  ;;  %v4351_v28 = vrot.slane %v15330_v16, 5  ;;  %v5180_v56 = vshll.u32 %v15364_v53, 16  ;;  %v5169_v12 = vsel %vm13904_vm2, %v5164_v22, %v5168_v33 }
 0x4d1   : > { %6812 = vmatmul.mubr.bf16.vlgmr.msra.gmra.mrb[48].mxu1 %v6412_v9  ;;  %v3972_v9 = vshll.u32 %v3867_v14, 16  ;;  %v5177_v14 = vor.u32 %v5176_v11, %v5173_v51  ;;  %v12135_v35 = vcombine.low %v5159_v45, %v5169_v12  ;;  %v15447_v51 = vld [vmem:[%s15046_s24 + $0x3c] sm:$0xf]  ;;  %v15450_v11 = vld [vmem:[%s15046_s24 + $0x40] sm:$0xf] }
 0x4d2   : > { %6819 = vmatprep.mubr.bf16.mxu1 %v6543_v30  ;;  %v5184_v30 = vshrl.u32 %v15364_v53, 16  ;;  %v4353_v60 = vrot.slane %v4351_v28, 4  ;;  %v4352_v33 = vsel %vm14431_vm15, %v11848_v4, %v4351_v28  ;;  %19806 = vst [vmem:[#allocation15_spill] sm:$0xff] %v15447_v51  ;;  %19807 = vst [vmem:[#allocation18_spill] sm:$0xff] %v15450_v11  ;;  %v4004_v45 = vshll.u32 %v15447_v51, 16 }
 0x4d3   : > { %v5949_v2 = vpop.permute.xlu1 %5948  ;;  %v3974_v21 = vrot.slane %v3972_v9, 5  ;;  %v4010_v12 = vshll.u32 %v15450_v11, 16 }
 0x4d4   : > { %v6415_v40 = vsel %vm6410_vm0, %v6381_v6, %v5949_v2  ;;  %v3977_v6 = vshrl.u32 %v15369_v55, 16  ;;  %v3980_v2 = vshll.u32 %v15369_v55, 16  ;;  %v5186_v44 = vrot.slane %v5184_v30, 4  ;;  %v15434_v30 = vld [vmem:[%s15046_s24 + $0x48] sm:$0xf] }
 0x4d5   : > { %v3975_v54 = vsel %vm13904_vm2, %v3970_v1, %v3974_v21  ;;  %v4355_v17 = vsel %vm14431_vm15, %v4353_v60, %v4354_v42  ;;  %v12072_v1 = vcombine.low %v15429_v48, %v15349_v29  ;;  %v15455_v21 = vld [vmem:[%s15046_s24 + $0x4c] sm:$0xf]  ;;  %v5195_v4 = vshrl.u32 %v15434_v30, 16 }
 0x4d6   : > { %v3979_v20 = vrot.slane %v3977_v6, 4  ;;  %v12040_v28 = vcombine.low %v3965_v59, %v3975_v54  ;;  %v15440_v6 = vld [vmem:[%s15046_s24 + $0x44] sm:$0x1]  ;;  %v12056_v27 = vcombine.low %v4352_v33, %v4355_v17  ;;  %19808 = vst [vmem:[#allocation22_spill] sm:$0xff] %v15455_v21  ;;  %v5198_v60 = vshll.u32 %v15434_v30, 16 }
 0x4d7   : > { %v4969_v59 = vrot.slane %v4967_v23, 4  ;;  %v4970_v54 = vrot.slane %v15440_v6, 5 }
 0x4d8   : > { %v5200_v33 = vrot.slane %v5198_v60, 5  ;;  %v4006_v60 = vrot.slane %v4004_v45, 5 }
 0x4d9   : > { %6820 = vmatmul.mubr.bf16.gmra.mrb[52].mxu1 %v6415_v40  ;;  %v3986_v40 = vshll.u32 %v15372_v24, 16 }
 0x584   : > { %v15335_v26 = vpop.f32.mrb[44].mxu1 }
 0x585   : > { %19802 = vst [vmem:[#allocation19_spill] sm:$0xff] %v15335_v26  ;;  %v13076_v34 = vpop.f32.mrb[45].mxu1  ;;  %v3598_v36 = vsel %vm3597_vm1, %v15335_v26, -inf }
 0x586   : > { %3599 = vmax.xlane.f32.xlu1 %v3598_v36  ;;  %v15343_v63 = vpop.f32.mrb[46].mxu1  ;;  %v15389_v34 = vld [vmem:[%s15046_s24 + $0x44] sm:$0x1]  ;;  %v15391_v36 = vrot.slane %v5180_v56, 5  ;;  %v15437_v56 = vrot.slane %v5177_v14, 4  ;;  %v4014_v14 = vshrl.u32 %v15450_v11, 16 }
 0x587   : > { %19803 = vst [vmem:[#allocation20_spill] sm:$0xff] %v15343_v63  ;;  %v13077_v43 = vpop.f32.mrb[47].mxu1  ;;  %v3601_v41 = vsel %vm3597_vm1, %v15343_v63, -inf  ;;  %19805 = vst [vmem:[#allocation17_spill] sm:$0xff] %v15389_v34  ;;  %v5190_v52 = vshll.u32 %v15389_v34, 16 }
 0x588   : > { %3602 = vmax.xlane.f32.xlu0 %v3601_v41  ;;  %v3982_v43 = vrot.slane %v3980_v2, 5  ;;  %v15393_v41 = vrot.slane %v3986_v40, 5  ;;  %v5187_v22 = vor.u32 %v5186_v44, %v15391_v36  ;;  %v11913_v2 = vld [vmem:[%s15046_s24 + $0x3c] sm:$0xe]  ;;  %v12104_v40 = vcombine.low %v15408_v62, %v15418_v5 }
 0x589   : > { %v5192_v13 = vrot.slane %v5190_v52, 5  ;;  %v11929_v62 = vrot.slane %v11913_v2, 9  ;;  %v5208_v52 = vshrl.u32 %v15455_v21, 16  ;;  %v5197_v5 = vrot.slane %v5195_v4, 4  ;;  %v15478_v2 = vld [vmem:[%s15046_s24 + $0x50] sm:$0x1] }
 0x58a   : > { %v3983_v37 = vor.u32 %v3982_v43, %v3979_v20  ;;  %v3993_v9 = vor.u32 %v3992_v32, %v15393_v41  ;;  %v5188_v0 = vrot.slane %v5187_v22, 4  ;;  %v3998_v20 = vrot.slane %v3996_v18, 5  ;;  %v4268_v43 = vld [vmem:[%s15046_s24 + $0x30] sm:$0xe]  ;;  %19811 = vst [vmem:[#allocation23_spill] sm:$0xff] %v15478_v2 }
 0x58b   : > { %v4358_v32 = vrot.slane %v15372_v24, 5  ;;  %v11849_v17 = vrot.slane %v4268_v43, 9  ;;  %v5204_v22 = vshll.u32 %v15455_v21, 16  ;;  %v15480_v43 = vrot.slane %v4010_v12, 5 }
 0x58c   : > { %v3984_v42 = vrot.slane %v3983_v37, 4  ;;  %v3994_v44 = vrot.slane %v3993_v9, 4  ;;  %v4016_v3 = vrot.slane %v4014_v14, 4 }
 0x58d   : > { %v4360_v18 = vrot.slane %v4358_v32, 4 }
 0x58e   : > { %v3989_v37 = vsel %vm13904_vm2, %v3984_v42, %v15393_v41  ;;  %v3999_v9 = vsel %vm13904_vm2, %v3994_v44, %v3998_v20  ;;  %v5183_v41 = vsel %vm13904_vm2, %v15437_v56, %v15391_v36  ;;  %v15491_v42 = vld [vmem:[%s15046_s24 + $0x44] sm:$0x1]  ;;  %v15499_v44 = vsel %vm14431_vm15, %v4969_v59, %v4970_v54  ;;  %v15519_v59 = vld [vmem:[%s15046_s24 + $0x4c] sm:$0xf]  ;;  %v3844_v54 = vld [vmem:[%s15046_s24 + $0x48] sm:$0xf] }
 0x58f   : > { %v5210_v20 = vrot.slane %v5208_v52, 4  ;;  %v12041_v36 = vcombine.low %v3989_v37, %v3999_v9  ;;  %v4359_v56 = vsel %vm14431_vm15, %v11849_v17, %v4358_v32  ;;  %v4017_v45 = vor.u32 %v4016_v3, %v15480_v43  ;;  %v15515_v32 = vld [vmem:[%s15046_s24 + $0x3c] sm:$0xf]  ;;  %v15523_v52 = vld [vmem:[%s15046_s24 + $0x4c] sm:$0xf] }
 0x590   : > { %v15532_v37 = vld [vmem:[%s15046_s24 + $0x58] sm:$0xf] }
 0x591   : > { %19812 = vst [vmem:[#allocation24_spill] sm:$0xff] %v15532_v37 }
 0x597   : > { %5950 = vrot.lane.b32.xlu1 %v12071_v15, %s13682_s27  ;;  %v4001_v15 = vshrl.u32 %v15447_v51, 16 }
 0x599   : > { %v4003_v4 = vrot.slane %v4001_v15, 4 }
 0x59b   : > { %5776 = vrot.lane.b32.xlu1 %v12040_v28, %s19809_s22  ;;  %v4361_v28 = vrot.slane %v15404_v49, 5  ;;  %v5193_v49 = vsel %vm13904_vm2, %v5188_v0, %v5192_v13  ;;  %v5201_v13 = vor.u32 %v5200_v33, %v5197_v5  ;;  %v4007_v15 = vor.u32 %v4006_v60, %v4003_v4  ;;  %v4269_v4 = vld [vmem:[%s15046_s24 + $0x3c] sm:$0xe] }
 0x59c   : > { %v4365_v60 = vrot.slane %v15450_v11, 5 }
 0x59d   : > { %v4362_v0 = vsel %vm14431_vm15, %v4360_v18, %v4361_v28  ;;  %v5202_v33 = vrot.slane %v5201_v13, 4  ;;  %v4008_v9 = vrot.slane %v4007_v15, 4  ;;  %v4018_v18 = vrot.slane %v4017_v45, 4 }
 0x59e   : > { %6254 = vrot.lane.b32.xlu0 %v12135_v35, %s13682_s27  ;;  %v12120_v35 = vcombine.low %v15354_v61, %v15364_v53  ;;  %v15501_v61 = vrot.slane %v5204_v22, 5  ;;  %v12057_v5 = vcombine.low %v4359_v56, %v4362_v0  ;;  %v15529_v22 = vld [vmem:[%s15046_s24 + $0x54] sm:$0xf]  ;;  %v15542_v56 = vld [vmem:[%s15046_s24 + $0x50] sm:$0x1]  ;;  %v5232_v15 = vshrl.u32 %v15532_v37, 16 }
 0x59f   : > { %5856 = vrot.lane.b32.xlu1 %v12056_v27, %s19810_s29  ;;  %v15495_v27 = vsel %vm14431_vm15, %v11929_v62, %v4967_v23  ;;  %v5214_v23 = vshll.u32 %v15478_v2, 16  ;;  %v12136_v62 = vcombine.low %v5183_v41, %v5193_v49  ;;  %v4028_v41 = vshll.u32 %v3844_v54, 16  ;;  %v15803_v2 = vld [vmem:[%s15046_s24 + $0x74] sm:$0x1] }
 0x5a0   : > { %v12105_v3 = vcombine.low %v15495_v27, %v15499_v44  ;;  %v4034_v49 = vshll.u32 %v15523_v52, 16  ;;  %v4038_v27 = vshrl.u32 %v15523_v52, 16  ;;  %v5219_v13 = vshrl.u32 %v15529_v22, 16 }
 0x5a1   : > { %v5216_v17 = vrot.slane %v5214_v23, 5  ;;  %v11914_v23 = vld [vmem:[%s15046_s24 + $0x48] sm:$0xe]  ;;  %v5222_v0 = vshll.u32 %v15529_v22, 16  ;;  %v11850_v45 = vrot.slane %v4269_v4, 9  ;;  %v4367_v14 = vrot.slane %v4365_v60, 4 }
 0x5a2   : > { %6080 = vrot.lane.b32.xlu0 %v12104_v40, %s19809_s22  ;;  %v4020_v40 = vshll.u32 %v15491_v42, 16  ;;  %v4030_v63 = vrot.slane %v4028_v41, 5  ;;  %v4036_v26 = vrot.slane %v4034_v49, 5  ;;  %v4040_v51 = vrot.slane %v4038_v27, 4 }
 0x5a3   : > { %5952 = vrot.lane.b32.xlu1 %v12072_v1, %s13682_s27  ;;  %v5211_v1 = vor.u32 %v5210_v20, %v15501_v61  ;;  %v12073_v20 = vcombine.low %v15515_v32, %v15426_v57  ;;  %v12121_v4 = vcombine.low %v15434_v30, %v15455_v21  ;;  %v5224_v41 = vrot.slane %v5222_v0, 5 }
 0x5a4   : > { %v4022_v28 = vrot.slane %v4020_v40, 5  ;;  %v4368_v40 = vrot.slane %v15491_v42, 5  ;;  %v5207_v42 = vsel %vm13904_vm2, %v5202_v33, %v15501_v61  ;;  %v4366_v49 = vsel %vm14431_vm15, %v11850_v45, %v4365_v60 }
 0x5a5   : > { %v5212_v44 = vrot.slane %v5211_v1, 4  ;;  %v4013_v1 = vsel %vm13904_vm2, %v4008_v9, %v15480_v43  ;;  %v4977_v43 = vrot.slane %v15542_v56, 5  ;;  %v15565_v9 = vld [vmem:[%s15046_s24 + $0x50] sm:$0x1]  ;;  %v5234_v33 = vrot.slane %v5232_v15, 4 }
 0x5a6   : > { %6176 = vrot.lane.b32.xlu0 %v12120_v35, %s19810_s29  ;;  %v4025_v35 = vshrl.u32 %v3844_v54, 16  ;;  %v4023_v54 = vsel %vm13904_vm2, %v4018_v18, %v4022_v28  ;;  %v4369_v27 = vsel %vm14431_vm15, %v4367_v14, %v4368_v40  ;;  %v4041_v11 = vor.u32 %v4040_v51, %v4036_v26  ;;  %v11871_v40 = vld [vmem:[%s15046_s24 + $0x48] sm:$0xf] }
 0x5a7   : > { %5778 = vrot.lane.b32.xlu1 %v12041_v36, %s19809_s22  ;;  %v4974_v36 = vrot.slane %v15519_v59, 5  ;;  %v5217_v18 = vsel %vm13904_vm2, %v5212_v44, %v5216_v17  ;;  %v12042_v30 = vcombine.low %v4013_v1, %v4023_v54  ;;  %v4044_v17 = vshll.u32 %v15565_v9, 16 }
 0x5a8   : > { %v4027_v12 = vrot.slane %v4025_v35, 4  ;;  %v5221_v35 = vrot.slane %v5219_v13, 4  ;;  %v19814_v44 = vshrl.u32 %v15429_v48, 16  ;;  %v12137_v60 = vcombine.low %v5207_v42, %v5217_v18 }
 0x5a9   : > { %v4976_v28 = vrot.slane %v4974_v36, 4  ;;  %v4046_v54 = vrot.slane %v4044_v17, 5  ;;  %v4613_v17 = vshll.u32 %v11871_v40, 16 }
 0x5aa   : > { %6256 = vrot.lane.b32.xlu0 %v12136_v62, %s13682_s27  ;;  %v5228_v62 = vshll.u32 %v15532_v37, 16  ;;  %v4564_v13 = vrot.slane %v19814_v44, 4  ;;  %v5225_v51 = vor.u32 %v5224_v41, %v5221_v35  ;;  %v4586_v35 = vshrl.u32 %v15515_v32, 16 }
 0x5ab   : > { %5858 = vrot.lane.b32.xlu1 %v12057_v5, %s19810_s29  ;;  %v11930_v5 = vrot.slane %v11914_v23, 9  ;;  %v15576_v23 = vld [vmem:[%s15046_s24 + $0x5c] sm:$0x1]  ;;  %v4978_v14 = vsel %vm14431_vm15, %v4976_v28, %v4977_v43  ;;  %v12074_v43 = vcombine.low %v11871_v40, %v15519_v59  ;;  %v4589_v41 = vshll.u32 %v15515_v32, 16 }
 0x5ac   : > { %v5230_v61 = vrot.slane %v5228_v62, 5  ;;  %19813 = vst [vmem:[#allocation25_spill] sm:$0xff] %v15576_v23  ;;  %v5238_v45 = vshll.u32 %v15576_v23, 16  ;;  %v4610_v32 = vshrl.u32 %v11871_v40, 16  ;;  %v4605_v40 = vshll.u32 %v15440_v6, 16 }
 0x5ad   : > { %v4975_v15 = vsel %vm14431_vm15, %v11930_v5, %v4974_v36  ;;  %v5226_v36 = vrot.slane %v5225_v51, 4 }
 0x5ae   : > { %6082 = vrot.lane.b32.xlu0 %v12105_v3, %s19809_s22  ;;  %v4031_v3 = vor.u32 %v4030_v63, %v4027_v12  ;;  %v12058_v63 = vcombine.low %v4366_v49, %v4369_v27  ;;  %v5235_v12 = vor.u32 %v5234_v33, %v5230_v61  ;;  %v5240_v5 = vrot.slane %v5238_v45, 5 }
 0x5af   : > { %5954 = vrot.lane.b32.xlu1 %v12073_v20, %s13682_s27  ;;  %v19815_v20 = vshll.u32 %v15429_v48, 16  ;;  %v4042_v48 = vrot.slane %v4041_v11, 4  ;;  %v4581_v11 = vshll.u32 %v15360_v38, 16  ;;  %v4571_v49 = vshll.u32 %v15349_v29, 16 }
 0x5b0   : > { %v4032_v1 = vrot.slane %v4031_v3, 4  ;;  %v5236_v42 = vrot.slane %v5235_v12, 4  ;;  %v4575_v33 = vshrl.u32 %v15349_v29, 16 }
 0x5b1   : > { %v4567_v0 = vrot.slane %v19815_v20, 5  ;;  %v4047_v28 = vsel %vm13904_vm2, %v4042_v48, %v4046_v54  ;;  %v4573_v44 = vrot.slane %v4571_v49, 5  ;;  %v4588_v20 = vrot.slane %v4586_v35, 4 }
 0x5b2   : > { %6178 = vrot.lane.b32.xlu0 %v12121_v4, %s19810_s29  ;;  %v12106_v4 = vcombine.low %v4975_v15, %v4978_v14  ;;  %v4037_v18 = vsel %vm13904_vm2, %v4032_v1, %v4036_v26  ;;  %v5231_v26 = vsel %vm13904_vm2, %v5226_v36, %v5230_v61  ;;  %v5241_v38 = vsel %vm13904_vm2, %v5236_v42, %v5240_v5 }
 0x5b3   : > { %5780 = vrot.lane.b32.xlu1 %v12042_v30, %s19809_s22  ;;  %v4568_v62 = vor.u32 %v4567_v0, %v4564_v13  ;;  %v12122_v30 = vcombine.low %v15529_v22, %v15532_v37  ;;  %v12043_v3 = vcombine.low %v4037_v18, %v4047_v28  ;;  %v4577_v13 = vrot.slane %v4575_v33, 4 }
 0x5b4   : > { %v4591_v22 = vrot.slane %v4589_v41, 5  ;;  %v12138_v0 = vcombine.low %v5231_v26, %v5241_v38  ;;  %v4612_v61 = vrot.slane %v4610_v32, 4  ;;  %v4615_v15 = vrot.slane %v4613_v17, 5  ;;  %v13490_v17 = vld [vmem:[%s15046_s24 + $0x28] sm:$0xf] }
 0x5b5   : > { %v4569_v27 = vrot.slane %v4568_v62, 4  ;;  %v4578_v29 = vor.u32 %v4577_v13, %v4573_v44  ;;  %v4595_v48 = vshll.u32 %v15426_v57, 16  ;;  %v4599_v54 = vshrl.u32 %v15426_v57, 16 }
 0x5b6   : > { %6258 = vrot.lane.b32.xlu0 %v12137_v60, %s13682_s27  ;;  %v4583_v60 = vrot.slane %v4581_v11, 5  ;;  %v4592_v51 = vor.u32 %v4591_v22, %v4588_v20  ;;  %v4616_v1 = vor.u32 %v4615_v15, %v4612_v61  ;;  %v4629_v62 = vshll.u32 %v15542_v56, 16 }
 0x5b7   : > { %5860 = vrot.lane.b32.xlu1 %v12058_v63, %s19810_s29  ;;  %v4574_v14 = vsel %vm13904_vm2, %v4569_v27, %v4573_v44  ;;  %v4579_v63 = vrot.slane %v4578_v29, 4  ;;  %v4597_v42 = vrot.slane %v4595_v48, 5  ;;  %v4601_v5 = vrot.slane %v4599_v54, 4  ;;  %v15651_v48 = vld [vmem:[%s15046_s24 + $0x58] sm:$0xf]  ;;  %v5775_v54 = vpop.permute.xlu1 %5774 }
 0x5b8   : > { %v4593_v36 = vrot.slane %v4592_v51, 4  ;;  %v4617_v28 = vrot.slane %v4616_v1, 4  ;;  %v4607_v35 = vrot.slane %v4605_v40, 5  ;;  %v4631_v49 = vrot.slane %v4629_v62, 5  ;;  %v15647_v40 = vld [vmem:[%s15046_s24 + $0x28] sm:$0xf] }
 0x5b9   : > { %v4584_v12 = vsel %vm13904_vm2, %v4579_v63, %v4583_v60  ;;  %v4602_v11 = vor.u32 %v4601_v5, %v4597_v42  ;;  %v4541_v32 = vshll.u32 %v15386_v50, 16  ;;  %v4547_v44 = vshll.u32 %v13490_v17, 16  ;;  %19816 = vst [vmem:[#allocation26_spill] sm:$0xff] %v15647_v40  ;;  %v15654_v62 = vld [vmem:[%s15046_s24 + $0x60] sm:$0xf] }
 0x5ba   : > { %6084 = vrot.lane.b32.xlu0 %v12106_v4, %s19809_s22  ;;  %v15618_v45 = vcombine.low %v4574_v14, %v4584_v12  ;;  %v4619_v4 = vshll.u32 %v15519_v59, 16  ;;  %v4598_v41 = vsel %vm13904_vm2, %v4593_v36, %v4597_v42  ;;  %v4551_v13 = vshrl.u32 %v13490_v17, 16  ;;  %v15659_v36 = vld [vmem:[%s15046_s24 + $0x5c] sm:$0x1]  ;;  %v11915_v42 = vld [vmem:[%s15046_s24 + $0x54] sm:$0xe] }
 0x5bb   : > { %5956 = vrot.lane.b32.xlu1 %v12074_v43, %s13682_s27  ;;  %v4623_v43 = vshrl.u32 %v15519_v59, 16  ;;  %v4543_v22 = vrot.slane %v4541_v32, 5  ;;  %v4557_v60 = vshll.u32 %v15138_v10, 16  ;;  %v19676_v1 = vrot.slane %v15647_v40, 5  ;;  %v15849_v40 = vld [vmem:[%s15046_s24 + $0x74] sm:$0x1] }
 0x5bc   : > { %v4621_v18 = vrot.slane %v4619_v4, 5  ;;  %v4553_v29 = vrot.slane %v4551_v13, 4  ;;  %v12023_v4 = vcombine.low %v15207_v19, %v15210_v31  ;;  %v4981_v5 = vrot.slane %v15651_v48, 5  ;;  %v15762_v19 = vld [vmem:[%s15046_s24 + $0x70] sm:$0xf] }
 0x5bd   : > { %v4625_v6 = vrot.slane %v4623_v43, 4  ;;  %v15665_v43 = vrot.slane %v19676_v1, 4  ;;  %19823 = vst [vmem:[#allocation33_spill] sm:$0xff] %v15762_v19 }
 0x5be   : > { %6180 = vrot.lane.b32.xlu0 %v12122_v30, %s19810_s29  ;;  %v4603_v30 = vrot.slane %v4602_v11, 4  ;;  %v4622_v33 = vsel %vm13904_vm2, %v4617_v28, %v4621_v18  ;;  %v15669_v28 = vld [vmem:[%s15046_s24 + $0x64] sm:$0xf]  ;;  %v5243_v11 = vshrl.u32 %v15654_v62, 16 }
 0x5bf   : > { %5782 = vrot.lane.b32.xlu1 %v12043_v3, %s19809_s22  ;;  %v4626_v57 = vor.u32 %v4625_v6, %v4621_v18  ;;  %v4538_v3 = vshrl.u32 %v15386_v50, 16  ;;  %v4559_v50 = vrot.slane %v4557_v60, 5  ;;  %19817 = vst [vmem:[#allocation27_spill] sm:$0xff] %v15665_v43  ;;  %v4372_v18 = vrot.slane %v15523_v52, 5  ;;  %v15674_v6 = vld [vmem:[%s15046_s24 + $0x2c] sm:$0x1] }
 0x5c0   : > { %v4608_v56 = vsel %vm13904_vm2, %v4603_v30, %v4607_v35  ;;  %v5246_v35 = vshll.u32 %v15654_v62, 16  ;;  %19818 = vst [vmem:[#allocation28_spill] sm:$0xff] %v15674_v6  ;;  %v6338_v52 = vsel %vm3549_vm14, %v12023_v4, %v5775_v54  ;;  %v5252_v32 = vshll.u32 %v15669_v28, 16  ;;  %v15716_v4 = vld [vmem:[%s15046_s24 + $0x58] sm:$0xf] }
 0x5c1   : > { %v4627_v27 = vrot.slane %v4626_v57, 4  ;;  %v15632_v59 = vcombine.low %v4598_v41, %v4608_v56  ;;  %v4540_v20 = vrot.slane %v4538_v3, 4  ;;  %v4270_v57 = vld [vmem:[%s15046_s24 + $0x48] sm:$0xe]  ;;  %v11931_v56 = vrot.slane %v11915_v42, 9  ;;  %v12744_v42 = vpop.f32.mrb[48].mxu1 }
 0x5c2   : > { %6260 = vrot.lane.b32.xlu0 %v12138_v0, %s13682_s27  ;;  %v4549_v0 = vrot.slane %v4547_v44, 5  ;;  %v4375_v3 = vrot.slane %v15565_v9, 5  ;;  %v11851_v17 = vrot.slane %v4270_v57, 9  ;;  %v4374_v44 = vrot.slane %v4372_v18, 4  ;;  %v15693_v9 = vld [vmem:[%s15046_s24 + $0x54] sm:$0xf] }
 0x5c3   : > { %v4632_v26 = vsel %vm13904_vm2, %v4627_v27, %v4631_v49  ;;  %v4544_v61 = vor.u32 %v4543_v22, %v4540_v20  ;;  %v5855_v27 = vpop.permute.xlu1 %5854  ;;  %v5245_v13 = vrot.slane %v5243_v11, 4  ;;  %v5248_v20 = vrot.slane %v5246_v35, 5  ;;  %v15731_v57 = vld [vmem:[%s15046_s24 + $0x64] sm:$0xf]  ;;  %v3850_v6 = vld [vmem:[%s15046_s24 + $0x6c] sm:$0xf] }
 0x5c4   : > { %v15636_v38 = vcombine.low %v4622_v33, %v4632_v26  ;;  %v4554_v15 = vor.u32 %v4553_v29, %v4549_v0  ;;  %v4984_v33 = vrot.slane %v15659_v36, 5  ;;  %v4983_v26 = vrot.slane %v4981_v5, 4  ;;  %v15751_v29 = vld [vmem:[%s15046_s24 + $0x68] sm:$0x1] }
 0x5c5   : > { %v4545_v14 = vrot.slane %v4544_v61, 4  ;;  %v15713_v54 = vrot.slane %v5252_v32, 5  ;;  %v15724_v35 = vsel %vm14431_vm15, %v11851_v17, %v4372_v18  ;;  %v4058_v17 = vshll.u32 %v15716_v4, 16  ;;  %19822 = vst [vmem:[#allocation32_spill] sm:$0xff] %v15751_v29 }
 0x5c6   : > { %v4555_v63 = vrot.slane %v4554_v15, 4  ;;  %v15700_v15 = vsel %vm1172_vm3, %v6338_v52, %v5855_v27  ;;  %v15720_v11 = vsel %vm14431_vm15, %v4983_v26, %v4984_v33  ;;  %v12745_v52 = vpop.f32.mrb[49].mxu1  ;;  %v4097_v7 = vshrl.u32 %v3850_v6, 16 }
 0x5c7   : > { %v4550_v51 = vsel %vm13904_vm2, %v4545_v14, %v4549_v0  ;;  %v4634_v14 = vshrl.u32 %v15693_v9, 16  ;;  %v15734_v32 = vadd.f32 %v12745_v52, %v12744_v42  ;;  %v12747_v33 = vpop.f32.mrb[50].mxu1  ;;  %v15757_v0 = vld [vmem:[%s15046_s24 + $0x6c] sm:$0xf]  ;;  %v15759_v30 = vrot.slane %v4058_v17, 5 }
 0x5c8   : > { %v4560_v12 = vsel %vm13904_vm2, %v4555_v63, %v4559_v50  ;;  %v4637_v63 = vshll.u32 %v15693_v9, 16  ;;  %v15705_v50 = vld [vmem:[%s15046_s24 + $0x68] sm:$0x1]  ;;  %v4991_v42 = vrot.slane %v15751_v29, 5  ;;  %v15841_v29 = vld [vmem:[%s15046_s24 + $0x64] sm:$0xf] }
 0x5c9   : > { %v12087_v10 = vcombine.low %v4550_v51, %v4560_v12  ;;  %19819 = vst [vmem:[#allocation29_spill] sm:$0xff] %v15705_v50  ;;  %v3846_v51 = vld [vmem:[%s15046_s24 + $0x54] sm:$0xf]  ;;  %19820 = vst [vmem:[#allocation30_spill] sm:$0xff] %v15734_v32  ;;  %v4636_v26 = vrot.slane %v4634_v14, 4  ;;  %v4988_v12 = vrot.slane %v15731_v57, 5 }
 0x5ca   : > { %v4049_v27 = vshrl.u32 %v3846_v51, 16  ;;  %v4639_v18 = vrot.slane %v4637_v63, 5  ;;  %v15766_v14 = vld [vmem:[%s15046_s24 + $0x5c] sm:$0x1]  ;;  %v4086_v43 = vshrl.u32 %v15841_v29, 16 }
 0x5cb   : > { %v6467_v31 = vsel %vm3549_vm14, %v12087_v10, %v15252_v58  ;;  %v5256_v58 = vshrl.u32 %v15669_v28, 16  ;;  %v15711_v10 = vsel %vm14431_vm15, %v11931_v56, %v4981_v5  ;;  %v5249_v5 = vor.u32 %v5248_v20, %v5245_v13 }
 0x5cc   : > { %v15697_v61 = vsel %vm1172_vm3, %v6467_v31, %v15254_v47  ;;  %v15728_v31 = vsel %vm14431_vm15, %v4374_v44, %v4375_v3  ;;  %v5262_v56 = vshll.u32 %v15705_v50, 16  ;;  %v4062_v3 = vshrl.u32 %v15716_v4, 16  ;;  %v12748_v44 = vpop.f32.mrb[51].mxu1 }
 0x5cd   : > { %v5258_v47 = vrot.slane %v5256_v58, 4  ;;  %v4052_v58 = vshll.u32 %v3846_v51, 16  ;;  %v15741_v51 = vadd.f32 %v12748_v44, %v12747_v33  ;;  %v5250_v44 = vrot.slane %v5249_v5, 4 }
 0x5ce   : > { %v4051_v22 = vrot.slane %v4049_v27, 4  ;;  %v4640_v49 = vor.u32 %v4639_v18, %v4636_v26  ;;  %v5264_v1 = vrot.slane %v5262_v56, 5  ;;  %v4064_v63 = vrot.slane %v4062_v3, 4  ;;  %v12750_v26 = vpop.f32.mrb[52].mxu1 }
 0x5cf   : > { %v5259_v20 = vor.u32 %v5258_v47, %v15713_v54  ;;  %19821 = vst [vmem:[#allocation31_spill] sm:$0xff] %v15741_v51  ;;  %v11916_v47 = vld [vmem:[%s15046_s24 + $0x60] sm:$0xe]  ;;  %v4054_v60 = vrot.slane %v4052_v58, 5  ;;  %v4990_v52 = vrot.slane %v4988_v12, 4  ;;  %v5267_v58 = vshrl.u32 %v15757_v0, 16 }
 0x5d0   : > { %v11932_v13 = vrot.slane %v11916_v47, 9  ;;  %v5270_v56 = vshll.u32 %v15757_v0, 16  ;;  %v5255_v18 = vsel %vm13904_vm2, %v5250_v44, %v15713_v54  ;;  %v5280_v3 = vshrl.u32 %v15762_v19, 16  ;;  %v12751_v47 = vpop.f32.mrb[53].mxu1 }
 0x5d1   : > { %v5260_v41 = vrot.slane %v5259_v20, 4  ;;  %v4055_v17 = vor.u32 %v4054_v60, %v4051_v22  ;;  %v5276_v20 = vshll.u32 %v15762_v19, 16  ;;  %v4065_v27 = vor.u32 %v4064_v63, %v15759_v30  ;;  %v12753_v32 = vpop.f32.mrb[54].mxu1  ;;  %v4271_v63 = vld [vmem:[%s15046_s24 + $0x54] sm:$0xe] }
 0x5d2   : > { %v4068_v33 = vshll.u32 %v15766_v14, 16  ;;  %v15782_v51 = vadd.f32 %v12751_v47, %v12750_v26  ;;  %v15784_v50 = vrot.slane %v4640_v49, 4  ;;  %v15790_v60 = vsel %vm14431_vm15, %v11932_v13, %v4988_v12  ;;  %v12754_v44 = vpop.f32.mrb[55].mxu1  ;;  %v19827_v47 = vld [vmem:[#allocation18_spill] sm:$0xff] }
 0x5d3   : > { %v5265_v22 = vsel %vm13904_vm2, %v5260_v41, %v5264_v1  ;;  %v15794_v54 = vsel %vm14431_vm15, %v4990_v52, %v4991_v42  ;;  %v5269_v5 = vrot.slane %v5267_v58, 4  ;;  %v5272_v23 = vrot.slane %v5270_v56, 5  ;;  %19829 = vst [vmem:[#allocation18_spill] sm:$0xff] %v15803_v2  ;;  %v15828_v1 = vld [vmem:[%s15046_s24 + $0x70] sm:$0xf] }
 0x5d4   : > { %19824 = vst [vmem:[#allocation34_spill] sm:$0xff] %v15782_v51  ;;  %19825 = vst [vmem:[#allocation35_spill] sm:$0xff] %v15784_v50  ;;  %v4379_v26 = vrot.slane %v15716_v4, 5  ;;  %v15798_v49 = vadd.f32 %v12754_v44, %v12753_v32  ;;  %v19828_v51 = vld [vmem:[#allocation15_spill] sm:$0xff]  ;;  %v4056_v41 = vrot.slane %v4055_v17, 4  ;;  %v15805_v12 = vrot.slane %v5276_v20, 5 }
 0x5d5   : > { %v5282_v13 = vrot.slane %v5280_v3, 4  ;;  %v4066_v52 = vrot.slane %v4065_v27, 4  ;;  %v4070_v58 = vrot.slane %v4068_v33, 5  ;;  %v11852_v56 = vrot.slane %v4271_v63, 9  ;;  %v15816_v20 = vld [vmem:[%s15046_s24 + $0x60] sm:$0xf] }
 0x5d6   : > { %19826 = vst [vmem:[#allocation36_spill] sm:$0xff] %v15798_v49  ;;  %v15808_v34 = vcombine.low %v5255_v18, %v5265_v22  ;;  %v4381_v3 = vrot.slane %v4379_v26, 4  ;;  %v4382_v27 = vrot.slane %v15766_v14, 5  ;;  %v5273_v33 = vor.u32 %v5272_v23, %v5269_v5  ;;  %v3848_v22 = vld [vmem:[%s15046_s24 + $0x60] sm:$0xf]  ;;  %v19830_v63 = vld [vmem:[#allocation19_spill] sm:$0xff] }
 0x5d7   : > { %v5286_v18 = vshll.u32 %v15803_v2, 16  ;;  %v4061_v32 = vsel %vm13904_vm2, %v4056_v41, %v15759_v30  ;;  %v5283_v17 = vor.u32 %v5282_v13, %v15805_v12  ;;  %v4658_v4 = vshrl.u32 %v15816_v20, 16  ;;  %v11917_v30 = vld [vmem:[%s15046_s24 + $0x6c] sm:$0xe]  ;;  %v19831_v13 = vld [vmem:[#allocation20_spill] sm:$0xff]  ;;  %19832 = vst [vmem:[#allocation15_spill] sm:$0xff] %v15849_v40 }
 0x5d8   : > { %v4071_v23 = vsel %vm13904_vm2, %v4066_v52, %v4070_v58  ;;  %v15834_v14 = vsel %vm14431_vm15, %v11852_v56, %v4379_v26  ;;  %v4073_v37 = vshrl.u32 %v3848_v22, 16  ;;  %v4076_v21 = vshll.u32 %v3848_v22, 16  ;;  %v15982_v50 = vld [vmem:[%s15046_s24 + $0x74] sm:$0x1] }
 0x5d9   : > { %v15845_v52 = vsel %vm14431_vm15, %v4381_v3, %v4382_v27  ;;  %v5274_v26 = vrot.slane %v5273_v33, 4  ;;  %v5288_v58 = vrot.slane %v5286_v18, 5  ;;  %v4995_v56 = vrot.slane %v15828_v1, 5  ;;  %v15854_v3 = vld [vmem:[%s15046_s24 + $0x78] sm:$0xf] }
 0x5da   : > { %v5284_v2 = vrot.slane %v5283_v17, 4  ;;  %v11933_v39 = vrot.slane %v11917_v30, 9  ;;  %v4082_v22 = vshll.u32 %v15841_v29, 16  ;;  %19833 = vst [vmem:[#allocation19_spill] sm:$0xff] %v15854_v3  ;;  %v4075_v33 = vrot.slane %v4073_v37, 4 }
 0x5db   : > { %v4078_v18 = vrot.slane %v4076_v21, 5  ;;  %v4997_v30 = vrot.slane %v4995_v56, 4  ;;  %v5279_v37 = vsel %vm13904_vm2, %v5274_v26, %v15805_v12  ;;  %v15869_v21 = vld [vmem:[%s15046_s24 + $0x7c] sm:$0xf] }
 0x5dc   : > { %19834 = vst [vmem:[#allocation20_spill] sm:$0xff] %v15869_v21  ;;  %v5289_v12 = vsel %vm13904_vm2, %v5284_v2, %v5288_v58  ;;  %v4272_v2 = vld [vmem:[%s15046_s24 + $0x60] sm:$0xe]  ;;  %v5300_v58 = vshll.u32 %v15869_v21, 16 }
 0x613   : > { %v3600_v44 = vpop.xlane.xlu1 %3599 }
 0x614   : > { %v3604_v42 = vsub.f32 %v19830_v63, %v3600_v44  ;;  %v4661_v44 = vshll.u32 %v15816_v20, 16 }
 0x615   : > { %v3603_v49 = vpop.xlane.xlu0 %3602 }
 0x616   : > { %v3606_v41 = vmul.f32 1.442695, %v3604_v42  ;;  %v3605_v63 = vsub.f32 %v19831_v13, %v3603_v49  ;;  %v4660_v42 = vrot.slane %v4658_v4, 4  ;;  %v4663_v13 = vrot.slane %v4661_v44, 5 }
 0x617   : > { %v5951_v53 = vpop.permute.xlu1 %5950  ;;  %v15860_v44 = vcombine.low %v4061_v32, %v4071_v23 }
 0x618   : > { %13480 = vpow2.f32 %v3606_v41  ;;  %v3608_v5 = vmul.f32 1.442695, %v3605_v63  ;;  %v6418_v4 = vsel %vm6410_vm0, %v15700_v15, %v5951_v53  ;;  %v4998_v41 = vrot.slane %v15849_v40, 5  ;;  %v15876_v63 = vld [vmem:[%s15046_s24 + $0x68] sm:$0x1] }
 0x619   : > { %v6255_v49 = vpop.permute.xlu0 %6254  ;;  %v5294_v53 = vshll.u32 %v15854_v3, 16  ;;  %v4664_v32 = vor.u32 %v4663_v13, %v4660_v42  ;;  %v19836_v42 = vcombine.low %v15327_v46, %v15330_v16 }
 0x61a   : > { %13482 = vpow2.f32 %v3608_v5  ;;  %v6546_v27 = vsel %vm6410_vm0, %v15697_v61, %v6255_v49  ;;  %v5291_v61 = vshrl.u32 %v15854_v3, 16  ;;  %v15878_v49 = vrot.slane %v4082_v22, 5 }
 0x61b   : > { %6827 = vmatprep.mubr.bf16.mxu1 %v6546_v27  ;;  %v5777_v17 = vpop.permute.xlu1 %5776  ;;  %v4088_v27 = vrot.slane %v4086_v43, 4  ;;  %v4079_v5 = vor.u32 %v4078_v18, %v4075_v33  ;;  %v15893_v22 = vsel %vm14431_vm15, %v4997_v30, %v4998_v41  ;;  %v5304_v43 = vshrl.u32 %v15869_v21, 16 }
 0x61c   : > { %6828 = vmatmul.mubr.bf16.gmra.mrb[56].mxu1 %v6418_v4  ;;  %v15885_v4 = vsel %vm14431_vm15, %v11933_v39, %v4995_v56  ;;  %v6341_v13 = vsel %vm3549_vm14, %v19836_v42, %v5777_v17  ;;  %19837 = vst [vmem:[#allocation38_spill] sm:$0xff] %v15893_v22  ;;  %v4092_v56 = vshll.u32 %v15876_v63, 16  ;;  %v5293_v33 = vrot.slane %v5291_v61, 4 }
 0x61d   : > { %v6081_v15 = vpop.permute.xlu0 %6080  ;;  %19835 = vst [vmem:[#allocation37_spill] sm:$0xff] %v15885_v4  ;;  %v5296_v46 = vrot.slane %v5294_v53, 5  ;;  %v15901_v18 = vcombine.low %v5279_v37, %v5289_v12  ;;  %v15903_v17 = vrot.slane %v4664_v32, 4  ;;  %v4089_v30 = vor.u32 %v4088_v27, %v15878_v49 }
 0x61e   : > { %v6470_v39 = vsel %vm3549_vm14, %v15618_v45, %v6081_v15  ;;  %v4386_v41 = vrot.slane %v15841_v29, 5  ;;  %v15912_v61 = vrot.slane %v4079_v5, 4  ;;  %v11853_v53 = vrot.slane %v4272_v2, 9  ;;  %v15915_v15 = vld [vmem:[%s15046_s24 + $0x80] sm:$0x1] }
 0x61f   : > { %v5857_v23 = vpop.permute.xlu1 %5856  ;;  %19838 = vst [vmem:[#allocation39_spill] sm:$0xff] %v15901_v18  ;;  %19839 = vst [vmem:[#allocation40_spill] sm:$0xff] %v15903_v17  ;;  %v15920_v29 = vrot.slane %v5300_v58, 5  ;;  %v5306_v12 = vrot.slane %v5304_v43, 4  ;;  %v4094_v5 = vrot.slane %v4092_v56, 5  ;;  %v4389_v45 = vrot.slane %v15876_v63, 5 }
 0x620   : > { %v6385_v26 = vsel %vm1172_vm3, %v6341_v13, %v5857_v23  ;;  %19841 = vst [vmem:[#allocation42_spill] sm:$0xff] %v15915_v15  ;;  %v15923_v23 = vld [vmem:[%s15046_s24 + $0x6c] sm:$0xf]  ;;  %v5297_v40 = vor.u32 %v5296_v46, %v5293_v33  ;;  %v4388_v17 = vrot.slane %v4386_v41, 4  ;;  %v15941_v46 = vld [vmem:[%s15046_s24 + $0x70] sm:$0xf] }
 0x621   : > { %v6177_v16 = vpop.permute.xlu0 %6176  ;;  %v4682_v63 = vshrl.u32 %v15923_v23, 16  ;;  %v4685_v33 = vshll.u32 %v15923_v23, 16  ;;  %v4100_v22 = vshll.u32 %v3850_v6, 16  ;;  %v15969_v6 = vld [vmem:[%s15046_s24 + $0x84] sm:$0xf]  ;;  %v4099_v18 = vrot.slane %v4097_v7, 4 }
 0x622   : > { %v15907_v42 = vpop.eup %13480  ;;  %v6514_v32 = vsel %vm1172_vm3, %v6470_v39, %v6177_v16  ;;  %v4090_v16 = vrot.slane %v4089_v30, 4 }
 0x623   : > { %19840 = vst [vmem:[#allocation41_spill] sm:$0xff] %v15907_v42  ;;  %v3610_v37 = vsel %vm3597_vm1, %v15907_v42, 0.0  ;;  %v5953_v27 = vpop.permute.xlu1 %5952  ;;  %v15930_v42 = vld [vmem:[%s15046_s24 + $0x7c] sm:$0xf]  ;;  %v4687_v21 = vrot.slane %v4685_v33, 5 }
 0x624   : > { %v15925_v13 = vpop.eup %13482  ;;  %3611 = vadd.xlane.f32.xlu0 %v3610_v37  ;;  %v6421_v43 = vsel %vm6410_vm0, %v6385_v26, %v5953_v27  ;;  %v5310_v37 = vshll.u32 %v15915_v15, 16  ;;  %v4085_v26 = vsel %vm13904_vm2, %v15912_v61, %v15878_v49  ;;  %v5307_v27 = vor.u32 %v5306_v12, %v15920_v29 }
 0x625   : > { %19842 = vst [vmem:[#allocation43_spill] sm:$0xff] %v15925_v13  ;;  %v3613_v39 = vsel %vm3597_vm1, %v15925_v13, 0.0  ;;  %v6257_v58 = vpop.permute.xlu0 %6256  ;;  %v5002_v13 = vrot.slane %v15930_v42, 5  ;;  %v4095_v61 = vsel %vm13904_vm2, %v4090_v16, %v4094_v5  ;;  %v15966_v12 = vsel %vm14431_vm15, %v4388_v17, %v4389_v45 }
 0x626   : > { %3614 = vadd.xlane.f32.xlu1 %v3613_v39  ;;  %v6549_v56 = vsel %vm6410_vm0, %v6514_v32, %v6257_v58  ;;  %v15951_v32 = vsel %vm14431_vm15, %v11853_v53, %v4386_v41  ;;  %v15955_v39 = vld [vmem:[%s15046_s24 + $0x80] sm:$0x1]  ;;  %v5298_v58 = vrot.slane %v5297_v40, 4  ;;  %v4106_v41 = vshll.u32 %v15941_v46, 16 }
 0x627   : > { %6835 = vmatprep.mubr.bf16.mxu1 %v6549_v56  ;;  %v5779_v2 = vpop.permute.xlu1 %5778  ;;  %19843 = vst [vmem:[#allocation44_spill] sm:$0xff] %v15955_v39  ;;  %v11918_v56 = vld [vmem:[%s15046_s24 + $0x78] sm:$0xe]  ;;  %v4110_v53 = vshrl.u32 %v15941_v46, 16  ;;  %v5312_v40 = vrot.slane %v5310_v37, 5  ;;  %v19844_v5 = vcombine.low %v15369_v55, %v15372_v24  ;;  %v5308_v15 = vrot.slane %v5307_v27, 4 }
 0x628   : > { %6836 = vmatmul.mubr.bf16.gmra.mrb[60].mxu1 %v6421_v43  ;;  %v4684_v43 = vrot.slane %v4682_v63, 4  ;;  %v11934_v3 = vrot.slane %v11918_v56, 9  ;;  %v5005_v4 = vrot.slane %v15955_v39, 5  ;;  %v5004_v45 = vrot.slane %v5002_v13, 4  ;;  %v15979_v63 = vld [vmem:[%s15046_s24 + $0x88] sm:$0xf] }
 0x629   : > { %v6083_v49 = vpop.permute.xlu0 %6082  ;;  %v6344_v16 = vsel %vm3549_vm14, %v19844_v5, %v5779_v2  ;;  %v4102_v37 = vrot.slane %v4100_v22, 5  ;;  %v15984_v19 = vrot.slane %v4106_v41, 5  ;;  %v4112_v55 = vrot.slane %v4110_v53, 4 }
 0x62a   : > { %v6473_v17 = vsel %vm3549_vm14, %v15632_v59, %v6083_v49  ;;  %v5315_v24 = vshrl.u32 %v15969_v6, 16  ;;  %v5318_v2 = vshll.u32 %v15969_v6, 16  ;;  %v15989_v56 = vcombine.low %v4085_v26, %v4095_v61 }
 0x62b   : > { %v5859_v30 = vpop.permute.xlu1 %5858  ;;  %v5303_v7 = vsel %vm13904_vm2, %v5298_v58, %v15920_v29  ;;  %v4688_v59 = vor.u32 %v4687_v21, %v4684_v43  ;;  %v5313_v41 = vsel %vm13904_vm2, %v5308_v15, %v5312_v40  ;;  %v5328_v53 = vshrl.u32 %v15979_v63, 16 }
 0x62c   : > { %v6387_v27 = vsel %vm1172_vm3, %v6344_v16, %v5859_v30  ;;  %v5324_v5 = vshll.u32 %v15979_v63, 16  ;;  %v16001_v26 = vsel %vm14431_vm15, %v11934_v3, %v5002_v13  ;;  %v16005_v29 = vsel %vm14431_vm15, %v5004_v45, %v5005_v4  ;;  %v4273_v13 = vld [vmem:[%s15046_s24 + $0x6c] sm:$0xe] }
 0x62d   : > { %v6179_v33 = vpop.permute.xlu0 %6178  ;;  %v4103_v21 = vor.u32 %v4102_v37, %v4099_v18  ;;  %v4116_v30 = vshll.u32 %v15982_v50, 16  ;;  %v4113_v61 = vor.u32 %v4112_v55, %v15984_v19  ;;  %v5317_v40 = vrot.slane %v5315_v24, 4  ;;  %v3852_v18 = vld [vmem:[%s15046_s24 + $0x78] sm:$0xf] }
 0x62e   : > { %v6516_v22 = vsel %vm1172_vm3, %v6473_v17, %v6179_v33  ;;  %v5320_v43 = vrot.slane %v5318_v2, 5  ;;  %v16018_v17 = vld [vmem:[%s15046_s24 + $0x8c] sm:$0x1]  ;;  %v16020_v37 = vcombine.low %v5303_v7, %v5313_v41  ;;  %v16022_v33 = vrot.slane %v4688_v59, 4  ;;  %v16027_v2 = vld [vmem:[%s15046_s24 + $0x78] sm:$0xf] }
 0x62f   : > { %v5955_v49 = vpop.permute.xlu1 %5954  ;;  %19845 = vst [vmem:[#allocation45_spill] sm:$0xff] %v16018_v17  ;;  %v16024_v55 = vrot.slane %v5324_v5, 5  ;;  %v5330_v24 = vrot.slane %v5328_v53, 4  ;;  %v4114_v41 = vrot.slane %v4113_v61, 4  ;;  %v4393_v59 = vrot.slane %v15941_v46, 5 }
 0x630   : > { %v6424_v15 = vsel %vm6410_vm0, %v6387_v27, %v5955_v49  ;;  %19846 = vst [vmem:[#allocation46_spill] sm:$0xff] %v16022_v33  ;;  %v4118_v49 = vrot.slane %v4116_v30, 5  ;;  %v5321_v5 = vor.u32 %v5320_v43, %v5317_v40  ;;  %v5334_v53 = vshll.u32 %v16018_v17, 16  ;;  %v16068_v33 = vld [vmem:[%s15046_s24 + $0x7c] sm:$0xf] }
 0x631   : > { %v6259_v58 = vpop.permute.xlu0 %6258  ;;  %v11854_v27 = vrot.slane %v4273_v13, 9  ;;  %v4709_v30 = vshll.u32 %v16027_v2, 16  ;;  %v19848_v46 = vcombine.low %v19828_v51, %v19827_v47  ;;  %v4396_v43 = vrot.slane %v15982_v50, 5  ;;  %v11919_v13 = vld [vmem:[%s15046_s24 + $0x84] sm:$0xe] }
 0x632   : > { %v6552_v16 = vsel %vm6410_vm0, %v6516_v22, %v6259_v58  ;;  %v4104_v22 = vrot.slane %v4103_v21, 4  ;;  %v4706_v21 = vshrl.u32 %v16027_v2, 16  ;;  %v19847_v58 = vcombine.low %v15724_v35, %v15728_v31  ;;  %v11903_v31 = vld [vmem:[%s15046_s24 + $0x8c] sm:$0x1] }
 0x633   : > { %6843 = vmatprep.mubr.bf16.mxu1 %v6552_v16  ;;  %v5781_v45 = vpop.permute.xlu1 %5780  ;;  %v16033_v16 = vld [vmem:[%s15046_s24 + $0x88] sm:$0xf]  ;;  %v4121_v51 = vshrl.u32 %v3852_v18, 16  ;;  %v4124_v47 = vshll.u32 %v3852_v18, 16  ;;  %v4119_v50 = vsel %vm13904_vm2, %v4114_v41, %v4118_v49  ;;  %v19849_v39 = vcombine.low %v15711_v10, %v15720_v11 }
 0x634   : > { %6844 = vmatmul.mubr.bf16.gmra.mrb[64].mxu1 %v6424_v15  ;;  %v6347_v61 = vsel %vm3549_vm14, %v19848_v46, %v5781_v45  ;;  %v5331_v15 = vor.u32 %v5330_v24, %v16024_v55  ;;  %v5009_v4 = vrot.slane %v16033_v16, 5  ;;  %v4109_v35 = vsel %vm13904_vm2, %v4104_v22, %v15984_v19 }
 0x635   : > { %v6085_v7 = vpop.permute.xlu0 %6084  ;;  %v5322_v24 = vrot.slane %v5321_v5, 4  ;;  %v5336_v46 = vrot.slane %v5334_v53, 5  ;;  %v4711_v19 = vrot.slane %v4709_v30, 5  ;;  %v11935_v22 = vrot.slane %v11919_v13, 9 }
 0x636   : > { %v6476_v3 = vsel %vm3549_vm14, %v15636_v38, %v6085_v7  ;;  %v4708_v7 = vrot.slane %v4706_v21, 4  ;;  %v19850_v18 = vcombine.low %v15693_v9, %v15651_v48  ;;  %v5332_v5 = vrot.slane %v5331_v15, 4 }
 0x637   : > { %5862 = vrot.lane.b32.xlu1 %v19847_v58, %s19810_s29  ;;  %v5861_v40 = vpop.permute.xlu1 %5860  ;;  %v4395_v58 = vrot.slane %v4393_v59, 4  ;;  %v5011_v10 = vrot.slane %v5009_v4, 4  ;;  %v5012_v11 = vrot.slane %v11903_v31, 5  ;;  %v16079_v53 = vsel %vm14431_vm15, %v11854_v27, %v4393_v59 }
 0x638   : > { %v6389_v38 = vsel %vm1172_vm3, %v6347_v61, %v5861_v40  ;;  %v4123_v21 = vrot.slane %v4121_v51, 4  ;;  %v4126_v30 = vrot.slane %v4124_v47, 5  ;;  %v16082_v61 = vld [vmem:[%s15046_s24 + $0x90] sm:$0xf]  ;;  %v4130_v15 = vshll.u32 %v16068_v33, 16 }
 0x639   : > { %v6181_v45 = vpop.permute.xlu0 %6180  ;;  %v4134_v13 = vshrl.u32 %v16068_v33, 16  ;;  %v19851_v27 = vcombine.low %v15654_v62, %v15669_v28  ;;  %v5327_v31 = vsel %vm13904_vm2, %v5322_v24, %v16024_v55  ;;  %v4712_v51 = vor.u32 %v4711_v19, %v4708_v7 }
 0x63a   : > { %6086 = vrot.lane.b32.xlu0 %v19849_v39, %s19809_s22  ;;  %v6518_v49 = vsel %vm1172_vm3, %v6476_v3, %v6181_v45  ;;  %v16075_v39 = vcombine.low %v4109_v35, %v4119_v50  ;;  %v16087_v3 = vsel %vm14431_vm15, %v4395_v58, %v4396_v43  ;;  %v16092_v35 = vld [vmem:[%s15046_s24 + $0x94] sm:$0xf]  ;;  %v16104_v43 = vsel %vm14431_vm15, %v11935_v22, %v5009_v4  ;;  %v16115_v45 = vld [vmem:[%s15046_s24 + $0x80] sm:$0x1]  ;;  %v11904_v4 = vld [vmem:[%s15046_s24 + $0x98] sm:$0x1] }
 0x63b   : > { %5958 = vrot.lane.b32.xlu1 %v19850_v18, %s13682_s27  ;;  %v5957_v41 = vpop.permute.xlu1 %5956  ;;  %v5337_v47 = vsel %vm13904_vm2, %v5332_v5, %v5336_v46  ;;  %v16112_v62 = vsel %vm14431_vm15, %v5011_v10, %v5012_v11  ;;  %v5339_v55 = vshrl.u32 %v16082_v61, 16  ;;  %v5342_v50 = vshll.u32 %v16082_v61, 16  ;;  %v3854_v5 = vld [vmem:[%s15046_s24 + $0x84] sm:$0xf] }
 0x63c   : > { %v6427_v40 = vsel %vm6410_vm0, %v6389_v38, %v5957_v41  ;;  %v4127_v58 = vor.u32 %v4126_v30, %v4123_v21  ;;  %v5348_v24 = vshll.u32 %v16092_v35, 16  ;;  %v16126_v7 = vrot.slane %v4130_v15, 5  ;;  %v16145_v30 = vld [vmem:[%s15046_s24 + $0x88] sm:$0xf]  ;;  %v16151_v15 = vld [vmem:[%s15046_s24 + $0x78] sm:$0xe] }
 0x63d   : > { %v6261_v9 = vpop.permute.xlu0 %6260  ;;  %v4136_v19 = vrot.slane %v4134_v13, 4  ;;  %v16130_v22 = vcombine.low %v5327_v31, %v5337_v47  ;;  %v16132_v18 = vrot.slane %v4712_v51, 4  ;;  %v4140_v41 = vshll.u32 %v16115_v45, 16 }
 0x63e   : > { %6182 = vrot.lane.b32.xlu0 %v19851_v27, %s19810_s29  ;;  %v6555_v59 = vsel %vm6410_vm0, %v6518_v49, %v6261_v9  ;;  %v19853_v10 = vcombine.low %v15834_v14, %v15845_v52  ;;  %v5341_v11 = vrot.slane %v5339_v55, 4  ;;  %v5344_v21 = vrot.slane %v5342_v50, 5  ;;  %v13417_v55 = vld [vmem:[%s19640_s8 + $0x80] sm:$0xff]  }
 0x63f   : > { %6851 = vmatprep.mubr.bf16.mxu1 %v6555_v59  ;;  %5784 = vrot.lane.b32.xlu1 %v15860_v44, %s19809_s22  ;;  %v5352_v44 = vshrl.u32 %v16092_v35, 16  ;;  %19852 = vst [vmem:[#allocation47_spill] sm:$0xff] %v16132_v18  ;;  %v4643_v9 = vshll.u32 %v15651_v48, 16  ;;  %v16153_v13 = vrot.slane %v5348_v24, 5  ;;  %v4647_v14 = vshrl.u32 %v15651_v48, 16 }
 0x640   : > { %6852 = vmatmul.mubr.bf16.gmra.mrb[68].mxu1 %v6427_v40  ;;  %v16148_v40 = vrot.slane %v4127_v58, 4  ;;  %v4137_v52 = vor.u32 %v4136_v19, %v16126_v7  ;;  %v11983_v59 = vld [vmem:[%s15046_s24 + $0x98] sm:$0x1]  ;;  %v4145_v31 = vshrl.u32 %v3854_v5, 16  ;;  %v4148_v51 = vshll.u32 %v3854_v5, 16  ;;  %13084 = vmatprep.subr.bf16.mxu0 %v13417_v55 }
 0x641   : > { %v5354_v27 = vrot.slane %v5352_v44, 4  ;;  %v4645_v47 = vrot.slane %v4643_v9, 5  ;;  %v19854_v50 = vcombine.low %v15790_v60, %v15794_v54  ;;  %v16165_v58 = vrot.slane %v4140_v41, 5  ;;  %v16168_v48 = vld [vmem:[%s15046_s24 + $0x94] sm:$0xf] }
 0x642   : > { %6262 = vrot.lane.b32.xlu0 %v15808_v34, %s13682_s27  ;;  %v4154_v44 = vshll.u32 %v16145_v30, 16  ;;  %v4158_v24 = vshrl.u32 %v16145_v30, 16  ;;  %v4649_v19 = vrot.slane %v4647_v14, 4  ;;  %v19855_v5 = vcombine.low %v15816_v20, %v15731_v57  ;;  %v16182_v34 = vld [vmem:[%s15046_s24 + $0x9c] sm:$0xf] }
 0x643   : > { %5864 = vrot.lane.b32.xlu1 %v19853_v10, %s19810_s29  ;;  %v11855_v10 = vrot.slane %v16151_v15, 9  ;;  %v4400_v60 = vrot.slane %v16068_v33, 5  ;;  %v4403_v54 = vrot.slane %v16115_v45, 5  ;;  %v5345_v41 = vor.u32 %v5344_v21, %v5341_v11  ;;  %19856 = vst [vmem:[#allocation48_spill] sm:$0xff] %v16182_v34  ;;  %v11920_v15 = vld [vmem:[%s15046_s24 + $0x90] sm:$0xe] }
 0x644   : > { %v5355_v9 = vor.u32 %v5354_v27, %v16153_v13  ;;  %v4650_v14 = vor.u32 %v4649_v19, %v4645_v47  ;;  %v19857_v49 = vshll.u32 %v15659_v36, 16  ;;  %v4138_v20 = vrot.slane %v4137_v52, 4  ;;  %v19858_v11 = vld [vmem:[#allocation33_spill] sm:$0xff]  ;;  %v16195_v55 = vld [vmem:[%s15046_s24 + $0xa0] sm:$0xf]  ;;  %v19861_v19 = vld [vmem:[#allocation35_spill] sm:$0xff] }
 0x645   : > { %v5016_v33 = vrot.slane %v16168_v48, 5  ;;  %v4150_v45 = vrot.slane %v4148_v51, 5  ;;  %v19859_v21 = vcombine.low %v15757_v0, %v19858_v11  ;;  %v16192_v27 = vrot.slane %v4154_v44, 5  ;;  %19860 = vst [vmem:[#allocation33_spill] sm:$0xff] %v16195_v55  ;;  %v16203_v51 = vld [vmem:[%s15046_s24 + $0x8c] sm:$0x1] }
 0x646   : > { %6088 = vrot.lane.b32.xlu0 %v19854_v50, %s19809_s22  ;;  %v5358_v50 = vshll.u32 %v11983_v59, 16  ;;  %v4655_v57 = vrot.slane %v19857_v49, 5  ;;  %v4160_v59 = vrot.slane %v4158_v24, 4  ;;  %v4646_v36 = vsel %vm13904_vm2, %v19861_v19, %v4645_v47 }
 0x647   : > { %5960 = vrot.lane.b32.xlu1 %v19855_v5, %s13682_s27  ;;  %v4147_v5 = vrot.slane %v4145_v31, 4  ;;  %v4651_v49 = vrot.slane %v4650_v14, 4  ;;  %v4402_v52 = vrot.slane %v4400_v60, 4  ;;  %v5346_v31 = vrot.slane %v5345_v41, 4  ;;  %v19863_v41 = vld [vmem:[#allocation39_spill] sm:$0xff] }
 0x648   : > { %v5363_v0 = vshrl.u32 %v16182_v34, 16  ;;  %v5366_v44 = vshll.u32 %v16182_v34, 16  ;;  %v5360_v24 = vrot.slane %v5358_v50, 5  ;;  %v11936_v38 = vrot.slane %v11920_v15, 9 }
 0x649   : > { %v4656_v46 = vsel %vm13904_vm2, %v4651_v49, %v4655_v57  ;;  %v5019_v18 = vrot.slane %v11904_v4, 5  ;;  %v5376_v47 = vshrl.u32 %v16195_v55, 16  ;;  %v5372_v14 = vshll.u32 %v16195_v55, 16 }
 0x64a   : > { %6184 = vrot.lane.b32.xlu0 %v19859_v21, %s19810_s29  ;;  %v5356_v21 = vrot.slane %v5355_v9, 4  ;;  %v5018_v19 = vrot.slane %v5016_v33, 4  ;;  %v4151_v17 = vor.u32 %v4150_v45, %v4147_v5  ;;  %v4161_v9 = vor.u32 %v4160_v59, %v16192_v27  ;;  %v19866_v59 = vld [vmem:[#allocation38_spill] sm:$0xff] }
 0x64b   : > { %5786 = vrot.lane.b32.xlu1 %v15989_v56, %s19809_s22  ;;  %v16211_v56 = vcombine.low %v4646_v36, %v4656_v46  ;;  %v4164_v50 = vshll.u32 %v16203_v51, 16  ;;  %v19864_v4 = vcombine.low %v15951_v32, %v15966_v12  ;;  %v4133_v46 = vsel %vm13904_vm2, %v16148_v40, %v16126_v7  ;;  %v4275_v7 = vld [vmem:[%s15046_s24 + $0x84] sm:$0xe] }
 0x64c   : > { %v5365_v57 = vrot.slane %v5363_v0, 4  ;;  %v5368_v15 = vrot.slane %v5366_v44, 5  ;;  %v4407_v36 = vrot.slane %v16145_v30, 5  ;;  %v4143_v5 = vsel %vm13904_vm2, %v4138_v20, %v16165_v58  ;;  %v16244_v40 = vld [vmem:[%s15046_s24 + $0x84] sm:$0xf]  ;;  %v19865_v20 = vld [vmem:[#allocation37_spill] sm:$0xff] }
 0x64d   : > { %19862 = vst [vmem:[#allocation35_spill] sm:$0xff] %v16211_v56  ;;  %v16231_v45 = vsel %vm14431_vm15, %v11855_v10, %v4400_v60  ;;  %v16235_v32 = vsel %vm14431_vm15, %v4402_v52, %v4403_v54  ;;  %v5351_v12 = vsel %vm13904_vm2, %v5346_v31, %v16153_v13  ;;  %v5361_v30 = vsel %vm13904_vm2, %v5356_v21, %v5360_v24  ;;  %v11984_v10 = vld [vmem:[%s15046_s24 + $0xa4] sm:$0x1] }
 0x64e   : > { %6264 = vrot.lane.b32.xlu0 %v19863_v41, %s13682_s27  ;;  %v16248_v58 = vsel %vm14431_vm15, %v11936_v38, %v5016_v33  ;;  %v16251_v60 = vrot.slane %v5372_v14, 5  ;;  %v5378_v54 = vrot.slane %v5376_v47, 4  ;;  %v19867_v49 = vcombine.low %v19865_v20, %v19866_v59  ;;  %v19877_v14 = vld [vmem:[#allocation27_spill] sm:$0xff] }
 0x64f   : > { %5866 = vrot.lane.b32.xlu1 %v19864_v4, %s19810_s29  ;;  %v16259_v13 = vsel %vm14431_vm15, %v5018_v19, %v5019_v18  ;;  %v16261_v52 = vrot.slane %v4151_v17, 4  ;;  %v16263_v31 = vrot.slane %v4161_v9, 4  ;;  %v16265_v38 = vrot.slane %v4164_v50, 5  ;;  %v3856_v18 = vld [vmem:[%s15046_s24 + $0x90] sm:$0xf]  ;;  %v19870_v4 = vld [vmem:[#allocation19_spill] sm:$0xff] }
 0x650   : > { %19868 = vst [vmem:[#allocation39_spill] sm:$0xff] %v16259_v13  ;;  %v19869_v33 = vcombine.low %v15923_v23, %v15828_v1  ;;  %v11856_v0 = vrot.slane %v4275_v7, 9  ;;  %v4409_v44 = vrot.slane %v4407_v36, 4  ;;  %v4410_v21 = vrot.slane %v16203_v51, 5  ;;  %v16280_v1 = vld [vmem:[%s15046_s24 + $0x94] sm:$0xf] }
 0x651   : > { %v5369_v24 = vor.u32 %v5368_v15, %v5365_v57  ;;  %v16273_v47 = vcombine.low %v4133_v46, %v4143_v5  ;;  %v5382_v41 = vshll.u32 %v11984_v10, 16  ;;  %v16282_v23 = vcombine.low %v5351_v12, %v5361_v30  ;;  %v11989_v50 = vld [vmem:[%s15046_s24 + $0x18] sm:$0xe]  ;;  %v19871_v46 = vld [vmem:[#allocation20_spill] sm:$0xff] }
 0x652   : > { %6090 = vrot.lane.b32.xlu0 %v19867_v49, %s19809_s22  ;;  %v5379_v9 = vor.u32 %v5378_v54, %v16251_v60  ;;  %v19872_v57 = vcombine.low %v19870_v4, %v19871_v46  ;;  %v16303_v12 = vld [vmem:[%s15046_s24 + $0xa0] sm:$0xf]  ;;  %v4169_v7 = vshrl.u32 %v3856_v18, 16  ;;  %v4172_v30 = vshll.u32 %v3856_v18, 16  ;;  %v11990_v10 = vld [vmem:[%s15046_s24 + $0x24] sm:$0xe] }
 0x653   : > { %5962 = vrot.lane.b32.xlu1 %v19869_v33, %s13682_s27  ;;  %v16310_v54 = vsel %vm14431_vm15, %v11856_v0, %v4407_v36  ;;  %v16314_v20 = vsel %vm14431_vm15, %v4409_v44, %v4410_v21  ;;  %v16316_v59 = vrot.slane %v5369_v24, 4  ;;  %v4178_v49 = vshll.u32 %v16280_v1, 16  ;;  %v11992_v36 = vld [vmem:[%s15046_s24 + $0x3c] sm:$0xe]  ;;  %v16329_v21 = vld [vmem:[%s15046_s24 + $0xa8] sm:$0xf] }
 0x654   : > { %v16319_v33 = vrot.slane %v5382_v41, 5  ;;  %v4182_v18 = vshrl.u32 %v16280_v1, 16  ;;  %v12005_v4 = vrot.slane %v11989_v50, 9  ;;  %v16325_v0 = vrot.slane %v5379_v9, 4  ;;  %v19875_v51 = vld [vmem:[#allocation28_spill] sm:$0xff] }
 0x655   : > { %v12006_v24 = vrot.slane %v11990_v10, 9  ;;  %v19876_v41 = vrot.slane %v19875_v51, 5  ;;  %v16340_v50 = vrot.slane %v4169_v7, 4  ;;  %v16342_v9 = vrot.slane %v4172_v30, 5  ;;  %v19881_v10 = vld [vmem:[#allocation14_spill] sm:$0xff]  ;;  %v19894_v46 = vld [vmem:[#allocation24_spill] sm:$0xff] }
 0x656   : > { %6186 = vrot.lane.b32.xlu0 %v19872_v57, %s19810_s29  ;;  %v19882_v5 = vrot.slane %v19881_v10, 5  ;;  %v19884_v7 = vcombine.low %v16079_v53, %v16087_v3  ;;  %v16364_v30 = vrot.slane %v4178_v49, 5  ;;  %v12008_v10 = vrot.slane %v11992_v36, 9  ;;  %v11996_v49 = vld [vmem:[%s15046_s24 + $0x6c] sm:$0xe]  ;;  %v19892_v3 = vld [vmem:[#allocation22_spill] sm:$0xff] }
 0x657   : > { %5788 = vrot.lane.b32.xlu1 %v16075_v39, %s19809_s22  ;;  %v19873_v39 = vld [vmem:[#allocation13_spill] sm:$0xff]  ;;  %v16336_v17 = vsel %vm14431_vm15, %v19877_v14, %v19876_v41  ;;  %v19885_v41 = vld [vmem:[#allocation26_spill] sm:$0xff]  ;;  %v16376_v44 = vrot.slane %v4182_v18, 4  ;;  %v5387_v56 = vshrl.u32 %v16329_v21, 16  ;;  %v5390_v53 = vshll.u32 %v16329_v21, 16 }
 0x658   : > { %v19874_v57 = vrot.slane %v19873_v39, 5  ;;  %19878 = vst [vmem:[#allocation37_spill] sm:$0xff] %v16336_v17  ;;  %v19879_v15 = vrot.slane %v19873_v39, 5  ;;  %v19893_v17 = vrot.slane %v19892_v3, 5  ;;  %v19895_v55 = vrot.slane %v19894_v46, 5 }
 0x659   : > { %v19903_v3 = vrot.slane %v19894_v46, 5 }
 0x65a   : > { %v5550_v19 = vrot.slane %v19874_v57, 4  ;;  %6266 = vrot.lane.b32.xlu0 %v16020_v37, %s13682_s27  ;;  %v16345_v57 = vld [vmem:[%s15046_s24 + $0xac] sm:$0xf]  ;;  %v16351_v51 = vsel %vm14431_vm15, %v12005_v4, %v19879_v15  ;;  %v11993_v37 = vld [vmem:[%s15046_s24 + $0x48] sm:$0xe]  ;;  %v19886_v15 = vrot.slane %v19885_v41, 5 }
 0x65b   : > { %19880 = vst [vmem:[#allocation38_spill] sm:$0xff] %v16351_v51  ;;  %5868 = vrot.lane.b32.xlu1 %v19884_v7, %s19810_s29  ;;  %v5400_v7 = vshrl.u32 %v16345_v57, 16  ;;  %v19888_v41 = vld [vmem:[#allocation16_spill] sm:$0xff]  ;;  %v12009_v39 = vrot.slane %v11993_v37, 9  ;;  %v5585_v34 = vrot.slane %v19895_v55, 4  ;;  %v19900_v55 = vrot.slane %v15669_v28, 5 }
 0x65c   : > { %v16357_v14 = vsel %vm14431_vm15, %v5550_v19, %v19882_v5  ;;  %v16372_v4 = vsel %vm14431_vm15, %v12006_v24, %v19886_v15  ;;  %v11994_v19 = vld [vmem:[%s15046_s24 + $0x54] sm:$0xe]  ;;  %v11995_v5 = vld [vmem:[%s15046_s24 + $0x60] sm:$0xe]  ;;  %v19889_v24 = vrot.slane %v19888_v41, 5  ;;  %v19897_v41 = vld [vmem:[#allocation17_spill] sm:$0xff] }
 0x65d   : > { %19883 = vst [vmem:[#allocation19_spill] sm:$0xff] %v16357_v14  ;;  %19887 = vst [vmem:[#allocation13_spill] sm:$0xff] %v16372_v4  ;;  %v19891_v14 = vcombine.low %v16001_v26, %v16005_v29  ;;  %v5578_v4 = vrot.slane %v19893_v17, 4  ;;  %v12010_v51 = vrot.slane %v11994_v19, 9  ;;  %v12011_v13 = vrot.slane %v11995_v5, 9 }
 0x65e   : > { %v16388_v36 = vsel %vm14431_vm15, %v12008_v10, %v19889_v24  ;;  %v19890_v18 = vmov %v19889_v24  ;;  %v19896_v10 = vcombine.low %v16027_v2, %v15930_v42  ;;  %v19898_v37 = vrot.slane %v19897_v41, 5  ;;  %v11905_v5 = vld [vmem:[%s15046_s24 + $0xa4] sm:$0x1]  ;;  %v11921_v42 = vld [vmem:[%s15046_s24 + $0x9c] sm:$0xe] }
 0x65f   : > { %v5571_v15 = vrot.slane %v19890_v18, 4  ;;  %6092 = vrot.lane.b32.xlu0 %v19891_v14, %s19809_s22  ;;  %v19899_v29 = vmov %v19893_v17  ;;  %v5592_v14 = vrot.slane %v19900_v55, 4  ;;  %v12012_v19 = vrot.slane %v11996_v49, 9  ;;  %v19901_v24 = vld [vmem:[#allocation23_spill] sm:$0xff]  ;;  %v16590_v2 = vld [vmem:[%s15046_s24 + $0xa4] sm:$0x1] }
 0x660   : > { %5964 = vrot.lane.b32.xlu1 %v19896_v10, %s13682_s27  ;;  %v16414_v17 = vsel %vm14431_vm15, %v12009_v39, %v19899_v29  ;;  %v19902_v18 = vrot.slane %v19901_v24, 5  ;;  %v16432_v39 = vsel %vm14431_vm15, %v12010_v51, %v19903_v3  ;;  %v19905_v10 = vld [vmem:[#allocation25_spill] sm:$0xff]  ;;  %v5396_v28 = vshll.u32 %v16345_v57, 16 }
 0x661   : > { %v16408_v26 = vsel %vm14431_vm15, %v5571_v15, %v19898_v37  ;;  %19904 = vst [vmem:[#allocation28_spill] sm:$0xff] %v16432_v39  ;;  %v19906_v41 = vrot.slane %v19905_v10, 5  ;;  %v19910_v51 = vld [vmem:[#allocation29_spill] sm:$0xff]  ;;  %v19914_v3 = vrot.slane %v19858_v11, 5  ;;  %v5385_v11 = vsel %vm13904_vm2, %v16325_v0, %v16319_v33 }
 0x662   : > { %v16426_v15 = vsel %vm14431_vm15, %v5578_v4, %v19902_v18  ;;  %v19908_v4 = vmov %v19900_v55  ;;  %v19911_v55 = vrot.slane %v19910_v51, 5  ;;  %v16461_v18 = vld [vmem:[%s15046_s24 + $0x98] sm:$0x1]  ;;  %v19921_v0 = vsel %vm13904_vm2, %v16263_v31, %v16265_v38 }
 0x663   : > { %v16438_v49 = vsel %vm14431_vm15, %v5585_v34, %v19906_v41  ;;  %v16448_v46 = vsel %vm14431_vm15, %v12011_v13, %v19908_v4  ;;  %v19913_v34 = vcombine.low %v15969_v6, %v15979_v63  ;;  %v16470_v10 = vsel %vm14431_vm15, %v12012_v19, %v19914_v3 }
 0x664   : > { %19907 = vst [vmem:[#allocation27_spill] sm:$0xff] %v16438_v49  ;;  %19909 = vst [vmem:[#allocation14_spill] sm:$0xff] %v16448_v46  ;;  %v16454_v24 = vsel %vm14431_vm15, %v5592_v14, %v19911_v55  ;;  %v19916_v14 = vmov %v19914_v3  ;;  %5790 = vrot.lane.b32.xlu1 %v16273_v47, %s19809_s22  ;;  %v11937_v6 = vrot.slane %v11921_v42, 9  ;;  %v19917_v4 = vrot.slane %v16303_v12, 5  ;;  %v19918_v42 = vld [vmem:[#allocation18_spill] sm:$0xff] }
 0x665   : > { %19912 = vst [vmem:[#allocation26_spill] sm:$0xff] %v16454_v24  ;;  %6188 = vrot.lane.b32.xlu0 %v19913_v34, %s19810_s29  ;;  %19915 = vst [vmem:[#allocation16_spill] sm:$0xff] %v16470_v10  ;;  %v5599_v41 = vrot.slane %v19916_v14, 4  ;;  %v5026_v55 = vrot.slane %v11905_v5, 5  ;;  %v4175_v34 = vor.u32 %v16342_v9, %v16340_v50  ;;  %v5375_v19 = vsel %vm13904_vm2, %v16316_v59, %v16251_v60  ;;  %v16497_v50 = vld [vmem:[%s15046_s24 + $0x90] sm:$0xf] }
 0x666   : > { %v5025_v51 = vrot.slane %v19917_v4, 4  ;;  %v4185_v47 = vor.u32 %v16376_v44, %v16364_v30  ;;  %v19919_v3 = vrot.slane %v19918_v42, 5  ;;  %v4188_v60 = vshll.u32 %v16461_v18, 16  ;;  %v4276_v42 = vld [vmem:[%s15046_s24 + $0x90] sm:$0xe] }
 0x667   : > { %v5389_v59 = vrot.slane %v5387_v56, 4  ;;  %v5392_v9 = vrot.slane %v5390_v53, 5  ;;  %v19922_v44 = vsel %vm13904_vm2, %v16261_v52, %v16192_v27  ;;  %v12064_v53 = vcombine.low %v16310_v54, %v16314_v20 }
 0x668   : > { %v16494_v5 = vsel %vm14431_vm15, %v5599_v41, %v19919_v3  ;;  %v12048_v56 = vcombine.low %v19922_v44, %v19921_v0  ;;  %v16516_v14 = vrot.slane %v5396_v28, 5  ;;  %v5402_v41 = vrot.slane %v5400_v7, 4  ;;  %v16535_v28 = vld [vmem:[%s15046_s24 + $0xb0] sm:$0x1]  ;;  %v13493_v7 = vld [vmem:[%s15046_s24 + $0x64] sm:$0xf] }
 0x669   : > { %19920 = vst [vmem:[#allocation22_spill] sm:$0xff] %v16494_v5  ;;  %6268 = vrot.lane.b32.xlu0 %v16130_v22, %s13682_s27  ;;  %v19923_v22 = vcombine.low %v16231_v45, %v16235_v32  ;;  %v19924_v31 = vmov %v19917_v4  ;;  %v16530_v27 = vsel %vm14431_vm15, %v5025_v51, %v5026_v55  ;;  %v16532_v52 = vrot.slane %v4175_v34, 4  ;;  %19925 = vst [vmem:[#allocation24_spill] sm:$0xff] %v16535_v28  ;;  %v3858_v3 = vld [vmem:[%s15046_s24 + $0x9c] sm:$0xf] }
 0x66a   : > { %v16526_v38 = vsel %vm14431_vm15, %v11937_v6, %v19924_v31  ;;  %v4667_v4 = vshll.u32 %v13493_v7, 16  ;;  %v16538_v45 = vcombine.low %v5375_v19, %v5385_v11  ;;  %v12080_v32 = vcombine.low %v16497_v50, %v16168_v48  ;;  %v16554_v31 = vld [vmem:[%s15046_s24 + $0xac] sm:$0xf] }
 0x66b   : > { %5870 = vrot.lane.b32.xlu1 %v19923_v22, %s19810_s29  ;;  %v4414_v6 = vrot.slane %v16280_v1, 5  ;;  %v4671_v0 = vshrl.u32 %v13493_v7, 16  ;;  %v4186_v51 = vrot.slane %v4185_v47, 4  ;;  %v4190_v55 = vrot.slane %v4188_v60, 5  ;;  %v16557_v47 = vld [vmem:[%s15046_s24 + $0xa0] sm:$0xf] }
 0x66c   : > { %v5393_v34 = vor.u32 %v5392_v9, %v5389_v59  ;;  %v4669_v44 = vrot.slane %v4667_v4, 5  ;;  %v19926_v22 = vcombine.low %v16104_v43, %v16112_v62  ;;  %v5403_v11 = vor.u32 %v5402_v41, %v16516_v14 }
 0x66d   : > { %v5406_v1 = vshll.u32 %v16535_v28, 16  ;;  %v4673_v60 = vrot.slane %v4671_v0, 4  ;;  %v19927_v59 = vcombine.low %v16244_v40, %v16033_v16  ;;  %v4181_v43 = vsel %vm13904_vm2, %v16532_v52, %v16364_v30  ;;  %v19928_v0 = vld [vmem:[#allocation32_spill] sm:$0xff]  ;;  %v11922_v16 = vld [vmem:[%s15046_s24 + $0xa8] sm:$0xe] }
 0x66e   : > { %6094 = vrot.lane.b32.xlu0 %v19926_v22, %s19809_s22  ;;  %v11857_v62 = vrot.slane %v4276_v42, 9  ;;  %v4193_v9 = vshrl.u32 %v3858_v3, 16  ;;  %v4196_v41 = vshll.u32 %v3858_v3, 16  ;;  %v4416_v7 = vrot.slane %v4414_v6, 4  ;;  %v11906_v22 = vld [vmem:[%s15046_s24 + $0xb0] sm:$0x1] }
 0x66f   : > { %5966 = vrot.lane.b32.xlu1 %v19927_v59, %s13682_s27  ;;  %v4417_v4 = vrot.slane %v16461_v18, 5  ;;  %v4674_v33 = vor.u32 %v4673_v60, %v4669_v44  ;;  %v19929_v13 = vshll.u32 %v19928_v0, 16  ;;  %v5394_v37 = vrot.slane %v5393_v34, 4  ;;  %v19931_v60 = vld [vmem:[#allocation40_spill] sm:$0xff] }
 0x670   : > { %v5030_v40 = vrot.slane %v16554_v31, 5  ;;  %v4202_v30 = vshll.u32 %v16557_v47, 16  ;;  %v4206_v52 = vshrl.u32 %v16557_v47, 16  ;;  %v19930_v18 = vcombine.low %v16082_v61, %v16092_v35 }
 0x671   : > { %v4679_v29 = vrot.slane %v19929_v13, 5  ;;  %v5404_v42 = vrot.slane %v5403_v11, 4  ;;  %v5408_v3 = vrot.slane %v5406_v1, 5  ;;  %v4670_v13 = vsel %vm13904_vm2, %v19931_v60, %v4669_v44  ;;  %v16593_v11 = vld [vmem:[%s15046_s24 + $0xb4] sm:$0xf] }
 0x672   : > { %6190 = vrot.lane.b32.xlu0 %v19930_v18, %s19810_s29  ;;  %v4675_v34 = vrot.slane %v4674_v33, 4  ;;  %v4191_v59 = vsel %vm13904_vm2, %v4186_v51, %v4190_v55  ;;  %v16587_v0 = vsel %vm14431_vm15, %v11857_v62, %v4414_v6  ;;  %v4195_v61 = vrot.slane %v4193_v9, 4  ;;  %v16600_v33 = vld [vmem:[%s15046_s24 + $0x9c] sm:$0xf]  ;;  %v16607_v9 = vld [vmem:[%s15046_s24 + $0xb8] sm:$0xf] }
 0x673   : > { %5792 = vrot.lane.b32.xlu1 %v12048_v56, %s19809_s22  ;;  %v4198_v35 = vrot.slane %v4196_v41, 5  ;;  %v16597_v44 = vsel %vm14431_vm15, %v4416_v7, %v4417_v4  ;;  %19932 = vst [vmem:[#allocation17_spill] sm:$0xff] %v16600_v33  ;;  %v11938_v56 = vrot.slane %v11922_v16, 9  ;;  %v5033_v1 = vrot.slane %v11906_v22, 5 }
 0x674   : > { %v4680_v51 = vsel %vm13904_vm2, %v4675_v34, %v4679_v29  ;;  %v5032_v6 = vrot.slane %v5030_v40, 4  ;;  %v16604_v55 = vrot.slane %v4202_v30, 5  ;;  %v4208_v62 = vrot.slane %v4206_v52, 4  ;;  %v16629_v30 = vld [vmem:[%s15046_s24 + $0xa8] sm:$0xf] }
 0x675   : > { %v16609_v41 = vcombine.low %v4670_v13, %v4680_v51  ;;  %v5399_v7 = vsel %vm13904_vm2, %v5394_v37, %v16516_v14  ;;  %v5409_v29 = vsel %vm13904_vm2, %v5404_v42, %v5408_v3  ;;  %v4212_v4 = vshll.u32 %v16590_v2, 16  ;;  %v19933_v13 = vld [vmem:[#allocation39_spill] sm:$0xff] }
 0x676   : > { %6270 = vrot.lane.b32.xlu0 %v16282_v23, %s13682_s27  ;;  %v5411_v22 = vshrl.u32 %v16593_v11, 16  ;;  %v12049_v16 = vcombine.low %v4181_v43, %v4191_v59  ;;  %v12065_v37 = vcombine.low %v16587_v0, %v16597_v44  ;;  %v4199_v14 = vor.u32 %v4198_v35, %v4195_v61  ;;  %v4277_v61 = vld [vmem:[%s15046_s24 + $0x9c] sm:$0xe]  ;;  %v16677_v52 = vld [vmem:[%s15046_s24 + $0xb8] sm:$0xf] }
 0x677   : > { %5872 = vrot.lane.b32.xlu1 %v12064_v53, %s19810_s29  ;;  %v5414_v18 = vshll.u32 %v16593_v11, 16  ;;  %v5424_v54 = vshrl.u32 %v16607_v9, 16  ;;  %v5420_v20 = vshll.u32 %v16607_v9, 16  ;;  %v16637_v53 = vld [vmem:[%s15046_s24 + $0xac] sm:$0xf]  ;;  %v16639_v43 = vcombine.low %v5399_v7, %v5409_v29 }
 0x678   : > { %v16643_v42 = vsel %vm14431_vm15, %v11938_v56, %v5030_v40  ;;  %v16647_v3 = vsel %vm14431_vm15, %v5032_v6, %v5033_v1  ;;  %v4209_v60 = vor.u32 %v4208_v62, %v16604_v55  ;;  %v19934_v34 = vcombine.low %v16248_v58, %v19933_v13  ;;  %v16662_v56 = vld [vmem:[%s15046_s24 + $0xbc] sm:$0x1]  ;;  %v13494_v7 = vld [vmem:[%s15046_s24 + $0x70] sm:$0xf]  ;;  %v19937_v13 = vld [vmem:[#allocation33_spill] sm:$0xff] }
 0x679   : > { %v4214_v59 = vrot.slane %v4212_v4, 5  ;;  %v5413_v0 = vrot.slane %v5411_v22, 4  ;;  %v4421_v35 = vrot.slane %v16557_v47, 5  ;;  %v4217_v40 = vshrl.u32 %v16629_v30, 16  ;;  %19935 = vst [vmem:[#allocation23_spill] sm:$0xff] %v16662_v56 }
 0x67a   : > { %6096 = vrot.lane.b32.xlu0 %v19934_v34, %s19809_s22  ;;  %v4200_v44 = vrot.slane %v4199_v14, 4  ;;  %v4220_v58 = vshll.u32 %v16629_v30, 16  ;;  %v4226_v1 = vshll.u32 %v16637_v53, 16  ;;  %v4230_v51 = vshrl.u32 %v16637_v53, 16  ;;  %v19936_v14 = vld [vmem:[#allocation48_spill] sm:$0xff] }
 0x67b   : > { %5968 = vrot.lane.b32.xlu1 %v12080_v32, %s13682_s27  ;;  %v5416_v6 = vrot.slane %v5414_v18, 5  ;;  %v16667_v47 = vrot.slane %v5420_v20, 5  ;;  %v5426_v62 = vrot.slane %v5424_v54, 4  ;;  %v4691_v29 = vshll.u32 %v13494_v7, 16 }
 0x67c   : > { %v4210_v4 = vrot.slane %v4209_v60, 4  ;;  %v11858_v48 = vrot.slane %v4277_v61, 9  ;;  %v4424_v32 = vrot.slane %v16590_v2, 5  ;;  %v4695_v22 = vshrl.u32 %v13494_v7, 16  ;;  %v16681_v60 = vld [vmem:[%s15046_s24 + $0xb0] sm:$0x1] }
 0x67d   : > { %v19938_v34 = vcombine.low %v19936_v14, %v19937_v13  ;;  %v4423_v23 = vrot.slane %v4421_v35, 4  ;;  %v5430_v18 = vshll.u32 %v16662_v56, 16  ;;  %v4219_v20 = vrot.slane %v4217_v40, 4 }
 0x67e   : > { %v4693_v54 = vrot.slane %v4691_v29, 5  ;;  %v4222_v61 = vrot.slane %v4220_v58, 5  ;;  %v16683_v2 = vrot.slane %v4226_v1, 5  ;;  %v4232_v7 = vrot.slane %v4230_v51, 4  ;;  %v16694_v58 = vld [vmem:[%s15046_s24 + $0xa8] sm:$0xf] }
 0x67f   : > { %6192 = vrot.lane.b32.xlu0 %v19938_v34, %s19810_s29  ;;  %5794 = vrot.lane.b32.xlu1 %v12049_v16, %s19809_s22  ;;  %v4697_v14 = vrot.slane %v4695_v22, 4  ;;  %v4205_v34 = vsel %vm13904_vm2, %v4200_v44, %v16604_v55  ;;  %v5417_v40 = vor.u32 %v5416_v6, %v5413_v0  ;;  %v5427_v29 = vor.u32 %v5426_v62, %v16667_v47  ;;  %v19939_v22 = vld [vmem:[#allocation15_spill] sm:$0xff]  ;;  %v16715_v6 = vld [vmem:[%s15046_s24 + $0xb4] sm:$0xe]  ;;  %v16721_v62 = vld [vmem:[%s15046_s24 + $0xc0] sm:$0xf] }
 0x680   : > { %v4215_v16 = vsel %vm13904_vm2, %v4210_v4, %v4214_v59  ;;  %v19715_v1 = vrot.slane %v16677_v52, 5  ;;  %v19940_v19 = vshll.u32 %v19939_v22, 16  ;;  %v16703_v55 = vsel %vm14431_vm15, %v11858_v48, %v4421_v35  ;;  %v16712_v44 = vld [vmem:[%s15046_s24 + $0xbc] sm:$0x1]  ;;  %v19941_v4 = vld [vmem:[#allocation46_spill] sm:$0xff] }
 0x681   : > { %v4698_v51 = vor.u32 %v4697_v14, %v4693_v54  ;;  %v16707_v0 = vsel %vm14431_vm15, %v4423_v23, %v4424_v32  ;;  %v16709_v59 = vrot.slane %v5430_v18, 5  ;;  %v4233_v35 = vor.u32 %v4232_v7, %v16683_v2 }
 0x682   : > { %v4703_v56 = vrot.slane %v19940_v19, 5  ;;  %v4236_v19 = vshll.u32 %v16681_v60, 16  ;;  %v4694_v23 = vsel %vm13904_vm2, %v19941_v4, %v4693_v54  ;;  %v12050_v32 = vcombine.low %v4205_v34, %v4215_v16  ;;  %v16742_v34 = vld [vmem:[%s15046_s24 + $0xb4] sm:$0xf]  ;;  %v11997_v54 = vld [vmem:[%s15046_s24 + $0x78] sm:$0xe] }
 0x683   : > { %6272 = vrot.lane.b32.xlu0 %v16538_v45, %s13682_s27  ;;  %5874 = vrot.lane.b32.xlu1 %v12065_v37, %s19810_s29  ;;  %v4223_v45 = vor.u32 %v4222_v61, %v4219_v20  ;;  %v4699_v48 = vrot.slane %v4698_v51, 4  ;;  %v16726_v18 = vrot.slane %v5417_v40, 4  ;;  %v16728_v14 = vrot.slane %v5427_v29, 4  ;;  %v16733_v20 = vld [vmem:[%s15046_s24 + $0xc4] sm:$0xf] }
 0x684   : > { %v16738_v7 = vrot.slane %v19715_v1, 4  ;;  %v19942_v29 = vcombine.low %v16526_v38, %v16530_v27  ;;  %v12066_v16 = vcombine.low %v16703_v55, %v16707_v0  ;;  %v16752_v51 = vrot.slane %v4236_v19, 5  ;;  %v11998_v37 = vld [vmem:[%s15046_s24 + $0x84] sm:$0xe]  ;;  %v16766_v55 = vld [vmem:[%s15046_s24 + $0xb8] sm:$0xf] }
 0x685   : > { %v4704_v40 = vsel %vm13904_vm2, %v4699_v48, %v4703_v56  ;;  %v5435_v22 = vshrl.u32 %v16721_v62, 16  ;;  %v19943_v56 = vcombine.low %v16600_v33, %v16303_v12  ;;  %v4224_v48 = vrot.slane %v4223_v45, 4 }
 0x686   : > { %v16755_v4 = vcombine.low %v4694_v23, %v4704_v40  ;;  %v4234_v38 = vrot.slane %v4233_v35, 4  ;;  %v5438_v27 = vshll.u32 %v16721_v62, 16  ;;  %v4428_v0 = vrot.slane %v16637_v53, 5  ;;  %v13495_v23 = vld [vmem:[%s15046_s24 + $0x7c] sm:$0xf] }
 0x687   : > { %6098 = vrot.lane.b32.xlu0 %v19942_v29, %s19809_s22  ;;  %5970 = vrot.lane.b32.xlu1 %v19943_v56, %s13682_s27  ;;  %v5448_v29 = vshrl.u32 %v16733_v20, 16  ;;  %v4241_v19 = vshrl.u32 %v16742_v34, 16  ;;  %v4715_v40 = vshll.u32 %v13495_v23, 16  ;;  %v4719_v61 = vshrl.u32 %v13495_v23, 16  ;;  %v19944_v56 = vld [vmem:[#allocation20_spill] sm:$0xff] }
 0x688   : > { %v4244_v1 = vshll.u32 %v16742_v34, 16  ;;  %v12013_v12 = vrot.slane %v11997_v54, 9  ;;  %v19945_v45 = vrot.slane %v19944_v56, 5  ;;  %v12014_v13 = vrot.slane %v11998_v37, 9  ;;  %v4278_v23 = vld [vmem:[%s15046_s24 + $0xa8] sm:$0xe] }
 0x689   : > { %v19946_v28 = vcombine.low %v16329_v21, %v16345_v57  ;;  %v4250_v33 = vshll.u32 %v16766_v55, 16  ;;  %v4717_v5 = vrot.slane %v4715_v40, 5  ;;  %v4721_v10 = vrot.slane %v4719_v61, 4  ;;  %v19948_v21 = vld [vmem:[#allocation42_spill] sm:$0xff]  ;;  %v19951_v40 = vld [vmem:[#allocation44_spill] sm:$0xff] }
 0x68a   : > { %v5606_v35 = vrot.slane %v19945_v45, 4  ;;  %v19947_v24 = vrot.slane %v15979_v63, 5  ;;  %v4254_v54 = vshrl.u32 %v16766_v55, 16  ;;  %v16788_v37 = vsel %vm14431_vm15, %v12013_v12, %v19945_v45  ;;  %v19953_v45 = vld [vmem:[#allocation45_spill] sm:$0xff] }
 0x68b   : > { %6194 = vrot.lane.b32.xlu0 %v19946_v28, %s19810_s29  ;;  %5796 = vrot.lane.b32.xlu1 %v12050_v32, %s19809_s22  ;;  %v19949_v57 = vrot.slane %v19948_v21, 5  ;;  %v4722_v32 = vor.u32 %v4721_v10, %v4717_v5  ;;  %v19952_v49 = vshll.u32 %v19951_v40, 16  ;;  %v19954_v39 = vrot.slane %v19953_v45, 5 }
 0x68c   : > { %v5613_v46 = vrot.slane %v19947_v24, 4  ;;  %v19950_v61 = vmov %v19947_v24  ;;  %v4229_v63 = vsel %vm13904_vm2, %v4224_v48, %v16683_v2  ;;  %v4239_v2 = vsel %vm13904_vm2, %v4234_v38, %v16752_v51 }
 0x68d   : > { %v16794_v28 = vsel %vm14431_vm15, %v5606_v35, %v19949_v57  ;;  %v16800_v24 = vsel %vm14431_vm15, %v12014_v13, %v19950_v61  ;;  %v4727_v56 = vrot.slane %v19952_v49, 5  ;;  %v5437_v35 = vrot.slane %v5435_v22, 4  ;;  %v19955_v61 = vld [vmem:[#allocation47_spill] sm:$0xff] }
 0x68e   : > { %v16810_v21 = vsel %vm14431_vm15, %v5613_v46, %v19954_v39  ;;  %v5440_v13 = vrot.slane %v5438_v27, 5  ;;  %v11859_v49 = vrot.slane %v4278_v23, 9  ;;  %v5444_v57 = vshll.u32 %v16733_v20, 16 }
 0x68f   : > { %6274 = vrot.lane.b32.xlu0 %v16639_v43, %s13682_s27  ;;  %v4718_v39 = vsel %vm13904_vm2, %v19955_v61, %v4717_v5  ;;  %v4723_v46 = vrot.slane %v4722_v32, 4  ;;  %5876 = vrot.lane.b32.xlu1 %v12066_v16, %s19810_s29  ;;  %v4431_v22 = vrot.slane %v16681_v60, 5  ;;  %v4243_v48 = vrot.slane %v4241_v19, 4 }
 0x690   : > { %v4246_v43 = vrot.slane %v4244_v1, 5  ;;  %v4430_v27 = vrot.slane %v4428_v0, 4  ;;  %v16828_v23 = vrot.slane %v4250_v33, 5  ;;  %v4256_v40 = vrot.slane %v4254_v54, 4  ;;  %v16843_v33 = vld [vmem:[%s15046_s24 + $0xc8] sm:$0x1] }
 0x691   : > { %v4728_v45 = vsel %vm13904_vm2, %v4723_v46, %v4727_v56  ;;  %v12130_v5 = vcombine.low %v16593_v11, %v16607_v9  ;;  %v5423_v16 = vsel %vm13904_vm2, %v16726_v18, %v16667_v47  ;;  %v5433_v60 = vsel %vm13904_vm2, %v16728_v14, %v16709_v59  ;;  %v16846_v1 = vld [vmem:[%s15046_s24 + $0xbc] sm:$0x1]  ;;  %v16888_v46 = vld [vmem:[%s15046_s24 + $0xd0] sm:$0xf] }
 0x692   : > { %v16848_v51 = vcombine.low %v4718_v39, %v4728_v45  ;;  %v19956_v11 = vcombine.low %v16643_v42, %v16647_v3  ;;  %v19957_v38 = vrot.slane %v16677_v52, 5  ;;  %v19958_v47 = vrot.slane %v16715_v6, 9  ;;  %v16885_v39 = vld [vmem:[%s15046_s24 + $0xc4] sm:$0xf] }
 0x693   : > { %v5441_v59 = vor.u32 %v5440_v13, %v5437_v35  ;;  %v16860_v14 = vrot.slane %v5444_v57, 5  ;;  %v5450_v19 = vrot.slane %v5448_v29, 4  ;;  %v19959_v54 = vcombine.low %v16694_v58, %v16554_v31  ;;  %v16874_v35 = vld [vmem:[%s15046_s24 + $0xcc] sm:$0xf] }
 0x694   : > { %6100 = vrot.lane.b32.xlu0 %v19956_v11, %s19809_s22  ;;  %v5038_v18 = vsel %vm14431_vm15, %v19958_v47, %v19957_v38  ;;  %v19960_v42 = vrot.slane %v16712_v44, 5  ;;  %v12051_v6 = vcombine.low %v4229_v63, %v4239_v2  ;;  %v4429_v32 = vsel %vm14431_vm15, %v11859_v49, %v4428_v0 }
 0x695   : > { %5972 = vrot.lane.b32.xlu1 %v19959_v54, %s13682_s27  ;;  %v4247_v56 = vor.u32 %v4246_v43, %v4243_v48  ;;  %v4432_v29 = vsel %vm14431_vm15, %v4430_v27, %v4431_v22  ;;  %v5454_v31 = vshll.u32 %v16843_v33, 16  ;;  %v4257_v13 = vor.u32 %v4256_v40, %v16828_v23  ;;  %v11924_v43 = vld [vmem:[%s15046_s24 + $0xc0] sm:$0xe] }
 0x696   : > { %v5041_v3 = vsel %vm14431_vm15, %v16738_v7, %v19960_v42  ;;  %v4260_v57 = vshll.u32 %v16846_v1, 16  ;;  %v12146_v61 = vcombine.low %v5423_v16, %v5433_v60  ;;  %v11889_v7 = vld [vmem:[%s15046_s24 + $0xb4] sm:$0xf]  ;;  %v5442_v0 = vrot.slane %v5441_v59, 4 }
 0x697   : > { %v12115_v63 = vcombine.low %v5038_v18, %v5041_v3  ;;  %v5451_v49 = vor.u32 %v5450_v19, %v16860_v14  ;;  %v5459_v2 = vshrl.u32 %v16874_v35, 16  ;;  %v12067_v22 = vcombine.low %v4429_v32, %v4432_v29  ;;  %v4279_v59 = vld [vmem:[%s15046_s24 + $0xb4] sm:$0xe]  ;;  %v16905_v32 = vld [vmem:[%s15046_s24 + $0xc0] sm:$0xf] }
 0x698   : > { %6196 = vrot.lane.b32.xlu0 %v12130_v5, %s19810_s29  ;;  %v4826_v48 = vshrl.u32 %v11889_v7, 16  ;;  %v4248_v27 = vrot.slane %v4247_v56, 4  ;;  %v5462_v40 = vshll.u32 %v16874_v35, 16  ;;  %v5456_v45 = vrot.slane %v5454_v31, 5  ;;  %v16895_v5 = vld [vmem:[%s15046_s24 + $0xc8] sm:$0x1] }
 0x699   : > { %5798 = vrot.lane.b32.xlu1 %v12051_v6, %s19809_s22  ;;  %v4258_v16 = vrot.slane %v4257_v13, 4  ;;  %v4262_v60 = vrot.slane %v4260_v57, 5  ;;  %v4435_v11 = vrot.slane %v16766_v55, 5  ;;  %v4829_v38 = vshll.u32 %v11889_v7, 16 }
 0x69a   : > { %v5044_v47 = vrot.slane %v16885_v39, 5  ;;  %v5472_v18 = vshrl.u32 %v16888_v46, 16  ;;  %v5468_v19 = vshll.u32 %v16888_v46, 16  ;;  %v5452_v54 = vrot.slane %v5451_v49, 4 }
 0x69b   : > { %v12083_v42 = vcombine.low %v11889_v7, %v16677_v52  ;;  %v11940_v3 = vrot.slane %v11924_v43, 9  ;;  %v5461_v6 = vrot.slane %v5459_v2, 4  ;;  %v4253_v56 = vsel %vm13904_vm2, %v4248_v27, %v16828_v23 }
 0x69c   : > { %6276 = vrot.lane.b32.xlu0 %v12146_v61, %s13682_s27  ;;  %v5464_v29 = vrot.slane %v5462_v40, 5  ;;  %v4850_v31 = vshrl.u32 %v16905_v32, 16  ;;  %v4853_v13 = vshll.u32 %v16905_v32, 16  ;;  %v4263_v57 = vsel %vm13904_vm2, %v4258_v16, %v4262_v60  ;;  %v16926_v60 = vld [vmem:[%s15046_s24 + $0xd4] sm:$0x1] }
 0x69d   : > { %5878 = vrot.lane.b32.xlu1 %v12067_v22, %s19810_s29  ;;  %v11860_v61 = vrot.slane %v4279_v59, 9  ;;  %v4437_v7 = vrot.slane %v4435_v11, 4  ;;  %v4438_v49 = vrot.slane %v16846_v1, 5  ;;  %v5046_v2 = vrot.slane %v5044_v47, 4 }
 0x69e   : > { %v5047_v22 = vrot.slane %v16895_v5, 5  ;;  %v16917_v43 = vrot.slane %v5468_v19, 5  ;;  %v5474_v10 = vrot.slane %v5472_v18, 4  ;;  %v12131_v23 = vcombine.low %v16721_v62, %v16733_v20 }
 0x69f   : > { %v5447_v27 = vsel %vm13904_vm2, %v5442_v0, %v16860_v14  ;;  %v4828_v40 = vrot.slane %v4826_v48, 4  ;;  %v4831_v16 = vrot.slane %v4829_v38, 5  ;;  %v5457_v1 = vsel %vm13904_vm2, %v5452_v54, %v5456_v45 }
 0x6a0   : > { %6102 = vrot.lane.b32.xlu0 %v12115_v63, %s19809_s22  ;;  %v12052_v59 = vcombine.low %v4253_v56, %v4263_v57  ;;  %v4852_v18 = vrot.slane %v4850_v31, 4  ;;  %v4855_v19 = vrot.slane %v4853_v13, 5  ;;  %v4436_v63 = vsel %vm14431_vm15, %v11860_v61, %v4435_v11 }
 0x6a1   : > { %5974 = vrot.lane.b32.xlu1 %v12083_v42, %s13682_s27  ;;  %v4439_v62 = vsel %vm14431_vm15, %v4437_v7, %v4438_v49  ;;  %v5465_v12 = vor.u32 %v5464_v29, %v5461_v6  ;;  %v5045_v14 = vsel %vm14431_vm15, %v11940_v3, %v5044_v47  ;;  %v5048_v0 = vsel %vm14431_vm15, %v5046_v2, %v5047_v22 }
 0x6a2   : > { %v5475_v48 = vor.u32 %v5474_v10, %v16917_v43  ;;  %v5478_v45 = vshll.u32 %v16926_v60, 16  ;;  %v12147_v38 = vcombine.low %v5447_v27, %v5457_v1  ;;  %v4832_v54 = vor.u32 %v4831_v16, %v4828_v40 }
 0x6a3   : > { %v4835_v11 = vshll.u32 %v16677_v52, 16  ;;  %v4839_v42 = vshrl.u32 %v16677_v52, 16  ;;  %v12068_v6 = vcombine.low %v4436_v63, %v4439_v62  ;;  %v4845_v47 = vshll.u32 %v16712_v44, 16 }
 0x6a4   : > { %6198 = vrot.lane.b32.xlu0 %v12131_v23, %s19810_s29  ;;  %v12035_v3 = vcombine.low %v16629_v30, %v16637_v53  ;;  %v4856_v56 = vor.u32 %v4855_v19, %v4852_v18  ;;  %v12116_v10 = vcombine.low %v5045_v14, %v5048_v0  ;;  %v5466_v29 = vrot.slane %v5465_v12, 4  ;;  %v12003_v0 = vld [vmem:[%s15046_s24 + $0xc0] sm:$0xe] }
 0x6a5   : > { %5800 = vrot.lane.b32.xlu1 %v12052_v59, %s19809_s22  ;;  %v4833_v31 = vrot.slane %v4832_v54, 4  ;;  %v4837_v13 = vrot.slane %v4835_v11, 5  ;;  %v5476_v57 = vrot.slane %v5475_v48, 4  ;;  %v5480_v61 = vrot.slane %v5478_v45, 5 }
 0x6a6   : > { %v4841_v7 = vrot.slane %v4839_v42, 4  ;;  %v4857_v49 = vrot.slane %v4856_v56, 4  ;;  %v4859_v2 = vshll.u32 %v16885_v39, 16  ;;  %v4863_v44 = vshrl.u32 %v16885_v39, 16 }
 0x6a7   : > { %v4838_v52 = vsel %vm13904_vm2, %v4833_v31, %v4837_v13  ;;  %v4869_v22 = vshll.u32 %v16895_v5, 16  ;;  %v12084_v12 = vcombine.low %v16905_v32, %v16885_v39  ;;  %v4847_v27 = vrot.slane %v4845_v47, 5 }
 0x6a8   : > { %6278 = vrot.lane.b32.xlu0 %v12147_v38, %s13682_s27  ;;  %v4842_v23 = vor.u32 %v4841_v7, %v4837_v13  ;;  %v12036_v40 = vcombine.low %v16742_v34, %v16766_v55  ;;  %v4861_v16 = vrot.slane %v4859_v2, 5  ;;  %v4865_v1 = vrot.slane %v4863_v44, 4  ;;  %v12004_v38 = vld [vmem:[%s15046_s24 + $0xcc] sm:$0xe]  ;;  %v5783_v13 = vpop.permute.xlu1 %5782  ;;  %v19961_v2 = vld [vmem:[#allocation35_spill] sm:$0xff] }
 0x6a9   : > { %5880 = vrot.lane.b32.xlu1 %v12068_v6, %s19810_s29  ;;  %v12132_v59 = vcombine.low %v16874_v35, %v16888_v46  ;;  %v5471_v5 = vsel %vm13904_vm2, %v5466_v29, %v16917_v43  ;;  %v5481_v39 = vsel %vm13904_vm2, %v5476_v57, %v5480_v61  ;;  %v4871_v63 = vrot.slane %v4869_v22, 5  ;;  %v13496_v22 = vld [vmem:[%s15046_s24 + $0x48] sm:$0xf] }
 0x6aa   : > { %v4843_v18 = vrot.slane %v4842_v23, 4  ;;  %v4862_v32 = vsel %vm13904_vm2, %v4857_v49, %v4861_v16  ;;  %v4866_v19 = vor.u32 %v4865_v1, %v4861_v16  ;;  %v12148_v43 = vcombine.low %v5471_v5, %v5481_v39  ;;  %v13498_v5 = vld [vmem:[%s15046_s24 + $0x34] sm:$0xf]  ;;  %v7228_v55 = vld [vmem:[#allocation3 + $0x18] sm:$0x1] }
 0x6ab   : > { %v5646_v48 = vrot.slane %v16733_v20, 5  ;;  %v5649_v45 = vrot.slane %v16843_v33, 5  ;;  %v12019_v11 = vrot.slane %v12003_v0, 9  ;;  %v12020_v42 = vrot.slane %v12004_v38, 9 }
 0x6ac   : > { %6104 = vrot.lane.b32.xlu0 %v12116_v10, %s19809_s22  ;;  %v4848_v35 = vsel %vm13904_vm2, %v4843_v18, %v4847_v27  ;;  %v4867_v14 = vrot.slane %v4866_v19, 4  ;;  %v5653_v6 = vrot.slane %v16888_v46, 5  ;;  %v5656_v10 = vrot.slane %v16926_v60, 5 }
 0x6ad   : > { %5976 = vrot.lane.b32.xlu1 %v12084_v12, %s13682_s27  ;;  %v16972_v62 = vcombine.low %v4838_v52, %v4848_v35  ;;  %v5648_v56 = vrot.slane %v5646_v48, 4  ;;  %v16987_v20 = vsel %vm14431_vm15, %v12019_v11, %v5646_v48  ;;  %v13497_v12 = vld [vmem:[%s15046_s24 + $0x4c] sm:$0xf]  ;;  %v5562_v18 = vrot.slane %v13498_v5, 5  ;;  %v19963_v48 = vld [vmem:[#allocation43_spill] sm:$0xff] }
 0x6ae   : > { %v4872_v54 = vsel %vm13904_vm2, %v4867_v14, %v4871_v63  ;;  %v16991_v33 = vsel %vm14431_vm15, %v12020_v42, %v5653_v6  ;;  %v5655_v29 = vrot.slane %v5653_v6, 4  ;;  %v12027_v23 = vcombine.low %v13496_v22, %v13497_v12  ;;  %v11991_v14 = vld [vmem:[%s15046_s24 + $0x30] sm:$0xe]  ;;  %v13500_v11 = vld [vmem:[%s15046_s24 + $0x58] sm:$0xf] }
 0x6af   : > { %v16982_v47 = vcombine.low %v4862_v32, %v4872_v54  ;;  %v16995_v31 = vsel %vm14431_vm15, %v5648_v56, %v5649_v45  ;;  %v13499_v54 = vld [vmem:[%s15046_s24 + $0x54] sm:$0xf]  ;;  %v13501_v56 = vld [vmem:[%s15046_s24 + $0x38] sm:$0x1] }
 0x6b0   : > { %6200 = vrot.lane.b32.xlu0 %v12132_v59, %s19810_s29  ;;  %v12163_v46 = vcombine.low %v16987_v20, %v16995_v31  ;;  %v17002_v60 = vsel %vm14431_vm15, %v5655_v29, %v5656_v10  ;;  %v6350_v39 = vsel %vm3549_vm14, %v12027_v23, %v5783_v13  ;;  %v12028_v42 = vcombine.low %v13499_v54, %v13500_v11  ;;  %v13419_v13 = vld [vmem:[%s19640_s8 + $0x88] sm:$0xff]   ;;  %v19964_v22 = vld [vmem:[#allocation38_spill] sm:$0xff]  ;;  %v19965_v12 = vld [vmem:[#allocation19_spill] sm:$0xff] }
 0x6b1   : > { %v12164_v57 = vcombine.low %v16991_v33, %v17002_v60  ;;  %v3612_v61 = vpop.xlane.xlu0 %3611  ;;  %v5565_v10 = vrot.slane %v13501_v56, 5  ;;  %v19966_v23 = vcombine.low %v19964_v22, %v19965_v12 }
 0x6b2   : > { %13484 = vrcp.f32 %v3612_v61  ;;  %v12007_v61 = vrot.slane %v11991_v14, 9  ;;  %v19967_v14 = vld [vmem:[#allocation13_spill] sm:$0xff] }
 0x6b3   : > { %v3615_v7 = vpop.xlane.xlu1 %3614 }
 0x6b4   : > { %6280 = vrot.lane.b32.xlu0 %v12148_v43, %s13682_s27  ;;  %13486 = vrcp.f32 %v3615_v7  ;;  %v19962_v43 = vld [vmem:[#allocation41_spill] sm:$0xff]  ;;  %v5564_v7 = vrot.slane %v5562_v18, 4 }
 0x6b5   : > { %v6087_v49 = vpop.permute.xlu0 %6086 }
 0x6b6   : > { %v6479_v44 = vsel %vm3549_vm14, %v19961_v2, %v6087_v49 }
 0x6b7   : > { %v5863_v52 = vpop.permute.xlu1 %5862 }
 0x6b8   : > { %v6391_v63 = vsel %vm1172_vm3, %v6350_v39, %v5863_v52 }
 0x6b9   : > { %v6183_v27 = vpop.permute.xlu0 %6182 }
 0x6ba   : > { %v6520_v16 = vsel %vm1172_vm3, %v6479_v44, %v6183_v27  ;;  %v13502_v44 = vld [vmem:[%s19640_s8 + $0x80] sm:$0xff]  }
 0x6bb   : > { %v5959_v1 = vpop.permute.xlu1 %5958 }
 0x6bc   : > { %v13485_v59 = vpop.eup %13484  ;;  %v6430_v38 = vsel %vm6410_vm0, %v6391_v63, %v5959_v1  ;;  %v5566_v1 = vsel %vm14431_vm15, %v5564_v7, %v5565_v10 }
 0x6bd   : > { %v6263_v32 = vpop.permute.xlu0 %6262  ;;  %v3618_v0 = vmul.f32 %v13485_v59, %v19962_v43  ;;  %v19968_v43 = vld [vmem:[#allocation37_spill] sm:$0xff] }
 0x6be   : > { %v13487_v19 = vpop.eup %13486  ;;  %v6558_v35 = vsel %vm6410_vm0, %v6520_v16, %v6263_v32  ;;  %v5563_v16 = vsel %vm14431_vm15, %v12007_v61, %v5562_v18  ;;  %v19969_v18 = vcombine.low %v19967_v14, %v19968_v43  ;;  %v13506_v61 = vld [vmem:[%s15046_s24 + $0x88] sm:$0xf]  ;;  %v4757_v14 = vshll.u32 %v16497_v50, 16  ;;  %v19972_v43 = vld [vmem:[#allocation28_spill] sm:$0xff] }
 0x6bf   : > { %v3619_v45 = vmul.f32 %v13487_v19, %v19963_v48  ;;  %6859 = vmatprep.mubr.bf16.mxu1 %v6558_v35  ;;  %v5785_v6 = vpop.permute.xlu1 %5784  ;;  %v12151_v19 = vcombine.low %v5563_v16, %v5566_v1  ;;  %v13504_v48 = vld [vmem:[%s15046_s24 + $0x64] sm:$0xf]  ;;  %v4739_v7 = vshll.u32 %v13506_v61, 16 }
 0x6c0   : > { %6860 = vmatmul.mubr.bf16.gmra.mrb[72].mxu1 %v6430_v38  ;;  %v6353_v52 = vsel %vm3549_vm14, %v12028_v42, %v5785_v6  ;;  %v13505_v6 = vld [vmem:[%s15046_s24 + $0x84] sm:$0xf] }
 0x6c1   : > { %v3620_v29 = vpack.c.bf16 %v3619_v45, %v3618_v0  ;;  %v6089_v49 = vpop.permute.xlu0 %6088  ;;  %v13503_v0 = vld [vmem:[%s15046_s24 + $0x60] sm:$0xf]  ;;  %v4730_v56 = vshrl.u32 %v13505_v6, 16  ;;  %v4733_v10 = vshll.u32 %v13505_v6, 16  ;;  %v4741_v1 = vrot.slane %v4739_v7, 5  ;;  %v19976_v6 = vld [vmem:[#allocation26_spill] sm:$0xff] }
 0x6c2   : > { %v6482_v27 = vsel %vm3549_vm14, %v16609_v41, %v6089_v49  ;;  %v12029_v45 = vcombine.low %v13503_v0, %v13504_v48  ;;  %v4743_v49 = vshrl.u32 %v13506_v61, 16  ;;  %v11999_v7 = vld [vmem:[%s15046_s24 + $0x90] sm:$0xe] }
 0x6c3   : > { %13081 = vmatmul.mubr.msk.bf16.vlgmr.msra.gmra.mrb[40].mxu0 %vm3597_vm1, %v3620_v29  ;;  %v5865_v2 = vpop.permute.xlu1 %5864  ;;  %v4732_v12 = vrot.slane %v4730_v56, 4 }
 0x6c4   : > { %13085 = vmatpush3.bf16.msra.mxu0 %v13502_v44  ;;  %13088 = vmatprep.mubr.msk.bf16.mxu0 %vm3549_vm14, %v19966_v23  ;;  %v6393_v5 = vsel %vm1172_vm3, %v6353_v52, %v5865_v2  ;;  %v19970_v2 = vcombine.low %v16388_v36, %v16408_v26  ;;  %v4735_v23 = vrot.slane %v4733_v10, 5  ;;  %v13507_v26 = vld [vmem:[%s15046_s24 + $0x6c] sm:$0xf] }
 0x6c5   : > { %13086 = vmatprep.subr.bf16.mxu0 %v13419_v13  ;;  %v6185_v59 = vpop.permute.xlu0 %6184 }
 0x6c6   : > { %v6522_v39 = vsel %vm1172_vm3, %v6482_v27, %v6185_v59  ;;  %v4745_v59 = vrot.slane %v4743_v49, 4  ;;  %v13511_v49 = vld [vmem:[%s15046_s24 + $0x94] sm:$0xf] }
 0x6c7   : > { %v5961_v32 = vpop.permute.xlu1 %5960 }
 0x6c8   : > { %13087 = vmatpush3.bf16.msra.mxu0 %v13419_v13  ;;  %v6433_v41 = vsel %vm6410_vm0, %v6393_v5, %v5961_v32  ;;  %v13508_v5 = vld [vmem:[%s15046_s24 + $0x70] sm:$0xf] }
 0x6c9   : > { %v6265_v63 = vpop.permute.xlu0 %6264 }
 0x6ca   : > { %v6561_v35 = vsel %vm6410_vm0, %v6522_v39, %v6265_v63  ;;  %v12030_v39 = vcombine.low %v13507_v26, %v13508_v5 }
 0x6cb   : > { %13089 = vmatmul.mubr.msk.bf16.vlgmr.msra.gmra.mrb[44].mxu0 %vm3549_vm14, %v19969_v18  ;;  %6867 = vmatprep.mubr.bf16.mxu1 %v6561_v35  ;;  %v5787_v38 = vpop.permute.xlu1 %5786  ;;  %v4754_v35 = vshrl.u32 %v16497_v50, 16  ;;  %v19973_v18 = vld [vmem:[#allocation27_spill] sm:$0xff] }
 0x6cc   : > { %13092 = vmatprep.mubr.msk.bf16.mxu0 %vm3549_vm14, %v12151_v19  ;;  %6868 = vmatmul.mubr.bf16.gmra.mrb[76].mxu1 %v6433_v41  ;;  %v6356_v11 = vsel %vm3549_vm14, %v12029_v45, %v5787_v38  ;;  %v4736_v19 = vor.u32 %v4735_v23, %v4732_v12  ;;  %v19974_v0 = vcombine.low %v19972_v43, %v19973_v18  ;;  %v13510_v38 = vld [vmem:[%s15046_s24 + $0x94] sm:$0xf] }
 0x6cd   : > { %v6091_v54 = vpop.permute.xlu0 %6090 }
 0x6ce   : > { %v6485_v29 = vsel %vm3549_vm14, %v16755_v4, %v6091_v54  ;;  %v19971_v4 = vcombine.low %v16414_v17, %v16426_v15  ;;  %v4746_v17 = vor.u32 %v4745_v59, %v4741_v1  ;;  %v13509_v15 = vld [vmem:[%s15046_s24 + $0x8c] sm:$0x1]  ;;  %v4763_v54 = vshll.u32 %v13510_v38, 16 }
 0x6cf   : > { %v5867_v42 = vpop.permute.xlu1 %5866  ;;  %v4749_v41 = vshll.u32 %v13509_v15, 16  ;;  %v4737_v50 = vrot.slane %v4736_v19, 4  ;;  %v19979_v15 = vld [vmem:[#allocation22_spill] sm:$0xff] }
 0x6d0   : > { %v6395_v52 = vsel %vm1172_vm3, %v6356_v11, %v5867_v42  ;;  %v4767_v11 = vshrl.u32 %v13510_v38, 16  ;;  %v19975_v42 = vld [vmem:[#allocation14_spill] sm:$0xff]  ;;  %v19981_v38 = vcombine.low %v16788_v37, %v16794_v28 }
 0x6d1   : > { %v6187_v13 = vpop.permute.xlu0 %6186  ;;  %v19977_v56 = vcombine.low %v19975_v42, %v19976_v6  ;;  %v4751_v61 = vrot.slane %v4749_v41, 5 }
 0x6d2   : > { %v6524_v44 = vsel %vm1172_vm3, %v6485_v29, %v6187_v13  ;;  %v4747_v13 = vrot.slane %v4746_v17, 4  ;;  %v19978_v17 = vld [vmem:[#allocation16_spill] sm:$0xff] }
 0x6d3   : > { %13093 = vmatmul.mubr.msk.bf16.gmra.mrb[48].mxu0 %vm3549_vm14, %v19970_v2  ;;  %v5963_v22 = vpop.permute.xlu1 %5962  ;;  %v4756_v2 = vrot.slane %v4754_v35, 4  ;;  %v19980_v41 = vcombine.low %v19978_v17, %v19979_v15  ;;  %v13514_v35 = vld [vmem:[%s15046_s24 + $0x7c] sm:$0xf] }
 0x6d4   : > { %13096 = vmatprep.mubr.msk.bf16.mxu0 %vm3549_vm14, %v19971_v4  ;;  %v6436_v16 = vsel %vm6410_vm0, %v6395_v52, %v5963_v22  ;;  %v5618_v52 = vrot.slane %v13511_v49, 5  ;;  %v17089_v4 = vrot.slane %v4763_v54, 5  ;;  %v12001_v49 = vld [vmem:[%s15046_s24 + $0xa8] sm:$0xe] }
 0x6d5   : > { %v6267_v27 = vpop.permute.xlu0 %6266 }
 0x6d6   : > { %v6564_v36 = vsel %vm6410_vm0, %v6524_v44, %v6267_v27  ;;  %v4759_v44 = vrot.slane %v4757_v14, 5  ;;  %v4742_v27 = vsel %vm13904_vm2, %v4737_v50, %v4741_v1  ;;  %v5620_v5 = vrot.slane %v5618_v52, 4  ;;  %v13513_v1 = vld [vmem:[%s15046_s24 + $0x78] sm:$0xf]  ;;  %v13517_v50 = vld [vmem:[%s15046_s24 + $0xac] sm:$0xf] }
 0x6d7   : > { %6875 = vmatprep.mubr.bf16.mxu1 %v6564_v36  ;;  %v5789_v32 = vpop.permute.xlu1 %5788  ;;  %v4752_v36 = vsel %vm13904_vm2, %v4747_v13, %v4751_v61  ;;  %v12031_v14 = vcombine.low %v13513_v1, %v13514_v35  ;;  %v19982_v13 = vld [vmem:[#allocation17_spill] sm:$0xff]  ;;  %v19984_v1 = vcombine.low %v16800_v24, %v16810_v21 }
 0x6d8   : > { %6876 = vmatmul.mubr.bf16.gmra.mrb[80].mxu1 %v6436_v16  ;;  %v6359_v48 = vsel %vm3549_vm14, %v12030_v39, %v5789_v32  ;;  %v12015_v16 = vrot.slane %v11999_v7, 9  ;;  %v13512_v39 = vld [vmem:[%s15046_s24 + $0x98] sm:$0x1]  ;;  %v12095_v54 = vcombine.low %v4742_v27, %v4752_v36  ;;  %v4778_v61 = vshrl.u32 %v19982_v13, 16 }
 0x6d9   : > { %v6093_v63 = vpop.permute.xlu0 %6092  ;;  %v5621_v32 = vrot.slane %v13512_v39, 5  ;;  %v4781_v37 = vshll.u32 %v19982_v13, 16  ;;  %v12017_v39 = vrot.slane %v12001_v49, 9  ;;  %v13520_v13 = vld [vmem:[%s15046_s24 + $0x84] sm:$0xf] }
 0x6da   : > { %v6488_v10 = vsel %vm3549_vm14, %v16848_v51, %v6093_v63  ;;  %v4769_v51 = vrot.slane %v4767_v11, 4  ;;  %v4760_v63 = vor.u32 %v4759_v44, %v4756_v2  ;;  %v13516_v11 = vld [vmem:[%s15046_s24 + $0xa0] sm:$0xf]  ;;  %v4780_v17 = vrot.slane %v4778_v61, 4 }
 0x6db   : > { %13097 = vmatmul.mubr.msk.bf16.gmra.mrb[52].mxu0 %vm3549_vm14, %v19974_v0  ;;  %v5869_v45 = vpop.permute.xlu1 %5868  ;;  %v13515_v0 = vld [vmem:[%s15046_s24 + $0x98] sm:$0x1]  ;;  %v5625_v42 = vrot.slane %v13516_v11, 5 }
 0x6dc   : > { %13100 = vmatprep.mubr.msk.bf16.mxu0 %vm3549_vm14, %v19977_v56  ;;  %v6397_v22 = vsel %vm1172_vm3, %v6359_v48, %v5869_v45  ;;  %v4770_v18 = vor.u32 %v4769_v51, %v17089_v4  ;;  %v4773_v48 = vshll.u32 %v13515_v0, 16  ;;  %v12000_v45 = vld [vmem:[%s15046_s24 + $0x9c] sm:$0xe]  ;;  %v5619_v56 = vsel %vm14431_vm15, %v12015_v16, %v5618_v52 }
 0x6dd   : > { %v6189_v29 = vpop.permute.xlu0 %6188  ;;  %v4761_v28 = vrot.slane %v4760_v63, 4  ;;  %v12016_v7 = vrot.slane %v12000_v45, 9  ;;  %v5627_v16 = vrot.slane %v5625_v42, 4 }
 0x6de   : > { %v6526_v12 = vsel %vm1172_vm3, %v6488_v10, %v6189_v29  ;;  %v5622_v10 = vsel %vm14431_vm15, %v5620_v5, %v5621_v32  ;;  %v5632_v29 = vrot.slane %v13517_v50, 5 }
 0x6df   : > { %v5965_v23 = vpop.permute.xlu1 %5964  ;;  %v12159_v27 = vcombine.low %v5619_v56, %v5622_v10 }
 0x6e0   : > { %v6439_v26 = vsel %vm6410_vm0, %v6397_v22, %v5965_v23  ;;  %v4771_v22 = vrot.slane %v4770_v18, 4  ;;  %v13518_v23 = vld [vmem:[%s15046_s24 + $0xa4] sm:$0x1]  ;;  %v5634_v32 = vrot.slane %v5632_v29, 4  ;;  %v5626_v18 = vsel %vm14431_vm15, %v12016_v7, %v5625_v42  ;;  %v12002_v42 = vld [vmem:[%s15046_s24 + $0xb4] sm:$0xe] }
 0x6e1   : > { %v6269_v59 = vpop.permute.xlu0 %6268  ;;  %v5628_v52 = vrot.slane %v13518_v23, 5 }
 0x6e2   : > { %v6567_v19 = vsel %vm6410_vm0, %v6526_v12, %v6269_v59  ;;  %v4775_v12 = vrot.slane %v4773_v48, 5  ;;  %v13519_v59 = vld [vmem:[%s15046_s24 + $0xa0] sm:$0xf]  ;;  %v5639_v48 = vrot.slane %v16607_v9, 5  ;;  %v13521_v9 = vld [vmem:[%s15046_s24 + $0x88] sm:$0xf] }
 0x6e3   : > { %13101 = vmatmul.mubr.msk.bf16.gmra.mrb[56].mxu0 %vm3549_vm14, %v19980_v41  ;;  %6883 = vmatprep.mubr.bf16.mxu1 %v6567_v19  ;;  %v5791_v43 = vpop.permute.xlu1 %5790  ;;  %v4787_v36 = vshll.u32 %v13519_v59, 16  ;;  %v4791_v5 = vshrl.u32 %v13519_v59, 16  ;;  %v19983_v19 = vld [vmem:[#allocation24_spill] sm:$0xff]  ;;  %v4783_v41 = vrot.slane %v4781_v37, 5  ;;  %v5629_v24 = vsel %vm14431_vm15, %v5627_v16, %v5628_v52 }
 0x6e4   : > { %13104 = vmatprep.mubr.msk.bf16.mxu0 %vm3549_vm14, %v19981_v38  ;;  %6884 = vmatmul.mubr.bf16.gmra.mrb[84].mxu1 %v6439_v26  ;;  %v6362_v2 = vsel %vm3549_vm14, %v12031_v14, %v5791_v43  ;;  %v5635_v63 = vrot.slane %v19983_v19, 5  ;;  %v4766_v43 = vsel %vm13904_vm2, %v4761_v28, %v17089_v4  ;;  %v4776_v0 = vsel %vm13904_vm2, %v4771_v22, %v4775_v12 }
 0x6e5   : > { %v6095_v6 = vpop.permute.xlu0 %6094  ;;  %v17141_v21 = vrot.slane %v4787_v36, 5  ;;  %v4793_v38 = vrot.slane %v4791_v5, 4  ;;  %v12096_v10 = vcombine.low %v4766_v43, %v4776_v0  ;;  %v12160_v50 = vcombine.low %v5626_v18, %v5629_v24 }
 0x6e6   : > { %v6491_v51 = vsel %vm3549_vm14, %v12095_v54, %v6095_v6  ;;  %v5633_v54 = vsel %vm14431_vm15, %v12017_v39, %v5632_v29  ;;  %v5636_v11 = vsel %vm14431_vm15, %v5634_v32, %v5635_v63  ;;  %v12032_v61 = vcombine.low %v13520_v13, %v13521_v9  ;;  %v13525_v13 = vld [vmem:[%s15046_s24 + $0x94] sm:$0xf] }
 0x6e7   : > { %v5871_v44 = vpop.permute.xlu1 %5870  ;;  %v4784_v28 = vor.u32 %v4783_v41, %v4780_v17  ;;  %v12161_v49 = vcombine.low %v5633_v54, %v5636_v11  ;;  %v12018_v29 = vrot.slane %v12002_v42, 9  ;;  %v4802_v36 = vshrl.u32 %v16694_v58, 16 }
 0x6e8   : > { %v6399_v15 = vsel %vm1172_vm3, %v6362_v2, %v5871_v44  ;;  %v5641_v2 = vrot.slane %v5639_v48, 4  ;;  %v19985_v44 = vld [vmem:[#allocation23_spill] sm:$0xff] }
 0x6e9   : > { %v6191_v26 = vpop.permute.xlu0 %6190  ;;  %v5642_v22 = vrot.slane %v19985_v44, 5  ;;  %v4785_v63 = vrot.slane %v4784_v28, 4  ;;  %v5640_v17 = vsel %vm14431_vm15, %v12018_v29, %v5639_v48 }
 0x6ea   : > { %v6528_v35 = vsel %vm1172_vm3, %v6491_v51, %v6191_v26  ;;  %v4794_v51 = vor.u32 %v4793_v38, %v17141_v21  ;;  %v4805_v26 = vshll.u32 %v16694_v58, 16 }
 0x6eb   : > { %13105 = vmatmul.mubr.msk.bf16.gmra.mrb[60].mxu0 %vm3549_vm14, %v19984_v1  ;;  %v5967_v14 = vpop.permute.xlu1 %5966  ;;  %v4790_v48 = vsel %vm13904_vm2, %v4785_v63, %v17141_v21 }
 0x6ec   : > { %13108 = vmatprep.mubr.msk.bf16.mxu0 %vm3549_vm14, %v12159_v27  ;;  %v6442_v4 = vsel %vm6410_vm0, %v6399_v15, %v5967_v14  ;;  %v13522_v27 = vld [vmem:[%s15046_s24 + $0xa4] sm:$0x1]  ;;  %v5643_v15 = vsel %vm14431_vm15, %v5641_v2, %v5642_v22  ;;  %v4795_v58 = vrot.slane %v4794_v51, 4  ;;  %v4807_v38 = vrot.slane %v4805_v26, 5  ;;  %v13526_v22 = vld [vmem:[%s15046_s24 + $0xb0] sm:$0x1] }
 0x6ed   : > { %v6271_v45 = vpop.permute.xlu0 %6270  ;;  %v4797_v16 = vshll.u32 %v13522_v27, 16 }
 0x6ee   : > { %v6570_v6 = vsel %vm6410_vm0, %v6528_v35, %v6271_v45  ;;  %v13523_v35 = vld [vmem:[%s15046_s24 + $0xac] sm:$0xf]  ;;  %v12162_v45 = vcombine.low %v5640_v17, %v5643_v15 }
 0x6ef   : > { %v12756_v56 = vpop.f32.mrb[56].mxu1  ;;  %6891 = vmatprep.mubr.bf16.mxu1 %v6570_v6  ;;  %v5793_v37 = vpop.permute.xlu1 %5792  ;;  %v4799_v1 = vrot.slane %v4797_v16, 5  ;;  %v4811_v14 = vshll.u32 %v13523_v35, 16  ;;  %v4815_v43 = vshrl.u32 %v13523_v35, 16  ;;  %v13528_v35 = vld [vmem:[%s15046_s24 + $0xa0] sm:$0xf] }
 0x6f0   : > { %v12757_v7 = vpop.f32.mrb[57].mxu1  ;;  %6892 = vmatmul.mubr.bf16.gmra.mrb[88].mxu1 %v6442_v4  ;;  %v6365_v39 = vsel %vm3549_vm14, %v12032_v61, %v5793_v37  ;;  %v4804_v4 = vrot.slane %v4802_v36, 4 }
 0x6f1   : > { %v17154_v12 = vadd.f32 %v12757_v7, %v12756_v56  ;;  %v12759_v23 = vpop.f32.mrb[58].mxu1  ;;  %v6097_v52 = vpop.permute.xlu0 %6096  ;;  %v4800_v11 = vsel %vm13904_vm2, %v4795_v58, %v4799_v1  ;;  %v4813_v6 = vrot.slane %v4811_v14, 5  ;;  %v4817_v56 = vrot.slane %v4815_v43, 4  ;;  %v13527_v1 = vld [vmem:[%s15046_s24 + $0x9c] sm:$0xf] }
 0x6f2   : > { %v12760_v59 = vpop.f32.mrb[59].mxu1  ;;  %v6494_v19 = vsel %vm3549_vm14, %v12096_v10, %v6097_v52  ;;  %v12097_v21 = vcombine.low %v4790_v48, %v4800_v11  ;;  %v4808_v2 = vor.u32 %v4807_v38, %v4804_v4  ;;  %v12034_v14 = vcombine.low %v13527_v1, %v13528_v35  ;;  %v7280_v35 = vld [vmem:[#allocation3 + $0x14] sm:$0x1] }
 0x6f3   : > { %v17160_v5 = vadd.f32 %v12760_v59, %v12759_v23  ;;  %13109 = vmatmul.mubr.msk.bf16.gmra.mrb[64].mxu0 %vm3549_vm14, %v12160_v50  ;;  %v5873_v32 = vpop.permute.xlu1 %5872  ;;  %v13524_v50 = vld [vmem:[%s15046_s24 + $0x90] sm:$0xf]  ;;  %v4818_v44 = vor.u32 %v4817_v56, %v4813_v6  ;;  %v4821_v23 = vshll.u32 %v13526_v22, 16 }
 0x6f4   : > { %13112 = vmatprep.mubr.msk.bf16.mxu0 %vm3549_vm14, %v12161_v49  ;;  %v6401_v18 = vsel %vm1172_vm3, %v6365_v39, %v5873_v32  ;;  %v12033_v9 = vcombine.low %v13524_v50, %v13525_v13  ;;  %v4809_v31 = vrot.slane %v4808_v2, 4 }
 0x6f5   : > { %v6193_v41 = vpop.permute.xlu0 %6192  ;;  %v4823_v36 = vrot.slane %v4821_v23, 5 }
 0x6f6   : > { %v6530_v0 = vsel %vm1172_vm3, %v6494_v19, %v6193_v41  ;;  %v4814_v17 = vsel %vm13904_vm2, %v4809_v31, %v4813_v6 }
 0x6f7   : > { %v5969_v24 = vpop.permute.xlu1 %5968 }
 0x6f8   : > { %v6445_v42 = vsel %vm6410_vm0, %v6401_v18, %v5969_v24 }
 0x6f9   : > { %v6273_v54 = vpop.permute.xlu0 %6272 }
 0x6fa   : > { %v6573_v10 = vsel %vm6410_vm0, %v6530_v0, %v6273_v54 }
 0x6fb   : > { %6899 = vmatprep.mubr.bf16.mxu1 %v6573_v10  ;;  %v5795_v61 = vpop.permute.xlu1 %5794  ;;  %v12762_v37 = vpop.f32.mrb[60].mxu1  ;;  %13113 = vmatmul.mubr.msk.bf16.gmra.mrb[68].mxu0 %vm3549_vm14, %v12162_v45 }
 0x6fc   : > { %6900 = vmatmul.mubr.bf16.gmra.mrb[92].mxu1 %v6445_v42  ;;  %v12763_v28 = vpop.f32.mrb[61].mxu1  ;;  %13116 = vmatprep.mubr.msk.bf16.mxu0 %vm3549_vm14, %v12163_v46  ;;  %v6368_v51 = vsel %vm3549_vm14, %v12033_v9, %v5795_v61  ;;  %v4819_v46 = vrot.slane %v4818_v44, 4 }
 0x6fd   : > { %v6099_v7 = vpop.permute.xlu0 %6098  ;;  %v17187_v49 = vadd.f32 %v12763_v28, %v12762_v37  ;;  %v12765_v29 = vpop.f32.mrb[62].mxu1 }
 0x6fe   : > { %v12766_v52 = vpop.f32.mrb[63].mxu1  ;;  %v6497_v59 = vsel %vm3549_vm14, %v12097_v21, %v6099_v7  ;;  %v4824_v15 = vsel %vm13904_vm2, %v4819_v46, %v4823_v36 }
 0x6ff   : > { %v17191_v27 = vadd.f32 %v12766_v52, %v12765_v29  ;;  %v5875_v16 = vpop.permute.xlu1 %5874  ;;  %v12098_v33 = vcombine.low %v4814_v17, %v4824_v15  ;;  %v7225_v15 = vld [vmem:[#allocation3 + $0xc] sm:$0x1] }
 0x700   : > { %v6403_v26 = vsel %vm1172_vm3, %v6368_v51, %v5875_v16 }
 0x701   : > { %v6195_v20 = vpop.permute.xlu0 %6194 }
 0x702   : > { %v6532_v39 = vsel %vm1172_vm3, %v6497_v59, %v6195_v20 }
 0x703   : > { %v5971_v32 = vpop.permute.xlu1 %5970  ;;  %13117 = vmatmul.mubr.msk.bf16.gmra.mrb[72].mxu0 %vm3549_vm14, %v12164_v57 }
 0x704   : > { %v6448_v63 = vsel %vm6410_vm0, %v6403_v26, %v5971_v32 }
 0x705   : > { %v6275_v19 = vpop.permute.xlu0 %6274 }
 0x706   : > { %v6576_v41 = vsel %vm6410_vm0, %v6532_v39, %v6275_v19 }
 0x707   : > { %6907 = vmatprep.mubr.bf16.mxu1 %v6576_v41  ;;  %v12768_v58 = vpop.f32.mrb[64].mxu1  ;;  %v5797_v43 = vpop.permute.xlu1 %5796  ;;  %v7283_v41 = vld [vmem:[#allocation3 + $0x20] sm:$0x1] }
 0x708   : > { %6908 = vmatmul.mubr.bf16.gmra.mrb[96].mxu1 %v6448_v63  ;;  %v12769_v60 = vpop.f32.mrb[65].mxu1  ;;  %v6371_v45 = vsel %vm3549_vm14, %v12034_v14, %v5797_v43  ;;  %v7284_v1 = vsel %vm17252_vm5, 0, %v7283_v41  ;;  %v7234_v14 = vld [vmem:[#allocation3 + $0x30] sm:$0x1]  ;;  %v7281_v43 = vsel %vm17252_vm5, 0, %v7280_v35 }
 0x709   : > { %v6101_v57 = vpop.permute.xlu0 %6100  ;;  %v17208_v18 = vadd.f32 %v12769_v60, %v12768_v58  ;;  %v12771_v0 = vpop.f32.mrb[66].mxu1  ;;  %v7226_v58 = vsel %vm17244_vm4, 0, %v7225_v15  ;;  %7285 = vst [vmem:[#allocation3 + $0x20] sm:$0x1] %v7284_v1  ;;  %7282 = vst [vmem:[#allocation3 + $0x14] sm:$0x1] %v7281_v43 }
 0x70a   : > { %v12772_v24 = vpop.f32.mrb[67].mxu1  ;;  %v6500_v48 = vsel %vm3549_vm14, %v12098_v33, %v6101_v57  ;;  %7227 = vst [vmem:[#allocation3 + $0xc] sm:$0x1] %v7226_v58  ;;  %v7235_v33 = vsel %vm17244_vm4, 0, %v7234_v14  ;;  %v7231_v60 = vld [vmem:[#allocation3 + $0x24] sm:$0x1] }
 0x70b   : > { %v17211_v4 = vadd.f32 %v12772_v24, %v12771_v0  ;;  %v5877_v38 = vpop.permute.xlu1 %5876  ;;  %7236 = vst [vmem:[#allocation3 + $0x30] sm:$0x1] %v7235_v33  ;;  %v7232_v57 = vsel %vm17244_vm4, 0, %v7231_v60  ;;  %v7289_v0 = vld [vmem:[#allocation3 + $0x38] sm:$0x1] }
 0x70c   : > { %v6405_v11 = vsel %vm1172_vm3, %v6371_v45, %v5877_v38  ;;  %7233 = vst [vmem:[#allocation3 + $0x24] sm:$0x1] %v7232_v57  ;;  %v7290_v24 = vsel %vm17252_vm5, 0, %v7289_v0  ;;  %v7286_v45 = vld [vmem:[#allocation3 + $0x2c] sm:$0x1]  ;;  %v13437_v57 = vld [vmem:[%s19643_s11 + $0x88] sm:$0xff]  }
 0x70d   : > { %v6197_v54 = vpop.permute.xlu0 %6196  ;;  %7291 = vst [vmem:[#allocation3 + $0x38] sm:$0x1] %v7290_v24  ;;  %v7287_v38 = vsel %vm17252_vm5, 0, %v7286_v45  ;;  %v7246_v58 = vld [vmem:[#allocation3 + $0x60] sm:$0x1] }
 0x70e   : > { %v6534_v42 = vsel %vm1172_vm3, %v6500_v48, %v6197_v54  ;;  %v7240_v48 = vld [vmem:[#allocation3 + $0x48] sm:$0x1]  ;;  %7288 = vst [vmem:[#allocation3 + $0x2c] sm:$0x1] %v7287_v38  ;;  %v7247_v1 = vsel %vm17244_vm4, 0, %v7246_v58 }
 0x70f   : > { %v5973_v6 = vpop.permute.xlu1 %5972  ;;  %v7241_v54 = vsel %vm17244_vm4, 0, %v7240_v48  ;;  %7248 = vst [vmem:[#allocation3 + $0x60] sm:$0x1] %v7247_v1  ;;  %v7301_v0 = vld [vmem:[#allocation3 + $0x68] sm:$0x1] }
 0x710   : > { %v6451_v10 = vsel %vm6410_vm0, %v6405_v11, %v5973_v6  ;;  %7242 = vst [vmem:[#allocation3 + $0x48] sm:$0x1] %v7241_v54  ;;  %v7237_v11 = vld [vmem:[#allocation3 + $0x3c] sm:$0x1]  ;;  %v7295_v6 = vld [vmem:[#allocation3 + $0x50] sm:$0x1] }
 0x711   : > { %v6277_v56 = vpop.permute.xlu0 %6276  ;;  %v7302_v24 = vsel %vm17252_vm5, 0, %v7301_v0  ;;  %v7249_v45 = vld [vmem:[#allocation3 + $0x6c] sm:$0x1]  ;;  %v7304_v48 = vld [vmem:[#allocation3 + $0x74] sm:$0x1] }
 0x712   : > { %v6579_v50 = vsel %vm6410_vm0, %v6534_v42, %v6277_v56  ;;  %v7238_v42 = vsel %vm17244_vm4, 0, %v7237_v11  ;;  %v7296_v56 = vsel %vm17252_vm5, 0, %v7295_v6  ;;  %7303 = vst [vmem:[#allocation3 + $0x68] sm:$0x1] %v7302_v24  ;;  %v7250_v38 = vsel %vm17244_vm4, 0, %v7249_v45 }
 0x713   : > { %6915 = vmatprep.mubr.bf16.mxu1 %v6579_v50  ;;  %v12774_v13 = vpop.f32.mrb[68].mxu1  ;;  %v5799_v9 = vpop.permute.xlu1 %5798  ;;  %7239 = vst [vmem:[#allocation3 + $0x3c] sm:$0x1] %v7238_v42  ;;  %7297 = vst [vmem:[#allocation3 + $0x50] sm:$0x1] %v7296_v56  ;;  %v7305_v54 = vsel %vm17252_vm5, 0, %v7304_v48 }
 0x714   : > { %6916 = vmatmul.mubr.bf16.gmra.mrb[100].mxu1 %v6451_v10  ;;  %v12775_v61 = vpop.f32.mrb[69].mxu1  ;;  %v6374_v2 = vsel %vm3549_vm14, %v12035_v3, %v5799_v9  ;;  %v7292_v10 = vld [vmem:[#allocation3 + $0x44] sm:$0x1]  ;;  %v7277_v9 = vld [vmem:[#allocation3 + $0x8] sm:$0x1] }
 0x715   : > { %v17218_v37 = vadd.f32 %v12775_v61, %v12774_v13  ;;  %v12777_v21 = vpop.f32.mrb[70].mxu1  ;;  %v6103_v28 = vpop.permute.xlu0 %6102  ;;  %v7293_v50 = vsel %vm17252_vm5, 0, %v7292_v10  ;;  %v7222_v13 = vld [vmem:[#allocation3] sm:$0x1]  ;;  %v7865_v61 = vld [vmem:[#allocation3 + $0x4] sm:$0xf] }
 0x716   : > { %v12778_v7 = vpop.f32.mrb[71].mxu1  ;;  %v6503_v22 = vsel %vm3549_vm14, %v16972_v62, %v6103_v28  ;;  %7294 = vst [vmem:[#allocation3 + $0x44] sm:$0x1] %v7293_v50  ;;  %v7278_v28 = vsel %vm17252_vm5, 0, %v7277_v9  ;;  %7251 = vst [vmem:[#allocation3 + $0x6c] sm:$0x1] %v7250_v38 }
 0x717   : > { %v17220_v29 = vadd.f32 %v12778_v7, %v12777_v21  ;;  %v5879_v44 = vpop.permute.xlu1 %5878  ;;  %v7223_v21 = vsel %vm17244_vm4, 0, %v7222_v13  ;;  %v7922_v7 = vshll.u32 %v7865_v61, 16  ;;  %7279 = vst [vmem:[#allocation3 + $0x8] sm:$0x1] %v7278_v28  ;;  %7306 = vst [vmem:[#allocation3 + $0x74] sm:$0x1] %v7305_v54 }
 0x718   : > { %v6407_v52 = vsel %vm1172_vm3, %v6374_v2, %v5879_v44  ;;  %v7926_v2 = vshrl.u32 %v7865_v61, 16  ;;  %v7243_v44 = vld [vmem:[#allocation3 + $0x54] sm:$0x1]  ;;  %7224 = vst [vmem:[#allocation3] sm:$0x1] %v7223_v21  ;;  %v19990_v50 = vld [vmem:[#allocation21_spill] sm:$0xff] }
 0x719   : > { %v6199_v23 = vpop.permute.xlu0 %6198  ;;  %v13684_v11 = vmov 1966171168   ;;  %v7252_v56 = vld [vmem:[#allocation3 + $0x78] sm:$0x1] }
 0x71a   : > { %v6536_v51 = vsel %vm1172_vm3, %v6503_v22, %v6199_v23  ;;  %v7244_v22 = vsel %vm17244_vm4, 0, %v7243_v44  ;;  %v7924_v23 = vrot.slane %v7922_v7, 5  ;;  %v3672_v42 = vunpack.c.l.s4 %v13684_v11 }
 0x71b   : > { %v5975_v16 = vpop.permute.xlu1 %5974  ;;  %7245 = vst [vmem:[#allocation3 + $0x54] sm:$0x1] %v7244_v22  ;;  %v7253_v10 = vsel %vm17244_vm4, 0, %v7252_v56 }
 0x71c   : > { %v6454_v20 = vsel %vm6410_vm0, %v6407_v52, %v5975_v16  ;;  %v7928_v52 = vrot.slane %v7926_v2, 4  ;;  %v3673_v6 = vunpack.c.0.s8 %v3672_v42  ;;  %7254 = vst [vmem:[#allocation3 + $0x78] sm:$0x1] %v7253_v10 }
 0x71d   : > { %v6279_v59 = vpop.permute.xlu0 %6278 }
 0x71e   : > { %v6582_v31 = vsel %vm6410_vm0, %v6536_v51, %v6279_v59  ;;  %v7298_v51 = vld [vmem:[#allocation3 + $0x5c] sm:$0x1]  ;;  %v7929_v59 = vor.u32 %v7928_v52, %v7924_v23  ;;  %v3676_v13 = vsub.s32 %v3673_v6, %v19990_v50 }
 0x71f   : > { %v5801_v46 = vpop.permute.xlu1 %5800  ;;  %6923 = vmatprep.mubr.bf16.mxu1 %v6582_v31  ;;  %v7299_v16 = vsel %vm17252_vm5, 0, %v7298_v51  ;;  %v7896_v31 = vld [vmem:[#allocation3 + $0x8] sm:$0x1]  ;;  %v3770_v51 = vsub.s32 0, %v19990_v50 }
 0x720   : > { %6924 = vmatmul.mubr.bf16.gmra.mrb[104].mxu1 %v6454_v20  ;;  %v6377_v53 = vsel %vm3549_vm14, %v12036_v40, %v5801_v46  ;;  %v7229_v40 = vsel %vm17244_vm4, 0, %v7228_v55  ;;  %7300 = vst [vmem:[#allocation3 + $0x5c] sm:$0x1] %v7299_v16  ;;  %v7864_v20 = vld [vmem:[#allocation3] sm:$0xf] }
 0x721   : > { %v6105_v30 = vpop.permute.xlu0 %6104  ;;  %7230 = vst [vmem:[#allocation3 + $0x18] sm:$0x1] %v7229_v40  ;;  %v7913_v46 = vshrl.u32 %v7864_v20, 16  ;;  %v8365_v40 = vrot.slane %v7896_v31, 5 }
 0x722   : > { %v6506_v62 = vsel %vm3549_vm14, %v16982_v47, %v6105_v30  ;;  %v7916_v30 = vshll.u32 %v7864_v20, 16 }
 0x723   : > { %v5881_v3 = vpop.permute.xlu1 %5880 }
 0x724   : > { %v6409_v26 = vsel %vm1172_vm3, %v6377_v53, %v5881_v3  ;;  %v7932_v53 = vshll.u32 %v7896_v31, 16  ;;  %v8362_v3 = vrot.slane %v7865_v61, 5 }
 0x725   : > { %v6201_v36 = vpop.permute.xlu0 %6200 }
 0x726   : > { %v6538_v39 = vsel %vm1172_vm3, %v6506_v62, %v6201_v36  ;;  %v8296_v62 = vld [vmem:[#allocation3] sm:$0xe]  ;;  %v7915_v36 = vrot.slane %v7913_v46, 4  ;;  %v8364_v55 = vrot.slane %v8362_v3, 4 }
 0x727   : > { %v5977_v32 = vpop.permute.xlu1 %5976 }
 0x728   : > { %v6457_v63 = vsel %vm6410_vm0, %v6409_v26, %v5977_v32  ;;  %v7918_v26 = vrot.slane %v7916_v30, 5  ;;  %v7934_v32 = vrot.slane %v7932_v53, 5  ;;  %v8366_v43 = vsel %vm14431_vm15, %v8364_v55, %v8365_v40 }
 0x729   : > { %v6281_v19 = vpop.permute.xlu0 %6280 }
 0x72a   : > { %v6585_v17 = vsel %vm6410_vm0, %v6538_v39, %v6281_v19  ;;  %v7930_v39 = vrot.slane %v7929_v59, 4  ;;  %v13436_v19 = vld [vmem:[%s19643_s11 + $0x80] sm:$0xff]  }
 0x72b   : > { %6931 = vmatprep.mubr.bf16.mxu1 %v6585_v17  ;;  %v12233_v17 = vrot.slane %v8296_v62, 9  ;;  %13120 = vmatprep.subr.bf16.mxu1 %v13436_v19 }
 0x72c   : > { %6932 = vmatmul.mubr.bf16.gmra.mrb[108].mxu1 %v6457_v63  ;;  %v7919_v63 = vor.u32 %v7918_v26, %v7915_v36  ;;  %v7935_v41 = vsel %vm13904_vm2, %v7930_v39, %v7934_v32 }
 0x72d   : > { %13121 = vmatpush3.bf16.msra.mxu1 %v13436_v19  ;;  %v8363_v14 = vsel %vm14431_vm15, %v12233_v17, %v8362_v3 }
 0x72e   : > { %v7920_v15 = vrot.slane %v7919_v63, 4  ;;  %v12313_v60 = vcombine.low %v8363_v14, %v8366_v43  ;;  %13122 = vmatprep.subr.bf16.mxu1 %v13437_v57 }
 0x730   : > { %v7925_v35 = vsel %vm13904_vm2, %v7920_v15, %v7924_v23 }
 0x731   : > { %v12297_v33 = vcombine.low %v7925_v35, %v7935_v41  ;;  %13123 = vmatpush3.bf16.msra.mxu1 %v13437_v57 }
 0x733   : > { %9801 = vrot.lane.b32.xlu1 %v12297_v33, %s19809_s22 }
 0x737   : > { %9881 = vrot.lane.b32.xlu1 %v12313_v60, %s19810_s29 }
 0x793   : > { %v12780_v9 = vpop.f32.mrb[72].mxu1 }
 0x794   : > { %v12781_v61 = vpop.f32.mrb[73].mxu1 }
 0x795   : > { %v17313_v21 = vadd.f32 %v12781_v61, %v12780_v9  ;;  %v12783_v28 = vpop.f32.mrb[74].mxu1 }
 0x796   : > { %v3661_v7 = vpop.f32.mrb[40].mxu0  ;;  %v12784_v2 = vpop.f32.mrb[75].mxu1 }
 0x797   : > { %v3670_v44 = vcombine.high %v3661_v7, %v3661_v7  ;;  %v3677_v22 = vrot.slane %v3661_v7, %v3676_v13  ;;  %v17315_v23 = vadd.f32 %v12784_v2, %v12783_v28  ;;  %v13082_v52 = vpop.f32.mrb[41].mxu0 }
 0x798   : > { %v3664_v16 = vpop.f32.mrb[42].mxu0 }
 0x799   : > { %v3684_v59 = vrot.slane %v3670_v44, %v3676_v13  ;;  %v3685_v20 = vcombine.high %v3677_v22, %v3677_v22  ;;  %v3693_v31 = vrot.slane %v3677_v22, %v3676_v13  ;;  %v3719_v46 = vcombine.high %v3664_v16, %v3664_v16  ;;  %v13083_v30 = vpop.f32.mrb[43].mxu0 }
 0x79a   : > { %v3726_v53 = vrot.slane %v3664_v16, %v3676_v13 }
 0x79b   : > { %v3686_v3 = vcombine.high %v3684_v59, %v3684_v59  ;;  %v3700_v62 = vrot.slane %v3684_v59, %v3676_v13  ;;  %v3707_v36 = vrot.slane %v3685_v20, %v3676_v13  ;;  %v3715_v26 = vcombine.high %v3693_v31, %v3693_v31 }
 0x79c   : > { %v3771_v39 = vrot.slane %v3693_v31, %v3770_v51  ;;  %v3733_v32 = vrot.slane %v3719_v46, %v3676_v13  ;;  %v3734_v19 = vcombine.high %v3726_v53, %v3726_v53  ;;  %v3742_v63 = vrot.slane %v3726_v53, %v3676_v13  ;;  %v17331_v53 = vld [vmem:[%s19641_s9] ss:$0 sm:$0xff] }
 0x79d   : > { %v3714_v17 = vrot.slane %v3686_v3, %v3676_v13  ;;  %v3716_v55 = vcombine.high %v3700_v62, %v3700_v62  ;;  %v3717_v40 = vcombine.high %v3707_v36, %v3707_v36  ;;  %v3775_v15 = vrot.slane %v3707_v36, %v3770_v51 }
 0x79e   : > { %v3779_v41 = vrot.slane %v3715_v26, %v3770_v51  ;;  %v3787_v58 = vrot.slane %v3700_v62, %v3770_v51  ;;  %v3735_v1 = vcombine.high %v3733_v32, %v3733_v32  ;;  %v3749_v35 = vrot.slane %v3733_v32, %v3676_v13  ;;  %v13090_v14 = vpop.f32.mrb[44].mxu0  ;;  %v19997_v62 = vld [vmem:[#allocation34_spill] sm:$0xff]  ;;  %v19999_v32 = vld [vmem:[#allocation36_spill] sm:$0xff] }
 0x79f   : > { %v3718_v43 = vcombine.high %v3714_v17, %v3714_v17  ;;  %v3783_v33 = vrot.slane %v3717_v40, %v3770_v51  ;;  %v3791_v60 = vrot.slane %v3714_v17, %v3770_v51  ;;  %v3795_v57 = vrot.slane %v3716_v55, %v3770_v51  ;;  %v6974_v0 = vpop.f32.mrb[45].mxu0  ;;  %v12786_v24 = vpop.f32.mrb[76].mxu1  ;;  %v19998_v26 = vld [vmem:[#allocation30_spill] sm:$0xff]  ;;  %v20002_v40 = vld [vmem:[#allocation31_spill] sm:$0xff] }
 0x7a0   : > { %v17318_v45 = vcombine.low %v3771_v39, %v3775_v15  ;;  %v3756_v38 = vrot.slane %v3734_v19, %v3676_v13  ;;  %v3763_v48 = vrot.slane %v3735_v1, %v3676_v13  ;;  %v3764_v54 = vcombine.high %v3742_v63, %v3742_v63  ;;  %v13091_v11 = vpop.f32.mrb[46].mxu0  ;;  %v12787_v42 = vpop.f32.mrb[77].mxu1 }
 0x7a1   : > { %v3799_v6 = vrot.slane %v3718_v43, %v3770_v51  ;;  %v17320_v56 = vcombine.low %v3779_v41, %v3783_v33  ;;  %v17322_v10 = vcombine.low %v3787_v58, %v3791_v60  ;;  %v3765_v50 = vcombine.high %v3749_v35, %v3749_v35  ;;  %v6977_v9 = vpop.f32.mrb[47].mxu0  ;;  %v12789_v61 = vpop.f32.mrb[78].mxu1 }
 0x7a2   : > { %19991 = vst [vmem:[#allocation25_spill] sm:$0xff] %v17318_v45  ;;  %v3766_v28 = vcombine.high %v3756_v38, %v3756_v38  ;;  %v3767_v7 = vcombine.high %v3763_v48, %v3763_v48  ;;  %v3803_v2 = vrot.slane %v3742_v63, %v3770_v51  ;;  %v3807_v44 = vrot.slane %v3756_v38, %v3770_v51  ;;  %v12790_v22 = vpop.f32.mrb[79].mxu1  ;;  %v7307_v63 = vld [vmem:[#allocation3 + $0x80] sm:$0x1] }
 0x7a3   : > { %19992 = vst [vmem:[#allocation29_spill] sm:$0xff] %v17320_v56  ;;  %19993 = vst [vmem:[#allocation18_spill] sm:$0xff] %v17322_v10  ;;  %v17324_v52 = vcombine.low %v3795_v57, %v3799_v6  ;;  %v3811_v16 = vrot.slane %v3764_v54, %v3770_v51  ;;  %v3819_v13 = vrot.slane %v3749_v35, %v3770_v51 }
 0x7a4   : > { %v3823_v59 = vrot.slane %v3763_v48, %v3770_v51  ;;  %v3815_v20 = vrot.slane %v3766_v28, %v3770_v51  ;;  %v3827_v31 = vrot.slane %v3765_v50, %v3770_v51  ;;  %v3831_v46 = vrot.slane %v3767_v7, %v3770_v51  ;;  %v17345_v51 = vld [vmem:[%s19642_s10] ss:$0 sm:$0xff] }
 0x7a5   : > { %19994 = vst [vmem:[#allocation32_spill] sm:$0xff] %v17324_v52  ;;  %v17326_v30 = vcombine.low %v3803_v2, %v3807_v44  ;;  %v6983_v36 = vadd.f32 %v13090_v14, %v19997_v62  ;;  %v6975_v39 = vadd.f32 %v19998_v26, %v6974_v0  ;;  %v6986_v19 = vadd.f32 %v13091_v11, %v19999_v32 }
 0x7a6   : > { %v17333_v3 = vcombine.low %v3819_v13, %v3823_v59  ;;  %v17338_v17 = vcombine.low %v3811_v16, %v3815_v20  ;;  %v17340_v55 = vcombine.low %v3827_v31, %v3831_v46  ;;  %v6978_v15 = vadd.f32 %v20002_v40, %v6977_v9  ;;  %v13094_v41 = vpop.f32.mrb[48].mxu0 }
 0x7a7   : > { %19995 = vst [vmem:[#allocation40_spill] sm:$0xff] %v17326_v30  ;;  %v17348_v58 = vadd.f32 %v12787_v42, %v12786_v24  ;;  %v7110_v1 = vmul.f32 %v17331_v53, %v6983_v36  ;;  %v7108_v35 = vmul.f32 %v17331_v53, %v6975_v39  ;;  %v7111_v14 = vmul.f32 %v17331_v53, %v6986_v19  ;;  %v6990_v33 = vpop.f32.mrb[49].mxu0 }
 0x7a8   : > { %19996 = vst [vmem:[#allocation39_spill] sm:$0xff] %v17333_v3  ;;  %20000 = vst [vmem:[#allocation48_spill] sm:$0xff] %v17338_v17  ;;  %v6999_v43 = vadd.f32 %v13094_v41, %v17187_v49  ;;  %v7109_v60 = vmul.f32 %v17331_v53, %v6978_v15  ;;  %v6991_v57 = vadd.f32 %v17154_v12, %v6990_v33  ;;  %v13095_v0 = vpop.f32.mrb[50].mxu0  ;;  %v7308_v24 = vsel %vm17252_vm5, 0, %v7307_v63 }
 0x7a9   : > { %20001 = vst [vmem:[#allocation33_spill] sm:$0xff] %v17340_v55  ;;  %v17356_v38 = vadd.f32 %v12790_v22, %v12789_v61  ;;  %v7149_v48 = vadd.f32 %v17345_v51, %v7110_v1  ;;  %v7147_v54 = vadd.f32 %v17345_v51, %v7108_v35  ;;  %v7150_v11 = vadd.f32 %v17345_v51, %v7111_v14  ;;  %v6993_v42 = vpop.f32.mrb[51].mxu0 }
 0x7aa   : > { %v7114_v49 = vmul.f32 %v17331_v53, %v6999_v43  ;;  %7309 = vst [vmem:[#allocation3 + $0x80] sm:$0x1] %v7308_v24  ;;  %v7148_v6 = vadd.f32 %v17345_v51, %v7109_v60  ;;  %v7112_v12 = vmul.f32 %v17331_v53, %v6991_v57  ;;  %v7002_v50 = vadd.f32 %v13095_v0, %v17191_v27  ;;  %v7759_v24 = vld [vmem:[#allocation3 + $0x18] sm:$0xf] }
 0x7ab   : > { %v6994_v9 = vadd.f32 %v17160_v5, %v6993_v42  ;;  %v7181_v61 = vmax.f32 %v7149_v48, 0.0  ;;  %v7179_v28 = vmax.f32 %v7147_v54, 0.0  ;;  %v7182_v7 = vmax.f32 %v7150_v11, 0.0  ;;  %v17369_v44 = vpop.f32.mrb[80].mxu1 }
 0x7ac   : > { %v7153_v2 = vadd.f32 %v17345_v51, %v7114_v49  ;;  %v7180_v22 = vmax.f32 %v7148_v6, 0.0  ;;  %v7151_v16 = vadd.f32 %v17345_v51, %v7112_v12  ;;  %v7115_v13 = vmul.f32 %v17331_v53, %v7002_v50  ;;  %v17374_v20 = vpop.f32.mrb[81].mxu1  ;;  %v7752_v6 = vld [vmem:[#allocation3 + $0xc] sm:$0xf] }
 0x7ad   : > { %v7113_v59 = vmul.f32 %v17331_v53, %v6994_v9  ;;  %v12512_v31 = vpack.c.bf16 %v7181_v61, %v7181_v61  ;;  %v12510_v27 = vpack.c.bf16 %v7179_v28, %v7179_v28  ;;  %v12513_v46 = vpack.c.bf16 %v7182_v7, %v7182_v7  ;;  %v17376_v62 = vpop.f32.mrb[82].mxu1 }
 0x7ae   : > { %v7185_v5 = vmax.f32 %v7153_v2, 0.0  ;;  %v12511_v36 = vpack.c.bf16 %v7180_v22, %v7180_v22  ;;  %v7183_v26 = vmax.f32 %v7151_v16, 0.0  ;;  %v7154_v39 = vadd.f32 %v17345_v51, %v7115_v13  ;;  %v13098_v19 = vpop.f32.mrb[52].mxu0  ;;  %v17380_v63 = vpop.f32.mrb[83].mxu1  ;;  %v7763_v13 = vld [vmem:[#allocation3 + $0x20] sm:$0x1] }
 0x7af   : > { %v7152_v32 = vadd.f32 %v17345_v51, %v7113_v59  ;;  %v7447_v40 = vshrl.u32 %v12512_v31, 16  ;;  %v7450_v15 = vshll.u32 %v12512_v31, 16  ;;  %v7430_v41 = vshrl.u32 %v12510_v27, 16  ;;  %v7006_v35 = vpop.f32.mrb[53].mxu0  ;;  %v7756_v59 = vld [vmem:[#allocation3 + $0x14] sm:$0x1] }
 0x7b0   : > { %v7433_v1 = vshll.u32 %v12510_v27, 16  ;;  %v7455_v14 = vshrl.u32 %v12513_v46, 16  ;;  %v7458_v43 = vshll.u32 %v12513_v46, 16  ;;  %v7438_v33 = vshrl.u32 %v12511_v36, 16  ;;  %v13099_v57 = vpop.f32.mrb[54].mxu0 }
 0x7b1   : > { %v7441_v60 = vshll.u32 %v12511_v36, 16  ;;  %v7449_v0 = vrot.slane %v7447_v40, 7  ;;  %v7432_v48 = vrot.slane %v7430_v41, 7  ;;  %v12516_v54 = vpack.c.bf16 %v7185_v5, %v7185_v5  ;;  %v17382_v49 = vpop.f32.mrb[55].mxu0 }
 0x7b2   : > { %v12514_v11 = vpack.c.bf16 %v7183_v26, %v7183_v26  ;;  %v7457_v12 = vrot.slane %v7455_v14, 7  ;;  %v7440_v50 = vrot.slane %v7438_v33, 7  ;;  %v7186_v9 = vmax.f32 %v7154_v39, 0.0 }
 0x7b3   : > { %v7184_v61 = vmax.f32 %v7152_v32, 0.0  ;;  %v7452_v28 = vor.u32 %v7450_v15, %v7449_v0  ;;  %v7453_v7 = vrot.slane %v7449_v0, 4  ;;  %v7435_v2 = vor.u32 %v7433_v1, %v7432_v48 }
 0x7b4   : > { %v7436_v22 = vrot.slane %v7432_v48, 4  ;;  %v20005_v16 = vmov 0  ;;  %v7460_v31 = vor.u32 %v7458_v43, %v7457_v12  ;;  %v7462_v27 = vrot.slane %v7457_v12, 4 }
 0x7b5   : > { %v20006_v16 = vsel %vm17392_vm9, 4294967295, %v20005_v16  ;;  %v7443_v46 = vor.u32 %v7441_v60, %v7440_v50  ;;  %v7445_v5 = vrot.slane %v7440_v50, 4  ;;  %v7760_v36 = vsel %vm17386_vm7, %v7452_v28, %v7759_v24 }
 0x7b6   : > { %20007 = vst [vmem:[#allocation15_spill] sm:$0xff] %v20006_v16  ;;  %v7753_v26 = vsel %vm17386_vm7, %v7435_v2, %v7752_v6  ;;  %v7481_v39 = vshrl.u32 %v12516_v54, 16  ;;  %v7484_v32 = vshll.u32 %v12516_v54, 16  ;;  %7761 = vst [vmem:[#allocation3 + $0x18] sm:$0xf] %v7760_v36  ;;  %v7461_v40 = vsel %vm17392_vm9, %v7453_v7, %v7460_v31  ;;  %v17408_v14 = vpop.f32.mrb[56].mxu0 }
 0x7b7   : > { %7754 = vst [vmem:[#allocation3 + $0xc] sm:$0xf] %v7753_v26  ;;  %v7764_v15 = vsel %vm17244_vm4, %v7462_v27, %v7763_v13  ;;  %v7444_v41 = vsel %vm17392_vm9, %v7436_v22, %v7443_v46  ;;  %v7757_v1 = vsel %vm17244_vm4, %v7445_v5, %v7756_v59  ;;  %7762 = vst.msk [vmem:[#allocation3 + $0x1c] sm:$0xf] %vm7211_vm11, %v7461_v40  ;;  %v7464_v33 = vshrl.u32 %v12514_v11, 16  ;;  %v7022_v24 = vpop.f32.mrb[57].mxu0 }
 0x7b8   : > { %7765 = vst [vmem:[#allocation3 + $0x20] sm:$0x1] %v7764_v15  ;;  %7755 = vst.msk [vmem:[#allocation3 + $0x10] sm:$0xf] %vm7211_vm11, %v7444_v41  ;;  %v7483_v43 = vrot.slane %v7481_v39, 7  ;;  %v7467_v60 = vshll.u32 %v12514_v11, 16  ;;  %v12517_v0 = vpack.c.bf16 %v7186_v9, %v7186_v9  ;;  %v12515_v6 = vpack.c.bf16 %v7184_v61, %v7184_v61 }
 0x7b9   : > { %7758 = vst [vmem:[#allocation3 + $0x14] sm:$0x1] %v7757_v1  ;;  %v17412_v48 = vpop.f32.mrb[84].mxu1  ;;  %v7773_v54 = vld [vmem:[#allocation3 + $0x30] sm:$0xf]  ;;  %v7015_v12 = vadd.f32 %v13098_v19, %v17218_v37  ;;  %v7007_v50 = vadd.f32 %v17208_v18, %v7006_v35  ;;  %v7018_v28 = vadd.f32 %v13099_v57, %v17220_v29  ;;  %v17417_v7 = vpop.f32.mrb[58].mxu0 }
 0x7ba   : > { %v17419_v2 = vpop.f32.mrb[85].mxu1  ;;  %v7486_v22 = vor.u32 %v7484_v32, %v7483_v43  ;;  %v7487_v13 = vrot.slane %v7483_v43, 4  ;;  %v7466_v59 = vrot.slane %v7464_v33, 7  ;;  %v7489_v11 = vshrl.u32 %v12517_v0, 16  ;;  %v7025_v9 = vpop.f32.mrb[59].mxu0 }
 0x7bb   : > { %v17421_v31 = vpop.f32.mrb[86].mxu1  ;;  %v7766_v27 = vld [vmem:[#allocation3 + $0x24] sm:$0xf]  ;;  %v7492_v46 = vshll.u32 %v12517_v0, 16  ;;  %v7472_v61 = vshrl.u32 %v12515_v6, 16  ;;  %v7475_v5 = vshll.u32 %v12515_v6, 16  ;;  %v7118_v37 = vmul.f32 %v17331_v53, %v7015_v12 }
 0x7bc   : > { %v17424_v18 = vpop.f32.mrb[87].mxu1  ;;  %v7774_v29 = vsel %vm17386_vm7, %v7486_v22, %v7773_v54  ;;  %v7469_v19 = vor.u32 %v7467_v60, %v7466_v59  ;;  %v7470_v35 = vrot.slane %v7466_v59, 4  ;;  %v7491_v57 = vrot.slane %v7489_v11, 7  ;;  %v7777_v36 = vld [vmem:[#allocation3 + $0x38] sm:$0x1] }
 0x7bd   : > { %7775 = vst [vmem:[#allocation3 + $0x30] sm:$0xf] %v7774_v29  ;;  %v7474_v26 = vrot.slane %v7472_v61, 7  ;;  %v7157_v39 = vadd.f32 %v17345_v51, %v7118_v37  ;;  %v7116_v32 = vmul.f32 %v17331_v53, %v7007_v50  ;;  %v7119_v40 = vmul.f32 %v17331_v53, %v7018_v28  ;;  %v7770_v43 = vld [vmem:[#allocation3 + $0x2c] sm:$0x1] }
 0x7be   : > { %v7767_v15 = vsel %vm17386_vm7, %v7469_v19, %v7766_v27  ;;  %v7494_v41 = vor.u32 %v7492_v46, %v7491_v57  ;;  %v7496_v1 = vrot.slane %v7491_v57, 4  ;;  %v7010_v33 = vadd.f32 %v17211_v4, %v17382_v49  ;;  %v17447_v27 = vpop.f32.mrb[60].mxu0 }
 0x7bf   : > { %7768 = vst [vmem:[#allocation3 + $0x24] sm:$0xf] %v7767_v15  ;;  %v7477_v60 = vor.u32 %v7475_v5, %v7474_v26  ;;  %v7479_v0 = vrot.slane %v7474_v26, 4  ;;  %v7189_v54 = vmax.f32 %v7157_v39, 0.0  ;;  %v7155_v6 = vadd.f32 %v17345_v51, %v7116_v32  ;;  %v17453_v37 = vpop.f32.mrb[61].mxu0 }
 0x7c0   : > { %v7495_v12 = vsel %vm17392_vm9, %v7487_v13, %v7494_v41  ;;  %v7778_v50 = vsel %vm17244_vm4, %v7496_v1, %v7777_v36  ;;  %v7158_v28 = vadd.f32 %v17345_v51, %v7119_v40  ;;  %v7117_v22 = vmul.f32 %v17331_v53, %v7010_v33 }
 0x7c1   : > { %7776 = vst.msk [vmem:[#allocation3 + $0x34] sm:$0xf] %vm7211_vm11, %v7495_v12  ;;  %7779 = vst [vmem:[#allocation3 + $0x38] sm:$0x1] %v7778_v50  ;;  %v7478_v4 = vsel %vm17392_vm9, %v7470_v35, %v7477_v60  ;;  %v7771_v49 = vsel %vm17244_vm4, %v7479_v0, %v7770_v43  ;;  %v12520_v59 = vpack.c.bf16 %v7189_v54, %v7189_v54  ;;  %v7187_v11 = vmax.f32 %v7155_v6, 0.0  ;;  %v17455_v35 = vpop.f32.mrb[62].mxu0 }
 0x7c2   : > { %7769 = vst.msk [vmem:[#allocation3 + $0x28] sm:$0xf] %vm7211_vm11, %v7478_v4  ;;  %7772 = vst [vmem:[#allocation3 + $0x2c] sm:$0x1] %v7771_v49  ;;  %v7190_v13 = vmax.f32 %v7158_v28, 0.0  ;;  %v7156_v46 = vadd.f32 %v17345_v51, %v7117_v22  ;;  %v7023_v61 = vadd.f32 %v17313_v21, %v7022_v24  ;;  %v7026_v5 = vadd.f32 %v17315_v23, %v7025_v9  ;;  %v17459_v32 = vpop.f32.mrb[63].mxu0 }
 0x7c3   : > { %v7515_v29 = vshrl.u32 %v12520_v59, 16  ;;  %v12518_v19 = vpack.c.bf16 %v7187_v11, %v7187_v11  ;;  %v7518_v15 = vshll.u32 %v12520_v59, 16  ;;  %v7787_v21 = vld [vmem:[#allocation3 + $0x48] sm:$0xf]  ;;  %v7780_v60 = vld [vmem:[#allocation3 + $0x3c] sm:$0xf] }
 0x7c4   : > { %v12521_v57 = vpack.c.bf16 %v7190_v13, %v7190_v13  ;;  %v7188_v36 = vmax.f32 %v7156_v46, 0.0  ;;  %v7120_v26 = vmul.f32 %v17331_v53, %v7023_v61  ;;  %v7121_v39 = vmul.f32 %v17331_v53, %v7026_v5  ;;  %v17463_v22 = vld [vmem:[#allocation3 + $0x1c] sm:$0xf]  ;;  %v7791_v59 = vld [vmem:[#allocation3 + $0x50] sm:$0x1] }
 0x7c5   : > { %v7517_v40 = vrot.slane %v7515_v29, 7  ;;  %v7498_v41 = vshrl.u32 %v12518_v19, 16  ;;  %v7501_v24 = vshll.u32 %v12518_v19, 16  ;;  %v17467_v19 = vld [vmem:[#allocation3 + $0x18] sm:$0xf] }
 0x7c6   : > { %v7523_v23 = vshrl.u32 %v12521_v57, 16  ;;  %v12519_v9 = vpack.c.bf16 %v7188_v36, %v7188_v36  ;;  %v7159_v1 = vadd.f32 %v17345_v51, %v7120_v26  ;;  %v7526_v0 = vshll.u32 %v12521_v57, 16  ;;  %v7784_v26 = vld [vmem:[#allocation3 + $0x44] sm:$0x1] }
 0x7c7   : > { %v7520_v43 = vor.u32 %v7518_v15, %v7517_v40  ;;  %v7500_v33 = vrot.slane %v7498_v41, 7  ;;  %v7160_v54 = vadd.f32 %v17345_v51, %v7121_v39  ;;  %v7521_v6 = vrot.slane %v7517_v40, 4  ;;  %v17473_v15 = vpop.f32.mrb[88].mxu1 }
 0x7c8   : > { %v7525_v12 = vrot.slane %v7523_v23, 7  ;;  %v7506_v50 = vshrl.u32 %v12519_v9, 16  ;;  %v7191_v28 = vmax.f32 %v7159_v1, 0.0  ;;  %v7509_v11 = vshll.u32 %v12519_v9, 16  ;;  %v17479_v9 = vpop.f32.mrb[89].mxu1 }
 0x7c9   : > { %v7788_v4 = vsel %vm17386_vm7, %v7520_v43, %v7787_v21  ;;  %v7503_v49 = vor.u32 %v7501_v24, %v7500_v33  ;;  %v7192_v13 = vmax.f32 %v7160_v54, 0.0  ;;  %v7504_v57 = vrot.slane %v7500_v33, 4  ;;  %v8475_v33 = vld [vmem:[#allocation3 + $0x1c] sm:$0xf]  ;;  %v7794_v54 = vld [vmem:[#allocation3 + $0x54] sm:$0xf] }
 0x7ca   : > { %7789 = vst [vmem:[#allocation3 + $0x48] sm:$0xf] %v7788_v4  ;;  %v7528_v46 = vor.u32 %v7526_v0, %v7525_v12  ;;  %v7530_v61 = vrot.slane %v7525_v12, 4  ;;  %v7508_v5 = vrot.slane %v7506_v50, 7  ;;  %v12522_v29 = vpack.c.bf16 %v7191_v28, %v7191_v28  ;;  %v8474_v4 = vld [vmem:[#allocation3 + $0x18] sm:$0xf] }
 0x7cb   : > { %v7781_v36 = vsel %vm17386_vm7, %v7503_v49, %v7780_v60  ;;  %v12523_v39 = vpack.c.bf16 %v7192_v13, %v7192_v13  ;;  %v12377_v40 = vcombine.low %v17467_v19, %v17463_v22  ;;  %v7798_v49 = vld [vmem:[#allocation3 + $0x5c] sm:$0x1]  ;;  %v8505_v13 = vld [vmem:[#allocation3 + $0x20] sm:$0x1] }
 0x7cc   : > { %7782 = vst [vmem:[#allocation3 + $0x3c] sm:$0xf] %v7781_v36  ;;  %v7529_v41 = vsel %vm17392_vm9, %v7521_v6, %v7528_v46  ;;  %v7792_v21 = vsel %vm17244_vm4, %v7530_v61, %v7791_v59  ;;  %v7511_v24 = vor.u32 %v7509_v11, %v7508_v5  ;;  %v7513_v23 = vrot.slane %v7508_v5, 4  ;;  %v17488_v11 = vld [vmem:[#allocation3 + $0x10] sm:$0xf] }
 0x7cd   : > { %7790 = vst.msk [vmem:[#allocation3 + $0x4c] sm:$0xf] %vm7211_vm11, %v7529_v41  ;;  %7793 = vst [vmem:[#allocation3 + $0x50] sm:$0x1] %v7792_v21  ;;  %v7532_v1 = vshrl.u32 %v12522_v29, 16  ;;  %v7540_v43 = vshrl.u32 %v12523_v39, 16  ;;  %10201 = vrot.lane.b32.xlu0 %v12377_v40, %s19810_s29  ;;  %v12330_v59 = vcombine.low %v8474_v4, %v8475_v33 }
 0x7ce   : > { %v7512_v60 = vsel %vm17392_vm9, %v7504_v57, %v7511_v24  ;;  %v7785_v0 = vsel %vm17244_vm4, %v7513_v23, %v7784_v26  ;;  %v7535_v12 = vshll.u32 %v12522_v29, 16  ;;  %v7543_v28 = vshll.u32 %v12523_v39, 16  ;;  %v8472_v36 = vld [vmem:[#allocation3 + $0xc] sm:$0xf]  ;;  %v8905_v26 = vld [vmem:[#allocation3 + $0x18] sm:$0xe] }
 0x7cf   : > { %7783 = vst.msk [vmem:[#allocation3 + $0x40] sm:$0xf] %vm7211_vm11, %v7512_v60  ;;  %7786 = vst [vmem:[#allocation3 + $0x44] sm:$0x1] %v7785_v0  ;;  %v7534_v6 = vrot.slane %v7532_v1, 7  ;;  %v7542_v50 = vrot.slane %v7540_v43, 7  ;;  %9979 = vrot.lane.b32.xlu1 %v12330_v59, %s13682_s27 }
 0x7d0   : > { %v17490_v40 = vld [vmem:[#allocation3 + $0x20] sm:$0x1]  ;;  %v9130_v41 = vshrl.u32 %v17467_v19, 16  ;;  %v9513_v29 = vld [vmem:[#allocation3 + $0x18] sm:$0xe]  ;;  %v9133_v1 = vshll.u32 %v17467_v19, 16 }
 0x7d1   : > { %v7537_v46 = vor.u32 %v7535_v12, %v7534_v6  ;;  %v7538_v61 = vrot.slane %v7534_v6, 4  ;;  %v7545_v5 = vor.u32 %v7543_v28, %v7542_v50  ;;  %v7547_v57 = vrot.slane %v7542_v50, 4  ;;  %v17494_v39 = vld [vmem:[#allocation3 + $0x1c] sm:$0xf]  ;;  %v17503_v43 = vld [vmem:[#allocation3 + $0x20] sm:$0x1] }
 0x7d2   : > { %v8298_v60 = vld [vmem:[#allocation3 + $0x18] sm:$0xe]  ;;  %v17505_v0 = vpop.f32.mrb[90].mxu1  ;;  %v12329_v6 = vcombine.low %v8472_v36, %v17488_v11  ;;  %v8977_v12 = vrot.slane %v8475_v33, 5  ;;  %v9579_v50 = vrot.slane %v17463_v22, 5  ;;  %v8980_v28 = vrot.slane %v8505_v13, 5 }
 0x7d3   : > { %v7795_v21 = vsel %vm17386_vm7, %v7537_v46, %v7794_v54  ;;  %v7546_v24 = vsel %vm17392_vm9, %v7538_v61, %v7545_v5  ;;  %v7799_v23 = vsel %vm17244_vm4, %v7547_v57, %v7798_v49  ;;  %v12250_v54 = vrot.slane %v8905_v26, 9  ;;  %v8904_v57 = vld [vmem:[#allocation3 + $0xc] sm:$0xe]  ;;  %v8504_v26 = vld [vmem:[#allocation3 + $0x14] sm:$0x1] }
 0x7d4   : > { %7796 = vst [vmem:[#allocation3 + $0x54] sm:$0xf] %v7795_v21  ;;  %7797 = vst.msk [vmem:[#allocation3 + $0x58] sm:$0xf] %vm7211_vm11, %v7546_v24  ;;  %v12265_v4 = vrot.slane %v9513_v29, 9  ;;  %v9582_v49 = vrot.slane %v17490_v40, 5  ;;  %9977 = vrot.lane.b32.xlu1 %v12329_v6, %s13682_s27  ;;  %v7031_v6 = vadd.f32 %v17408_v14, %v17348_v58  ;;  %v7034_v14 = vadd.f32 %v17417_v7, %v17356_v38 }
 0x7d5   : > { %7800 = vst [vmem:[#allocation3 + $0x5c] sm:$0x1] %v7799_v23  ;;  %v8376_v19 = vrot.slane %v17494_v39, 5  ;;  %v8979_v59 = vrot.slane %v8977_v12, 4  ;;  %v9581_v46 = vrot.slane %v9579_v50, 4  ;;  %v12235_v61 = vrot.slane %v8298_v60, 9 }
 0x7d6   : > { %v8379_v5 = vrot.slane %v17503_v43, 5  ;;  %v8978_v36 = vsel %vm14431_vm15, %v12250_v54, %v8977_v12  ;;  %v9580_v33 = vsel %vm14431_vm15, %v12265_v4, %v9579_v50  ;;  %v8970_v29 = vrot.slane %v17488_v11, 5  ;;  %v17519_v21 = vpop.f32.mrb[64].mxu0  ;;  %v17529_v54 = vld [vmem:[#allocation3 + $0x10] sm:$0xf]  ;;  %v17531_v12 = vpop.f32.mrb[91].mxu1 }
 0x7d7   : > { %v8378_v13 = vrot.slane %v8376_v19, 4  ;;  %20008 = vst [vmem:[#allocation46_spill] sm:$0xff] %v17519_v21  ;;  %v8981_v24 = vsel %vm14431_vm15, %v8979_v59, %v8980_v28  ;;  %v9583_v23 = vsel %vm14431_vm15, %v9581_v46, %v9582_v49  ;;  %v8377_v60 = vsel %vm14431_vm15, %v12235_v61, %v8376_v19  ;;  %v8297_v28 = vld [vmem:[#allocation3 + $0xc] sm:$0xe]  ;;  %v17536_v19 = vld [vmem:[#allocation3 + $0x14] sm:$0x1] }
 0x7d8   : > { %v12362_v50 = vcombine.low %v8978_v36, %v8981_v24  ;;  %v12409_v11 = vcombine.low %v9580_v33, %v9583_v23  ;;  %v12249_v55 = vrot.slane %v8904_v57, 9  ;;  %v8972_v3 = vrot.slane %v8970_v29, 4 }
 0x7d9   : > { %v8380_v4 = vsel %vm14431_vm15, %v8378_v13, %v8379_v5  ;;  %v8973_v49 = vrot.slane %v8504_v26, 5  ;;  %v7122_v46 = vmul.f32 %v17331_v53, %v7031_v6  ;;  %v17538_v61 = vrot.slane %v9130_v41, 4  ;;  %v17545_v5 = vpop.f32.mrb[65].mxu0  ;;  %v17553_v13 = vld [vmem:[#allocation3 + $0x34] sm:$0xf] }
 0x7da   : > { %v12315_v59 = vcombine.low %v8377_v60, %v8380_v4  ;;  %10107 = vrot.lane.b32.xlu0 %v12362_v50, %s19809_s22  ;;  %13124 = vmatprep.mubr.msk.bf16.mxu1 %vm3549_vm14, %v12409_v11  ;;  %v8369_v58 = vrot.slane %v17529_v54, 5  ;;  %v8971_v57 = vsel %vm14431_vm15, %v12249_v55, %v8970_v29  ;;  %v12234_v33 = vrot.slane %v8297_v28, 9  ;;  %v17555_v26 = vld [vmem:[#allocation3 + $0x28] sm:$0xf]  ;;  %v9514_v60 = vld [vmem:[#allocation3 + $0x24] sm:$0xe] }
 0x7db   : > { %v8974_v41 = vsel %vm14431_vm15, %v8972_v3, %v8973_v49  ;;  %v7161_v36 = vadd.f32 %v17345_v51, %v7122_v46  ;;  %v8372_v38 = vrot.slane %v17536_v19, 5  ;;  %v7123_v7 = vmul.f32 %v17331_v53, %v7034_v14  ;;  %v17559_v6 = vpop.f32.mrb[66].mxu0  ;;  %v17564_v50 = vld [vmem:[#allocation3 + $0x2c] sm:$0x1]  ;;  %v17574_v49 = vld [vmem:[#allocation3 + $0x30] sm:$0xf] }
 0x7dc   : > { %9885 = vrot.lane.b32.xlu1 %v12315_v59, %s19810_s29  ;;  %v12361_v24 = vcombine.low %v8971_v57, %v8974_v41  ;;  %v8371_v23 = vrot.slane %v8369_v58, 4  ;;  %20009 = vst [vmem:[#allocation20_spill] sm:$0xff] %v17559_v6  ;;  %v17561_v55 = vrot.slane %v9133_v1, 5  ;;  %v9143_v3 = vshrl.u32 %v17463_v22, 16  ;;  %v17566_v11 = vpop.f32.mrb[67].mxu0 }
 0x7dd   : > { %v7193_v29 = vmax.f32 %v7161_v36, 0.0  ;;  %v8370_v4 = vsel %vm14431_vm15, %v12234_v33, %v8369_v58  ;;  %v7162_v59 = vadd.f32 %v17345_v51, %v7123_v7  ;;  %v9586_v1 = vrot.slane %v17555_v26, 5  ;;  %v9515_v46 = vld [vmem:[#allocation3 + $0x30] sm:$0xe] }
 0x7de   : > { %10105 = vrot.lane.b32.xlu0 %v12361_v24, %s19809_s22  ;;  %v8373_v28 = vsel %vm14431_vm15, %v8371_v23, %v8372_v38  ;;  %v12379_v41 = vcombine.low %v17574_v49, %v17553_v13  ;;  %v12266_v36 = vrot.slane %v9514_v60, 9  ;;  %v17579_v24 = vld [vmem:[#allocation3 + $0x38] sm:$0x1]  ;;  %v9589_v33 = vrot.slane %v17564_v50, 5  ;;  %v17583_v38 = vpop.f32.mrb[92].mxu1 }
 0x7df   : > { %v12524_v14 = vpack.c.bf16 %v7193_v29, %v7193_v29  ;;  %v12314_v57 = vcombine.low %v8370_v4, %v8373_v28  ;;  %v7194_v17 = vmax.f32 %v7162_v59, 0.0  ;;  %v9588_v58 = vrot.slane %v9586_v1, 4  ;;  %20010 = vst [vmem:[#allocation42_spill] sm:$0xff] %v17583_v38  ;;  %v17588_v28 = vld [vmem:[#allocation3 + $0x34] sm:$0xf]  ;;  %v17594_v56 = vpop.f32.mrb[93].mxu1 }
 0x7e0   : > { %v9593_v23 = vrot.slane %v17553_v13, 5  ;;  %v9587_v29 = vsel %vm14431_vm15, %v12266_v36, %v9586_v1  ;;  %v12267_v4 = vrot.slane %v9515_v46, 9  ;;  %v9596_v10 = vrot.slane %v17579_v24, 5  ;;  %v8478_v1 = vld [vmem:[#allocation3 + $0x30] sm:$0xf]  ;;  %v17598_v46 = vpop.f32.mrb[94].mxu1 }
 0x7e1   : > { %v7549_v7 = vshrl.u32 %v12524_v14, 16  ;;  %v7552_v30 = vshll.u32 %v12524_v14, 16  ;;  %9883 = vrot.lane.b32.xlu1 %v12314_v57, %s19810_s29  ;;  %v12525_v60 = vpack.c.bf16 %v7194_v17, %v7194_v17  ;;  %v9590_v59 = vsel %vm14431_vm15, %v9588_v58, %v9589_v33  ;;  %v7801_v36 = vld [vmem:[#allocation3 + $0x60] sm:$0xf]  ;;  %v7868_v33 = vld [vmem:[#allocation3 + $0x18] sm:$0xf] }
 0x7e2   : > { %10205 = vrot.lane.b32.xlu0 %v12379_v41, %s19810_s29  ;;  %v9595_v52 = vrot.slane %v9593_v23, 4  ;;  %v12410_v45 = vcombine.low %v9587_v29, %v9590_v59  ;;  %v9594_v57 = vsel %vm14431_vm15, %v12267_v4, %v9593_v23  ;;  %v12332_v58 = vcombine.low %v8478_v1, %v17588_v28  ;;  %v17604_v29 = vpop.f32.mrb[95].mxu1  ;;  %v17606_v23 = vpop.f32.mrb[68].mxu0 }
 0x7e3   : > { %v7551_v14 = vrot.slane %v7549_v7, 7  ;;  %v7557_v17 = vshrl.u32 %v12525_v60, 16  ;;  %v7560_v6 = vshll.u32 %v12525_v60, 16  ;;  %20011 = vst [vmem:[#allocation44_spill] sm:$0xff] %v17606_v23  ;;  %v9136_v60 = vor.u32 %v17561_v55, %v17538_v61  ;;  %v17612_v59 = vpop.f32.mrb[96].mxu1 }
 0x7e4   : > { %v9597_v41 = vsel %vm14431_vm15, %v9595_v52, %v9596_v10  ;;  %13125 = vmatmul.mubr.msk.bf16.vlgmr.msra.gmra.mrb[112].mxu1 %vm3549_vm14, %v12410_v45  ;;  %v9139_v10 = vshll.u32 %v17463_v22, 16  ;;  %v9145_v52 = vrot.slane %v9143_v3, 4  ;;  %v7805_v45 = vld [vmem:[#allocation3 + $0x68] sm:$0x1]  ;;  %v17617_v1 = vpop.f32.mrb[97].mxu1  ;;  %v9149_v61 = vshll.u32 %v17490_v40, 16 }
 0x7e5   : > { %v7554_v21 = vor.u32 %v7552_v30, %v7551_v14  ;;  %v7555_v38 = vrot.slane %v7551_v14, 4  ;;  %v12411_v7 = vcombine.low %v9594_v57, %v9597_v41  ;;  %v7559_v4 = vrot.slane %v7557_v17, 7  ;;  %9983 = vrot.lane.b32.xlu1 %v12332_v58, %s13682_s27  ;;  %v17620_v22 = vpop.f32.mrb[98].mxu1 }
 0x7e6   : > { %v7961_v14 = vshrl.u32 %v7868_v33, 16  ;;  %v7964_v57 = vshll.u32 %v7868_v33, 16  ;;  %v9141_v58 = vrot.slane %v9139_v10, 5  ;;  %v7970_v23 = vshll.u32 %v17494_v39, 16 }
 0x7e7   : > { %v7802_v30 = vsel %vm17386_vm7, %v7554_v21, %v7801_v36  ;;  %13128 = vmatprep.mubr.msk.bf16.mxu1 %vm3549_vm14, %v12411_v7  ;;  %v7562_v17 = vor.u32 %v7560_v6, %v7559_v4  ;;  %v7564_v41 = vrot.slane %v7559_v4, 4  ;;  %v17623_v21 = vpop.f32.mrb[99].mxu1  ;;  %v17625_v36 = vpop.f32.mrb[69].mxu0  ;;  %v9137_v7 = vrot.slane %v9136_v60, 4 }
 0x7e8   : > { %7803 = vst [vmem:[#allocation3 + $0x60] sm:$0xf] %v7802_v30  ;;  %v7963_v55 = vrot.slane %v7961_v14, 4  ;;  %v7966_v3 = vrot.slane %v7964_v57, 5  ;;  %20012 = vst [vmem:[#allocation45_spill] sm:$0xff] %v17623_v21  ;;  %v9146_v4 = vor.u32 %v9145_v52, %v9141_v58  ;;  %v17631_v10 = vpop.f32.mrb[70].mxu0 }
 0x7e9   : > { %20013 = vst [vmem:[#allocation47_spill] sm:$0xff] %v17625_v36  ;;  %v7563_v33 = vsel %vm17392_vm9, %v7555_v38, %v7562_v17  ;;  %v7806_v6 = vsel %vm17244_vm4, %v7564_v41, %v7805_v45  ;;  %20014 = vst [vmem:[#allocation35_spill] sm:$0xff] %v17631_v10  ;;  %v17633_v40 = vpop.f32.mrb[100].mxu1  ;;  %v7972_v14 = vrot.slane %v7970_v23, 5  ;;  %v7974_v57 = vshrl.u32 %v17494_v39, 16  ;;  %v17637_v36 = vpop.f32.mrb[71].mxu0 }
 0x7ea   : > { %20015 = vst [vmem:[#allocation41_spill] sm:$0xff] %v17633_v40  ;;  %7804 = vst.msk [vmem:[#allocation3 + $0x64] sm:$0xf] %vm7211_vm11, %v7563_v33  ;;  %v7967_v30 = vor.u32 %v7966_v3, %v7963_v55  ;;  %v9147_v21 = vrot.slane %v9146_v4, 4  ;;  %v9151_v38 = vrot.slane %v9149_v61, 5  ;;  %v7980_v17 = vshll.u32 %v17503_v43, 16 }
 0x7eb   : > { %7807 = vst [vmem:[#allocation3 + $0x68] sm:$0x1] %v7806_v6  ;;  %20016 = vst [vmem:[#allocation43_spill] sm:$0xff] %v17637_v36  ;;  %v17640_v45 = vld [vmem:[#allocation3 + $0x40] sm:$0xf]  ;;  %v17642_v60 = vpop.f32.mrb[101].mxu1  ;;  %v12794_v33 = vadd.f32 %v17374_v20, %v17369_v44  ;;  %v9142_v39 = vsel %vm13904_vm2, %v9137_v7, %v9141_v58 }
 0x7ec   : > { %20017 = vst [vmem:[#allocation38_spill] sm:$0xff] %v17642_v60  ;;  %v7976_v52 = vrot.slane %v7974_v57, 4  ;;  %v17644_v41 = vld [vmem:[#allocation3 + $0x24] sm:$0xf]  ;;  %v9516_v55 = vld [vmem:[#allocation3 + $0x3c] sm:$0xe]  ;;  %v9152_v23 = vsel %vm13904_vm2, %v9147_v21, %v9151_v38  ;;  %v12797_v21 = vadd.f32 %v17380_v63, %v17376_v62 }
 0x7ed   : > { %v7968_v61 = vrot.slane %v7967_v30, 4  ;;  %v17652_v3 = vld [vmem:[#allocation3 + $0x44] sm:$0x1]  ;;  %v17654_v43 = vld [vmem:[#allocation3 + $0x4c] sm:$0xf]  ;;  %v12393_v6 = vcombine.low %v9142_v39, %v9152_v23  ;;  %v12378_v57 = vcombine.low %v17644_v41, %v17555_v26  ;;  %v9600_v10 = vrot.slane %v17640_v45, 5 }
 0x7ee   : > { %v7977_v4 = vor.u32 %v7976_v52, %v7972_v14  ;;  %v9517_v44 = vld [vmem:[#allocation3 + $0x48] sm:$0xe]  ;;  %v17659_v20 = vpop.f32.mrb[102].mxu1  ;;  %v7982_v60 = vrot.slane %v7980_v17, 5  ;;  %v12268_v58 = vrot.slane %v9516_v55, 9  ;;  %v7039_v7 = vadd.f32 %v12794_v33, %v17453_v37 }
 0x7ef   : > { %20018 = vst [vmem:[#allocation19_spill] sm:$0xff] %v17659_v20  ;;  %v17664_v30 = vld [vmem:[#allocation3 + $0x50] sm:$0x1]  ;;  %10281 = vrot.lane.b32.xlu0 %v12393_v6, %s13682_s27  ;;  %v9602_v52 = vrot.slane %v9600_v10, 4  ;;  %v9603_v39 = vrot.slane %v17652_v3, 5  ;;  %v9607_v23 = vrot.slane %v17654_v43, 5  ;;  %v7973_v17 = vsel %vm13904_vm2, %v7968_v61, %v7972_v14 }
 0x7f0   : > { %v7978_v38 = vrot.slane %v7977_v4, 4  ;;  %v17669_v40 = vpop.f32.mrb[103].mxu1  ;;  %v9601_v62 = vsel %vm14431_vm15, %v12268_v58, %v9600_v10  ;;  %v7124_v63 = vmul.f32 %v17331_v53, %v7039_v7  ;;  %v12269_v37 = vrot.slane %v9517_v44, 9  ;;  %v17676_v33 = vld [vmem:[#allocation3 + $0x28] sm:$0xf] }
 0x7f1   : > { %20019 = vst [vmem:[#allocation13_spill] sm:$0xff] %v17669_v40  ;;  %v9604_v6 = vsel %vm14431_vm15, %v9602_v52, %v9603_v39  ;;  %v9609_v4 = vrot.slane %v9607_v23, 4  ;;  %v9610_v40 = vrot.slane %v17664_v30, 5  ;;  %v8907_v20 = vld [vmem:[#allocation3 + $0x30] sm:$0xe]  ;;  %v7042_v52 = vadd.f32 %v12797_v21, %v17459_v32 }
 0x7f2   : > { %v7983_v55 = vsel %vm13904_vm2, %v7978_v38, %v7982_v60  ;;  %v12412_v14 = vcombine.low %v9601_v62, %v9604_v6  ;;  %v7163_v61 = vadd.f32 %v17345_v51, %v7124_v63  ;;  %v8476_v10 = vld [vmem:[#allocation3 + $0x24] sm:$0xf]  ;;  %v8507_v58 = vld [vmem:[#allocation3 + $0x38] sm:$0x1]  ;;  %v7866_v7 = vld [vmem:[#allocation3 + $0xc] sm:$0xf]  ;;  %v9608_v44 = vsel %vm14431_vm15, %v12269_v37, %v9607_v23 }
 0x7f3   : > { %v12299_v36 = vcombine.low %v7973_v17, %v7983_v55  ;;  %10203 = vrot.lane.b32.xlu0 %v12378_v57, %s19810_s29  ;;  %v9611_v60 = vsel %vm14431_vm15, %v9609_v4, %v9610_v40  ;;  %v12331_v38 = vcombine.low %v8476_v10, %v17676_v33  ;;  %v12252_v62 = vrot.slane %v8907_v20, 9 }
 0x7f4   : > { %13129 = vmatmul.mubr.msk.bf16.gmra.mrb[116].mxu1 %vm3549_vm14, %v12412_v14  ;;  %v7195_v39 = vmax.f32 %v7163_v61, 0.0  ;;  %v12413_v17 = vcombine.low %v9608_v44, %v9611_v60  ;;  %v8991_v63 = vrot.slane %v17588_v28, 5  ;;  %v7125_v57 = vmul.f32 %v17331_v53, %v7042_v52  ;;  %v8506_v52 = vld [vmem:[#allocation3 + $0x2c] sm:$0x1] }
 0x7f5   : > { %9805 = vrot.lane.b32.xlu1 %v12299_v36, %s19809_s22  ;;  %v8994_v55 = vrot.slane %v8507_v58, 5  ;;  %v7937_v23 = vshrl.u32 %v7866_v7, 16  ;;  %v7940_v37 = vshll.u32 %v7866_v7, 16  ;;  %v7946_v36 = vshll.u32 %v17529_v54, 16 }
 0x7f6   : > { %v12526_v6 = vpack.c.bf16 %v7195_v39, %v7195_v39  ;;  %13132 = vmatprep.mubr.msk.bf16.mxu1 %vm3549_vm14, %v12413_v17  ;;  %v8992_v32 = vsel %vm14431_vm15, %v12252_v62, %v8991_v63  ;;  %v8993_v40 = vrot.slane %v8991_v63, 4  ;;  %v7164_v21 = vadd.f32 %v17345_v51, %v7125_v57  ;;  %v8906_v39 = vld [vmem:[#allocation3 + $0x24] sm:$0xe] }
 0x7f7   : > { %v7939_v4 = vrot.slane %v7937_v23, 4  ;;  %v7942_v20 = vrot.slane %v7940_v37, 5  ;;  %v7950_v28 = vshrl.u32 %v17529_v54, 16  ;;  %v7948_v10 = vrot.slane %v7946_v36, 5  ;;  %v17709_v37 = vld [vmem:[#allocation3 + $0x58] sm:$0xf] }
 0x7f8   : > { %v7566_v14 = vshrl.u32 %v12526_v6, 16  ;;  %v7569_v53 = vshll.u32 %v12526_v6, 16  ;;  %v8995_v61 = vsel %vm14431_vm15, %v8993_v40, %v8994_v55  ;;  %v7196_v58 = vmax.f32 %v7164_v21, 0.0  ;;  %v9518_v21 = vld [vmem:[#allocation3 + $0x54] sm:$0xe] }
 0x7f9   : > { %9981 = vrot.lane.b32.xlu1 %v12331_v38, %s13682_s27  ;;  %v12364_v7 = vcombine.low %v8992_v32, %v8995_v61  ;;  %v7943_v44 = vor.u32 %v7942_v20, %v7939_v4  ;;  %v7952_v60 = vrot.slane %v7950_v28, 4  ;;  %v9178_v51 = vshrl.u32 %v17574_v49, 16  ;;  %v7808_v38 = vld [vmem:[#allocation3 + $0x6c] sm:$0xf] }
 0x7fa   : > { %v7568_v17 = vrot.slane %v7566_v14, 7  ;;  %v7956_v62 = vshll.u32 %v17536_v19, 16  ;;  %v8984_v54 = vrot.slane %v17676_v33, 5  ;;  %v9181_v63 = vshll.u32 %v17574_v49, 16  ;;  %v9118_v33 = vld [vmem:[#allocation3 + $0x5c] sm:$0x1] }
 0x7fb   : > { %v12527_v57 = vpack.c.bf16 %v7196_v58, %v7196_v58  ;;  %10111 = vrot.lane.b32.xlu0 %v12364_v7, %s19809_s22  ;;  %v7944_v55 = vrot.slane %v7943_v44, 4  ;;  %v7953_v23 = vor.u32 %v7952_v60, %v7948_v10  ;;  %v12251_v40 = vrot.slane %v8906_v39, 9  ;;  %v17716_v7 = vld [vmem:[#allocation3 + $0x34] sm:$0xf] }
 0x7fc   : > { %v7571_v6 = vor.u32 %v7569_v53, %v7568_v17  ;;  %v7572_v32 = vrot.slane %v7568_v17, 4  ;;  %v8987_v36 = vrot.slane %v8506_v52, 5  ;;  %v7958_v28 = vrot.slane %v7956_v62, 5  ;;  %v7812_v39 = vld [vmem:[#allocation3 + $0x74] sm:$0x1] }
 0x7fd   : > { %v7574_v4 = vshrl.u32 %v12527_v57, 16  ;;  %v7577_v20 = vshll.u32 %v12527_v57, 16  ;;  %v7954_v19 = vrot.slane %v7953_v23, 4  ;;  %v8985_v14 = vsel %vm14431_vm15, %v12251_v40, %v8984_v54  ;;  %v8300_v57 = vld [vmem:[#allocation3 + $0x30] sm:$0xe] }
 0x7fe   : > { %v7809_v49 = vsel %vm17386_vm7, %v7571_v6, %v7808_v38  ;;  %v8986_v61 = vrot.slane %v8984_v54, 4  ;;  %v9614_v58 = vrot.slane %v17709_v37, 5  ;;  %v7949_v44 = vsel %vm13904_vm2, %v7944_v55, %v7948_v10  ;;  %v13450_v10 = vld [vmem:[%s19643_s11 + $0x40] sm:$0xff]  }
 0x7ff   : > { %7810 = vst [vmem:[#allocation3 + $0x6c] sm:$0xf] %v7809_v49  ;;  %v7576_v53 = vrot.slane %v7574_v4, 7  ;;  %v7959_v60 = vsel %vm13904_vm2, %v7954_v19, %v7958_v28  ;;  %v12270_v52 = vrot.slane %v9518_v21, 9  ;;  %v9617_v54 = vrot.slane %v9118_v33, 5  ;;  %v13451_v55 = vld [vmem:[%s19643_s11] sm:$0xff]   ;;  %12858 = vmatprep.subr.bf16.mxu0 %v13450_v10 }
 0x800   : > { %v12298_v17 = vcombine.low %v7949_v44, %v7959_v60  ;;  %v8988_v62 = vsel %vm14431_vm15, %v8986_v61, %v8987_v36  ;;  %v9616_v38 = vrot.slane %v9614_v58, 4  ;;  %v17724_v49 = vld [vmem:[#allocation3 + $0x38] sm:$0x1]  ;;  %v8390_v4 = vrot.slane %v17716_v7, 5  ;;  %v17738_v28 = vld [vmem:[#allocation3 + $0x28] sm:$0xf]  ;;  %12859 = vmatpush3.bf16.msra.mxu0 %v13451_v55 }
 0x801   : > { %v7579_v23 = vor.u32 %v7577_v20, %v7576_v53  ;;  %v7581_v6 = vrot.slane %v7576_v53, 4  ;;  %v12363_v40 = vcombine.low %v8985_v14, %v8988_v62  ;;  %v9180_v21 = vrot.slane %v9178_v51, 4  ;;  %v17745_v61 = vld [vmem:[#allocation3 + $0x48] sm:$0xf]  ;;  %v8299_v62 = vld [vmem:[#allocation3 + $0x24] sm:$0xe] }
 0x802   : > { %v9183_v36 = vrot.slane %v9181_v63, 5  ;;  %9803 = vrot.lane.b32.xlu1 %v12298_v17, %s19809_s22  ;;  %v9615_v20 = vsel %vm14431_vm15, %v12270_v52, %v9614_v58  ;;  %v9618_v19 = vsel %vm14431_vm15, %v9616_v38, %v9617_v54  ;;  %v12237_v63 = vrot.slane %v8300_v57, 9  ;;  %v13453_v54 = vld [vmem:[%s19643_s11 + $0x48] sm:$0xff]  }
 0x803   : > { %v7580_v33 = vsel %vm17392_vm9, %v7572_v32, %v7579_v23  ;;  %v7813_v14 = vsel %vm17244_vm4, %v7581_v6, %v7812_v39  ;;  %10109 = vrot.lane.b32.xlu0 %v12363_v40, %s19809_s22  ;;  %v12414_v51 = vcombine.low %v9615_v20, %v9618_v19  ;;  %v9191_v53 = vshrl.u32 %v17553_v13, 16  ;;  %v17751_v32 = vld [vmem:[#allocation3 + $0x2c] sm:$0x1]  ;;  %12860 = vmatprep.subr.bf16.mxu0 %v13453_v54  ;;  %v13454_v55 = vld [vmem:[%s19643_s11 + $0x8] sm:$0xff]  }
 0x804   : > { %v9154_v58 = vshrl.u32 %v17644_v41, 16  ;;  %7811 = vst.msk [vmem:[#allocation3 + $0x70] sm:$0xf] %vm7211_vm11, %v7580_v33  ;;  %7814 = vst [vmem:[#allocation3 + $0x74] sm:$0x1] %v7813_v14  ;;  %v8392_v44 = vrot.slane %v8390_v4, 4  ;;  %v8391_v52 = vsel %vm14431_vm15, %v12237_v63, %v8390_v4  ;;  %v12381_v39 = vcombine.low %v17745_v61, %v17654_v43  ;;  %12861 = vmatpush3.bf16.msra.mxu0 %v13454_v55 }
 0x805   : > { %v8393_v60 = vrot.slane %v17724_v49, 5  ;;  %13133 = vmatmul.mubr.msk.bf16.gmra.mrb[120].mxu1 %vm3549_vm14, %v12414_v51  ;;  %v12800_v17 = vadd.f32 %v17419_v2, %v17412_v48  ;;  %v8383_v38 = vrot.slane %v17738_v28, 5  ;;  %v12803_v23 = vadd.f32 %v17424_v18, %v17421_v31  ;;  %v17793_v63 = vld [vmem:[%s19642_s10] ss:$0 sm:$0xff] }
 0x806   : > { %v9184_v6 = vor.u32 %v9183_v36, %v9180_v21  ;;  %v9187_v40 = vshll.u32 %v17553_v13, 16  ;;  %v8386_v10 = vrot.slane %v17751_v32, 5  ;;  %v12236_v20 = vrot.slane %v8299_v62, 9 }
 0x807   : > { %v8394_v57 = vsel %vm14431_vm15, %v8392_v44, %v8393_v60  ;;  %10209 = vrot.lane.b32.xlu0 %v12381_v39, %s19810_s29  ;;  %v7047_v48 = vadd.f32 %v17447_v27, %v12800_v17  ;;  %v8385_v2 = vrot.slane %v8383_v38, 4  ;;  %v7050_v19 = vadd.f32 %v17455_v35, %v12803_v23  ;;  %v17781_v27 = vld [vmem:[%s19641_s9] ss:$0 sm:$0xff]  ;;  %v17797_v17 = vld [vmem:[#allocation3 + $0x4c] sm:$0xf] }
 0x808   : > { %v12317_v4 = vcombine.low %v8391_v52, %v8394_v57  ;;  %v9189_v31 = vrot.slane %v9187_v40, 5  ;;  %v9193_v18 = vrot.slane %v9191_v53, 4  ;;  %v9157_v13 = vshll.u32 %v17644_v41, 16  ;;  %v7872_v60 = vld [vmem:[#allocation3 + $0x30] sm:$0xf] }
 0x809   : > { %v7126_v21 = vmul.f32 %v17781_v27, %v7047_v48  ;;  %v8387_v36 = vsel %vm14431_vm15, %v8385_v2, %v8386_v10  ;;  %v9197_v33 = vshll.u32 %v17579_v24, 16  ;;  %v8384_v35 = vsel %vm14431_vm15, %v12236_v20, %v8383_v38  ;;  %v8482_v40 = vld [vmem:[#allocation3 + $0x48] sm:$0xf]  ;;  %v13455_v48 = vld [vmem:[%s19643_s11 + $0x50] sm:$0xff]  }
 0x80a   : > { %9889 = vrot.lane.b32.xlu1 %v12317_v4, %s19810_s29  ;;  %v7127_v41 = vmul.f32 %v17781_v27, %v7050_v19  ;;  %v9185_v14 = vrot.slane %v9184_v6, 4  ;;  %v9194_v51 = vor.u32 %v9193_v18, %v9189_v31  ;;  %v12316_v44 = vcombine.low %v8384_v35, %v8387_v36  ;;  %v13456_v20 = vld [vmem:[%s19643_s11 + $0x10] sm:$0xff]   ;;  %12862 = vmatprep.subr.bf16.mxu0 %v13455_v48 }
 0x80b   : > { %v7165_v53 = vadd.f32 %v17793_v63, %v7126_v21  ;;  %v9199_v39 = vrot.slane %v9197_v33, 5  ;;  %v9156_v62 = vrot.slane %v9154_v58, 4  ;;  %v9159_v38 = vrot.slane %v9157_v13, 5  ;;  %v17815_v33 = vld [vmem:[#allocation3 + $0x3c] sm:$0xf]  ;;  %12863 = vmatpush3.bf16.msra.mxu0 %v13456_v20 }
 0x80c   : > { %v7166_v52 = vadd.f32 %v17793_v63, %v7127_v41  ;;  %v9195_v24 = vrot.slane %v9194_v51, 4  ;;  %v9190_v23 = vsel %vm13904_vm2, %v9185_v14, %v9189_v31  ;;  %v8009_v4 = vshrl.u32 %v7872_v60, 16 }
 0x80d   : > { %v7197_v54 = vmax.f32 %v7165_v53, 0.0  ;;  %v12334_v58 = vcombine.low %v8482_v40, %v17797_v17  ;;  %v8012_v55 = vshll.u32 %v7872_v60, 16  ;;  %v8018_v18 = vshll.u32 %v17716_v7, 16  ;;  %v13459_v60 = vld [vmem:[%s19643_s11 + $0x18] sm:$0xff]  }
 0x80e   : > { %9887 = vrot.lane.b32.xlu1 %v12316_v44, %s19810_s29  ;;  %v7198_v57 = vmax.f32 %v7166_v52, 0.0  ;;  %v9200_v6 = vsel %vm13904_vm2, %v9195_v24, %v9199_v39  ;;  %v8011_v31 = vrot.slane %v8009_v4, 4  ;;  %v8022_v13 = vshrl.u32 %v17716_v7, 16  ;;  %v13458_v7 = vld [vmem:[%s19643_s11 + $0x58] sm:$0xff]  }
 0x80f   : > { %v12528_v2 = vpack.c.bf16 %v7197_v54, %v7197_v54  ;;  %v12395_v10 = vcombine.low %v9190_v23, %v9200_v6  ;;  %v8014_v35 = vrot.slane %v8012_v55, 5  ;;  %v8028_v41 = vshll.u32 %v17724_v49, 16  ;;  %v7815_v49 = vld [vmem:[#allocation3 + $0x78] sm:$0xf]  ;;  %12864 = vmatprep.subr.bf16.mxu0 %v13458_v7 }
 0x810   : > { %v12529_v19 = vpack.c.bf16 %v7198_v57, %v7198_v57  ;;  %v8020_v53 = vrot.slane %v8018_v18, 5  ;;  %v8024_v44 = vrot.slane %v8022_v13, 4  ;;  %v12380_v24 = vcombine.low %v17815_v33, %v17640_v45  ;;  %12865 = vmatpush3.bf16.msra.mxu0 %v13459_v60  ;;  %v7255_v13 = vld [vmem:[#allocation3 + $0x84] sm:$0x1]  ;;  %v17849_v60 = vld [vmem:[#allocation3 + $0x40] sm:$0xf] }
 0x811   : > { %v7583_v21 = vshrl.u32 %v12528_v2, 16  ;;  %v7586_v36 = vshll.u32 %v12528_v2, 16  ;;  %10285 = vrot.lane.b32.xlu0 %v12395_v10, %s13682_s27  ;;  %v8015_v39 = vor.u32 %v8014_v35, %v8011_v31  ;;  %v9160_v54 = vor.u32 %v9159_v38, %v9156_v62  ;;  %v7819_v2 = vld [vmem:[#allocation3 + $0x80] sm:$0x1] }
 0x812   : > { %9987 = vrot.lane.b32.xlu1 %v12334_v58, %s13682_s27  ;;  %v7591_v14 = vshrl.u32 %v12529_v19, 16  ;;  %v7594_v51 = vshll.u32 %v12529_v19, 16  ;;  %v8025_v23 = vor.u32 %v8024_v44, %v8020_v53  ;;  %v9163_v6 = vshll.u32 %v17555_v26, 16 }
 0x813   : > { %v7585_v52 = vrot.slane %v7583_v21, 7  ;;  %v9167_v40 = vshrl.u32 %v17555_v26, 16  ;;  %v8016_v10 = vrot.slane %v8015_v39, 4  ;;  %v8030_v58 = vrot.slane %v8028_v41, 5 }
 0x814   : > { %v7593_v57 = vrot.slane %v7591_v14, 7  ;;  %v8026_v19 = vrot.slane %v8025_v23, 4  ;;  %v9165_v31 = vrot.slane %v9163_v6, 5  ;;  %v9161_v38 = vrot.slane %v9160_v54, 4  ;;  %v7310_v14 = vld [vmem:[#allocation3 + $0x8c] sm:$0x1] }
 0x815   : > { %v7588_v4 = vor.u32 %v7586_v36, %v7585_v52  ;;  %v7589_v48 = vrot.slane %v7585_v52, 4  ;;  %10207 = vrot.lane.b32.xlu0 %v12380_v24, %s19810_s29  ;;  %v9169_v18 = vrot.slane %v9167_v40, 4  ;;  %v9173_v26 = vshll.u32 %v17564_v50, 16  ;;  %v13461_v50 = vld [vmem:[%s19643_s11 + $0x20] sm:$0xff]   ;;  %v8909_v52 = vld [vmem:[#allocation3 + $0x48] sm:$0xe] }
 0x816   : > { %v7596_v55 = vor.u32 %v7594_v51, %v7593_v57  ;;  %v7598_v20 = vrot.slane %v7593_v57, 4  ;;  %v8021_v35 = vsel %vm13904_vm2, %v8016_v10, %v8020_v53  ;;  %v8031_v41 = vsel %vm13904_vm2, %v8026_v19, %v8030_v58  ;;  %v13460_v51 = vld [vmem:[%s19643_s11 + $0x60] sm:$0xff]   ;;  %v9519_v40 = vld [vmem:[#allocation3 + $0x60] sm:$0xe]  ;;  %v7870_v10 = vld [vmem:[#allocation3 + $0x24] sm:$0xf] }
 0x817   : > { %v7816_v62 = vsel %vm17386_vm7, %v7588_v4, %v7815_v49  ;;  %v12301_v44 = vcombine.low %v8021_v35, %v8031_v41  ;;  %v9170_v7 = vor.u32 %v9169_v18, %v9165_v31  ;;  %v12806_v53 = vadd.f32 %v17479_v9, %v17473_v15  ;;  %v8480_v49 = vld [vmem:[#allocation3 + $0x3c] sm:$0xf]  ;;  %v8509_v57 = vld [vmem:[#allocation3 + $0x50] sm:$0x1]  ;;  %12866 = vmatprep.subr.bf16.mxu0 %v13460_v51  ;;  %v17870_v19 = vld [vmem:[#allocation3 + $0x64] sm:$0xf] }
 0x818   : > { %7817 = vst [vmem:[#allocation3 + $0x78] sm:$0xf] %v7816_v62  ;;  %v7597_v21 = vsel %vm17392_vm9, %v7589_v48, %v7596_v55  ;;  %v7820_v36 = vsel %vm17244_vm4, %v7598_v20, %v7819_v2  ;;  %v9226_v24 = vshrl.u32 %v17745_v61, 16  ;;  %v12809_v39 = vadd.f32 %v17531_v12, %v17505_v0  ;;  %12867 = vmatpush3.bf16.msra.mxu0 %v13461_v50  ;;  %v17864_v2 = vld [vmem:[#allocation3 + $0x68] sm:$0x1] }
 0x819   : > { %7818 = vst.msk [vmem:[#allocation3 + $0x7c] sm:$0xf] %vm7211_vm11, %v7597_v21  ;;  %7821 = vst [vmem:[#allocation3 + $0x80] sm:$0x1] %v7820_v36  ;;  %v7256_v54 = vsel %vm17244_vm4, 0, %v7255_v13  ;;  %9809 = vrot.lane.b32.xlu1 %v12301_v44, %s19809_s22  ;;  %v9171_v23 = vrot.slane %v9170_v7, 4  ;;  %v7055_v15 = vadd.f32 %v12806_v53, %v17545_v5  ;;  %v9166_v0 = vsel %vm13904_vm2, %v9161_v38, %v9165_v31 }
 0x81a   : > { %v9175_v6 = vrot.slane %v9173_v26, 5  ;;  %7257 = vst [vmem:[#allocation3 + $0x84] sm:$0x1] %v7256_v54  ;;  %v7311_v9 = vsel %vm17252_vm5, 0, %v7310_v14  ;;  %v12333_v12 = vcombine.low %v8480_v49, %v17849_v60  ;;  %v7058_v4 = vadd.f32 %v12809_v39, %v17566_v11  ;;  %v13463_v31 = vld [vmem:[%s19643_s11 + $0x68] sm:$0xff]  }
 0x81b   : > { %7312 = vst [vmem:[#allocation3 + $0x8c] sm:$0x1] %v7311_v9  ;;  %v12254_v48 = vrot.slane %v8909_v52, 9  ;;  %v7128_v58 = vmul.f32 %v17781_v27, %v7055_v15  ;;  %v9005_v55 = vrot.slane %v17797_v17, 5  ;;  %v9008_v20 = vrot.slane %v8509_v57, 5  ;;  %v13464_v11 = vld [vmem:[%s19643_s11 + $0x28] sm:$0xff]   ;;  %12868 = vmatprep.subr.bf16.mxu0 %v13463_v31 }
 0x81c   : > { %v9176_v5 = vsel %vm13904_vm2, %v9171_v23, %v9175_v6  ;;  %v7129_v38 = vmul.f32 %v17781_v27, %v7058_v4  ;;  %v12271_v18 = vrot.slane %v9519_v40, 9  ;;  %v9621_v26 = vrot.slane %v17870_v19, 5  ;;  %12869 = vmatpush3.bf16.msra.mxu0 %v13464_v11  ;;  %v8908_v9 = vld [vmem:[#allocation3 + $0x3c] sm:$0xe] }
 0x81d   : > { %v12394_v62 = vcombine.low %v9166_v0, %v9176_v5  ;;  %v7167_v13 = vadd.f32 %v17793_v63, %v7128_v58  ;;  %9985 = vrot.lane.b32.xlu1 %v12333_v12, %s13682_s27  ;;  %v9006_v17 = vsel %vm14431_vm15, %v12254_v48, %v9005_v55  ;;  %v9007_v21 = vrot.slane %v9005_v55, 4  ;;  %v8508_v48 = vld [vmem:[#allocation3 + $0x44] sm:$0x1] }
 0x81e   : > { %v9624_v36 = vrot.slane %v17864_v2, 5  ;;  %v7168_v35 = vadd.f32 %v17793_v63, %v7129_v38  ;;  %v9622_v41 = vsel %vm14431_vm15, %v12271_v18, %v9621_v26  ;;  %v9623_v14 = vrot.slane %v9621_v26, 4  ;;  %v8302_v18 = vld [vmem:[#allocation3 + $0x48] sm:$0xe] }
 0x81f   : > { %10283 = vrot.lane.b32.xlu0 %v12394_v62, %s13682_s27  ;;  %v7985_v51 = vshrl.u32 %v7870_v10, 16  ;;  %v7199_v50 = vmax.f32 %v7167_v13, 0.0  ;;  %v9009_v44 = vsel %vm14431_vm15, %v9007_v21, %v9008_v20  ;;  %v7988_v7 = vshll.u32 %v7870_v10, 16  ;;  %v17900_v20 = vld [vmem:[#allocation3 + $0x4c] sm:$0xf] }
 0x820   : > { %v7994_v53 = vshll.u32 %v17738_v28, 16  ;;  %v7200_v52 = vmax.f32 %v7168_v35, 0.0  ;;  %v12366_v39 = vcombine.low %v9006_v17, %v9009_v44  ;;  %v9625_v54 = vsel %vm14431_vm15, %v9623_v14, %v9624_v36  ;;  %v13465_v14 = vld [vmem:[%s19643_s11 + $0x70] sm:$0xff]  }
 0x821   : > { %v7987_v49 = vrot.slane %v7985_v51, 4  ;;  %v9229_v57 = vshll.u32 %v17745_v61, 16  ;;  %v12530_v23 = vpack.c.bf16 %v7199_v50, %v7199_v50  ;;  %v12415_v6 = vcombine.low %v9622_v41, %v9625_v54  ;;  %v7822_v21 = vld [vmem:[#allocation3 + $0x84] sm:$0xf]  ;;  %12870 = vmatprep.subr.bf16.mxu0 %v13465_v14 }
 0x822   : > { %v7990_v15 = vrot.slane %v7988_v7, 5  ;;  %v12531_v40 = vpack.c.bf16 %v7200_v52, %v7200_v52  ;;  %v7996_v0 = vrot.slane %v7994_v53, 5  ;;  %v7998_v12 = vshrl.u32 %v17738_v28, 16  ;;  %v7826_v44 = vld [vmem:[#allocation3 + $0x8c] sm:$0x1]  ;;  %v13466_v52 = vld [vmem:[%s19643_s11 + $0x30] sm:$0xff]  }
 0x823   : > { %10115 = vrot.lane.b32.xlu0 %v12366_v39, %s19809_s22  ;;  %v8004_v4 = vshll.u32 %v17751_v32, 16  ;;  %v7600_v10 = vshrl.u32 %v12530_v23, 16  ;;  %v7603_v5 = vshll.u32 %v12530_v23, 16  ;;  %13136 = vmatprep.mubr.msk.bf16.mxu1 %vm3549_vm14, %v12415_v6  ;;  %v8998_v55 = vrot.slane %v17849_v60, 5  ;;  %v17902_v32 = vld [vmem:[#allocation3 + $0x50] sm:$0x1] }
 0x824   : > { %v7991_v58 = vor.u32 %v7990_v15, %v7987_v49  ;;  %v7608_v31 = vshrl.u32 %v12531_v40, 16  ;;  %v7611_v11 = vshll.u32 %v12531_v40, 16  ;;  %v8000_v62 = vrot.slane %v7998_v12, 4  ;;  %v7258_v6 = vld [vmem:[#allocation3 + $0x90] sm:$0x1]  ;;  %12871 = vmatpush3.bf16.msra.mxu0 %v13466_v52 }
 0x825   : > { %v12253_v38 = vrot.slane %v8908_v9, 9  ;;  %v7602_v26 = vrot.slane %v7600_v10, 7  ;;  %v8006_v28 = vrot.slane %v8004_v4, 5  ;;  %v9000_v17 = vrot.slane %v8998_v55, 4  ;;  %v9520_v4 = vld [vmem:[#allocation3 + $0x6c] sm:$0xe] }
 0x826   : > { %v7992_v13 = vrot.slane %v7991_v58, 4  ;;  %v7610_v36 = vrot.slane %v7608_v31, 7  ;;  %v8001_v35 = vor.u32 %v8000_v62, %v7996_v0  ;;  %v9001_v60 = vrot.slane %v8508_v48, 5  ;;  %v17919_v48 = vld [vmem:[#allocation3 + $0x40] sm:$0xf]  ;;  %v17932_v62 = vpop.f32.mrb[104].mxu1 }
 0x827   : > { %v8999_v41 = vsel %vm14431_vm15, %v12253_v38, %v8998_v55  ;;  %v7605_v51 = vor.u32 %v7603_v5, %v7602_v26  ;;  %v7606_v50 = vrot.slane %v7602_v26, 4  ;;  %v12239_v7 = vrot.slane %v8302_v18, 9  ;;  %v8301_v10 = vld [vmem:[#allocation3 + $0x3c] sm:$0xe]  ;;  %v17934_v38 = vpop.f32.mrb[72].mxu0  ;;  %v13468_v18 = vld [vmem:[%s19643_s11 + $0x78] sm:$0xff]  }
 0x828   : > { %v8404_v53 = vrot.slane %v17900_v20, 5  ;;  %v7613_v39 = vor.u32 %v7611_v11, %v7610_v36  ;;  %v7615_v54 = vrot.slane %v7610_v36, 4  ;;  %v8002_v49 = vrot.slane %v8001_v35, 4  ;;  %v17930_v11 = vld [vmem:[#allocation3 + $0x44] sm:$0x1]  ;;  %v17947_v36 = vpop.f32.mrb[73].mxu0  ;;  %12872 = vmatprep.subr.bf16.mxu0 %v13468_v18 }
 0x829   : > { %v9002_v23 = vsel %vm14431_vm15, %v9000_v17, %v9001_v60  ;;  %v7823_v15 = vsel %vm17386_vm7, %v7605_v51, %v7822_v21  ;;  %v7997_v9 = vsel %vm13904_vm2, %v7992_v13, %v7996_v0  ;;  %v8407_v31 = vrot.slane %v17902_v32, 5  ;;  %v17928_v0 = vld [vmem:[#allocation3 + $0x70] sm:$0xf]  ;;  %v9120_v17 = vld [vmem:[#allocation3 + $0x74] sm:$0x1]  ;;  %v17945_v21 = vpop.f32.mrb[105].mxu1 }
 0x82a   : > { %v12365_v40 = vcombine.low %v8999_v41, %v9002_v23  ;;  %v8406_v12 = vrot.slane %v8404_v53, 4  ;;  %7824 = vst [vmem:[#allocation3 + $0x84] sm:$0xf] %v7823_v15  ;;  %v7614_v5 = vsel %vm17392_vm9, %v7606_v50, %v7613_v39  ;;  %v7827_v58 = vsel %vm17244_vm4, %v7615_v54, %v7826_v44  ;;  %v17951_v41 = vld [vmem:[#allocation3 + $0x60] sm:$0xf]  ;;  %v17957_v50 = vpop.f32.mrb[106].mxu1 }
 0x82b   : > { %v8007_v55 = vsel %vm13904_vm2, %v8002_v49, %v8006_v28  ;;  %v9228_v26 = vrot.slane %v9226_v24, 4  ;;  %7825 = vst.msk [vmem:[#allocation3 + $0x88] sm:$0xf] %vm7211_vm11, %v7614_v5  ;;  %7828 = vst [vmem:[#allocation3 + $0x8c] sm:$0x1] %v7827_v58  ;;  %v8405_v28 = vsel %vm14431_vm15, %v12239_v7, %v8404_v53  ;;  %v20020_v24 = vld [vmem:[#allocation42_spill] sm:$0xff]  ;;  %v12383_v53 = vcombine.low %v17951_v41, %v17870_v19 }
 0x82c   : > { %v12300_v13 = vcombine.low %v7997_v9, %v8007_v55  ;;  %10113 = vrot.lane.b32.xlu0 %v12365_v40, %s19809_s22  ;;  %v8408_v35 = vsel %vm14431_vm15, %v8406_v12, %v8407_v31  ;;  %v12812_v60 = vadd.f32 %v17594_v56, %v20020_v24  ;;  %v7259_v14 = vsel %vm17244_vm4, 0, %v7258_v6  ;;  %v7313_v56 = vld [vmem:[#allocation3 + $0x98] sm:$0x1]  ;;  %v20021_v39 = vld [vmem:[#allocation46_spill] sm:$0xff]  ;;  %v20022_v58 = vld [vmem:[#allocation20_spill] sm:$0xff] }
 0x82d   : > { %v12272_v51 = vrot.slane %v9520_v4, 9  ;;  %v9231_v44 = vrot.slane %v9229_v57, 5  ;;  %v12319_v7 = vcombine.low %v8405_v28, %v8408_v35  ;;  %7260 = vst [vmem:[#allocation3 + $0x90] sm:$0x1] %v7259_v14  ;;  %v9628_v52 = vrot.slane %v17928_v0, 5 }
 0x82e   : > { %9807 = vrot.lane.b32.xlu1 %v12300_v13, %s19809_s22  ;;  %v7063_v54 = vadd.f32 %v20021_v39, %v12812_v60  ;;  %v9631_v49 = vrot.slane %v9120_v17, 5  ;;  %v12238_v23 = vrot.slane %v8301_v10, 9  ;;  %v8397_v6 = vrot.slane %v17919_v48, 5 }
 0x82f   : > { %v9629_v61 = vsel %vm14431_vm15, %v12272_v51, %v9628_v52  ;;  %v9630_v57 = vrot.slane %v9628_v52, 4  ;;  %v8400_v15 = vrot.slane %v17930_v11, 5  ;;  %v12815_v9 = vadd.f32 %v17604_v29, %v17598_v46  ;;  %v7876_v52 = vld [vmem:[#allocation3 + $0x48] sm:$0xf] }
 0x830   : > { %10213 = vrot.lane.b32.xlu0 %v12383_v53, %s19810_s29  ;;  %v7130_v40 = vmul.f32 %v17781_v27, %v7063_v54  ;;  %v8398_v12 = vsel %vm14431_vm15, %v12238_v23, %v8397_v6  ;;  %v8399_v4 = vrot.slane %v8397_v6, 4  ;;  %v7314_v10 = vsel %vm17252_vm5, 0, %v7313_v56  ;;  %v17994_v54 = vld [vmem:[#allocation3 + $0x64] sm:$0xf]  ;;  %v17999_v23 = vpop.f32.mrb[107].mxu1 }
 0x831   : > { %v9632_v5 = vsel %vm14431_vm15, %v9630_v57, %v9631_v49  ;;  %v7066_v55 = vadd.f32 %v20022_v58, %v12815_v9  ;;  %7315 = vst [vmem:[#allocation3 + $0x98] sm:$0x1] %v7314_v10  ;;  %v9232_v31 = vor.u32 %v9231_v44, %v9228_v26  ;;  %v9235_v46 = vshll.u32 %v17654_v43, 16  ;;  %v13469_v49 = vld [vmem:[%s19643_s11 + $0x38] sm:$0xff]  }
 0x832   : > { %9893 = vrot.lane.b32.xlu1 %v12319_v7, %s19810_s29  ;;  %v7169_v29 = vadd.f32 %v17793_v63, %v7130_v40  ;;  %v12416_v18 = vcombine.low %v9629_v61, %v9632_v5  ;;  %v8401_v13 = vsel %vm14431_vm15, %v8399_v4, %v8400_v15  ;;  %v9239_v28 = vshrl.u32 %v17654_v43, 16  ;;  %v8486_v43 = vld [vmem:[#allocation3 + $0x60] sm:$0xf]  ;;  %12873 = vmatpush3.bf16.msra.mxu0 %v13469_v49  ;;  %v18007_v5 = vld [vmem:[#allocation3 + $0x54] sm:$0xf] }
 0x833   : > { %v9202_v17 = vshrl.u32 %v17815_v33, 16  ;;  %v12318_v35 = vcombine.low %v8398_v12, %v8401_v13  ;;  %v7131_v24 = vmul.f32 %v17781_v27, %v7066_v55  ;;  %v9237_v60 = vrot.slane %v9235_v46, 5  ;;  %v18012_v13 = vpop.f32.mrb[108].mxu1 }
 0x834   : > { %v7201_v14 = vmax.f32 %v7169_v29, 0.0  ;;  %13137 = vmatmul.mubr.msk.bf16.gmra.mrb[124].mxu1 %vm3549_vm14, %v12416_v18  ;;  %v9241_v26 = vrot.slane %v9239_v28, 4  ;;  %v9245_v51 = vshll.u32 %v17664_v30, 16  ;;  %v9205_v44 = vshll.u32 %v17815_v33, 16  ;;  %v18001_v30 = vpop.f32.mrb[74].mxu0 }
 0x835   : > { %v7170_v7 = vadd.f32 %v17793_v63, %v7131_v24  ;;  %v9233_v53 = vrot.slane %v9232_v31, 4  ;;  %v9204_v33 = vrot.slane %v9202_v17, 4  ;;  %v12336_v61 = vcombine.low %v8486_v43, %v17994_v54  ;;  %v7829_v31 = vld [vmem:[#allocation3 + $0x90] sm:$0xf] }
 0x836   : > { %9891 = vrot.lane.b32.xlu1 %v12318_v35, %s19810_s29  ;;  %v12532_v56 = vpack.c.bf16 %v7201_v14, %v7201_v14  ;;  %v9242_v39 = vor.u32 %v9241_v26, %v9237_v60  ;;  %v9247_v40 = vrot.slane %v9245_v51, 5  ;;  %v9207_v12 = vrot.slane %v9205_v44, 5  ;;  %v18016_v14 = vpop.f32.mrb[109].mxu1 }
 0x837   : > { %v7202_v6 = vmax.f32 %v7170_v7, 0.0  ;;  %v9238_v10 = vsel %vm13904_vm2, %v9233_v53, %v9237_v60  ;;  %v8057_v58 = vshrl.u32 %v7876_v52, 16  ;;  %v8060_v29 = vshll.u32 %v7876_v52, 16  ;;  %v18014_v60 = vpop.f32.mrb[75].mxu0 }
 0x838   : > { %v7617_v57 = vshrl.u32 %v12532_v56, 16  ;;  %v7620_v15 = vshll.u32 %v12532_v56, 16  ;;  %v9243_v9 = vrot.slane %v9242_v39, 4  ;;  %v8066_v18 = vshll.u32 %v17900_v20, 16  ;;  %v18022_v39 = vpop.f32.mrb[110].mxu1 }
 0x839   : > { %v12533_v4 = vpack.c.bf16 %v7202_v6, %v7202_v6  ;;  %v8059_v24 = vrot.slane %v8057_v58, 4  ;;  %v12382_v44 = vcombine.low %v18007_v5, %v17709_v37  ;;  %v8062_v7 = vrot.slane %v8060_v29, 5  ;;  %v7833_v6 = vld [vmem:[#allocation3 + $0x98] sm:$0x1]  ;;  %v18028_v37 = vpop.f32.mrb[111].mxu1 }
 0x83a   : > { %9991 = vrot.lane.b32.xlu1 %v12336_v61, %s13682_s27  ;;  %v7619_v55 = vrot.slane %v7617_v57, 7  ;;  %v9248_v46 = vsel %vm13904_vm2, %v9243_v9, %v9247_v40  ;;  %v8068_v43 = vrot.slane %v8066_v18, 5  ;;  %v8070_v52 = vshrl.u32 %v17900_v20, 16  ;;  %v7261_v58 = vld [vmem:[#allocation3 + $0x9c] sm:$0x1] }
 0x83b   : > { %v7625_v28 = vshrl.u32 %v12533_v4, 16  ;;  %v7628_v17 = vshll.u32 %v12533_v4, 16  ;;  %v12397_v35 = vcombine.low %v9238_v10, %v9248_v46  ;;  %v9208_v56 = vor.u32 %v9207_v12, %v9204_v33 }
 0x83c   : > { %v7622_v26 = vor.u32 %v7620_v15, %v7619_v55  ;;  %v7623_v51 = vrot.slane %v7619_v55, 4  ;;  %v8063_v61 = vor.u32 %v8062_v7, %v8059_v24  ;;  %v9211_v57 = vshll.u32 %v17640_v45, 16 }
 0x83d   : > { %v7627_v53 = vrot.slane %v7625_v28, 7  ;;  %10289 = vrot.lane.b32.xlu0 %v12397_v35, %s13682_s27  ;;  %v9215_v15 = vshrl.u32 %v17640_v45, 16  ;;  %v8072_v4 = vrot.slane %v8070_v52, 4  ;;  %v8076_v20 = vshll.u32 %v17902_v32, 16 }
 0x83e   : > { %v7830_v49 = vsel %vm17386_vm7, %v7622_v26, %v7829_v31  ;;  %v8064_v33 = vrot.slane %v8063_v61, 4  ;;  %v9213_v12 = vrot.slane %v9211_v57, 5  ;;  %v9221_v46 = vshll.u32 %v17652_v3, 16  ;;  %v20023_v26 = vld [vmem:[#allocation45_spill] sm:$0xff] }
 0x83f   : > { %7831 = vst [vmem:[#allocation3 + $0x90] sm:$0xf] %v7830_v49  ;;  %v7630_v9 = vor.u32 %v7628_v17, %v7627_v53  ;;  %v7632_v40 = vrot.slane %v7627_v53, 4  ;;  %v9217_v10 = vrot.slane %v9215_v15, 4  ;;  %v8073_v45 = vor.u32 %v8072_v4, %v8068_v43  ;;  %v7316_v17 = vld [vmem:[#allocation3 + $0xa4] sm:$0x1] }
 0x840   : > { %v9274_v29 = vshrl.u32 %v17951_v41, 16  ;;  %v9209_v32 = vrot.slane %v9208_v56, 4  ;;  %v12818_v28 = vadd.f32 %v17617_v1, %v17612_v59  ;;  %v8078_v24 = vrot.slane %v8076_v20, 5  ;;  %v18045_v3 = vld [vmem:[#allocation3 + $0x58] sm:$0xf]  ;;  %v20024_v56 = vld [vmem:[#allocation47_spill] sm:$0xff] }
 0x841   : > { %v7631_v55 = vsel %vm17392_vm9, %v7623_v51, %v7630_v9  ;;  %v7834_v31 = vsel %vm17244_vm4, %v7632_v40, %v7833_v6  ;;  %10211 = vrot.lane.b32.xlu0 %v12382_v44, %s19810_s29  ;;  %v9218_v18 = vor.u32 %v9217_v10, %v9213_v12  ;;  %v8074_v35 = vrot.slane %v8073_v45, 4  ;;  %v8911_v6 = vld [vmem:[#allocation3 + $0x60] sm:$0xe]  ;;  %v8511_v15 = vld [vmem:[#allocation3 + $0x68] sm:$0x1] }
 0x842   : > { %7832 = vst.msk [vmem:[#allocation3 + $0x94] sm:$0xf] %vm7211_vm11, %v7631_v55  ;;  %7835 = vst [vmem:[#allocation3 + $0x98] sm:$0x1] %v7834_v31  ;;  %v12821_v51 = vadd.f32 %v20023_v26, %v17620_v22  ;;  %v7262_v44 = vsel %vm17244_vm4, 0, %v7261_v58  ;;  %v9277_v7 = vshll.u32 %v17951_v41, 16  ;;  %v7071_v49 = vadd.f32 %v12818_v28, %v20024_v56 }
 0x843   : > { %v9219_v53 = vrot.slane %v9218_v18, 4  ;;  %v9223_v52 = vrot.slane %v9221_v46, 5  ;;  %7263 = vst [vmem:[#allocation3 + $0x9c] sm:$0x1] %v7262_v44  ;;  %v8069_v59 = vsel %vm13904_vm2, %v8064_v33, %v8068_v43  ;;  %v8079_v1 = vsel %vm13904_vm2, %v8074_v35, %v8078_v24  ;;  %v20025_v22 = vld [vmem:[#allocation43_spill] sm:$0xff] }
 0x844   : > { %v7074_v61 = vadd.f32 %v12821_v51, %v20025_v22  ;;  %v7317_v57 = vsel %vm17252_vm5, 0, %v7316_v17  ;;  %v9521_v9 = vld [vmem:[#allocation3 + $0x78] sm:$0xe]  ;;  %v12303_v40 = vcombine.low %v8069_v59, %v8079_v1  ;;  %v9214_v4 = vsel %vm13904_vm2, %v9209_v32, %v9213_v12  ;;  %v8484_v43 = vld [vmem:[#allocation3 + $0x54] sm:$0xf] }
 0x845   : > { %v9224_v20 = vsel %vm13904_vm2, %v9219_v53, %v9223_v52  ;;  %v7132_v10 = vmul.f32 %v17781_v27, %v7071_v49  ;;  %7318 = vst [vmem:[#allocation3 + $0xa4] sm:$0x1] %v7317_v57  ;;  %v18061_v33 = vld [vmem:[#allocation3 + $0x80] sm:$0x1]  ;;  %v7874_v58 = vld [vmem:[#allocation3 + $0x3c] sm:$0xf]  ;;  %v12335_v31 = vcombine.low %v8484_v43, %v18045_v3 }
 0x846   : > { %v12396_v55 = vcombine.low %v9214_v4, %v9224_v20  ;;  %v7133_v45 = vmul.f32 %v17781_v27, %v7074_v61  ;;  %v12256_v46 = vrot.slane %v8911_v6, 9  ;;  %9813 = vrot.lane.b32.xlu1 %v12303_v40, %s19809_s22  ;;  %v9019_v32 = vrot.slane %v17994_v54, 5  ;;  %v18068_v28 = vld [vmem:[#allocation3 + $0x7c] sm:$0xf]  ;;  %v8910_v20 = vld [vmem:[#allocation3 + $0x54] sm:$0xe] }
 0x847   : > { %v7171_v12 = vadd.f32 %v17793_v63, %v7132_v10  ;;  %v9022_v18 = vrot.slane %v8511_v15, 5  ;;  %v12273_v17 = vrot.slane %v9521_v9, 9  ;;  %v9635_v24 = vrot.slane %v18068_v28, 5 }
 0x848   : > { %10287 = vrot.lane.b32.xlu0 %v12396_v55, %s13682_s27  ;;  %v7172_v35 = vadd.f32 %v17793_v63, %v7133_v45  ;;  %v9638_v26 = vrot.slane %v18061_v33, 5  ;;  %v8033_v51 = vshrl.u32 %v7874_v58, 16  ;;  %v9020_v53 = vsel %vm14431_vm15, %v12256_v46, %v9019_v32  ;;  %v8510_v45 = vld [vmem:[#allocation3 + $0x5c] sm:$0x1] }
 0x849   : > { %v7203_v44 = vmax.f32 %v7171_v12, 0.0  ;;  %v9021_v52 = vrot.slane %v9019_v32, 4  ;;  %v8036_v56 = vshll.u32 %v7874_v58, 16  ;;  %v9636_v49 = vsel %vm14431_vm15, %v12273_v17, %v9635_v24 }
 0x84a   : > { %v7204_v54 = vmax.f32 %v7172_v35, 0.0  ;;  %v9637_v6 = vrot.slane %v9635_v24, 4  ;;  %v8035_v59 = vrot.slane %v8033_v51, 4  ;;  %9989 = vrot.lane.b32.xlu1 %v12335_v31, %s13682_s27  ;;  %v8042_v57 = vshll.u32 %v17919_v48, 16 }
 0x84b   : > { %v12534_v1 = vpack.c.bf16 %v7203_v44, %v7203_v44  ;;  %v9023_v22 = vsel %vm14431_vm15, %v9021_v52, %v9022_v18  ;;  %v8038_v61 = vrot.slane %v8036_v56, 5  ;;  %v8046_v4 = vshrl.u32 %v17919_v48, 16  ;;  %v8304_v48 = vld [vmem:[#allocation3 + $0x60] sm:$0xe] }
 0x84c   : > { %v12535_v15 = vpack.c.bf16 %v7204_v54, %v7204_v54  ;;  %v12368_v9 = vcombine.low %v9020_v53, %v9023_v22  ;;  %v9639_v40 = vsel %vm14431_vm15, %v9637_v6, %v9638_v26  ;;  %v8044_v12 = vrot.slane %v8042_v57, 5  ;;  %v7836_v26 = vld [vmem:[#allocation3 + $0x9c] sm:$0xf] }
 0x84d   : > { %v7634_v10 = vshrl.u32 %v12534_v1, 16  ;;  %v7637_v43 = vshll.u32 %v12534_v1, 16  ;;  %v12417_v58 = vcombine.low %v9636_v49, %v9639_v40  ;;  %v8039_v55 = vor.u32 %v8038_v61, %v8035_v59  ;;  %v7840_v49 = vld [vmem:[#allocation3 + $0xa4] sm:$0x1]  ;;  %v18091_v1 = vld [vmem:[#allocation3 + $0x68] sm:$0x1] }
 0x84e   : > { %v7642_v31 = vshrl.u32 %v12535_v15, 16  ;;  %v7645_v46 = vshll.u32 %v12535_v15, 16  ;;  %10119 = vrot.lane.b32.xlu0 %v12368_v9, %s19809_s22  ;;  %v8048_v32 = vrot.slane %v8046_v4, 4  ;;  %v8052_v35 = vshll.u32 %v17930_v11, 16  ;;  %v18095_v15 = vld [vmem:[#allocation3 + $0x64] sm:$0xf] }
 0x84f   : > { %v7636_v18 = vrot.slane %v7634_v10, 7  ;;  %13140 = vmatprep.mubr.msk.bf16.mxu1 %vm3549_vm14, %v12417_v58  ;;  %v8040_v17 = vrot.slane %v8039_v55, 4  ;;  %v12255_v24 = vrot.slane %v8910_v20, 9  ;;  %v9012_v53 = vrot.slane %v18045_v3, 5  ;;  %v7264_v55 = vld [vmem:[#allocation3 + $0xa8] sm:$0x1] }
 0x850   : > { %v7644_v51 = vrot.slane %v7642_v31, 7  ;;  %v8049_v44 = vor.u32 %v8048_v32, %v8044_v12  ;;  %v9015_v52 = vrot.slane %v8510_v45, 5  ;;  %v8054_v59 = vrot.slane %v8052_v35, 5  ;;  %v9522_v45 = vld [vmem:[#allocation3 + $0x84] sm:$0xe] }
 0x851   : > { %v7639_v56 = vor.u32 %v7637_v43, %v7636_v18  ;;  %v7640_v54 = vrot.slane %v7636_v18, 4  ;;  %v8045_v6 = vsel %vm13904_vm2, %v8040_v17, %v8044_v12  ;;  %v9013_v57 = vsel %vm14431_vm15, %v12255_v24, %v9012_v53  ;;  %v18112_v18 = vld [vmem:[#allocation3 + $0x88] sm:$0xf]  ;;  %v18114_v17 = vld [vmem:[#allocation3 + $0x58] sm:$0xf] }
 0x852   : > { %v7647_v22 = vor.u32 %v7645_v46, %v7644_v51  ;;  %v7649_v61 = vrot.slane %v7644_v51, 4  ;;  %v8050_v11 = vrot.slane %v8049_v44, 4  ;;  %v9014_v9 = vrot.slane %v9012_v53, 4  ;;  %v18121_v44 = vld [vmem:[#allocation3 + $0x78] sm:$0xf] }
 0x853   : > { %v7837_v3 = vsel %vm17386_vm7, %v7639_v56, %v7836_v26  ;;  %v12241_v40 = vrot.slane %v8304_v48, 9  ;;  %v8418_v4 = vrot.slane %v18095_v15, 5  ;;  %v8421_v58 = vrot.slane %v18091_v1, 5  ;;  %v9122_v48 = vld [vmem:[#allocation3 + $0x8c] sm:$0x1]  ;;  %v20026_v53 = vld [vmem:[#allocation41_spill] sm:$0xff] }
 0x854   : > { %7838 = vst [vmem:[#allocation3 + $0x9c] sm:$0xf] %v7837_v3  ;;  %v7648_v20 = vsel %vm17392_vm9, %v7640_v54, %v7647_v22  ;;  %v7841_v10 = vsel %vm17244_vm4, %v7649_v61, %v7840_v49  ;;  %v8055_v43 = vsel %vm13904_vm2, %v8050_v11, %v8054_v59  ;;  %v9016_v46 = vsel %vm14431_vm15, %v9014_v9, %v9015_v52  ;;  %v8303_v26 = vld [vmem:[#allocation3 + $0x54] sm:$0xe]  ;;  %v20027_v52 = vld [vmem:[#allocation38_spill] sm:$0xff] }
 0x855   : > { %7839 = vst.msk [vmem:[#allocation3 + $0xa0] sm:$0xf] %vm7211_vm11, %v7648_v20  ;;  %7842 = vst [vmem:[#allocation3 + $0xa4] sm:$0x1] %v7841_v10  ;;  %v12302_v31 = vcombine.low %v8045_v6, %v8055_v43  ;;  %v8419_v12 = vsel %vm14431_vm15, %v12241_v40, %v8418_v4  ;;  %v8420_v32 = vrot.slane %v8418_v4, 4  ;;  %v9276_v35 = vrot.slane %v9274_v29, 4 }
 0x856   : > { %v12367_v24 = vcombine.low %v9013_v57, %v9016_v46  ;;  %v12824_v56 = vadd.f32 %v20027_v52, %v20026_v53  ;;  %v7265_v54 = vsel %vm17244_vm4, 0, %v7264_v55  ;;  %v12274_v49 = vrot.slane %v9522_v45, 9  ;;  %v18127_v6 = vld [vmem:[#allocation3 + $0x5c] sm:$0x1]  ;;  %v7319_v11 = vld [vmem:[#allocation3 + $0xb0] sm:$0x1] }
 0x857   : > { %9811 = vrot.lane.b32.xlu1 %v12302_v31, %s19809_s22  ;;  %v8422_v51 = vsel %vm14431_vm15, %v8420_v32, %v8421_v58  ;;  %v9279_v29 = vrot.slane %v9277_v7, 5  ;;  %v12385_v22 = vcombine.low %v18121_v44, %v18068_v28  ;;  %7266 = vst [vmem:[#allocation3 + $0xa8] sm:$0x1] %v7265_v54  ;;  %v9642_v61 = vrot.slane %v18112_v18, 5  ;;  %v20028_v57 = vld [vmem:[#allocation44_spill] sm:$0xff]  ;;  %v20029_v10 = vld [vmem:[#allocation19_spill] sm:$0xff] }
 0x858   : > { %10117 = vrot.lane.b32.xlu0 %v12367_v24, %s19809_s22  ;;  %v12321_v59 = vcombine.low %v8419_v12, %v8422_v51  ;;  %v7079_v3 = vadd.f32 %v20028_v57, %v12824_v56  ;;  %v9645_v9 = vrot.slane %v9122_v48, 5  ;;  %v12240_v40 = vrot.slane %v8303_v26, 9  ;;  %v20030_v43 = vld [vmem:[#allocation13_spill] sm:$0xff]  ;;  %v20031_v32 = vld [vmem:[#allocation35_spill] sm:$0xff] }
 0x859   : > { %v8411_v4 = vrot.slane %v18114_v17, 5  ;;  %v9643_v41 = vsel %vm14431_vm15, %v12274_v49, %v9642_v61  ;;  %v9644_v7 = vrot.slane %v9642_v61, 4  ;;  %v8414_v20 = vrot.slane %v18127_v6, 5  ;;  %v18161_v57 = vld [vmem:[#allocation3 + $0x18] sm:$0xf] }
 0x85a   : > { %v12827_v58 = vadd.f32 %v20030_v43, %v20029_v10  ;;  %v7134_v55 = vmul.f32 %v17781_v27, %v7079_v3  ;;  %v7320_v46 = vsel %vm17252_vm5, 0, %v7319_v11  ;;  %v9280_v48 = vor.u32 %v9279_v29, %v9276_v35  ;;  %v8490_v10 = vld [vmem:[#allocation3 + $0x78] sm:$0xf]  ;;  %v18171_v43 = vld [vmem:[#allocation3 + $0x7c] sm:$0xf] }
 0x85b   : > { %9897 = vrot.lane.b32.xlu1 %v12321_v59, %s19810_s29  ;;  %v8412_v45 = vsel %vm14431_vm15, %v12240_v40, %v8411_v4  ;;  %v8413_v31 = vrot.slane %v8411_v4, 4  ;;  %v9646_v12 = vsel %vm14431_vm15, %v9644_v7, %v9645_v9  ;;  %7321 = vst [vmem:[#allocation3 + $0xb0] sm:$0x1] %v7320_v46  ;;  %v9283_v26 = vshll.u32 %v17870_v19, 16  ;;  %v7880_v40 = vld [vmem:[#allocation3 + $0x60] sm:$0xf] }
 0x85c   : > { %10217 = vrot.lane.b32.xlu0 %v12385_v22, %s19810_s29  ;;  %v7082_v24 = vadd.f32 %v20031_v32, %v12827_v58  ;;  %v7173_v51 = vadd.f32 %v17793_v63, %v7134_v55  ;;  %v12418_v53 = vcombine.low %v9643_v41, %v9646_v12  ;;  %v9287_v56 = vshrl.u32 %v17870_v19, 16  ;;  %v18168_v4 = vld [vmem:[#allocation3 + $0xc] sm:$0xf] }
 0x85d   : > { %v8415_v52 = vsel %vm14431_vm15, %v8413_v31, %v8414_v20  ;;  %v9250_v54 = vshrl.u32 %v18007_v5, 16  ;;  %v9285_v22 = vrot.slane %v9283_v26, 5  ;;  %v9281_v35 = vrot.slane %v9280_v48, 4  ;;  %v18177_v32 = vld [vmem:[#allocation3 + $0x6c] sm:$0xf] }
 0x85e   : > { %v12320_v49 = vcombine.low %v8412_v45, %v8415_v52  ;;  %v7135_v59 = vmul.f32 %v17781_v27, %v7082_v24  ;;  %v7205_v61 = vmax.f32 %v7173_v51, 0.0  ;;  %13141 = vmatmul.mubr.msk.bf16.gmra.mrb[128].mxu1 %vm3549_vm14, %v12418_v53  ;;  %v9289_v29 = vrot.slane %v9287_v56, 4 }
 0x85f   : > { %v9293_v11 = vshll.u32 %v17864_v2, 16  ;;  %v8545_v3 = vshrl.u32 %v18161_v57, 16  ;;  %v9253_v19 = vshll.u32 %v18007_v5, 16  ;;  %v9252_v55 = vrot.slane %v9250_v54, 4 }
 0x860   : > { %9895 = vrot.lane.b32.xlu1 %v12320_v49, %s19810_s29  ;;  %v7174_v27 = vadd.f32 %v17793_v63, %v7135_v59  ;;  %v12536_v7 = vpack.c.bf16 %v7205_v61, %v7205_v61  ;;  %v9290_v20 = vor.u32 %v9289_v29, %v9285_v22  ;;  %v12338_v5 = vcombine.low %v8490_v10, %v18171_v43  ;;  %v7843_v49 = vld [vmem:[#allocation3 + $0xa8] sm:$0xf] }
 0x861   : > { %v9295_v2 = vrot.slane %v9293_v11, 5  ;;  %v9286_v63 = vsel %vm13904_vm2, %v9281_v35, %v9285_v22  ;;  %v9255_v24 = vrot.slane %v9253_v19, 5  ;;  %v12384_v26 = vcombine.low %v18177_v32, %v17928_v0 }
 0x862   : > { %v7206_v45 = vmax.f32 %v7174_v27, 0.0  ;;  %v7651_v31 = vshrl.u32 %v12536_v7, 16  ;;  %v7654_v46 = vshll.u32 %v12536_v7, 16  ;;  %v9291_v12 = vrot.slane %v9290_v20, 4  ;;  %v7847_v10 = vld [vmem:[#allocation3 + $0xb0] sm:$0x1] }
 0x863   : > { %v8105_v51 = vshrl.u32 %v7880_v40, 16  ;;  %v8108_v56 = vshll.u32 %v7880_v40, 16  ;;  %v8114_v54 = vshll.u32 %v18095_v15, 16  ;;  %v8118_v0 = vshrl.u32 %v18095_v15, 16 }
 0x864   : > { %v12537_v48 = vpack.c.bf16 %v7206_v45, %v7206_v45  ;;  %9995 = vrot.lane.b32.xlu1 %v12338_v5, %s13682_s27  ;;  %v7653_v53 = vrot.slane %v7651_v31, 7  ;;  %v9296_v52 = vsel %vm13904_vm2, %v9291_v12, %v9295_v2  ;;  %v8124_v20 = vshll.u32 %v18091_v1, 16  ;;  %v13533_v5 = vld [vmem:[#allocation3 + $0x58] sm:$0xf] }
 0x865   : > { %v12399_v61 = vcombine.low %v9286_v63, %v9296_v52  ;;  %v8107_v35 = vrot.slane %v8105_v51, 4  ;;  %v8110_v19 = vrot.slane %v8108_v56, 5  ;;  %v8116_v27 = vrot.slane %v8114_v54, 5  ;;  %v18190_v54 = vpop.permute.xlu1 %9801 }
 0x866   : > { %v7659_v59 = vshrl.u32 %v12537_v48, 16  ;;  %v7662_v22 = vshll.u32 %v12537_v48, 16  ;;  %v7656_v29 = vor.u32 %v7654_v46, %v7653_v53  ;;  %v7657_v11 = vrot.slane %v7653_v53, 4 }
 0x867   : > { %10293 = vrot.lane.b32.xlu0 %v12399_v61, %s13682_s27  ;;  %v9256_v2 = vor.u32 %v9255_v24, %v9252_v55  ;;  %v8111_v45 = vor.u32 %v8110_v19, %v8107_v35  ;;  %v9259_v31 = vshll.u32 %v13533_v5, 16  ;;  %v9263_v63 = vshrl.u32 %v13533_v5, 16  ;;  %v18197_v61 = vpop.permute.xlu0 %10201  ;;  %v9523_v19 = vld [vmem:[#allocation3 + $0x90] sm:$0xe] }
 0x868   : > { %v7661_v7 = vrot.slane %v7659_v59, 7  ;;  %v7844_v40 = vsel %vm17386_vm7, %v7656_v29, %v7843_v49  ;;  %v8120_v48 = vrot.slane %v8118_v0, 4  ;;  %v8126_v51 = vrot.slane %v8124_v20, 5  ;;  %v13534_v49 = vld [vmem:[#allocation3 + $0x5c] sm:$0x1] }
 0x869   : > { %7845 = vst [vmem:[#allocation3 + $0xa8] sm:$0xf] %v7844_v40  ;;  %v8112_v53 = vrot.slane %v8111_v45, 4  ;;  %v9257_v52 = vrot.slane %v9256_v2, 4  ;;  %v9261_v56 = vrot.slane %v9259_v31, 5  ;;  %v9265_v15 = vrot.slane %v9263_v63, 4 }
 0x86a   : > { %v7664_v46 = vor.u32 %v7662_v22, %v7661_v7  ;;  %v7666_v12 = vrot.slane %v7661_v7, 4  ;;  %v8121_v24 = vor.u32 %v8120_v48, %v8116_v27  ;;  %v9269_v59 = vshll.u32 %v13534_v49, 16  ;;  %v8913_v22 = vld [vmem:[#allocation3 + $0x78] sm:$0xe]  ;;  %v8513_v29 = vld [vmem:[#allocation3 + $0x80] sm:$0x1] }
 0x86b   : > { %10215 = vrot.lane.b32.xlu0 %v12384_v26, %s19810_s29  ;;  %v9266_v35 = vor.u32 %v9265_v15, %v9261_v56  ;;  %v7878_v7 = vld [vmem:[#allocation3 + $0x54] sm:$0xf]  ;;  %v8117_v0 = vsel %vm13904_vm2, %v8112_v53, %v8116_v27  ;;  %v9262_v26 = vsel %vm13904_vm2, %v9257_v52, %v9261_v56  ;;  %v8488_v2 = vld [vmem:[#allocation3 + $0x6c] sm:$0xf]  ;;  %v8489_v40 = vld [vmem:[#allocation3 + $0x70] sm:$0xf] }
 0x86c   : > { %v7665_v1 = vsel %vm17392_vm9, %v7657_v11, %v7664_v46  ;;  %v7848_v55 = vsel %vm17244_vm4, %v7666_v12, %v7847_v10  ;;  %v9322_v11 = vshrl.u32 %v18121_v44, 16  ;;  %v8122_v20 = vrot.slane %v8121_v24, 4  ;;  %v18206_v63 = vld [vmem:[#allocation3 + $0x98] sm:$0x1] }
 0x86d   : > { %7846 = vst.msk [vmem:[#allocation3 + $0xac] sm:$0xf] %vm7211_vm11, %v7665_v1  ;;  %7849 = vst [vmem:[#allocation3 + $0xb0] sm:$0x1] %v7848_v55  ;;  %v9267_v10 = vrot.slane %v9266_v35, 4  ;;  %v9271_v45 = vrot.slane %v9269_v59, 5  ;;  %v12337_v12 = vcombine.low %v8488_v2, %v8489_v40  ;;  %v18216_v55 = vpop.permute.xlu1 %9881 }
 0x86e   : > { %v12258_v5 = vrot.slane %v8913_v22, 9  ;;  %v9033_v31 = vrot.slane %v18171_v43, 5  ;;  %v8127_v46 = vsel %vm13904_vm2, %v8122_v20, %v8126_v51  ;;  %v9036_v48 = vrot.slane %v8513_v29, 5  ;;  %v18214_v1 = vld [vmem:[#allocation3 + $0x94] sm:$0xf]  ;;  %v18220_v22 = vpop.permute.xlu0 %10107 }
 0x86f   : > { %v12275_v15 = vrot.slane %v9523_v19, 9  ;;  %v12305_v27 = vcombine.low %v8117_v0, %v8127_v46  ;;  %v9272_v53 = vsel %vm13904_vm2, %v9267_v10, %v9271_v45  ;;  %v9649_v24 = vrot.slane %v18214_v1, 5  ;;  %v8912_v59 = vld [vmem:[#allocation3 + $0x6c] sm:$0xe]  ;;  %20032 = vst [vmem:[#allocation37_spill] sm:$0xff] %v18220_v22 }
 0x870   : > { %v9034_v52 = vsel %vm14431_vm15, %v12258_v5, %v9033_v31  ;;  %v9035_v56 = vrot.slane %v9033_v31, 4  ;;  %v12398_v43 = vcombine.low %v9262_v26, %v9272_v53  ;;  %v9652_v51 = vrot.slane %v18206_v63, 5  ;;  %v8512_v20 = vld [vmem:[#allocation3 + $0x74] sm:$0x1] }
 0x871   : > { %v8081_v49 = vshrl.u32 %v7878_v7, 16  ;;  %9817 = vrot.lane.b32.xlu1 %v12305_v27, %s19809_s22  ;;  %v8084_v29 = vshll.u32 %v7878_v7, 16  ;;  %v8090_v19 = vshll.u32 %v18114_v17, 16  ;;  %v8094_v0 = vshrl.u32 %v18114_v17, 16 }
 0x872   : > { %v9037_v35 = vsel %vm14431_vm15, %v9035_v56, %v9036_v48  ;;  %10291 = vrot.lane.b32.xlu0 %v12398_v43, %s13682_s27  ;;  %v9650_v2 = vsel %vm14431_vm15, %v12275_v15, %v9649_v24  ;;  %v9651_v10 = vrot.slane %v9649_v24, 4  ;;  %v8100_v27 = vshll.u32 %v18127_v6, 16  ;;  %v18231_v48 = vld [vmem:[#allocation3 + $0x80] sm:$0x1]  ;;  %v8306_v43 = vld [vmem:[#allocation3 + $0x78] sm:$0xe] }
 0x873   : > { %v12370_v26 = vcombine.low %v9034_v52, %v9037_v35  ;;  %v8083_v45 = vrot.slane %v8081_v49, 4  ;;  %v8086_v5 = vrot.slane %v8084_v29, 5  ;;  %v8092_v31 = vrot.slane %v8090_v19, 5  ;;  %v18237_v35 = vld [vmem:[#allocation3 + $0x7c] sm:$0xf]  ;;  %v18239_v29 = vpop.permute.xlu1 %9979  ;;  %v18245_v19 = vpop.permute.xlu0 %10105 }
 0x874   : > { %v8096_v46 = vrot.slane %v8094_v0, 4  ;;  %v9653_v7 = vsel %vm14431_vm15, %v9651_v10, %v9652_v51  ;;  %v12257_v17 = vrot.slane %v8912_v59, 9  ;;  %v9026_v53 = vrot.slane %v8489_v40, 5  ;;  %20033 = vst [vmem:[#allocation28_spill] sm:$0xff] %v18239_v29  ;;  %v9524_v10 = vld [vmem:[#allocation3 + $0x9c] sm:$0xe] }
 0x875   : > { %v9029_v56 = vrot.slane %v8512_v20, 5  ;;  %v9325_v52 = vshll.u32 %v18121_v44, 16  ;;  %9993 = vrot.lane.b32.xlu1 %v12337_v12, %s13682_s27  ;;  %v12419_v15 = vcombine.low %v9650_v2, %v9653_v7  ;;  %v8087_v24 = vor.u32 %v8086_v5, %v8083_v45 }
 0x876   : > { %v8097_v49 = vor.u32 %v8096_v46, %v8092_v31  ;;  %10123 = vrot.lane.b32.xlu0 %v12370_v26, %s19809_s22  ;;  %v8102_v6 = vrot.slane %v8100_v27, 5  ;;  %v9027_v51 = vsel %vm14431_vm15, %v12257_v17, %v9026_v53  ;;  %v9028_v40 = vrot.slane %v9026_v53, 4  ;;  %v18253_v46 = vld [vmem:[#allocation3 + $0xa0] sm:$0xf]  ;;  %v9124_v27 = vld [vmem:[#allocation3 + $0xa4] sm:$0x1] }
 0x877   : > { %v8432_v59 = vrot.slane %v18237_v35, 5  ;;  %13144 = vmatprep.mubr.msk.bf16.mxu1 %vm3549_vm14, %v12419_v15  ;;  %v8088_v12 = vrot.slane %v8087_v24, 4  ;;  %v12243_v20 = vrot.slane %v8306_v43, 9  ;;  %v8435_v2 = vrot.slane %v18231_v48, 5  ;;  %20034 = vst [vmem:[#allocation27_spill] sm:$0xff] %v18253_v46 }
 0x878   : > { %v8098_v0 = vrot.slane %v8097_v49, 4  ;;  %v9324_v26 = vrot.slane %v9322_v11, 4  ;;  %v9030_v45 = vsel %vm14431_vm15, %v9028_v40, %v9029_v56  ;;  %v9327_v7 = vrot.slane %v9325_v52, 5  ;;  %v18259_v15 = vld [vmem:[#allocation3 + $0x74] sm:$0x1] }
 0x879   : > { %v8434_v5 = vrot.slane %v8432_v59, 4  ;;  %v8093_v17 = vsel %vm13904_vm2, %v8088_v12, %v8092_v31  ;;  %v12369_v43 = vcombine.low %v9027_v51, %v9030_v45  ;;  %v8305_v24 = vld [vmem:[#allocation3 + $0x6c] sm:$0xe]  ;;  %v18263_v44 = vrot.slane %v8545_v3, 4  ;;  %v18274_v12 = vld [vmem:[#allocation3 + $0x70] sm:$0xf]  ;;  %v18276_v3 = vpop.permute.xlu1 %9977 }
 0x87a   : > { %v8103_v53 = vsel %vm13904_vm2, %v8098_v0, %v8102_v6  ;;  %v9298_v11 = vshrl.u32 %v18177_v32, 16  ;;  %v12276_v49 = vrot.slane %v9524_v10, 9  ;;  %v8433_v31 = vsel %vm14431_vm15, %v12243_v20, %v8432_v59  ;;  %v18271_v6 = vld [vmem:[#allocation3 + $0x90] sm:$0xf] }
 0x87b   : > { %v12304_v56 = vcombine.low %v8093_v17, %v8103_v53  ;;  %10121 = vrot.lane.b32.xlu0 %v12369_v43, %s19809_s22  ;;  %v8436_v52 = vsel %vm14431_vm15, %v8434_v5, %v8435_v2  ;;  %v9656_v51 = vrot.slane %v18253_v46, 5  ;;  %v9659_v40 = vrot.slane %v9124_v27, 5  ;;  %v18283_v2 = vpop.permute.xlu0 %10205 }
 0x87c   : > { %v12387_v0 = vcombine.low %v18271_v6, %v18214_v1  ;;  %v12242_v10 = vrot.slane %v8305_v24, 9  ;;  %v8425_v59 = vrot.slane %v18274_v12, 5  ;;  %v8428_v20 = vrot.slane %v18259_v15, 5  ;;  %20035 = vst [vmem:[#allocation14_spill] sm:$0xff] %v18283_v2 }
 0x87d   : > { %9815 = vrot.lane.b32.xlu1 %v12304_v56, %s19809_s22  ;;  %v9657_v45 = vsel %vm14431_vm15, %v12276_v49, %v9656_v51  ;;  %v9658_v5 = vrot.slane %v9656_v51, 4  ;;  %v9328_v27 = vor.u32 %v9327_v7, %v9324_v26  ;;  %v9331_v17 = vshll.u32 %v18068_v28, 16 }
 0x87e   : > { %v9301_v53 = vshll.u32 %v18177_v32, 16  ;;  %v12323_v43 = vcombine.low %v8433_v31, %v8436_v52  ;;  %v8427_v56 = vrot.slane %v8425_v59, 4  ;;  %v9335_v58 = vshrl.u32 %v18068_v28, 16  ;;  %v7884_v28 = vld [vmem:[#allocation3 + $0x78] sm:$0xf] }
 0x87f   : > { %10221 = vrot.lane.b32.xlu0 %v12387_v0, %s19810_s29  ;;  %v9660_v24 = vsel %vm14431_vm15, %v9658_v5, %v9659_v40  ;;  %v8426_v41 = vsel %vm14431_vm15, %v12242_v10, %v8425_v59  ;;  %v9333_v9 = vrot.slane %v9331_v17, 5  ;;  %v9341_v49 = vshll.u32 %v18061_v33, 16  ;;  %v13535_v17 = vld [vmem:[#allocation3 + $0x30] sm:$0xf] }
 0x880   : > { %v12420_v26 = vcombine.low %v9657_v45, %v9660_v24  ;;  %v8429_v32 = vsel %vm14431_vm15, %v8427_v56, %v8428_v20  ;;  %v9329_v7 = vrot.slane %v9328_v27, 4  ;;  %v9337_v31 = vrot.slane %v9335_v58, 4  ;;  %v18311_v45 = vpop.permute.xlu1 %9885 }
 0x881   : > { %9901 = vrot.lane.b32.xlu1 %v12323_v43, %s19810_s29  ;;  %v20036_v52 = vshll.u32 %v18161_v57, 16  ;;  %v20037_v40 = vshrl.u32 %v18168_v4, 16  ;;  %v20038_v10 = vshll.u32 %v18168_v4, 16  ;;  %v9300_v59 = vrot.slane %v9298_v11, 4  ;;  %20039 = vst [vmem:[#allocation26_spill] sm:$0xff] %v18311_v45  ;;  %v18314_v57 = vpop.permute.xlu0 %10281 }
 0x882   : > { %v9303_v5 = vrot.slane %v9301_v53, 5  ;;  %13145 = vmatmul.mubr.msk.bf16.gmra.mrb[132].mxu1 %vm3549_vm14, %v12420_v26  ;;  %v12322_v58 = vcombine.low %v8426_v41, %v8429_v32  ;;  %v9338_v20 = vor.u32 %v9337_v31, %v9333_v9  ;;  %v9343_v27 = vrot.slane %v9341_v49, 5  ;;  %v18319_v26 = vld [vmem:[#allocation3 + $0x94] sm:$0xf] }
 0x883   : > { %v18301_v51 = vrot.slane %v20036_v52, 5  ;;  %v18305_v0 = vrot.slane %v20037_v40, 4  ;;  %v18309_v33 = vrot.slane %v20038_v10, 5  ;;  %v8593_v43 = vshrl.u32 %v13535_v17, 16  ;;  %v13536_v40 = vld [vmem:[#allocation3 + $0x24] sm:$0xf] }
 0x884   : > { %v8596_v56 = vshll.u32 %v13535_v17, 16  ;;  %v8153_v24 = vshrl.u32 %v7884_v28, 16  ;;  %v8156_v52 = vshll.u32 %v7884_v28, 16  ;;  %v8569_v4 = vshrl.u32 %v13536_v40, 16  ;;  %v8494_v10 = vld [vmem:[#allocation3 + $0x90] sm:$0xf]  ;;  %v18327_v22 = vpop.permute.xlu1 %9883 }
 0x885   : > { %9899 = vrot.lane.b32.xlu1 %v12322_v58, %s19810_s29  ;;  %v9334_v11 = vsel %vm13904_vm2, %v9329_v7, %v9333_v9  ;;  %v9339_v53 = vrot.slane %v9338_v20, 4  ;;  %v12340_v41 = vcombine.low %v8494_v10, %v18319_v26  ;;  %v8162_v31 = vshll.u32 %v18237_v35, 16  ;;  %v13537_v20 = vld [vmem:[#allocation3 + $0x70] sm:$0xf]  ;;  %20040 = vst [vmem:[#allocation16_spill] sm:$0xff] %v18327_v22 }
 0x886   : > { %v8155_v49 = vrot.slane %v8153_v24, 4  ;;  %v8158_v32 = vrot.slane %v8156_v52, 5  ;;  %v8166_v17 = vshrl.u32 %v18237_v35, 16  ;;  %v8172_v58 = vshll.u32 %v18231_v48, 16  ;;  %v13538_v24 = vld [vmem:[#allocation3 + $0x48] sm:$0xf] }
 0x887   : > { %v9344_v28 = vsel %vm13904_vm2, %v9339_v53, %v9343_v27  ;;  %v9304_v45 = vor.u32 %v9303_v5, %v9300_v59  ;;  %v8164_v7 = vrot.slane %v8162_v31, 5  ;;  %v9307_v29 = vshll.u32 %v13537_v20, 16  ;;  %v18330_v27 = vpop.permute.xlu0 %10203  ;;  %v13539_v35 = vld [vmem:[#allocation3 + $0x4] sm:$0xf]  ;;  %v13540_v53 = vld [vmem:[#allocation3] sm:$0xf] }
 0x888   : > { %v12401_v2 = vcombine.low %v9334_v11, %v9344_v28  ;;  %v8159_v9 = vor.u32 %v8158_v32, %v8155_v49  ;;  %v8572_v10 = vshll.u32 %v13536_v40, 16  ;;  %v8641_v52 = vshrl.u32 %v13538_v24, 16  ;;  %20041 = vst [vmem:[#allocation22_spill] sm:$0xff] %v18330_v27  ;;  %v13541_v11 = vld [vmem:[#allocation3 + $0x74] sm:$0x1] }
 0x889   : > { %9999 = vrot.lane.b32.xlu1 %v12340_v41, %s13682_s27  ;;  %v8168_v46 = vrot.slane %v8166_v17, 4  ;;  %v9311_v16 = vshrl.u32 %v13537_v20, 16  ;;  %v12281_v48 = vcombine.low %v13540_v53, %v13539_v35  ;;  %v9309_v5 = vrot.slane %v9307_v29, 5  ;;  %v18333_v32 = vld [vmem:[#allocation3 + $0x84] sm:$0xf] }
 0x88a   : > { %10297 = vrot.lane.b32.xlu0 %v12401_v2, %s13682_s27  ;;  %v8160_v59 = vrot.slane %v8159_v9, 4  ;;  %v9317_v49 = vshll.u32 %v13541_v11, 16  ;;  %v8174_v31 = vrot.slane %v8172_v58, 5  ;;  %v9305_v28 = vrot.slane %v9304_v45, 4  ;;  %v8915_v53 = vld [vmem:[#allocation3 + $0x90] sm:$0xe] }
 0x88b   : > { %v8169_v40 = vor.u32 %v8168_v46, %v8164_v7  ;;  %v9313_v22 = vrot.slane %v9311_v16, 4  ;;  %v18335_v41 = vrot.slane %v8593_v43, 4  ;;  %v18337_v17 = vrot.slane %v8596_v56, 5  ;;  %v8515_v43 = vld [vmem:[#allocation3 + $0x98] sm:$0x1] }
 0x88c   : > { %v8644_v20 = vshll.u32 %v13538_v24, 16  ;;  %v12386_v35 = vcombine.low %v18333_v32, %v18112_v18  ;;  %v8165_v29 = vsel %vm13904_vm2, %v8160_v59, %v8164_v7  ;;  %v9319_v11 = vrot.slane %v9317_v49, 5  ;;  %v18352_v18 = vpop.permute.xlu1 %9983  ;;  %v9525_v7 = vld [vmem:[#allocation3 + $0xa8] sm:$0xe]  ;;  %v18366_v49 = vld [vmem:[#allocation3 + $0xb0] sm:$0x1] }
 0x88d   : > { %v8170_v2 = vrot.slane %v8169_v40, 4  ;;  %v9314_v9 = vor.u32 %v9313_v22, %v9309_v5  ;;  %v18343_v27 = vrot.slane %v8569_v4, 4  ;;  %v18345_v46 = vrot.slane %v8572_v10, 5  ;;  %20044 = vst [vmem:[#allocation23_spill] sm:$0xff] %v18352_v18  ;;  %v18358_v10 = vpop.permute.xlu0 %10111  ;;  %20047 = vst [vmem:[#allocation30_spill] sm:$0xff] %v18366_v49 }
 0x88e   : > { %v18347_v16 = vrot.slane %v8641_v52, 4  ;;  %v10363_v45 = vsel %vm3549_vm14, %v12281_v48, %v18190_v54  ;;  %10219 = vrot.lane.b32.xlu0 %v12386_v35, %s19810_s29  ;;  %v9310_v22 = vsel %vm13904_vm2, %v9305_v28, %v9309_v5  ;;  %v12260_v58 = vrot.slane %v8915_v53, 9  ;;  %20045 = vst [vmem:[#allocation21_spill] sm:$0xff] %v18358_v10  ;;  %v18362_v52 = vld [vmem:[#allocation3 + $0x3c] sm:$0xf] }
 0x88f   : > { %20042 = vst [vmem:[#allocation17_spill] sm:$0xff] %v18345_v46  ;;  %v8175_v56 = vsel %vm13904_vm2, %v8170_v2, %v8174_v31  ;;  %v9315_v4 = vrot.slane %v9314_v9, 4  ;;  %v18360_v24 = vrot.slane %v8644_v20, 5  ;;  %v9370_v48 = vshrl.u32 %v18271_v6, 16  ;;  %v18372_v35 = vld [vmem:[#allocation3 + $0xac] sm:$0xf] }
 0x890   : > { %20043 = vst [vmem:[#allocation24_spill] sm:$0xff] %v18347_v16  ;;  %v12307_v59 = vcombine.low %v8165_v29, %v8175_v56  ;;  %v9373_v40 = vshll.u32 %v18271_v6, 16  ;;  %v9047_v31 = vrot.slane %v18319_v26, 5  ;;  %v9050_v28 = vrot.slane %v8515_v43, 5  ;;  %v8492_v2 = vld [vmem:[#allocation3 + $0x84] sm:$0xf] }
 0x891   : > { %20046 = vst [vmem:[#allocation34_spill] sm:$0xff] %v18360_v24  ;;  %v9320_v5 = vsel %vm13904_vm2, %v9315_v4, %v9319_v11  ;;  %v10410_v20 = vsel %vm1172_vm3, %v10363_v45, %v18216_v55  ;;  %v12277_v29 = vrot.slane %v9525_v7, 9  ;;  %v9663_v9 = vrot.slane %v18372_v35, 5  ;;  %v8493_v56 = vld [vmem:[#allocation3 + $0x88] sm:$0xf]  ;;  %v18384_v7 = vpop.permute.xlu1 %9805  ;;  %v18391_v24 = vpop.permute.xlu0 %10109 }
 0x892   : > { %9821 = vrot.lane.b32.xlu1 %v12307_v59, %s19809_s22  ;;  %v12400_v53 = vcombine.low %v9310_v22, %v9320_v5  ;;  %v9048_v6 = vsel %vm14431_vm15, %v12260_v58, %v9047_v31  ;;  %v9049_v11 = vrot.slane %v9047_v31, 4  ;;  %v9666_v26 = vrot.slane %v18366_v49, 5  ;;  %v13543_v43 = vld [vmem:[#allocation3 + $0x10] sm:$0xf]  ;;  %20048 = vst [vmem:[#allocation36_spill] sm:$0xff] %v18384_v7  ;;  %20049 = vst [vmem:[#allocation31_spill] sm:$0xff] %v18391_v24 }
 0x893   : > { %v8530_v4 = vshll.u32 %v13543_v43, 16  ;;  %v12339_v54 = vcombine.low %v8492_v2, %v8493_v56  ;;  %v9664_v55 = vsel %vm14431_vm15, %v12277_v29, %v9663_v9  ;;  %v9665_v45 = vrot.slane %v9663_v9, 4  ;;  %v7882_v18 = vld [vmem:[#allocation3 + $0x6c] sm:$0xf]  ;;  %v8308_v7 = vld [vmem:[#allocation3 + $0x90] sm:$0xe] }
 0x894   : > { %10295 = vrot.lane.b32.xlu0 %v12400_v53, %s13682_s27  ;;  %v8534_v22 = vshrl.u32 %v13543_v43, 16  ;;  %v9051_v58 = vsel %vm14431_vm15, %v9049_v11, %v9050_v28  ;;  %v8527_v31 = vor.u32 %v18309_v33, %v18305_v0  ;;  %v18393_v53 = vrot.slane %v9370_v48, 4  ;;  %v13544_v0 = vld [vmem:[#allocation3 + $0x14] sm:$0x1]  ;;  %v18413_v46 = vld [vmem:[#allocation3 + $0x98] sm:$0x1] }
 0x895   : > { %v8532_v5 = vrot.slane %v8530_v4, 5  ;;  %v12372_v2 = vcombine.low %v9048_v6, %v9051_v58  ;;  %v9667_v29 = vsel %vm14431_vm15, %v9665_v45, %v9666_v26  ;;  %v18398_v43 = vrot.slane %v9373_v40, 5  ;;  %v8914_v6 = vld [vmem:[#allocation3 + $0x84] sm:$0xe]  ;;  %v13545_v58 = vld [vmem:[#allocation3 + $0x1c] sm:$0xf]  ;;  %v18411_v24 = vpop.permute.xlu0 %10209 }
 0x896   : > { %9997 = vrot.lane.b32.xlu1 %v12339_v54, %s13682_s27  ;;  %v8536_v9 = vrot.slane %v8534_v22, 4  ;;  %v18402_v28 = vsel %vm6410_vm0, %v10410_v20, %v18276_v3  ;;  %v12421_v11 = vcombine.low %v9664_v55, %v9667_v29  ;;  %v8540_v33 = vshll.u32 %v13544_v0, 16  ;;  %v8514_v20 = vld [vmem:[#allocation3 + $0x8c] sm:$0x1] }
 0x897   : > { %v8129_v4 = vshrl.u32 %v7882_v18, 16  ;;  %v8132_v59 = vshll.u32 %v7882_v18, 16  ;;  %v8138_v54 = vshll.u32 %v18274_v12, 16  ;;  %v8554_v26 = vshll.u32 %v13545_v58, 16 }
 0x898   : > { %10127 = vrot.lane.b32.xlu0 %v12372_v2, %s19809_s22  ;;  %v8537_v48 = vor.u32 %v8536_v9, %v8532_v5  ;;  %13148 = vmatprep.mubr.msk.bf16.mxu1 %vm3549_vm14, %v12421_v11  ;;  %v8528_v40 = vrot.slane %v8527_v31, 4  ;;  %v8142_v45 = vshrl.u32 %v18274_v12, 16  ;;  %v8148_v3 = vshll.u32 %v18259_v15, 16  ;;  %v18409_v9 = vpop.permute.xlu1 %9981 }
 0x899   : > { %v8131_v22 = vrot.slane %v8129_v4, 4  ;;  %v8134_v29 = vrot.slane %v8132_v59, 5  ;;  %v8140_v2 = vrot.slane %v8138_v54, 5  ;;  %v8542_v18 = vrot.slane %v8540_v33, 5  ;;  %v18419_v4 = vld [vmem:[#allocation3 + $0x94] sm:$0xf] }
 0x89a   : > { %v8538_v55 = vrot.slane %v8537_v48, 4  ;;  %v8144_v0 = vrot.slane %v8142_v45, 4  ;;  %v12259_v16 = vrot.slane %v8914_v6, 9  ;;  %v9040_v10 = vrot.slane %v8493_v56, 5 }
 0x89b   : > { %v8558_v11 = vshrl.u32 %v13545_v58, 16  ;;  %v8135_v31 = vor.u32 %v8134_v29, %v8131_v22  ;;  %v8150_v49 = vrot.slane %v8148_v3, 5  ;;  %v9043_v12 = vrot.slane %v8514_v20, 5  ;;  %v7267_v22 = vld [vmem:[#allocation3 + $0xb4] sm:$0x1] }
 0x89c   : > { %v8543_v15 = vsel %vm13904_vm2, %v8538_v55, %v8542_v18  ;;  %v8145_v59 = vor.u32 %v8144_v0, %v8140_v2  ;;  %v9041_v48 = vsel %vm14431_vm15, %v12259_v16, %v9040_v10  ;;  %v9042_v33 = vrot.slane %v9040_v10, 4  ;;  %v18431_v18 = vld [vmem:[#allocation3 + $0xa8] sm:$0xf] }
 0x89d   : > { %v18421_v56 = vrot.slane %v8554_v26, 5  ;;  %v8533_v54 = vsel %vm13904_vm2, %v8528_v40, %v8532_v5  ;;  %v8136_v6 = vrot.slane %v8135_v31, 4  ;;  %v8446_v58 = vrot.slane %v18419_v4, 5  ;;  %v8307_v5 = vld [vmem:[#allocation3 + $0x84] sm:$0xe]  ;;  %v18433_v40 = vpop.permute.xlu1 %9803 }
 0x89e   : > { %v8146_v45 = vrot.slane %v8145_v59, 4  ;;  %v9044_v3 = vsel %vm14431_vm15, %v9042_v33, %v9043_v12  ;;  %v12245_v20 = vrot.slane %v8308_v7, 9  ;;  %v8449_v55 = vrot.slane %v18413_v46, 5  ;;  %v18445_v59 = vpop.permute.xlu0 %10285 }
 0x89f   : > { %v12345_v16 = vcombine.low %v8533_v54, %v8543_v15  ;;  %v8141_v10 = vsel %vm13904_vm2, %v8136_v6, %v8140_v2  ;;  %v12371_v26 = vcombine.low %v9041_v48, %v9044_v3  ;;  %v8448_v29 = vrot.slane %v8446_v58, 4  ;;  %v18443_v15 = vld [vmem:[#allocation3 + $0x8c] sm:$0x1]  ;;  %v7322_v2 = vld [vmem:[#allocation3 + $0xbc] sm:$0x1] }
 0x8a0   : > { %v18435_v0 = vrot.slane %v8558_v11, 4  ;;  %v8151_v31 = vsel %vm13904_vm2, %v8146_v45, %v8150_v49  ;;  %v12389_v7 = vcombine.low %v18431_v18, %v18372_v35  ;;  %v12830_v12 = vadd.f32 %v17945_v21, %v17932_v62  ;;  %v18459_v6 = vld [vmem:[#allocation3 + $0x88] sm:$0xf] }
 0x8a1   : > { %v10491_v48 = vsel %vm3549_vm14, %v12345_v16, %v18245_v19  ;;  %v12306_v33 = vcombine.low %v8141_v10, %v8151_v31  ;;  %10125 = vrot.lane.b32.xlu0 %v12371_v26, %s19809_s22  ;;  %v7268_v49 = vsel %vm17244_vm4, 0, %v7267_v22  ;;  %v12833_v11 = vadd.f32 %v17999_v23, %v17957_v50 }
 0x8a2   : > { %v8447_v62 = vsel %vm14431_vm15, %v12245_v20, %v8446_v58  ;;  %v8450_v21 = vsel %vm14431_vm15, %v8448_v29, %v8449_v55  ;;  %v7087_v54 = vadd.f32 %v12830_v12, %v17947_v36  ;;  %7269 = vst [vmem:[#allocation3 + $0xb4] sm:$0x1] %v7268_v49  ;;  %v12244_v19 = vrot.slane %v8307_v5, 9  ;;  %v18470_v58 = vld [vmem:[%s19641_s9] ss:$0 sm:$0xff]  ;;  %v18482_v29 = vpop.permute.xlu1 %9889  ;;  %v18493_v12 = vpop.permute.xlu0 %10207 }
 0x8a3   : > { %9819 = vrot.lane.b32.xlu1 %v12306_v33, %s19809_s22  ;;  %v8439_v45 = vrot.slane %v18459_v6, 5  ;;  %v8442_v3 = vrot.slane %v18443_v15, 5  ;;  %v7090_v50 = vadd.f32 %v12833_v11, %v18014_v60  ;;  %v7323_v23 = vsel %vm17252_vm5, 0, %v7322_v2  ;;  %20050 = vst [vmem:[#allocation42_spill] sm:$0xff] %v18482_v29 }
 0x8a4   : > { %v7136_v36 = vmul.f32 %v18470_v58, %v7087_v54  ;;  %7324 = vst [vmem:[#allocation3 + $0xbc] sm:$0x1] %v7323_v23  ;;  %v10538_v20 = vsel %vm1172_vm3, %v10491_v48, %v18197_v61  ;;  %v9376_v55 = vor.u32 %v18398_v43, %v18393_v53  ;;  %v9379_v22 = vshll.u32 %v18214_v1, 16  ;;  %v18487_v61 = vld [vmem:[%s19642_s10] ss:$0 sm:$0xff] }
 0x8a5   : > { %v12325_v60 = vcombine.low %v8447_v62, %v8450_v21  ;;  %10225 = vrot.lane.b32.xlu0 %v12389_v7, %s19810_s29  ;;  %v8441_v16 = vrot.slane %v8439_v45, 4  ;;  %v7137_v10 = vmul.f32 %v18470_v58, %v7090_v50  ;;  %v10570_v26 = vsel %vm6410_vm0, %v10538_v20, %v18314_v57  ;;  %v7270_v7 = vld [vmem:[#allocation3 + $0xc0] sm:$0x1]  ;;  %v7325_v21 = vld [vmem:[#allocation3 + $0xc8] sm:$0x1] }
 0x8a6   : > { %v7175_v53 = vadd.f32 %v18487_v61, %v7136_v36  ;;  %v8440_v43 = vsel %vm14431_vm15, %v12244_v19, %v8439_v45  ;;  %10841 = vmatprep.mubr.bf16.mxu0 %v10570_v26  ;;  %v9381_v5 = vrot.slane %v9379_v22, 5  ;;  %v9383_v31 = vshrl.u32 %v18214_v1, 16  ;;  %v7888_v20 = vld [vmem:[#allocation3 + $0x90] sm:$0xf]  ;;  %v18520_v26 = vpop.permute.xlu0 %10283 }
 0x8a7   : > { %9905 = vrot.lane.b32.xlu1 %v12325_v60, %s19810_s29  ;;  %v8443_v57 = vsel %vm14431_vm15, %v8441_v16, %v8442_v3  ;;  %v7176_v2 = vadd.f32 %v18487_v61, %v7137_v10  ;;  %v9389_v48 = vshll.u32 %v18206_v63, 16  ;;  %v12836_v33 = vadd.f32 %v18016_v14, %v18012_v13  ;;  %10842 = vmatmul.mubr.bf16.vlgmr.msra.gmra.mrb[76].mxu0 %v18402_v28 }
 0x8a8   : > { %v8551_v1 = vor.u32 %v18301_v51, %v18263_v44  ;;  %v7207_v49 = vmax.f32 %v7175_v53, 0.0  ;;  %v9377_v11 = vrot.slane %v9376_v55, 4  ;;  %v9385_v62 = vrot.slane %v9383_v31, 4  ;;  %v18516_v55 = vpop.permute.xlu1 %9887 }
 0x8a9   : > { %v12324_v54 = vcombine.low %v8440_v43, %v8443_v57  ;;  %v7208_v19 = vmax.f32 %v7176_v2, 0.0  ;;  %v7095_v45 = vadd.f32 %v17934_v38, %v12836_v33  ;;  %v7271_v3 = vsel %vm17244_vm4, 0, %v7270_v7 }
 0x8aa   : > { %v8561_v63 = vor.u32 %v18435_v0, %v18421_v56  ;;  %v12538_v13 = vpack.c.bf16 %v7207_v49, %v7207_v49  ;;  %v9386_v14 = vor.u32 %v9385_v62, %v9381_v5  ;;  %v9391_v28 = vrot.slane %v9389_v48, 5  ;;  %7272 = vst [vmem:[#allocation3 + $0xc0] sm:$0x1] %v7271_v3  ;;  %v7850_v48 = vld [vmem:[#allocation3 + $0xb4] sm:$0xf] }
 0x8ab   : > { %9903 = vrot.lane.b32.xlu1 %v12324_v54, %s19810_s29  ;;  %v12539_v50 = vpack.c.bf16 %v7208_v19, %v7208_v19  ;;  %v7138_v23 = vmul.f32 %v18470_v58, %v7095_v45  ;;  %v12839_v36 = vadd.f32 %v18028_v37, %v18022_v39  ;;  %v7326_v38 = vsel %vm17252_vm5, 0, %v7325_v21  ;;  %v7854_v54 = vld [vmem:[#allocation3 + $0xbc] sm:$0x1] }
 0x8ac   : > { %v7668_v22 = vshrl.u32 %v12538_v13, 16  ;;  %v7671_v60 = vshll.u32 %v12538_v13, 16  ;;  %v9382_v16 = vsel %vm13904_vm2, %v9377_v11, %v9381_v5  ;;  %v9387_v10 = vrot.slane %v9386_v14, 4  ;;  %7327 = vst [vmem:[#allocation3 + $0xc8] sm:$0x1] %v7326_v38 }
 0x8ad   : > { %v7676_v53 = vshrl.u32 %v12539_v50, 16  ;;  %v7679_v43 = vshll.u32 %v12539_v50, 16  ;;  %v7177_v31 = vadd.f32 %v18487_v61, %v7138_v23  ;;  %v7098_v39 = vadd.f32 %v18001_v30, %v12839_v36 }
 0x8ae   : > { %v7670_v37 = vrot.slane %v7668_v22, 7  ;;  %v9392_v7 = vsel %vm13904_vm2, %v9387_v10, %v9391_v28  ;;  %v8201_v57 = vshrl.u32 %v7888_v20, 16  ;;  %v8204_v2 = vshll.u32 %v7888_v20, 16  ;;  %v18529_v28 = vpop.permute.xlu1 %9987  ;;  %v18537_v20 = vpop.permute.xlu0 %10115 }
 0x8af   : > { %v7678_v33 = vrot.slane %v7676_v53, 7  ;;  %v12403_v49 = vcombine.low %v9382_v16, %v9392_v7  ;;  %v7209_v5 = vmax.f32 %v7177_v31, 0.0  ;;  %v7139_v11 = vmul.f32 %v18470_v58, %v7098_v39  ;;  %20051 = vst [vmem:[#allocation46_spill] sm:$0xff] %v18529_v28 }
 0x8b0   : > { %v7673_v62 = vor.u32 %v7671_v60, %v7670_v37  ;;  %v7674_v21 = vrot.slane %v7670_v37, 4  ;;  %v8203_v19 = vrot.slane %v8201_v57, 4  ;;  %v8206_v45 = vrot.slane %v8204_v2, 5 }
 0x8b1   : > { %v7681_v3 = vor.u32 %v7679_v43, %v7678_v33  ;;  %v7683_v13 = vrot.slane %v7678_v33, 4  ;;  %10301 = vrot.lane.b32.xlu0 %v12403_v49, %s13682_s27  ;;  %v12540_v30 = vpack.c.bf16 %v7209_v5, %v7209_v5  ;;  %v7178_v14 = vadd.f32 %v18487_v61, %v7139_v11  ;;  %v18553_v49 = vld [vmem:[#allocation3 + $0x9c] sm:$0xf]  ;;  %v13548_v5 = vld [vmem:[#allocation3 + $0x20] sm:$0x1] }
 0x8b2   : > { %v7851_v23 = vsel %vm17386_vm7, %v7673_v62, %v7850_v48  ;;  %v8207_v58 = vor.u32 %v8206_v45, %v8203_v19  ;;  %v8210_v36 = vshll.u32 %v18419_v4, 16  ;;  %v8214_v38 = vshrl.u32 %v18419_v4, 16  ;;  %v7857_v62 = vld [vmem:[#allocation3 + $0xc0] sm:$0xf]  ;;  %v20057_v19 = vld [vmem:[#allocation27_spill] sm:$0xff] }
 0x8b3   : > { %7852 = vst [vmem:[#allocation3 + $0xb4] sm:$0xf] %v7851_v23  ;;  %v7682_v61 = vsel %vm17392_vm9, %v7674_v21, %v7681_v3  ;;  %v7855_v16 = vsel %vm17244_vm4, %v7683_v13, %v7854_v54  ;;  %v7685_v10 = vshrl.u32 %v12540_v30, 16  ;;  %v7688_v53 = vshll.u32 %v12540_v30, 16  ;;  %v18563_v30 = vpop.permute.xlu1 %9809 }
 0x8b4   : > { %7853 = vst.msk [vmem:[#allocation3 + $0xb8] sm:$0xf] %vm7211_vm11, %v7682_v61  ;;  %7856 = vst [vmem:[#allocation3 + $0xbc] sm:$0x1] %v7855_v16  ;;  %v7210_v31 = vmax.f32 %v7178_v14, 0.0  ;;  %v8208_v4 = vrot.slane %v8207_v58, 4  ;;  %v12388_v45 = vcombine.low %v18553_v49, %v20057_v19 }
 0x8b5   : > { %v8212_v39 = vrot.slane %v8210_v36, 5  ;;  %v8216_v37 = vrot.slane %v8214_v38, 4  ;;  %v9346_v57 = vshrl.u32 %v18333_v32, 16  ;;  %v9349_v2 = vshll.u32 %v18333_v32, 16  ;;  %v18568_v38 = vpop.permute.xlu0 %10113 }
 0x8b6   : > { %v7687_v48 = vrot.slane %v7685_v10, 7  ;;  %v8220_v33 = vshll.u32 %v18413_v46, 16  ;;  %v8564_v11 = vshll.u32 %v13548_v5, 16  ;;  %v12541_v21 = vpack.c.bf16 %v7210_v31, %v7210_v31  ;;  %10223 = vrot.lane.b32.xlu0 %v12388_v45, %s19810_s29 }
 0x8b7   : > { %v18531_v50 = vpop.f32.mrb[112].mxu1  ;;  %v8217_v54 = vor.u32 %v8216_v37, %v8212_v39  ;;  %v8552_v3 = vrot.slane %v8551_v1, 4  ;;  %v8562_v32 = vrot.slane %v8561_v63, 4  ;;  %v8213_v58 = vsel %vm13904_vm2, %v8208_v4, %v8212_v39  ;;  %v18582_v39 = vld [vmem:[#allocation3 + $0x60] sm:$0xf]  ;;  %v18595_v19 = vpop.permute.xlu1 %9985 }
 0x8b8   : > { %20052 = vst [vmem:[#allocation20_spill] sm:$0xff] %v18531_v50  ;;  %v18539_v22 = vpop.f32.mrb[113].mxu1  ;;  %v7690_v13 = vor.u32 %v7688_v53, %v7687_v48  ;;  %v8222_v46 = vrot.slane %v8220_v33, 5  ;;  %v7693_v14 = vshrl.u32 %v12541_v21, 16  ;;  %v7696_v23 = vshll.u32 %v12541_v21, 16  ;;  %20060 = vst [vmem:[#allocation41_spill] sm:$0xff] %v18595_v19 }
 0x8b9   : > { %20053 = vst [vmem:[#allocation45_spill] sm:$0xff] %v18539_v22  ;;  %v18545_v43 = vpop.f32.mrb[114].mxu1  ;;  %v8218_v36 = vrot.slane %v8217_v54, 4  ;;  %v20058_v44 = vshrl.u32 %v18362_v52, 16  ;;  %v9348_v0 = vrot.slane %v9346_v57, 4  ;;  %v9351_v1 = vrot.slane %v9349_v2, 5 }
 0x8ba   : > { %20055 = vst [vmem:[#allocation47_spill] sm:$0xff] %v18545_v43  ;;  %v18548_v7 = vpop.f32.mrb[115].mxu1  ;;  %v7858_v63 = vsel %vm17386_vm7, %v7690_v13, %v7857_v62  ;;  %v8566_v61 = vrot.slane %v8564_v11, 5  ;;  %v7691_v16 = vrot.slane %v7687_v48, 4  ;;  %v7695_v10 = vrot.slane %v7693_v14, 7  ;;  %v18604_v14 = vpop.permute.xlu0 %10213 }
 0x8bb   : > { %20056 = vst [vmem:[#allocation43_spill] sm:$0xff] %v18548_v7  ;;  %v18572_v51 = vrot.slane %v20058_v44, 4  ;;  %7859 = vst [vmem:[#allocation3 + $0xc0] sm:$0xf] %v7858_v63  ;;  %v8223_v53 = vsel %vm13904_vm2, %v8218_v36, %v8222_v46  ;;  %v20059_v31 = vshll.u32 %v18362_v52, 16  ;;  %v8557_v48 = vsel %vm13904_vm2, %v8552_v3, %v18421_v56 }
 0x8bc   : > { %v7861_v2 = vld [vmem:[#allocation3 + $0xc8] sm:$0x1]  ;;  %v12309_v42 = vcombine.low %v8213_v58, %v8223_v53  ;;  %v8567_v33 = vsel %vm13904_vm2, %v8562_v32, %v8566_v61  ;;  %v7698_v5 = vor.u32 %v7696_v23, %v7695_v10  ;;  %v7700_v11 = vrot.slane %v7695_v10, 4  ;;  %v8496_v32 = vld [vmem:[#allocation3 + $0x9c] sm:$0xf]  ;;  %20061 = vst [vmem:[#allocation38_spill] sm:$0xff] %v18604_v14 }
 0x8bd   : > { %v18580_v4 = vrot.slane %v20059_v31, 5  ;;  %v9418_v52 = vshrl.u32 %v18431_v18, 16  ;;  %v9421_v62 = vshll.u32 %v18431_v18, 16  ;;  %v9394_v21 = vshrl.u32 %v18553_v49, 16  ;;  %v18602_v13 = vld [vmem:[#allocation3 + $0xa0] sm:$0xf] }
 0x8be   : > { %9825 = vrot.lane.b32.xlu1 %v12309_v42, %s19809_s22  ;;  %v9352_v54 = vor.u32 %v9351_v1, %v9348_v0  ;;  %v7699_v45 = vsel %vm17392_vm9, %v7691_v16, %v7698_v5  ;;  %v7862_v56 = vsel %vm17244_vm4, %v7700_v11, %v7861_v2  ;;  %v9397_v3 = vshll.u32 %v18553_v49, 16  ;;  %v13550_v46 = vld [vmem:[#allocation3 + $0x88] sm:$0xf]  ;;  %v18606_v23 = vld [vmem:[#allocation3 + $0x54] sm:$0xf]  ;;  %v20062_v10 = vld [vmem:[#allocation37_spill] sm:$0xff] }
 0x8bf   : > { %v9355_v18 = vshll.u32 %v13550_v46, 16  ;;  %v12346_v36 = vcombine.low %v8557_v48, %v8567_v33  ;;  %7860 = vst.msk [vmem:[#allocation3 + $0xc4] sm:$0xf] %vm7211_vm11, %v7699_v45  ;;  %7863 = vst [vmem:[#allocation3 + $0xc8] sm:$0x1] %v7862_v56  ;;  %v12341_v60 = vcombine.low %v8496_v32, %v18602_v13  ;;  %v9359_v44 = vshrl.u32 %v13550_v46, 16 }
 0x8c0   : > { %v13552_v0 = vld [vmem:[#allocation3 + $0x34] sm:$0xf]  ;;  %v13553_v61 = vld [vmem:[#allocation3 + $0x8c] sm:$0x1]  ;;  %v18613_v31 = vrot.slane %v9418_v52, 4  ;;  %v9353_v2 = vrot.slane %v9352_v54, 4  ;;  %v8599_v52 = vor.u32 %v18337_v17, %v18335_v41 }
 0x8c1   : > { %v8602_v49 = vshll.u32 %v13552_v0, 16  ;;  %v8606_v1 = vshrl.u32 %v13552_v0, 16  ;;  %v9357_v63 = vrot.slane %v9355_v18, 5  ;;  %v9365_v16 = vshll.u32 %v13553_v61, 16  ;;  %v7886_v48 = vld [vmem:[#allocation3 + $0x84] sm:$0xf]  ;;  %v18641_v61 = vpop.permute.xlu0 %10289 }
 0x8c2   : > { %v10494_v53 = vsel %vm3549_vm14, %v12346_v36, %v20062_v10  ;;  %10001 = vrot.lane.b32.xlu1 %v12341_v60, %s13682_s27  ;;  %v9361_v42 = vrot.slane %v9359_v44, 4  ;;  %v18616_v33 = vrot.slane %v9421_v62, 5  ;;  %v20063_v5 = vld [vmem:[#allocation22_spill] sm:$0xff]  ;;  %v18622_v45 = vrot.slane %v9394_v21, 4  ;;  %v18630_v46 = vld [vmem:[#allocation3 + $0x38] sm:$0x1]  ;;  %v18633_v36 = vpop.permute.xlu1 %9807 }
 0x8c3   : > { %v18620_v11 = vsel %vm1172_vm3, %v10494_v53, %v20063_v5  ;;  %v18624_v56 = vrot.slane %v9397_v3, 5  ;;  %v9367_v62 = vrot.slane %v9365_v16, 5  ;;  %v18637_v44 = vrot.slane %v8602_v49, 5  ;;  %v13555_v53 = vld [vmem:[#allocation3 + $0x28] sm:$0xf] }
 0x8c4   : > { %v9362_v18 = vor.u32 %v9361_v42, %v9357_v63  ;;  %v18639_v21 = vrot.slane %v8606_v1, 4  ;;  %v8177_v3 = vshrl.u32 %v7886_v48, 16  ;;  %v8180_v0 = vshll.u32 %v7886_v48, 16  ;;  %v8917_v5 = vld [vmem:[#allocation3 + $0xa8] sm:$0xe] }
 0x8c5   : > { %v9358_v41 = vsel %vm13904_vm2, %v9353_v2, %v9357_v63  ;;  %v8578_v16 = vshll.u32 %v13555_v53, 16  ;;  %v8186_v42 = vshll.u32 %v18459_v6, 16  ;;  %v8582_v49 = vshrl.u32 %v13555_v53, 16  ;;  %v8517_v37 = vld [vmem:[#allocation3 + $0xb0] sm:$0x1] }
 0x8c6   : > { %v9363_v17 = vrot.slane %v9362_v18, 4  ;;  %v8179_v1 = vrot.slane %v8177_v3, 4  ;;  %v8182_v57 = vrot.slane %v8180_v0, 5  ;;  %v8190_v48 = vshrl.u32 %v18459_v6, 16  ;;  %v18656_v18 = vld [vmem:[#allocation3 + $0xa4] sm:$0x1] }
 0x8c7   : > { %v18626_v32 = vpop.f32.mrb[116].mxu1  ;;  %v18651_v54 = vrot.slane %v8599_v52, 4  ;;  %v8188_v63 = vrot.slane %v8186_v42, 5  ;;  %v8196_v2 = vshll.u32 %v18443_v15, 16  ;;  %v12262_v3 = vrot.slane %v8917_v5, 9  ;;  %v18665_v42 = vpop.permute.xlu1 %9893 }
 0x8c8   : > { %20064 = vst [vmem:[#allocation44_spill] sm:$0xff] %v18626_v32  ;;  %v18635_v60 = vpop.f32.mrb[117].mxu1  ;;  %v8192_v43 = vrot.slane %v8190_v48, 4  ;;  %v8309_v0 = vld [vmem:[#allocation3 + $0x9c] sm:$0xe]  ;;  %v18662_v52 = vrot.slane %v8578_v16, 5  ;;  %v18670_v5 = vpop.permute.xlu0 %10211 }
 0x8c9   : > { %20065 = vst [vmem:[#allocation19_spill] sm:$0xff] %v18635_v60  ;;  %v18643_v10 = vpop.f32.mrb[118].mxu1  ;;  %v8183_v60 = vor.u32 %v8182_v57, %v8179_v1  ;;  %20068 = vst [vmem:[#allocation15_spill] sm:$0xff] %v18665_v42  ;;  %v8584_v15 = vrot.slane %v8582_v49, 4  ;;  %v18668_v1 = vld [vmem:[#allocation3 + $0xa0] sm:$0xf] }
 0x8ca   : > { %20066 = vst [vmem:[#allocation13_spill] sm:$0xff] %v18643_v10  ;;  %v18648_v58 = vpop.f32.mrb[119].mxu1  ;;  %v9368_v10 = vsel %vm13904_vm2, %v9363_v17, %v9367_v62  ;;  %v9064_v62 = vrot.slane %v8517_v37, 5  ;;  %v8916_v17 = vld [vmem:[#allocation3 + $0x9c] sm:$0xe]  ;;  %20069 = vst [vmem:[#allocation27_spill] sm:$0xff] %v18670_v5 }
 0x8cb   : > { %20067 = vst [vmem:[#allocation35_spill] sm:$0xff] %v18648_v58  ;;  %v12402_v32 = vcombine.low %v9358_v41, %v9368_v10  ;;  %v18658_v58 = vld [vmem:[#allocation3 + $0xac] sm:$0xf]  ;;  %v8184_v57 = vrot.slane %v8183_v60, 4  ;;  %v8193_v10 = vor.u32 %v8192_v43, %v8188_v63  ;;  %v8198_v41 = vrot.slane %v8196_v2, 5 }
 0x8cc   : > { %v9061_v53 = vrot.slane %v18658_v58, 5  ;;  %v12246_v6 = vrot.slane %v8309_v0, 9  ;;  %v8453_v37 = vrot.slane %v18668_v1, 5  ;;  %v8516_v50 = vld [vmem:[#allocation3 + $0xa4] sm:$0x1]  ;;  %v8456_v60 = vrot.slane %v18656_v18, 5 }
 0x8cd   : > { %10299 = vrot.lane.b32.xlu0 %v12402_v32, %s13682_s27  ;;  %v8189_v7 = vsel %vm13904_vm2, %v8184_v57, %v8188_v63  ;;  %v8194_v32 = vrot.slane %v8193_v10, 4  ;;  %v12261_v43 = vrot.slane %v8916_v17, 9  ;;  %v13556_v49 = vld [vmem:[#allocation3 + $0x2c] sm:$0x1]  ;;  %v8585_v0 = vor.u32 %v8584_v15, %v18662_v52  ;;  %v18684_v63 = vld [vmem:[#allocation3 + $0x10] sm:$0xf] }
 0x8ce   : > { %v9062_v16 = vsel %vm14431_vm15, %v12262_v3, %v9061_v53  ;;  %v9063_v48 = vrot.slane %v9061_v53, 4  ;;  %v8588_v2 = vshll.u32 %v13556_v49, 16  ;;  %v8455_v42 = vrot.slane %v8453_v37, 4  ;;  %v18686_v57 = vld [vmem:[#allocation3 + $0xc] sm:$0xf]  ;;  %v20071_v15 = vld [vmem:[#allocation17_spill] sm:$0xff] }
 0x8cf   : > { %v9054_v3 = vrot.slane %v18602_v13, 5  ;;  %v8199_v53 = vsel %vm13904_vm2, %v8194_v32, %v8198_v41  ;;  %v9057_v28 = vrot.slane %v8516_v50, 5  ;;  %v18692_v13 = vpop.permute.xlu1 %9891  ;;  %v8575_v49 = vor.u32 %v20071_v15, %v18343_v27  ;;  %v8498_v41 = vld [vmem:[#allocation3 + $0xa8] sm:$0xf]  ;;  %v18703_v32 = vpop.permute.xlu0 %10287  ;;  %v13559_v19 = vld [vmem:[#allocation3 + $0xa0] sm:$0xf] }
 0x8d0   : > { %v9065_v22 = vsel %vm14431_vm15, %v9063_v48, %v9064_v62  ;;  %v12308_v10 = vcombine.low %v8189_v7, %v8199_v53  ;;  %20070 = vst [vmem:[#allocation37_spill] sm:$0xff] %v18692_v13  ;;  %v8454_v50 = vsel %vm14431_vm15, %v12246_v6, %v8453_v37  ;;  %v9424_v7 = vor.u32 %v18616_v33, %v18613_v31  ;;  %v20072_v6 = vld [vmem:[#allocation30_spill] sm:$0xff]  ;;  %v18718_v53 = vld [vmem:[#allocation3 + $0xb0] sm:$0x1] }
 0x8d1   : > { %v12374_v14 = vcombine.low %v9062_v16, %v9065_v22  ;;  %v9055_v62 = vsel %vm14431_vm15, %v12261_v43, %v9054_v3  ;;  %v9056_v48 = vrot.slane %v9054_v3, 4  ;;  %v8457_v22 = vsel %vm14431_vm15, %v8455_v42, %v8456_v60  ;;  %v7892_v16 = vld [vmem:[#allocation3 + $0xa8] sm:$0xf]  ;;  %v18711_v3 = vld [vmem:[#allocation3 + $0xac] sm:$0xf] }
 0x8d2   : > { %9823 = vrot.lane.b32.xlu1 %v12308_v10, %s19809_s22  ;;  %v9431_v43 = vshrl.u32 %v18372_v35, 16  ;;  %v9437_v37 = vshll.u32 %v20072_v6, 16  ;;  %v18713_v42 = vrot.slane %v8585_v0, 4  ;;  %v18715_v60 = vrot.slane %v8588_v2, 5  ;;  %v13560_v5 = vld [vmem:[#allocation3 + $0xa4] sm:$0x1] }
 0x8d3   : > { %10131 = vrot.lane.b32.xlu0 %v12374_v14, %s19809_s22  ;;  %v9058_v27 = vsel %vm14431_vm15, %v9056_v48, %v9057_v28  ;;  %v9427_v14 = vshll.u32 %v18372_v35, 16  ;;  %v12342_v33 = vcombine.low %v8498_v41, %v18658_v58  ;;  %v12326_v10 = vcombine.low %v8454_v50, %v8457_v22  ;;  %v7890_v41 = vld [vmem:[#allocation3 + $0x9c] sm:$0xf] }
 0x8d4   : > { %v12373_v31 = vcombine.low %v9055_v62, %v9058_v27  ;;  %v9425_v15 = vrot.slane %v9424_v7, 4  ;;  %v9433_v48 = vrot.slane %v9431_v43, 4  ;;  %v8249_v35 = vshrl.u32 %v7892_v16, 16  ;;  %v18731_v7 = vpop.permute.xlu1 %9991 }
 0x8d5   : > { %v9429_v28 = vrot.slane %v9427_v14, 5  ;;  %v8252_v6 = vshll.u32 %v7892_v16, 16  ;;  %v8258_v0 = vshll.u32 %v18711_v3, 16  ;;  %v8262_v2 = vshrl.u32 %v18711_v3, 16  ;;  %20075 = vst [vmem:[#allocation30_spill] sm:$0xff] %v18731_v7 }
 0x8d6   : > { %9907 = vrot.lane.b32.xlu1 %v12326_v10, %s19810_s29  ;;  %v9439_v62 = vrot.slane %v9437_v37, 5  ;;  %v8268_v50 = vshll.u32 %v18718_v53, 16  ;;  %v9400_v22 = vor.u32 %v18624_v56, %v18622_v45  ;;  %v8251_v16 = vrot.slane %v8249_v35, 4 }
 0x8d7   : > { %10129 = vrot.lane.b32.xlu0 %v12373_v31, %s19809_s22  ;;  %v9434_v58 = vor.u32 %v9433_v48, %v9429_v28  ;;  %v8254_v14 = vrot.slane %v8252_v6, 5  ;;  %v8260_v43 = vrot.slane %v8258_v0, 5  ;;  %v8264_v31 = vrot.slane %v8262_v2, 4 }
 0x8d8   : > { %v18720_v17 = vpop.f32.mrb[120].mxu1  ;;  %v9430_v37 = vsel %vm13904_vm2, %v9425_v15, %v9429_v28  ;;  %v8270_v48 = vrot.slane %v8268_v50, 5  ;;  %v9403_v45 = vshll.u32 %v13559_v19, 16  ;;  %v9407_v7 = vshrl.u32 %v13559_v19, 16 }
 0x8d9   : > { %20073 = vst [vmem:[#allocation22_spill] sm:$0xff] %v18720_v17  ;;  %v18725_v13 = vpop.f32.mrb[121].mxu1  ;;  %v18735_v17 = vpop.permute.xlu0 %10119  ;;  %v9435_v10 = vrot.slane %v9434_v58, 4  ;;  %v8255_v56 = vor.u32 %v8254_v14, %v8251_v16  ;;  %v8265_v29 = vor.u32 %v8264_v31, %v8260_v43  ;;  %v9401_v6 = vrot.slane %v9400_v22, 4 }
 0x8da   : > { %20074 = vst [vmem:[#allocation17_spill] sm:$0xff] %v18725_v13  ;;  %v18733_v27 = vpop.f32.mrb[122].mxu1  ;;  %20077 = vst [vmem:[#allocation50_spill] sm:$0xff] %v18735_v17  ;;  %10003 = vrot.lane.b32.xlu1 %v12342_v33, %s13682_s27  ;;  %v9405_v0 = vrot.slane %v9403_v45, 5  ;;  %v8225_v2 = vshrl.u32 %v7890_v41, 16  ;;  %v9409_v28 = vrot.slane %v9407_v7, 4  ;;  %v8591_v19 = vsel %vm13904_vm2, %v18713_v42, %v18715_v60  ;;  %v18748_v16 = vpop.permute.xlu1 %9813 }
 0x8db   : > { %20076 = vst [vmem:[#allocation49_spill] sm:$0xff] %v18733_v27  ;;  %v18737_v13 = vpop.f32.mrb[123].mxu1  ;;  %v9413_v27 = vshll.u32 %v13560_v5, 16  ;;  %v9440_v35 = vsel %vm13904_vm2, %v9435_v10, %v9439_v62  ;;  %v8256_v17 = vrot.slane %v8255_v56, 4  ;;  %v8266_v15 = vrot.slane %v8265_v29, 4 }
 0x8dc   : > { %20078 = vst [vmem:[#allocation51_spill] sm:$0xff] %v18737_v13  ;;  %v12405_v13 = vcombine.low %v9430_v37, %v9440_v35  ;;  %v8576_v58 = vrot.slane %v8575_v49, 4  ;;  %v8227_v5 = vrot.slane %v8225_v2, 4  ;;  %v9410_v29 = vor.u32 %v9409_v28, %v9405_v0  ;;  %v20081_v35 = vld [vmem:[#allocation16_spill] sm:$0xff]  ;;  %v20083_v28 = vld [vmem:[#allocation31_spill] sm:$0xff] }
 0x8dd   : > { %v9415_v50 = vrot.slane %v9413_v27, 5  ;;  %v8261_v33 = vsel %vm13904_vm2, %v8256_v17, %v8260_v43  ;;  %v8271_v62 = vsel %vm13904_vm2, %v8266_v15, %v8270_v48  ;;  %v8228_v22 = vshll.u32 %v7890_v41, 16  ;;  %v18755_v49 = vpop.permute.xlu0 %10117 }
 0x8de   : > { %10305 = vrot.lane.b32.xlu0 %v12405_v13, %s13682_s27  ;;  %v12311_v7 = vcombine.low %v8261_v33, %v8271_v62  ;;  %v8234_v14 = vshll.u32 %v18668_v1, 16  ;;  %v8238_v42 = vshrl.u32 %v18668_v1, 16  ;;  %v8244_v60 = vshll.u32 %v18656_v18, 16 }
 0x8df   : > { %v20079_v13 = vcombine.low %v18686_v57, %v18684_v63  ;;  %v9406_v27 = vsel %vm13904_vm2, %v9401_v6, %v9405_v0  ;;  %v9411_v43 = vrot.slane %v9410_v29, 4  ;;  %v8230_v41 = vrot.slane %v8228_v22, 5  ;;  %v8310_v6 = vld [vmem:[#allocation3 + $0xa8] sm:$0xe]  ;;  %v18781_v0 = vpop.permute.xlu1 %9989 }
 0x8e0   : > { %v20080_v31 = vor.u32 %v18639_v21, %v18637_v44  ;;  %v8581_v1 = vsel %vm13904_vm2, %v8576_v58, %v18662_v52  ;;  %9829 = vrot.lane.b32.xlu1 %v12311_v7, %s19809_s22  ;;  %v8236_v18 = vrot.slane %v8234_v14, 5  ;;  %v8240_v10 = vrot.slane %v8238_v42, 4 }
 0x8e1   : > { %v10366_v17 = vsel %vm3549_vm14, %v20079_v13, %v18433_v40  ;;  %v12347_v63 = vcombine.low %v8581_v1, %v8591_v19  ;;  %v9416_v40 = vsel %vm13904_vm2, %v9411_v43, %v9415_v50  ;;  %v8231_v57 = vor.u32 %v8230_v41, %v8227_v5  ;;  %v20084_v50 = vld [vmem:[#allocation28_spill] sm:$0xff]  ;;  %v20089_v41 = vld [vmem:[#allocation14_spill] sm:$0xff] }
 0x8e2   : > { %v8610_v37 = vrot.slane %v20080_v31, 4  ;;  %v10573_v48 = vsel %vm6410_vm0, %v18620_v11, %v18520_v26  ;;  %v12404_v45 = vcombine.low %v9406_v27, %v9416_v40  ;;  %v8241_v21 = vor.u32 %v8240_v10, %v8236_v18  ;;  %v18789_v11 = vpop.permute.xlu0 %10217  ;;  %v9107_v13 = vld [vmem:[#allocation3 + $0xb4] sm:$0xf]  ;;  %v18826_v40 = vld [vmem:[#allocation3 + $0x6c] sm:$0xf] }
 0x8e3   : > { %v8246_v56 = vrot.slane %v8244_v60, 5  ;;  %10849 = vmatprep.mubr.bf16.mxu0 %v10573_v48  ;;  %v10412_v52 = vsel %vm1172_vm3, %v10366_v17, %v20081_v35  ;;  %v20082_v2 = vshll.u32 %v18630_v46, 16  ;;  %v10497_v58 = vsel %vm3549_vm14, %v12347_v63, %v20083_v28  ;;  %20085 = vst [vmem:[#allocation16_spill] sm:$0xff] %v18789_v11 }
 0x8e4   : > { %v8232_v19 = vrot.slane %v8231_v57, 4  ;;  %v10445_v26 = vsel %vm6410_vm0, %v10412_v52, %v20084_v50  ;;  %v20086_v5 = vshrl.u32 %v18582_v39, 16  ;;  %v20087_v62 = vshll.u32 %v18582_v39, 16  ;;  %10303 = vrot.lane.b32.xlu0 %v12404_v45, %s13682_s27  ;;  %v18809_v39 = vld [vmem:[#allocation3 + $0xb8] sm:$0xf] }
 0x8e5   : > { %v8614_v15 = vrot.slane %v20082_v2, 5  ;;  %v8668_v46 = vshll.u32 %v18606_v23, 16  ;;  %v8242_v22 = vrot.slane %v8241_v21, 4  ;;  %10850 = vmatmul.mubr.bf16.gmra.mrb[80].mxu0 %v10445_v26  ;;  %v20088_v7 = vshrl.u32 %v18606_v23, 16  ;;  %v13563_v57 = vld [vmem:[#allocation3 + $0x18] sm:$0xf] }
 0x8e6   : > { %v18793_v33 = vrot.slane %v20086_v5, 4  ;;  %v18797_v29 = vrot.slane %v20087_v62, 5  ;;  %v8237_v60 = vsel %vm13904_vm2, %v8232_v19, %v8236_v18  ;;  %v12247_v17 = vrot.slane %v8310_v6, 9  ;;  %v9109_v21 = vld [vmem:[#allocation3 + $0xc0] sm:$0xf]  ;;  %v18837_v6 = vpop.permute.xlu0 %10293 }
 0x8e7   : > { %v18803_v14 = vrot.slane %v20088_v7, 4  ;;  %v8615_v42 = vsel %vm13904_vm2, %v8610_v37, %v8614_v15  ;;  %v8605_v27 = vsel %vm13904_vm2, %v18651_v54, %v18637_v44  ;;  %v8247_v23 = vsel %vm13904_vm2, %v8242_v22, %v8246_v56  ;;  %v13562_v44 = vld [vmem:[#allocation3 + $0x1c] sm:$0xf]  ;;  %v18830_v56 = vpop.permute.xlu1 %9811  ;;  %v18835_v52 = vld [vmem:[#allocation3 + $0xc4] sm:$0xf]  ;;  %v20090_v7 = vld [vmem:[#allocation36_spill] sm:$0xff] }
 0x8e8   : > { %v12390_v43 = vcombine.low %v9107_v13, %v18809_v39  ;;  %v10542_v31 = vsel %vm1172_vm3, %v10497_v58, %v20089_v41  ;;  %v12310_v37 = vcombine.low %v8237_v60, %v8247_v23  ;;  %v8460_v18 = vrot.slane %v18711_v3, 5  ;;  %v13564_v2 = vld [vmem:[#allocation3 + $0x4c] sm:$0xf]  ;;  %v13565_v19 = vld [vmem:[#allocation3 + $0x40] sm:$0xf]  ;;  %v20091_v60 = vld [vmem:[#allocation21_spill] sm:$0xff] }
 0x8e9   : > { %v10576_v1 = vsel %vm6410_vm0, %v10542_v31, %v18445_v59  ;;  %v8463_v10 = vrot.slane %v18718_v53, 5  ;;  %v18824_v63 = vrot.slane %v8668_v46, 5  ;;  %v12283_v48 = vcombine.low %v13563_v57, %v13562_v44  ;;  %v8918_v22 = vld [vmem:[#allocation3 + $0xb4] sm:$0xe] }
 0x8ea   : > { %v12348_v45 = vcombine.low %v8605_v27, %v8615_v42  ;;  %10227 = vrot.lane.b32.xlu0 %v12390_v43, %s19810_s29  ;;  %10857 = vmatprep.mubr.bf16.mxu0 %v10576_v1  ;;  %v9442_v59 = vshrl.u32 %v9107_v13, 16  ;;  %v9445_v3 = vshll.u32 %v9107_v13, 16  ;;  %v8461_v53 = vsel %vm14431_vm15, %v12247_v17, %v8460_v18  ;;  %v18854_v1 = vld [vmem:[#allocation3 + $0xbc] sm:$0x1] }
 0x8eb   : > { %9827 = vrot.lane.b32.xlu1 %v12310_v37, %s19809_s22  ;;  %v8462_v35 = vrot.slane %v8460_v18, 4  ;;  %v8650_v15 = vshll.u32 %v13564_v2, 16  ;;  %v8654_v28 = vshrl.u32 %v13564_v2, 16  ;;  %v12391_v58 = vcombine.low %v9109_v21, %v18835_v52  ;;  %v18852_v37 = vld [vmem:[#allocation3 + $0xb4] sm:$0xf]  ;;  %20093 = vst [vmem:[#allocation28_spill] sm:$0xff] %v18854_v1 }
 0x8ec   : > { %v8626_v50 = vshll.u32 %v13565_v19, 16  ;;  %v9466_v5 = vshrl.u32 %v9109_v21, 16  ;;  %v9469_v62 = vshll.u32 %v9109_v21, 16  ;;  %v8630_v46 = vshrl.u32 %v13565_v19, 16  ;;  %20092 = vst [vmem:[#allocation31_spill] sm:$0xff] %v18852_v37 }
 0x8ed   : > { %v8464_v26 = vsel %vm14431_vm15, %v8462_v35, %v8463_v10  ;;  %v10369_v42 = vsel %vm3549_vm14, %v12283_v48, %v20090_v7  ;;  %v18846_v13 = vsel %vm3549_vm14, %v12348_v45, %v20091_v60  ;;  %v9455_v17 = vshrl.u32 %v18809_v39, 16  ;;  %v8311_v48 = vld [vmem:[#allocation3 + $0xb4] sm:$0xe]  ;;  %v18862_v45 = vpop.permute.xlu1 %9897  ;;  %v13568_v19 = vld [vmem:[#allocation3 + $0x44] sm:$0x1] }
 0x8ee   : > { %v12327_v27 = vcombine.low %v8461_v53, %v8464_v26  ;;  %10229 = vrot.lane.b32.xlu0 %v12391_v58, %s19810_s29  ;;  %v9444_v23 = vrot.slane %v9442_v59, 4  ;;  %v9447_v43 = vrot.slane %v9445_v3, 5  ;;  %v18850_v41 = vrot.slane %v8626_v50, 5  ;;  %20094 = vst [vmem:[#allocation14_spill] sm:$0xff] %v18862_v45  ;;  %v18868_v3 = vld [vmem:[#allocation3 + $0x28] sm:$0xf]  ;;  %v18880_v58 = vpop.permute.xlu0 %10215 }
 0x8ef   : > { %v8632_v31 = vrot.slane %v8630_v46, 4  ;;  %v18856_v18 = vrot.slane %v8650_v15, 5  ;;  %v18858_v10 = vrot.slane %v8654_v28, 4  ;;  %v12263_v57 = vrot.slane %v8918_v22, 9  ;;  %v18870_v53 = vld [vmem:[#allocation3 + $0x24] sm:$0xf] }
 0x8f0   : > { %9909 = vrot.lane.b32.xlu1 %v12327_v27, %s19810_s29  ;;  %v18864_v21 = vrot.slane %v9466_v5, 4  ;;  %v18866_v59 = vrot.slane %v9469_v62, 5  ;;  %v8623_v2 = vor.u32 %v18580_v4, %v18572_v51  ;;  %v18876_v15 = vld [vmem:[#allocation3 + $0xb8] sm:$0xf]  ;;  %v18878_v28 = vld [vmem:[#allocation3 + $0xbc] sm:$0x1] }
 0x8f1   : > { %20095 = vst [vmem:[#allocation36_spill] sm:$0xff] %v18876_v15  ;;  %v8636_v50 = vshll.u32 %v13568_v19, 16  ;;  %v12343_v26 = vcombine.low %v18852_v37, %v18876_v15  ;;  %v9068_v5 = vrot.slane %v18876_v15, 5  ;;  %v9071_v62 = vrot.slane %v18854_v1, 5  ;;  %v18886_v46 = vld [vmem:[#allocation3 + $0xb8] sm:$0xf] }
 0x8f2   : > { %20096 = vst [vmem:[#allocation21_spill] sm:$0xff] %v18886_v46  ;;  %v8633_v22 = vor.u32 %v8632_v31, %v18850_v41  ;;  %v20097_v51 = vld [vmem:[#allocation26_spill] sm:$0xff]  ;;  %v12248_v7 = vrot.slane %v8311_v48, 9  ;;  %v8467_v60 = vrot.slane %v18886_v46, 5  ;;  %v8470_v35 = vrot.slane %v18878_v28, 5 }
 0x8f3   : > { %v10414_v4 = vsel %vm1172_vm3, %v10369_v42, %v20097_v51  ;;  %v9069_v27 = vsel %vm14431_vm15, %v12263_v57, %v9068_v5  ;;  %v9070_v19 = vrot.slane %v9068_v5, 4  ;;  %v18898_v44 = vrot.slane %v8623_v2, 4  ;;  %v9126_v48 = vld [vmem:[#allocation3 + $0xbc] sm:$0x1]  ;;  %v9526_v1 = vld [vmem:[#allocation3 + $0xb4] sm:$0xe]  ;;  %v18909_v2 = vpop.permute.xlu1 %9895 }
 0x8f4   : > { %10005 = vrot.lane.b32.xlu1 %v12343_v26, %s13682_s27  ;;  %v10448_v54 = vsel %vm6410_vm0, %v10414_v4, %v18409_v9  ;;  %v8468_v42 = vsel %vm14431_vm15, %v12248_v7, %v8467_v60  ;;  %v8469_v31 = vrot.slane %v8467_v60, 4  ;;  %v9448_v51 = vor.u32 %v9447_v43, %v9444_v23  ;;  %v18907_v4 = vld [vmem:[#allocation3 + $0xb4] sm:$0xf]  ;;  %v18913_v23 = vpop.permute.xlu0 %10291 }
 0x8f5   : > { %10858 = vmatmul.mubr.bf16.gmra.mrb[84].mxu0 %v10448_v54  ;;  %v18902_v26 = vrot.slane %v8636_v50, 5  ;;  %v9072_v57 = vsel %vm14431_vm15, %v9070_v19, %v9071_v62  ;;  %v9451_v5 = vshll.u32 %v18809_v39, 16  ;;  %v9457_v9 = vrot.slane %v9455_v17, 4  ;;  %20098 = vst [vmem:[#allocation26_spill] sm:$0xff] %v18907_v4 }
 0x8f6   : > { %v12375_v54 = vcombine.low %v9069_v27, %v9072_v57  ;;  %v8471_v7 = vsel %vm14431_vm15, %v8469_v31, %v8470_v35  ;;  %v9449_v60 = vrot.slane %v9448_v51, 4  ;;  %v9461_v15 = vshll.u32 %v9126_v48, 16 }
 0x8f7   : > { %v8634_v43 = vrot.slane %v8633_v22, 4  ;;  %v12328_v50 = vcombine.low %v8468_v42, %v8471_v7  ;;  %v9453_v37 = vrot.slane %v9451_v5, 5  ;;  %v12278_v45 = vrot.slane %v9526_v1, 9  ;;  %v18931_v7 = vld [vmem:[#allocation3 + $0xc8] sm:$0x1] }
 0x8f8   : > { %10133 = vrot.lane.b32.xlu0 %v12375_v54, %s19809_s22  ;;  %v9463_v62 = vrot.slane %v9461_v15, 5  ;;  %v9670_v17 = vrot.slane %v18809_v39, 5  ;;  %v9673_v19 = vrot.slane %v9126_v48, 5  ;;  %v8273_v11 = vshrl.u32 %v18907_v4, 16  ;;  %v18927_v54 = vpop.permute.xlu1 %9995 }
 0x8f9   : > { %9911 = vrot.lane.b32.xlu1 %v12328_v50, %s19810_s29  ;;  %v9454_v35 = vsel %vm13904_vm2, %v9449_v60, %v9453_v37  ;;  %v9458_v27 = vor.u32 %v9457_v9, %v9453_v37  ;;  %v8276_v31 = vshll.u32 %v18907_v4, 16  ;;  %v8282_v22 = vshll.u32 %v18886_v46, 16  ;;  %v18936_v60 = vpop.permute.xlu0 %10123 }
 0x8fa   : > { %v9671_v1 = vsel %vm14431_vm15, %v12278_v45, %v9670_v17  ;;  %v9672_v42 = vrot.slane %v9670_v17, 4  ;;  %v8275_v15 = vrot.slane %v8273_v11, 4  ;;  %v8286_v39 = vshrl.u32 %v18886_v46, 16 }
 0x8fb   : > { %v9459_v48 = vrot.slane %v9458_v27, 4  ;;  %v8278_v51 = vrot.slane %v8276_v31, 5  ;;  %v8284_v57 = vrot.slane %v8282_v22, 5  ;;  %v8292_v5 = vshll.u32 %v18878_v28, 16 }
 0x8fc   : > { %v9674_v37 = vsel %vm14431_vm15, %v9672_v42, %v9673_v19  ;;  %v8288_v9 = vrot.slane %v8286_v39, 4  ;;  %v9472_v45 = vor.u32 %v18866_v59, %v18864_v21  ;;  %v9475_v11 = vshll.u32 %v18835_v52, 16 }
 0x8fd   : > { %v9464_v50 = vsel %vm13904_vm2, %v9459_v48, %v9463_v62  ;;  %v12422_v17 = vcombine.low %v9671_v1, %v9674_v37  ;;  %v8279_v28 = vor.u32 %v8278_v51, %v8275_v15  ;;  %v8294_v27 = vrot.slane %v8292_v5, 5  ;;  %v20100_v62 = vld [vmem:[#allocation24_spill] sm:$0xff]  ;;  %v20101_v1 = vld [vmem:[#allocation34_spill] sm:$0xff]  ;;  %v18957_v51 = vld [vmem:[#allocation3 + $0xc8] sm:$0x1] }
 0x8fe   : > { %v12406_v31 = vcombine.low %v9454_v35, %v9464_v50  ;;  %v8289_v22 = vor.u32 %v8288_v9, %v8284_v57  ;;  %v9473_v4 = vrot.slane %v9472_v45, 4  ;;  %v9477_v19 = vrot.slane %v9475_v11, 5  ;;  %v8919_v5 = vld [vmem:[#allocation3 + $0xc0] sm:$0xe]  ;;  %v18965_v11 = vld [vmem:[#allocation3 + $0xc4] sm:$0xf] }
 0x8ff   : > { %v8639_v42 = vsel %vm13904_vm2, %v8634_v43, %v18902_v26  ;;  %13149 = vmatmul.mubr.msk.bf16.gmra.mrb[136].mxu1 %vm3549_vm14, %v12422_v17  ;;  %v8280_v21 = vrot.slane %v8279_v28, 4  ;;  %v20099_v59 = vshrl.u32 %v18835_v52, 16  ;;  %v9485_v46 = vshll.u32 %v18931_v7, 16 }
 0x900   : > { %v8647_v15 = vor.u32 %v20101_v1, %v20100_v62  ;;  %v8657_v35 = vor.u32 %v18858_v10, %v18856_v18  ;;  %v20102_v48 = vcombine.low %v18870_v53, %v18868_v3  ;;  %10307 = vrot.lane.b32.xlu0 %v12406_v31, %s13682_s27  ;;  %v8290_v43 = vrot.slane %v8289_v22, 4  ;;  %v7273_v3 = vld [vmem:[#allocation3 + $0xcc] sm:$0x1]  ;;  %v9527_v62 = vld [vmem:[#allocation3 + $0xc0] sm:$0xe] }
 0x901   : > { %v9481_v39 = vrot.slane %v20099_v59, 4  ;;  %v8629_v37 = vsel %vm13904_vm2, %v18898_v44, %v18850_v41  ;;  %v8285_v10 = vsel %vm13904_vm2, %v8280_v21, %v8284_v57  ;;  %v9487_v45 = vrot.slane %v9485_v46, 5  ;;  %v18974_v41 = vpop.permute.xlu0 %10121 }
 0x902   : > { %v10372_v26 = vsel %vm3549_vm14, %v20102_v48, %v18633_v36  ;;  %v18967_v36 = vpop.permute.xlu1 %9817  ;;  %v12349_v53 = vcombine.low %v8629_v37, %v8639_v42  ;;  %v8295_v50 = vsel %vm13904_vm2, %v8290_v43, %v8294_v27  ;;  %v9478_v17 = vsel %vm13904_vm2, %v9473_v4, %v9477_v19  ;;  %v13569_v42 = vld [vmem:[#allocation3 + $0x50] sm:$0x1]  ;;  %v18993_v43 = vld [vmem:[#allocation3 + $0xc0] sm:$0xf] }
 0x903   : > { %v9482_v9 = vor.u32 %v9481_v39, %v9477_v19  ;;  %v9075_v28 = vrot.slane %v18965_v11, 5  ;;  %v12312_v44 = vcombine.low %v8285_v10, %v8295_v50  ;;  %v12264_v31 = vrot.slane %v8919_v5, 9  ;;  %v18982_v4 = vld [vmem:[#allocation3 + $0xd0] sm:$0xf] }
 0x904   : > { %v9078_v46 = vrot.slane %v18957_v51, 5  ;;  %v10544_v22 = vsel %vm1172_vm3, %v18846_v13, %v18493_v12  ;;  %v8660_v21 = vshll.u32 %v13569_v42, 16  ;;  %v7274_v27 = vsel %vm17244_vm4, 0, %v7273_v3 }
 0x905   : > { %v9483_v57 = vrot.slane %v9482_v9, 4  ;;  %v9077_v59 = vrot.slane %v9075_v28, 4  ;;  %v10503_v19 = vsel %vm3549_vm14, %v12349_v53, %v18568_v38  ;;  %9831 = vrot.lane.b32.xlu1 %v12312_v44, %s19809_s22  ;;  %7275 = vst [vmem:[#allocation3 + $0xcc] sm:$0x1] %v7274_v27  ;;  %v10579_v12 = vsel %vm6410_vm0, %v10544_v22, %v18703_v32  ;;  %v20103_v38 = vld [vmem:[#allocation23_spill] sm:$0xff] }
 0x906   : > { %v10416_v13 = vsel %vm1172_vm3, %v10372_v26, %v18516_v55  ;;  %v8648_v34 = vrot.slane %v8647_v15, 4  ;;  %v8658_v1 = vrot.slane %v8657_v35, 4  ;;  %10865 = vmatprep.mubr.bf16.mxu0 %v10579_v12  ;;  %v12344_v10 = vcombine.low %v18993_v43, %v18965_v11  ;;  %v19006_v35 = vpop.permute.xlu1 %9993  ;;  %v13570_v9 = vld [vmem:[#allocation3 + $0x64] sm:$0xf] }
 0x907   : > { %v9488_v39 = vsel %vm13904_vm2, %v9483_v57, %v9487_v45  ;;  %v10451_v5 = vsel %vm6410_vm0, %v10416_v13, %v20103_v38  ;;  %v18997_v37 = vpop.f32.mrb[124].mxu1  ;;  %v9076_v32 = vsel %vm14431_vm15, %v12264_v31, %v9075_v28  ;;  %v9079_v55 = vsel %vm14431_vm15, %v9077_v59, %v9078_v46  ;;  %v19014_v28 = vpop.permute.xlu0 %10221  ;;  %v13572_v59 = vld [vmem:[#allocation3 + $0x30] sm:$0xf] }
 0x908   : > { %v12407_v48 = vcombine.low %v9478_v17, %v9488_v39  ;;  %v9503_v15 = vshrl.u32 %v18982_v4, 16  ;;  %10866 = vmatmul.mubr.bf16.gmra.mrb[88].mxu0 %v10451_v5  ;;  %v19008_v26 = vpop.f32.mrb[125].mxu1  ;;  %v8698_v45 = vshll.u32 %v13570_v9, 16  ;;  %v10546_v3 = vsel %vm1172_vm3, %v10503_v19, %v18411_v24  ;;  %v7328_v17 = vld [vmem:[#allocation3 + $0xd4] sm:$0x1] }
 0x909   : > { %v12279_v53 = vrot.slane %v9527_v62, 9  ;;  %v9677_v50 = vrot.slane %v18835_v52, 5  ;;  %v19016_v44 = vpop.f32.mrb[126].mxu1  ;;  %v8716_v57 = vshll.u32 %v18826_v40, 16  ;;  %v8662_v31 = vrot.slane %v8660_v21, 5  ;;  %10007 = vrot.lane.b32.xlu1 %v12344_v10, %s13682_s27 }
 0x90a   : > { %10309 = vrot.lane.b32.xlu0 %v12407_v48, %s13682_s27  ;;  %v8702_v46 = vshrl.u32 %v13570_v9, 16  ;;  %v10582_v22 = vsel %vm6410_vm0, %v10546_v3, %v18641_v61  ;;  %v19022_v42 = vpop.f32.mrb[127].mxu1  ;;  %v13571_v24 = vld [vmem:[#allocation3 + $0x34] sm:$0xf]  ;;  %v12376_v52 = vcombine.low %v9076_v32, %v9079_v55  ;;  %v9680_v39 = vrot.slane %v18931_v7, 5  ;;  %v19041_v55 = vpop.permute.xlu1 %9815 }
 0x90b   : > { %v12285_v27 = vcombine.low %v13572_v59, %v13571_v24  ;;  %10873 = vmatprep.mubr.bf16.mxu0 %v10582_v22  ;;  %v9679_v19 = vrot.slane %v9677_v50, 4  ;;  %v8663_v12 = vsel %vm13904_vm2, %v8658_v1, %v8662_v31  ;;  %v9678_v21 = vsel %vm14431_vm15, %v12279_v53, %v9677_v50  ;;  %v13574_v22 = vld [vmem:[#allocation3 + $0x68] sm:$0x1] }
 0x90c   : > { %v7329_v13 = vsel %vm17252_vm5, 0, %v7328_v17  ;;  %v9499_v61 = vshll.u32 %v18982_v4, 16  ;;  %v8653_v62 = vsel %vm13904_vm2, %v8648_v34, %v18856_v18  ;;  %v9111_v48 = vld [vmem:[#allocation3 + $0xcc] sm:$0xf]  ;;  %v19036_v38 = vrot.slane %v8698_v45, 5  ;;  %v19045_v45 = vpop.permute.xlu0 %10297 }
 0x90d   : > { %v9681_v7 = vsel %vm14431_vm15, %v9679_v19, %v9680_v39  ;;  %7330 = vst [vmem:[#allocation3 + $0xd4] sm:$0x1] %v7329_v13  ;;  %v9505_v1 = vrot.slane %v9503_v15, 4  ;;  %v9490_v5 = vshrl.u32 %v9111_v48, 16  ;;  %v9493_v10 = vshll.u32 %v9111_v48, 16  ;;  %v20105_v13 = vld [vmem:[#allocation42_spill] sm:$0xff] }
 0x90e   : > { %10135 = vrot.lane.b32.xlu0 %v12376_v52, %s19809_s22  ;;  %v12392_v47 = vcombine.low %v9111_v48, %v18982_v4  ;;  %v8704_v32 = vrot.slane %v8702_v46, 4  ;;  %v10375_v18 = vsel %vm3549_vm14, %v12285_v27, %v18563_v30  ;;  %v12350_v34 = vcombine.low %v8653_v62, %v8663_v12  ;;  %v13573_v17 = vld [vmem:[#allocation3 + $0x58] sm:$0xf] }
 0x90f   : > { %v12423_v9 = vcombine.low %v9678_v21, %v9681_v7  ;;  %v9501_v3 = vrot.slane %v9499_v61, 5  ;;  %v9492_v53 = vrot.slane %v9490_v5, 4  ;;  %v9495_v50 = vrot.slane %v9493_v10, 5  ;;  %v13576_v7 = vld [vmem:[#allocation3 + $0x40] sm:$0xf] }
 0x910   : > { %v8671_v15 = vor.u32 %v18824_v63, %v18803_v14  ;;  %v8674_v31 = vshll.u32 %v13573_v17, 16  ;;  %v10506_v46 = vsel %vm3549_vm14, %v12350_v34, %v18537_v20  ;;  %v8708_v24 = vshll.u32 %v13574_v22, 16  ;;  %v20104_v63 = vld [vmem:[#allocation27_spill] sm:$0xff]  ;;  %v13575_v20 = vld [vmem:[#allocation3 + $0x5c] sm:$0x1] }
 0x911   : > { %13152 = vmatprep.mubr.msk.bf16.mxu1 %vm3549_vm14, %v12423_v9  ;;  %v9506_v30 = vor.u32 %v9505_v1, %v9501_v3  ;;  %v8678_v59 = vshrl.u32 %v13573_v17, 16  ;;  %v8705_v27 = vor.u32 %v8704_v32, %v19036_v38  ;;  %v8695_v52 = vor.u32 %v18797_v29, %v18793_v33  ;;  %v13577_v1 = vld [vmem:[#allocation3 + $0x3c] sm:$0xf]  ;;  %v19064_v29 = vpop.permute.xlu1 %9901 }
 0x912   : > { %10231 = vrot.lane.b32.xlu0 %v12392_v47, %s19810_s29  ;;  %v9496_v19 = vor.u32 %v9495_v50, %v9492_v53  ;;  %v8676_v14 = vrot.slane %v8674_v31, 5  ;;  %v10548_v39 = vsel %vm1172_vm3, %v10506_v46, %v20104_v63  ;;  %v8684_v21 = vshll.u32 %v13575_v20, 16  ;;  %v20106_v47 = vld [vmem:[#allocation41_spill] sm:$0xff]  ;;  %v19069_v53 = vpop.permute.xlu0 %10219 }
 0x913   : > { %v8680_v12 = vrot.slane %v8678_v59, 4  ;;  %v10418_v61 = vsel %vm1172_vm3, %v10375_v18, %v20105_v13  ;;  %v12286_v5 = vcombine.low %v13577_v1, %v13576_v7  ;;  %v8672_v10 = vrot.slane %v8671_v15, 4  ;;  %v20109_v7 = vld [vmem:[#allocation46_spill] sm:$0xff] }
 0x914   : > { %v19060_v62 = vld [vmem:[#allocation3 + $0xd4] sm:$0x1]  ;;  %v9497_v48 = vrot.slane %v9496_v19, 4  ;;  %v10454_v33 = vsel %vm6410_vm0, %v10418_v61, %v20106_v47  ;;  %v9507_v32 = vrot.slane %v9506_v30, 4  ;;  %v10585_v18 = vsel %vm6410_vm0, %v10548_v39, %v18913_v23 }
 0x915   : > { %v9509_v34 = vshll.u32 %v19060_v62, 16  ;;  %v8681_v9 = vor.u32 %v8680_v12, %v8676_v14  ;;  %10874 = vmatmul.mubr.bf16.gmra.mrb[92].mxu0 %v10454_v33  ;;  %v8706_v50 = vrot.slane %v8705_v27, 4  ;;  %v8710_v17 = vrot.slane %v8708_v24, 5  ;;  %v19087_v20 = vpop.permute.xlu1 %9899  ;;  %v20110_v33 = vld [vmem:[#allocation38_spill] sm:$0xff] }
 0x916   : > { %v8696_v31 = vrot.slane %v8695_v52, 4  ;;  %v10378_v15 = vsel %vm3549_vm14, %v12286_v5, %v18830_v56  ;;  %10881 = vmatprep.mubr.bf16.mxu0 %v10585_v18  ;;  %v9502_v46 = vsel %vm13904_vm2, %v9497_v48, %v9501_v3  ;;  %v8686_v59 = vrot.slane %v8684_v21, 5  ;;  %v20108_v52 = vld [vmem:[#allocation37_spill] sm:$0xff]  ;;  %v13578_v21 = vld [vmem:[#allocation3 + $0x70] sm:$0xf]  ;;  %v10296_v61 = vpop.permute.xlu0 %10295 }
 0x917   : > { %v9511_v22 = vrot.slane %v9509_v34, 5  ;;  %v8682_v30 = vrot.slane %v8681_v9, 4  ;;  %v20107_v19 = vshrl.u32 %v18826_v40, 16  ;;  %v8718_v23 = vrot.slane %v8716_v57, 5  ;;  %v13580_v9 = vld [vmem:[#allocation3 + $0x4c] sm:$0xf] }
 0x918   : > { %v8677_v27 = vsel %vm13904_vm2, %v8672_v10, %v8676_v14  ;;  %v10420_v3 = vsel %vm1172_vm3, %v10378_v15, %v20108_v52  ;;  %v8711_v40 = vsel %vm13904_vm2, %v8706_v50, %v8710_v17  ;;  %v8701_v57 = vsel %vm13904_vm2, %v8696_v31, %v19036_v38  ;;  %v13579_v10 = vld [vmem:[#allocation3 + $0x74] sm:$0x1]  ;;  %v13581_v18 = vld [vmem:[#allocation3 + $0x48] sm:$0xf]  ;;  %v13582_v52 = vld [vmem:[#allocation3 + $0x58] sm:$0xf] }
 0x919   : > { %v8715_v63 = vrot.slane %v20107_v19, 4  ;;  %v9512_v24 = vsel %vm13904_vm2, %v9507_v32, %v9511_v22  ;;  %v8687_v56 = vsel %vm13904_vm2, %v8682_v30, %v8686_v59  ;;  %v8722_v13 = vshll.u32 %v13578_v21, 16  ;;  %v19105_v30 = vpop.permute.xlu1 %9999  ;;  %v20111_v59 = vld [vmem:[#allocation50_spill] sm:$0xff] }
 0x91a   : > { %v12408_v39 = vcombine.low %v9502_v46, %v9512_v24  ;;  %v12351_v12 = vcombine.low %v8677_v27, %v8687_v56  ;;  %v8726_v14 = vshrl.u32 %v13578_v21, 16  ;;  %v10457_v1 = vsel %vm6410_vm0, %v10420_v3, %v20109_v7 }
 0x91b   : > { %v8719_v5 = vor.u32 %v8718_v23, %v8715_v63  ;;  %v8732_v47 = vshll.u32 %v13579_v10, 16  ;;  %v8724_v38 = vrot.slane %v8722_v13, 5  ;;  %v12287_v50 = vcombine.low %v13581_v18, %v13580_v9  ;;  %v19109_v23 = vpop.permute.xlu0 %10127  ;;  %v13585_v13 = vld [vmem:[#allocation3 + $0x84] sm:$0xf] }
 0x91c   : > { %10311 = vrot.lane.b32.xlu0 %v12408_v39, %s13682_s27  ;;  %v10509_v48 = vsel %vm3549_vm14, %v12351_v12, %v18755_v49  ;;  %v8728_v34 = vrot.slane %v8726_v14, 4  ;;  %v12352_v31 = vcombine.low %v8701_v57, %v8711_v40  ;;  %v13584_v57 = vld [vmem:[#allocation3 + $0x78] sm:$0xf]  ;;  %v8761_v14 = vshrl.u32 %v13585_v13, 16  ;;  %s554_s27 = sand.u32 1, %s13667_s25  }
 0x91d   : > { %10882 = vmatmul.mubr.bf16.gmra.mrb[96].mxu0 %v10457_v1  ;;  %v10550_v32 = vsel %vm1172_vm3, %v10509_v48, %v20110_v33  ;;  %v10381_v15 = vsel %vm3549_vm14, %v12287_v50, %v18748_v16  ;;  %v8720_v46 = vrot.slane %v8719_v5, 4  ;;  %v8734_v22 = vrot.slane %v8732_v47, 5  ;;  %v13583_v16 = vld [vmem:[#allocation3 + $0x54] sm:$0xf]  ;;  %v19124_v48 = vpop.permute.xlu1 %9821  ;;  %v13586_v1 = vld [vmem:[#allocation3 + $0x7c] sm:$0xf] }
 0x91e   : > { %v10588_v17 = vsel %vm6410_vm0, %v10550_v32, %v18837_v6  ;;  %v8729_v49 = vor.u32 %v8728_v34, %v8724_v38  ;;  %v10512_v19 = vsel %vm3549_vm14, %v12352_v31, %v20111_v59  ;;  %v20112_v6 = vld [vmem:[#allocation15_spill] sm:$0xff]  ;;  %v12288_v3 = vcombine.low %v13583_v16, %v13582_v52  ;;  %v20114_v59 = vld [vmem:[#allocation16_spill] sm:$0xff]  ;;  %s11590_s22 = sshll.u32 %s554_s27, 6  ;;  %s19591_s26 = scalar_lea.sflag [#allocation5], %s554_s27 }
 0x91f   : > { %10889 = vmatprep.mubr.bf16.mxu0 %v10588_v17  ;;  %v10552_v24 = vsel %vm1172_vm3, %v10512_v19, %v18880_v58  ;;  %v10422_v27 = vsel %vm1172_vm3, %v10381_v15, %v20112_v6  ;;  %v8725_v39 = vsel %vm13904_vm2, %v8720_v46, %v8724_v38  ;;  %v8737_v58 = vshrl.u32 %v13584_v57, 16  ;;  %v19126_v33 = vpop.permute.xlu0 %10125  ;;  %v20113_v15 = vld [vmem:[#allocation30_spill] sm:$0xff]  ;;  %s556_s29 = scalar_lea.vmem [#allocation4], %s11590_s22 }
 0x920   : > { %v8730_v63 = vrot.slane %v8729_v49, 4  ;;  %v10591_v56 = vsel %vm6410_vm0, %v10552_v24, %v10296_v61  ;;  %v10460_v40 = vsel %vm6410_vm0, %v10422_v27, %v18781_v0  ;;  %v8740_v21 = vshll.u32 %v13584_v57, 16  ;;  %v13587_v0 = vld [vmem:[#allocation3 + $0x88] sm:$0xf]  ;;  %v13588_v27 = vld [vmem:[#allocation3 + $0x64] sm:$0xf] }
 0x921   : > { %v10384_v61 = vsel %vm3549_vm14, %v12288_v3, %v19041_v55  ;;  %v8764_v7 = vshll.u32 %v13585_v13, 16  ;;  %v8746_v5 = vshll.u32 %v13586_v1, 16  ;;  %v8750_v10 = vshrl.u32 %v13586_v1, 16  ;;  %s11512_s23 = sshll.u32 %s556_s29, 4  ;;  %s19584_s23 = int_to_ptr.vmem [resolvable:$true] %s11512_s23 }
 0x922   : > { %v8735_v12 = vsel %vm13904_vm2, %v8730_v63, %v8734_v22  ;;  %v8770_v32 = vshll.u32 %v13587_v0, 16  ;;  %v8774_v38 = vshrl.u32 %v13587_v0, 16  ;;  %v10424_v9 = vsel %vm1172_vm3, %v10384_v61, %v18909_v2  ;;  %v19136_v22 = vpop.permute.xlu1 %9997  ;;  %s13613_s24 = scalar_lea.vmem %s19584_s23, 1024  ;;  %p13620_p0 = scmp.lt.s32.totalorder %s19584_s23, %s13618_s20 }
 0x923   : > { %v12353_v47 = vcombine.low %v8725_v39, %v8735_v12  ;;  %v8739_v55 = vrot.slane %v8737_v58, 4  ;;  %v8742_v18 = vrot.slane %v8740_v21, 5  ;;  %v8763_v50 = vrot.slane %v8761_v14, 4  ;;  %v19144_v24 = vpop.permute.xlu0 %10225  ;;  %v13590_v12 = vld [vmem:[#allocation3 + $0x80] sm:$0x1]  ;;  %p13614_p11 = scmp.ne.s32.totalorder %s19584_s23, %s13613_s24  ;;  %p13621_p1 = scmp.lt.s32.totalorder %s13619_s18, %s13613_s24 }
 0x924   : > { %v8766_v17 = vrot.slane %v8764_v7, 5  ;;  %v19132_v31 = vrot.slane %v8746_v5, 5  ;;  %v8752_v49 = vrot.slane %v8750_v10, 4  ;;  %v10463_v46 = vsel %vm6410_vm0, %v10424_v9, %v20113_v15  ;;  %v13591_v21 = vld [vmem:[#allocation3 + $0x8c] sm:$0x1] }
 0x925   : > { %10890 = vmatmul.mubr.bf16.gmra.mrb[100].mxu0 %v10460_v40  ;;  %v10515_v34 = vsel %vm3549_vm14, %v12353_v47, %v18974_v41  ;;  %v19140_v63 = vrot.slane %v8770_v32, 5  ;;  %v8776_v41 = vrot.slane %v8774_v38, 4  ;;  %v8881_v6 = vshrl.u32 %v18993_v43, 16  ;;  %v20115_v47 = vld [vmem:[#allocation14_spill] sm:$0xff]  ;;  %v9528_v15 = vld [vmem:[#allocation3 + $0xcc] sm:$0xe]  ;;  %p13615_p12 = pnand %p13614_p11, %p13816_p5  ;;  %p13622_p2 = por %p13621_p1, %p13620_p0 }
 0x926   : > { %10897 = vmatprep.mubr.bf16.mxu0 %v10591_v56  ;;  %v10554_v19 = vsel %vm1172_vm3, %v10515_v34, %v20114_v59  ;;  %v13589_v56 = vld [vmem:[#allocation3 + $0x60] sm:$0xf]  ;;  %v8743_v16 = vor.u32 %v8742_v18, %v8739_v55  ;;  %v8884_v3 = vshll.u32 %v18993_v43, 16  ;;  %v8753_v39 = vor.u32 %v8752_v49, %v19132_v31  ;;  %v9820_v7 = vpop.permute.xlu1 %9819  ;;  %v13592_v59 = vld [vmem:[#allocation3 + $0x70] sm:$0xf] }
 0x927   : > { %v10594_v2 = vsel %vm6410_vm0, %v10554_v19, %v19045_v45  ;;  %v12289_v52 = vcombine.low %v13589_v56, %v13588_v27  ;;  %v8756_v40 = vshll.u32 %v13590_v12, 16  ;;  %v8767_v58 = vor.u32 %v8766_v17, %v8763_v50  ;;  %v19154_v0 = vpop.permute.xlu0 %10301  ;;  %v13593_v19 = vld [vmem:[#allocation3 + $0x6c] sm:$0xf]  ;;  %p13616_p13 = pneg %p13615_p12 }
 0x928   : > { %v8777_v45 = vor.u32 %v8776_v41, %v19140_v63  ;;  %v8780_v13 = vshll.u32 %v13591_v21, 16  ;;  %v8883_v14 = vrot.slane %v8881_v6, 4  ;;  %v8744_v61 = vrot.slane %v8743_v16, 4 }
 0x929   : > { %v10387_v57 = vsel %vm3549_vm14, %v12289_v52, %v18967_v36  ;;  %v8886_v1 = vrot.slane %v8884_v3, 5  ;;  %v8754_v5 = vrot.slane %v8753_v39, 4  ;;  %v8758_v10 = vrot.slane %v8756_v40, 5  ;;  %p13623_p3 = pnand %p13622_p2, %p13616_p13 }
 0x92a   : > { %v10426_v43 = vsel %vm1172_vm3, %v10387_v57, %v20115_v47  ;;  %v8768_v38 = vrot.slane %v8767_v58, 4  ;;  %v8778_v36 = vrot.slane %v8777_v45, 4  ;;  %v8782_v34 = vrot.slane %v8780_v13, 5  ;;  %v19179_v52 = vpop.permute.xlu1 %9905 }
 0x92b   : > { %v10466_v9 = vsel %vm6410_vm0, %v10426_v43, %v19006_v35  ;;  %v8890_v50 = vshll.u32 %v18965_v11, 16  ;;  %v8749_v17 = vsel %vm13904_vm2, %v8744_v61, %v19132_v31  ;;  %v12290_v35 = vcombine.low %v13593_v19, %v13592_v59  ;;  %v19181_v16 = vpop.permute.xlu0 %10223 }
 0x92c   : > { %v8773_v6 = vsel %vm13904_vm2, %v8768_v38, %v19140_v63  ;;  %v8783_v27 = vsel %vm13904_vm2, %v8778_v36, %v8782_v34  ;;  %v8900_v31 = vshll.u32 %v18957_v51, 16  ;;  %v8887_v56 = vor.u32 %v8886_v1, %v8883_v14 }
 0x92d   : > { %10898 = vmatmul.mubr.bf16.gmra.mrb[104].mxu0 %v10463_v46  ;;  %v8759_v46 = vsel %vm13904_vm2, %v8754_v5, %v8758_v10  ;;  %v8892_v41 = vrot.slane %v8890_v50, 5  ;;  %v12280_v39 = vrot.slane %v9528_v15, 9  ;;  %v9684_v12 = vrot.slane %v18982_v4, 5  ;;  %v13594_v10 = vld [vmem:[#allocation3 + $0x90] sm:$0xf] }
 0x92e   : > { %10905 = vmatprep.mubr.bf16.mxu0 %v10594_v2  ;;  %v8894_v2 = vshrl.u32 %v18965_v11, 16  ;;  %v9687_v11 = vrot.slane %v19060_v62, 5  ;;  %v10390_v40 = vsel %vm3549_vm14, %v12290_v35, %v9820_v7  ;;  %v8888_v57 = vrot.slane %v8887_v56, 4  ;;  %v19200_v38 = vpop.permute.xlu1 %9903  ;;  %v13597_v35 = vld [vmem:[#allocation3 + $0xa0] sm:$0xf] }
 0x92f   : > { %v8902_v58 = vrot.slane %v8900_v31, 5  ;;  %v9685_v45 = vsel %vm14431_vm15, %v12280_v39, %v9684_v12  ;;  %v9686_v51 = vrot.slane %v9684_v12, 4  ;;  %v12354_v21 = vcombine.low %v8749_v17, %v8759_v46  ;;  %v13596_v17 = vld [vmem:[#allocation3 + $0x94] sm:$0xf] }
 0x930   : > { %v8896_v3 = vrot.slane %v8894_v2, 4  ;;  %v12355_v13 = vcombine.low %v8773_v6, %v8783_v27  ;;  %v8893_v14 = vsel %vm13904_vm2, %v8888_v57, %v8892_v41  ;;  %v10428_v1 = vsel %vm1172_vm3, %v10390_v40, %v19087_v20  ;;  %v13598_v6 = vld [vmem:[#allocation3 + $0x7c] sm:$0xf]  ;;  %v13599_v27 = vld [vmem:[#allocation3 + $0x78] sm:$0xf] }
 0x931   : > { %v19156_v32 = vpop.f32.mrb[128].mxu1  ;;  %v9688_v4 = vsel %vm14431_vm15, %v9686_v51, %v9687_v11  ;;  %v10518_v62 = vsel %vm3549_vm14, %v12354_v21, %v18936_v60  ;;  %v8785_v47 = vshrl.u32 %v13594_v10, 16  ;;  %v8788_v34 = vshll.u32 %v13594_v10, 16  ;;  %v13595_v60 = vld [vmem:[#allocation3 + $0x9c] sm:$0xf] }
 0x932   : > { %v19160_v55 = vpop.f32.mrb[129].mxu1  ;;  %v8897_v63 = vor.u32 %v8896_v3, %v8892_v41  ;;  %v10521_v7 = vsel %vm3549_vm14, %v12355_v13, %v19126_v33  ;;  %v12424_v5 = vcombine.low %v9685_v45, %v9688_v4  ;;  %v10556_v43 = vsel %vm1172_vm3, %v10518_v62, %v19069_v53  ;;  %v13600_v45 = vld [vmem:[#allocation3 + $0x98] sm:$0x1]  ;;  %v13601_v4 = vld [vmem:[#allocation3 + $0xa4] sm:$0x1] }
 0x933   : > { %v19162_v18 = vpop.f32.mrb[130].mxu1  ;;  %v8812_v20 = vshll.u32 %v13595_v60, 16  ;;  %v8794_v15 = vshll.u32 %v13596_v17, 16  ;;  %v10469_v53 = vsel %vm6410_vm0, %v10428_v1, %v18927_v54  ;;  %v10558_v46 = vsel %vm1172_vm3, %v10521_v7, %v19014_v28  ;;  %v19216_v28 = vpop.permute.xlu1 %9825 }
 0x934   : > { %v19168_v49 = vpop.f32.mrb[131].mxu1  ;;  %v8898_v61 = vrot.slane %v8897_v63, 4  ;;  %13153 = vmatmul.mubr.msk.bf16.gmra.mrb[140].mxu1 %vm3549_vm14, %v12424_v5  ;;  %v8798_v59 = vshrl.u32 %v13596_v17, 16  ;;  %v10600_v19 = vsel %vm6410_vm0, %v10558_v46, %v19154_v0  ;;  %v8818_v41 = vshll.u32 %v13597_v35, 16 }
 0x935   : > { %10906 = vmatmul.mubr.bf16.gmra.mrb[108].mxu0 %v10466_v9  ;;  %v8809_v9 = vshrl.u32 %v13595_v60, 16  ;;  %v8822_v2 = vshrl.u32 %v13597_v35, 16  ;;  %v12291_v31 = vcombine.low %v13599_v27, %v13598_v6  ;;  %v8787_v56 = vrot.slane %v8785_v47, 4  ;;  %v13602_v60 = vld [vmem:[#allocation3 + $0x88] sm:$0xf] }
 0x936   : > { %v8903_v25 = vsel %vm13904_vm2, %v8898_v61, %v8902_v58  ;;  %v8790_v3 = vrot.slane %v8788_v34, 5  ;;  %v8814_v12 = vrot.slane %v8812_v20, 5  ;;  %v8796_v11 = vrot.slane %v8794_v15, 5 }
 0x937   : > { %v19205_v50 = vcombine.low %v8893_v14, %v8903_v25  ;;  %v8811_v39 = vrot.slane %v8809_v9, 4  ;;  %v10393_v54 = vsel %vm3549_vm14, %v12291_v31, %v19124_v48  ;;  %v8800_v40 = vrot.slane %v8798_v59, 4  ;;  %v10002_v7 = vpop.permute.xlu1 %10001  ;;  %v13603_v9 = vld [vmem:[#allocation3 + $0x84] sm:$0xf] }
 0x938   : > { %v8820_v0 = vrot.slane %v8818_v41, 5  ;;  %v8824_v63 = vrot.slane %v8822_v2, 4  ;;  %v10430_v58 = vsel %vm1172_vm3, %v10393_v54, %v19064_v29  ;;  %v8804_v51 = vshll.u32 %v13600_v45, 16  ;;  %v13604_v54 = vld [vmem:[#allocation3 + $0xa8] sm:$0xf] }
 0x939   : > { %v8791_v21 = vor.u32 %v8790_v3, %v8787_v56  ;;  %v10472_v13 = vsel %vm6410_vm0, %v10430_v58, %v19136_v22  ;;  %v8801_v14 = vor.u32 %v8800_v40, %v8796_v11  ;;  %v8815_v61 = vor.u32 %v8814_v12, %v8811_v39  ;;  %v13605_v40 = vld [vmem:[#allocation3 + $0x94] sm:$0xf]  ;;  %v13607_v45 = vld [vmem:[#allocation3 + $0xac] sm:$0xf] }
 0x93a   : > { %v8825_v48 = vor.u32 %v8824_v63, %v8820_v0  ;;  %v8828_v62 = vshll.u32 %v13601_v4, 16  ;;  %v8806_v5 = vrot.slane %v8804_v51, 5  ;;  %v8836_v58 = vshll.u32 %v13604_v54, 16 }
 0x93b   : > { %v8792_v10 = vrot.slane %v8791_v21, 4  ;;  %v8802_v47 = vrot.slane %v8801_v14, 4  ;;  %v8842_v51 = vshll.u32 %v13607_v45, 16 }
 0x93c   : > { %v8830_v29 = vrot.slane %v8828_v62, 5  ;;  %v8838_v14 = vrot.slane %v8836_v58, 5 }
 0x93d   : > { %v8797_v25 = vsel %vm13904_vm2, %v8792_v10, %v8796_v11  ;;  %v8807_v22 = vsel %vm13904_vm2, %v8802_v47, %v8806_v5  ;;  %v8833_v11 = vshrl.u32 %v13604_v54, 16  ;;  %v20116_v5 = vld [vmem:[#allocation31_spill] sm:$0xff] }
 0x93e   : > { %v12356_v46 = vcombine.low %v8797_v25, %v8807_v22  ;;  %v8857_v10 = vshrl.u32 %v20116_v5, 16  ;;  %v8860_v47 = vshll.u32 %v20116_v5, 16  ;;  %v13608_v25 = vld [vmem:[#allocation3 + $0xb0] sm:$0x1] }
 0x93f   : > { %v10300_v36 = vpop.permute.xlu0 %10299  ;;  %v8835_v21 = vrot.slane %v8833_v11, 4 }
 0x940   : > { %v10597_v33 = vsel %vm6410_vm0, %v10556_v43, %v10300_v36  ;;  %v8816_v43 = vrot.slane %v8815_v61, 4  ;;  %v8826_v36 = vrot.slane %v8825_v48, 4  ;;  %v8844_v61 = vrot.slane %v8842_v51, 5 }
 0x941   : > { %10913 = vmatprep.mubr.bf16.mxu0 %v10597_v33  ;;  %v12292_v33 = vcombine.low %v13603_v9, %v13602_v60  ;;  %v8839_v22 = vor.u32 %v8838_v14, %v8835_v21  ;;  %v8859_v9 = vrot.slane %v8857_v10, 4 }
 0x942   : > { %10914 = vmatmul.mubr.bf16.gmra.mrb[112].mxu0 %v10469_v53  ;;  %v8821_v20 = vsel %vm13904_vm2, %v8816_v43, %v8820_v0  ;;  %v8831_v17 = vsel %vm13904_vm2, %v8826_v36, %v8830_v29  ;;  %v13606_v0 = vld [vmem:[#allocation3 + $0x90] sm:$0xf] }
 0x943   : > { %10921 = vmatprep.mubr.bf16.mxu0 %v10600_v19  ;;  %v12357_v59 = vcombine.low %v8821_v20, %v8831_v17  ;;  %v10524_v19 = vsel %vm3549_vm14, %v12356_v46, %v19109_v23  ;;  %v12293_v63 = vcombine.low %v13606_v0, %v13605_v40  ;;  %v20117_v43 = vld [vmem:[#allocation36_spill] sm:$0xff] }
 0x944   : > { %v9824_v34 = vpop.permute.xlu1 %9823  ;;  %v10560_v2 = vsel %vm1172_vm3, %v10524_v19, %v19181_v16  ;;  %v8866_v36 = vshll.u32 %v20117_v43, 16  ;;  %v20118_v19 = vld [vmem:[#allocation28_spill] sm:$0xff] }
 0x945   : > { %v19218_v57 = vpop.permute.xlu0 %10131  ;;  %v10396_v53 = vsel %vm3549_vm14, %v12292_v33, %v9824_v34  ;;  %v8852_v34 = vshll.u32 %v13608_v25, 16  ;;  %v8862_v33 = vrot.slane %v8860_v47, 5 }
 0x946   : > { %v10432_v41 = vsel %vm1172_vm3, %v10396_v53, %v19200_v38  ;;  %v8840_v53 = vrot.slane %v8839_v22, 4  ;;  %v19288_v22 = vld [vmem:[%s19644_s12] ss:$0 sm:$0xff] }
 0x947   : > { %v10475_v23 = vsel %vm6410_vm0, %v10432_v41, %v19105_v30  ;;  %v8846_v30 = vshrl.u32 %v13607_v45, 16  ;;  %v8863_v46 = vor.u32 %v8862_v33, %v8859_v9  ;;  %v20119_v33 = vld [vmem:[#allocation45_spill] sm:$0xff] }
 0x948   : > { %v9908_v3 = vpop.permute.xlu1 %9907 }
 0x949   : > { %v10130_v1 = vpop.permute.xlu0 %10129  ;;  %v8848_v48 = vrot.slane %v8846_v30, 4  ;;  %v8864_v11 = vrot.slane %v8863_v46, 4 }
 0x94a   : > { %10922 = vmatmul.mubr.bf16.gmra.mrb[116].mxu0 %v10472_v13  ;;  %v10527_v35 = vsel %vm3549_vm14, %v12357_v59, %v10130_v1 }
 0x94b   : > { %v10562_v39 = vsel %vm1172_vm3, %v10527_v35, %v19144_v24  ;;  %v10399_v24 = vsel %vm3549_vm14, %v12293_v63, %v19216_v28  ;;  %v8870_v28 = vshrl.u32 %v20117_v43, 16  ;;  %v8849_v29 = vor.u32 %v8848_v48, %v8844_v61 }
 0x94c   : > { %v10004_v13 = vpop.permute.xlu1 %10003  ;;  %v10434_v62 = vsel %vm1172_vm3, %v10399_v24, %v19179_v52  ;;  %v8868_v52 = vrot.slane %v8866_v36, 5  ;;  %v8876_v35 = vshll.u32 %v20118_v19, 16 }
 0x94d   : > { %v10478_v1 = vsel %vm6410_vm0, %v10434_v62, %v10002_v7  ;;  %v8872_v17 = vrot.slane %v8870_v28, 4  ;;  %v8850_v7 = vrot.slane %v8849_v29, 4 }
 0x94e   : > { %v8878_v0 = vrot.slane %v8876_v35, 5  ;;  %v8869_v30 = vsel %vm13904_vm2, %v8864_v11, %v8868_v52 }
 0x94f   : > { %v8873_v59 = vor.u32 %v8872_v17, %v8868_v52 }
 0x950   : > { %v10306_v15 = vpop.permute.xlu0 %10305 }
 0x951   : > { %v10606_v16 = vsel %vm6410_vm0, %v10562_v39, %v10306_v15  ;;  %v8854_v15 = vrot.slane %v8852_v34, 5  ;;  %v8874_v40 = vrot.slane %v8873_v59, 4 }
 0x952   : > { %v9830_v60 = vpop.permute.xlu1 %9829 }
 0x953   : > { %v8879_v24 = vsel %vm13904_vm2, %v8874_v40, %v8878_v0  ;;  %v20124_v40 = vld [vmem:[#allocation29_spill] sm:$0xff] }
 0x954   : > { %v12359_v62 = vcombine.low %v8869_v30, %v8879_v24 }
 0x955   : > { %v19240_v27 = vpop.f32.mrb[132].mxu1 }
 0x956   : > { %v10304_v6 = vpop.permute.xlu0 %10303  ;;  %v19243_v56 = vpop.f32.mrb[133].mxu1 }
 0x957   : > { %v10603_v31 = vsel %vm6410_vm0, %v10560_v2, %v10304_v6  ;;  %v19249_v12 = vpop.f32.mrb[134].mxu1  ;;  %v8855_v2 = vsel %vm13904_vm2, %v8850_v7, %v8854_v15  ;;  %v8845_v6 = vsel %vm13904_vm2, %v8840_v53, %v8844_v61  ;;  %v19294_v7 = vld [vmem:[%s19645_s13] ss:$0 sm:$0xff]  ;;  %v20120_v53 = vld [vmem:[#allocation43_spill] sm:$0xff]  ;;  %vm19449_vm2 = vmpackc.low %vm3549_vm14, %vm3549_vm14 }
 0x958   : > { %10929 = vmatprep.mubr.bf16.mxu0 %v10603_v31  ;;  %v19252_v38 = vpop.f32.mrb[135].mxu1  ;;  %v13609_v31 = vld [vmem:[#allocation3 + $0xa0] sm:$0xf]  ;;  %v12358_v63 = vcombine.low %v8845_v6, %v8855_v2 }
 0x959   : > { %10930 = vmatmul.mubr.bf16.gmra.mrb[120].mxu0 %v10475_v23  ;;  %v13610_v23 = vld [vmem:[#allocation3 + $0x9c] sm:$0xf] }
 0x95a   : > { %10937 = vmatprep.mubr.bf16.mxu0 %v10606_v16  ;;  %v12294_v39 = vcombine.low %v13610_v23, %v13609_v31  ;;  %v10530_v58 = vsel %vm3549_vm14, %v12358_v63, %v19218_v57  ;;  %v20121_v31 = vld [vmem:[#allocation25_spill] sm:$0xff] }
 0x95c   : > { %v10228_v4 = vpop.permute.xlu0 %10227 }
 0x95d   : > { %v9828_v41 = vpop.permute.xlu1 %9827  ;;  %v10564_v51 = vsel %vm1172_vm3, %v10530_v58, %v10228_v4 }
 0x95e   : > { %v10402_v54 = vsel %vm3549_vm14, %v12294_v39, %v9828_v41 }
 0x95f   : > { %v10436_v45 = vsel %vm1172_vm3, %v10402_v54, %v9908_v3  ;;  %v13611_v3 = vld [vmem:[#allocation3 + $0xa8] sm:$0xf]  ;;  %v20123_v54 = vld [vmem:[#allocation26_spill] sm:$0xff] }
 0x960   : > { %v10230_v20 = vpop.permute.xlu0 %10229  ;;  %v10481_v48 = vsel %vm6410_vm0, %v10436_v45, %v10004_v13 }
 0x961   : > { %10938 = vmatmul.mubr.bf16.gmra.mrb[124].mxu0 %v10478_v1  ;;  %v13612_v1 = vld [vmem:[#allocation3 + $0xac] sm:$0xf] }
 0x962   : > { %v9910_v14 = vpop.permute.xlu1 %9909  ;;  %v12295_v4 = vcombine.low %v13611_v3, %v13612_v1 }
 0x964   : > { %v10405_v10 = vsel %vm3549_vm14, %v12295_v4, %v9830_v60 }
 0x965   : > { %v10438_v43 = vsel %vm1172_vm3, %v10405_v10, %v9910_v14 }
 0x966   : > { %v10006_v5 = vpop.permute.xlu1 %10005 }
 0x967   : > { %v10484_v13 = vsel %vm6410_vm0, %v10438_v43, %v10006_v5 }
 0x96a   : > { %v10134_v16 = vpop.permute.xlu0 %10133 }
 0x96b   : > { %v10533_v57 = vsel %vm3549_vm14, %v12359_v62, %v10134_v16  ;;  %v9912_v9 = vpop.permute.xlu1 %9911  ;;  %v20122_v16 = vld [vmem:[#allocation21_spill] sm:$0xff] }
 0x96c   : > { %v10566_v8 = vsel %vm1172_vm3, %v10533_v57, %v10230_v20  ;;  %v12296_v11 = vcombine.low %v20123_v54, %v20122_v16 }
 0x972   : > { %v10308_v21 = vpop.permute.xlu0 %10307 }
 0x973   : > { %v10609_v61 = vsel %vm6410_vm0, %v10564_v51, %v10308_v21 }
 0x974   : > { %10945 = vmatprep.mubr.bf16.mxu0 %v10609_v61 }
 0x975   : > { %10946 = vmatmul.mubr.bf16.gmra.mrb[128].mxu0 %v10481_v48 }
 0x977   : > { %v9832_v35 = vpop.permute.xlu1 %9831 }
 0x978   : > { %v10408_v63 = vsel %vm3549_vm14, %v12296_v11, %v9832_v35 }
 0x979   : > { %v10440_v14 = vsel %vm1172_vm3, %v10408_v63, %v9912_v9 }
 0x97a   : > { %v12874_v28 = vpop.f32.mrb[76].mxu0 }
 0x97b   : > { %v12875_v29 = vpop.f32.mrb[77].mxu0  ;;  %v10008_v58 = vpop.permute.xlu1 %10007 }
 0x97c   : > { %v10310_v47 = vpop.permute.xlu0 %10309  ;;  %v12876_v25 = vadd.f32 %v12875_v29, %v12874_v28  ;;  %v12877_v34 = vpop.f32.mrb[78].mxu0  ;;  %v10487_v61 = vsel %vm6410_vm0, %v10440_v14, %v10008_v58 }
 0x97d   : > { %v10612_v36 = vsel %vm6410_vm0, %v10566_v8, %v10310_v47  ;;  %v12878_v60 = vpop.f32.mrb[79].mxu0  ;;  %v20126_v47 = vld [vmem:[#allocation47_spill] sm:$0xff] }
 0x97e   : > { %10953 = vmatprep.mubr.bf16.mxu0 %v10612_v36  ;;  %v11005_v20 = vadd.f32 %v12876_v25, %v20119_v33  ;;  %v12879_v52 = vadd.f32 %v12878_v60, %v12877_v34 }
 0x97f   : > { %10954 = vmatmul.mubr.bf16.gmra.mrb[132].mxu0 %v10484_v13 }
 0x980   : > { %v10136_v17 = vpop.permute.xlu0 %10135  ;;  %v11138_v15 = vmul.f32 %v19288_v22, %v11005_v20  ;;  %v11008_v46 = vadd.f32 %v12879_v52, %v20120_v53 }
 0x981   : > { %v10536_v45 = vsel %vm3549_vm14, %v19205_v50, %v10136_v17  ;;  %v20125_v50 = vld [vmem:[#allocation20_spill] sm:$0xff] }
 0x982   : > { %v11177_v59 = vadd.f32 %v19294_v7, %v11138_v15  ;;  %v11139_v19 = vmul.f32 %v19288_v22, %v11008_v46  ;;  %v20127_v15 = vld [vmem:[#allocation19_spill] sm:$0xff] }
 0x984   : > { %v11209_v41 = vmax.f32 %v11177_v59, 0.0  ;;  %v11178_v2 = vadd.f32 %v19294_v7, %v11139_v19  ;;  %v10232_v6 = vpop.permute.xlu0 %10231  ;;  %v20128_v19 = vld [vmem:[#allocation35_spill] sm:$0xff] }
 0x985   : > { %v10568_v30 = vsel %vm1172_vm3, %v10536_v45, %v10232_v6 }
 0x986   : > { %v19302_v23 = vadd.f32 %v20121_v31, %v11209_v41  ;;  %v11210_v39 = vmax.f32 %v11178_v2, 0.0 }
 0x988   : > { %v19307_v0 = vadd.f32 %v20124_v40, %v11210_v39 }
 0x98a   : > { %v13159_v51 = vpack.c.bf16 %v19307_v0, %v19302_v23 }
 0x98e   : > { %v10312_v24 = vpop.permute.xlu0 %10311 }
 0x98f   : > { %v10615_v21 = vsel %vm6410_vm0, %v10568_v30, %v10312_v24 }
 0x990   : > { %10961 = vmatprep.mubr.bf16.mxu0 %v10615_v21 }
 0x991   : > { %10962 = vmatmul.mubr.bf16.gmra.mrb[136].mxu0 %v10487_v61 }
 0x9b8   : > { %v12880_v48 = vpop.f32.mrb[80].mxu0 }
 0x9b9   : > { %v12881_v62 = vpop.f32.mrb[81].mxu0 }
 0x9ba   : > { %v12882_v57 = vadd.f32 %v12881_v62, %v12880_v48  ;;  %v12883_v3 = vpop.f32.mrb[82].mxu0 }
 0x9bb   : > { %v12884_v1 = vpop.f32.mrb[83].mxu0 }
 0x9bc   : > { %v11013_v4 = vadd.f32 %v20125_v50, %v12882_v57  ;;  %v12885_v5 = vadd.f32 %v12884_v1, %v12883_v3  ;;  %v20129_v57 = vld [vmem:[#allocation44_spill] sm:$0xff] }
 0x9be   : > { %v11140_v10 = vmul.f32 %v19288_v22, %v11013_v4  ;;  %v11016_v8 = vadd.f32 %v20126_v47, %v12885_v5  ;;  %v20130_v4 = vld [vmem:[#allocation13_spill] sm:$0xff] }
 0x9c0   : > { %v11179_v43 = vadd.f32 %v19294_v7, %v11140_v10  ;;  %v11141_v36 = vmul.f32 %v19288_v22, %v11016_v8 }
 0x9c2   : > { %v11211_v13 = vmax.f32 %v11179_v43, 0.0  ;;  %v11180_v28 = vadd.f32 %v19294_v7, %v11141_v36 }
 0x9c4   : > { %v19325_v29 = vadd.f32 %v20121_v31, %v11211_v13  ;;  %v11212_v25 = vmax.f32 %v11180_v28, 0.0 }
 0x9c6   : > { %v19328_v34 = vadd.f32 %v20124_v40, %v11212_v25 }
 0x9c8   : > { %v12886_v60 = vpop.f32.mrb[84].mxu0  ;;  %v13165_v9 = vpack.c.bf16 %v19328_v34, %v19325_v29 }
 0x9c9   : > { %v12887_v33 = vpop.f32.mrb[85].mxu0 }
 0x9ca   : > { %v12888_v20 = vadd.f32 %v12887_v33, %v12886_v60  ;;  %v12889_v52 = vpop.f32.mrb[86].mxu0 }
 0x9cb   : > { %v12890_v17 = vpop.f32.mrb[87].mxu0 }
 0x9cc   : > { %v11021_v53 = vadd.f32 %v12888_v20, %v20127_v15  ;;  %v12891_v46 = vadd.f32 %v12890_v17, %v12889_v52  ;;  %v20131_v15 = vld [vmem:[#allocation17_spill] sm:$0xff] }
 0x9ce   : > { %v11142_v59 = vmul.f32 %v19288_v22, %v11021_v53  ;;  %v11024_v35 = vadd.f32 %v12891_v46, %v20128_v19  ;;  %v20132_v19 = vld [vmem:[#allocation51_spill] sm:$0xff] }
 0x9d0   : > { %v11181_v41 = vadd.f32 %v19294_v7, %v11142_v59  ;;  %v11143_v2 = vmul.f32 %v19288_v22, %v11024_v35 }
 0x9d2   : > { %v11213_v6 = vmax.f32 %v11181_v41, 0.0  ;;  %v11182_v39 = vadd.f32 %v19294_v7, %v11143_v2  ;;  %v19338_v16 = vpop.f32.mrb[136].mxu1 }
 0x9d3   : > { %v19343_v63 = vpop.f32.mrb[137].mxu1 }
 0x9d4   : > { %v19341_v54 = vadd.f32 %v20121_v31, %v11213_v6  ;;  %v11214_v11 = vmax.f32 %v11182_v39, 0.0  ;;  %v19345_v58 = vpop.f32.mrb[138].mxu1 }
 0x9d5   : > { %v19350_v30 = vpop.f32.mrb[139].mxu1 }
 0x9d6   : > { %v19348_v45 = vadd.f32 %v20124_v40, %v11214_v11 }
 0x9d8   : > { %v13171_v24 = vpack.c.bf16 %v19348_v45, %v19341_v54 }
 0x9db   : > { %v12892_v21 = vpop.f32.mrb[88].mxu0 }
 0x9dc   : > { %v12893_v14 = vpop.f32.mrb[89].mxu0 }
 0x9dd   : > { %v12894_v61 = vadd.f32 %v12893_v14, %v12892_v21  ;;  %v12895_v48 = vpop.f32.mrb[90].mxu0 }
 0x9de   : > { %v12896_v62 = vpop.f32.mrb[91].mxu0 }
 0x9df   : > { %v11029_v3 = vadd.f32 %v20129_v57, %v12894_v61  ;;  %v12897_v1 = vadd.f32 %v12896_v62, %v12895_v48  ;;  %v20133_v61 = vld [vmem:[#allocation18_spill] sm:$0xff] }
 0x9e0   : > { %v20134_v57 = vld [vmem:[#allocation22_spill] sm:$0xff] }
 0x9e1   : > { %v11144_v50 = vmul.f32 %v19288_v22, %v11029_v3  ;;  %v11032_v5 = vadd.f32 %v20130_v4, %v12897_v1 }
 0x9e3   : > { %v11183_v10 = vadd.f32 %v19294_v7, %v11144_v50  ;;  %v11145_v47 = vmul.f32 %v19288_v22, %v11032_v5  ;;  %v20135_v50 = vld [vmem:[#allocation32_spill] sm:$0xff] }
 0x9e5   : > { %v11215_v8 = vmax.f32 %v11183_v10, 0.0  ;;  %v11184_v43 = vadd.f32 %v19294_v7, %v11145_v47  ;;  %v20136_v10 = vld [vmem:[#allocation49_spill] sm:$0xff] }
 0x9e7   : > { %v19361_v36 = vadd.f32 %v20121_v31, %v11215_v8  ;;  %v11216_v13 = vmax.f32 %v11184_v43, 0.0  ;;  %v19386_v8 = vld [vmem:[%s19648_s16] sm:$0xff] }
 0x9e8   : > { %v12898_v28 = vpop.f32.mrb[92].mxu0  ;;  %13020 = vmatprep.mubr.msk.f32.mxu0 %vm3549_vm14, %v19386_v8 }
 0x9e9   : > { %v19364_v25 = vadd.f32 %v20124_v40, %v11216_v13  ;;  %v12899_v60 = vpop.f32.mrb[93].mxu0 }
 0x9ea   : > { %v12900_v33 = vadd.f32 %v12899_v60, %v12898_v28  ;;  %v12901_v20 = vpop.f32.mrb[94].mxu0 }
 0x9eb   : > { %v13177_v52 = vpack.c.bf16 %v19364_v25, %v19361_v36  ;;  %v12902_v17 = vpop.f32.mrb[95].mxu0 }
 0x9ec   : > { %v11037_v53 = vadd.f32 %v12900_v33, %v20131_v15  ;;  %v12903_v46 = vadd.f32 %v12902_v17, %v12901_v20 }
 0x9ee   : > { %v11146_v59 = vmul.f32 %v19288_v22, %v11037_v53  ;;  %v11040_v31 = vadd.f32 %v12903_v46, %v20132_v19 }
 0x9f0   : > { %v11185_v35 = vadd.f32 %v19294_v7, %v11146_v59  ;;  %v11147_v41 = vmul.f32 %v19288_v22, %v11040_v31  ;;  %v12904_v40 = vpop.f32.mrb[96].mxu0 }
 0x9f1   : > { %v12905_v2 = vpop.f32.mrb[97].mxu0 }
 0x9f2   : > { %v11217_v6 = vmax.f32 %v11185_v35, 0.0  ;;  %v11186_v39 = vadd.f32 %v19294_v7, %v11147_v41  ;;  %v12906_v11 = vadd.f32 %v12905_v2, %v12904_v40  ;;  %v12907_v21 = vpop.f32.mrb[98].mxu0 }
 0x9f3   : > { %v12908_v14 = vpop.f32.mrb[99].mxu0 }
 0x9f4   : > { %v19375_v48 = vadd.f32 %v20133_v61, %v11217_v6  ;;  %v11218_v62 = vmax.f32 %v11186_v39, 0.0  ;;  %v11045_v3 = vadd.f32 %v20134_v57, %v12906_v11  ;;  %v12909_v1 = vadd.f32 %v12908_v14, %v12907_v21 }
 0x9f6   : > { %v19379_v4 = vadd.f32 %v20135_v50, %v11218_v62  ;;  %v11148_v5 = vmul.f32 %v19288_v22, %v11045_v3  ;;  %v11048_v47 = vadd.f32 %v20136_v10, %v12909_v1 }
 0x9f8   : > { %v13183_v43 = vpack.c.bf16 %v19379_v4, %v19375_v48  ;;  %v11187_v13 = vadd.f32 %v19294_v7, %v11148_v5  ;;  %v11149_v28 = vmul.f32 %v19288_v22, %v11048_v47  ;;  %v12910_v60 = vpop.f32.mrb[100].mxu0 }
 0x9f9   : > { %v12911_v33 = vpop.f32.mrb[101].mxu0 }
 0x9fa   : > { %v11219_v20 = vmax.f32 %v11187_v13, 0.0  ;;  %v11188_v17 = vadd.f32 %v19294_v7, %v11149_v28  ;;  %v12912_v15 = vadd.f32 %v12911_v33, %v12910_v60  ;;  %v12913_v53 = vpop.f32.mrb[102].mxu0 }
 0x9fb   : > { %v12914_v46 = vpop.f32.mrb[103].mxu0 }
 0x9fc   : > { %v19396_v59 = vadd.f32 %v20133_v61, %v11219_v20  ;;  %v11220_v19 = vmax.f32 %v11188_v17, 0.0  ;;  %v11053_v31 = vadd.f32 %v12912_v15, %v19008_v26  ;;  %v12915_v35 = vadd.f32 %v12914_v46, %v12913_v53 }
 0x9fe   : > { %v19400_v41 = vadd.f32 %v20135_v50, %v11220_v19  ;;  %v11150_v40 = vmul.f32 %v19288_v22, %v11053_v31  ;;  %v11056_v2 = vadd.f32 %v12915_v35, %v19022_v42 }
 0xa00   : > { %v13189_v6 = vpack.c.bf16 %v19400_v41, %v19396_v59  ;;  %v11189_v39 = vadd.f32 %v19294_v7, %v11150_v40  ;;  %v11151_v11 = vmul.f32 %v19288_v22, %v11056_v2  ;;  %v12916_v21 = vpop.f32.mrb[104].mxu0 }
 0xa01   : > { %v12917_v14 = vpop.f32.mrb[105].mxu0 }
 0xa02   : > { %v11221_v62 = vmax.f32 %v11189_v39, 0.0  ;;  %v11190_v26 = vadd.f32 %v19294_v7, %v11151_v11  ;;  %v12918_v57 = vadd.f32 %v12917_v14, %v12916_v21  ;;  %v12919_v3 = vpop.f32.mrb[106].mxu0 }
 0xa03   : > { %v12920_v1 = vpop.f32.mrb[107].mxu0 }
 0xa04   : > { %v19410_v5 = vadd.f32 %v20133_v61, %v11221_v62  ;;  %v11222_v10 = vmax.f32 %v11190_v26, 0.0  ;;  %v11061_v42 = vadd.f32 %v18997_v37, %v12918_v57  ;;  %v12921_v47 = vadd.f32 %v12920_v1, %v12919_v3 }
 0xa06   : > { %v19414_v13 = vadd.f32 %v20135_v50, %v11222_v10  ;;  %v11152_v28 = vmul.f32 %v19288_v22, %v11061_v42  ;;  %v11064_v60 = vadd.f32 %v19016_v44, %v12921_v47 }
 0xa07   : > { %v19437_v1 = vpop.f32.mrb[140].mxu1 }
 0xa08   : > { %v13195_v33 = vpack.c.bf16 %v19414_v13, %v19410_v5  ;;  %v11191_v20 = vadd.f32 %v19294_v7, %v11152_v28  ;;  %v11153_v17 = vmul.f32 %v19288_v22, %v11064_v60  ;;  %v12922_v15 = vpop.f32.mrb[108].mxu0  ;;  %v19440_v42 = vpop.f32.mrb[141].mxu1 }
 0xa09   : > { %v12923_v53 = vpop.f32.mrb[109].mxu0  ;;  %v19442_v28 = vpop.f32.mrb[142].mxu1 }
 0xa0a   : > { %v11223_v46 = vmax.f32 %v11191_v20, 0.0  ;;  %v11192_v37 = vadd.f32 %v19294_v7, %v11153_v17  ;;  %v12924_v19 = vadd.f32 %v12923_v53, %v12922_v15  ;;  %v12925_v31 = vpop.f32.mrb[110].mxu0  ;;  %v19445_v17 = vpop.f32.mrb[143].mxu1 }
 0xa0b   : > { %v12926_v35 = vpop.f32.mrb[111].mxu0 }
 0xa0c   : > { %v19424_v40 = vadd.f32 %v20133_v61, %v11223_v46  ;;  %v11224_v2 = vmax.f32 %v11192_v37, 0.0  ;;  %v11069_v44 = vadd.f32 %v12924_v19, %v19160_v55  ;;  %v12927_v39 = vadd.f32 %v12926_v35, %v12925_v31  ;;  %v20137_v55 = vld [vmem:[#allocation40_spill] sm:$0xff] }
 0xa0e   : > { %v19428_v11 = vadd.f32 %v20135_v50, %v11224_v2  ;;  %v11154_v21 = vmul.f32 %v19288_v22, %v11069_v44  ;;  %v11072_v14 = vadd.f32 %v12927_v39, %v19168_v49  ;;  %v20138_v49 = vld [vmem:[#allocation48_spill] sm:$0xff] }
 0xa10   : > { %v13201_v62 = vpack.c.bf16 %v19428_v11, %v19424_v40  ;;  %v11193_v26 = vadd.f32 %v19294_v7, %v11154_v21  ;;  %v11155_v57 = vmul.f32 %v19288_v22, %v11072_v14  ;;  %v11292_v40 = vld [vmem:[%s19648_s16 + $0x18] sm:$0xff] }
 0xa12   : > { %v11225_v61 = vmax.f32 %v11193_v26, 0.0  ;;  %v11194_v3 = vadd.f32 %v19294_v7, %v11155_v57 }
 0xa14   : > { %v11273_v10 = vadd.f32 %v20137_v55, %v11225_v61  ;;  %v11226_v50 = vmax.f32 %v11194_v3, 0.0 }
 0xa15   : > { %v12928_v47 = vpop.f32.mrb[112].mxu0 }
 0xa16   : > { %v11274_v60 = vadd.f32 %v20138_v49, %v11226_v50  ;;  %v12929_v20 = vpop.f32.mrb[113].mxu0 }
 0xa17   : > { %v12930_v15 = vadd.f32 %v12929_v20, %v12928_v47  ;;  %v12931_v53 = vpop.f32.mrb[114].mxu0 }
 0xa18   : > { %v13156_v37 = vpack.c.bf16 %v11274_v60, %v11273_v10  ;;  %v12932_v19 = vpop.f32.mrb[115].mxu0 }
 0xa19   : > { %v11077_v31 = vadd.f32 %v19156_v32, %v12930_v15  ;;  %v12933_v35 = vadd.f32 %v12932_v19, %v12931_v53 }
 0xa1a   : > { %13158 = vmatprep.subr.msk.bf16.mxu0 %vm19449_vm2, %v13156_v37 }
 0xa1b   : > { %v11156_v2 = vmul.f32 %v19288_v22, %v11077_v31  ;;  %v11080_v44 = vadd.f32 %v19162_v18, %v12933_v35  ;;  %13161 = vmatpush3.bf16.xpose.msk.msra.mxu0 %vm19449_vm2, %v13159_v51 }
 0xa1d   : > { %v11195_v39 = vadd.f32 %v19294_v7, %v11156_v2  ;;  %v11157_v21 = vmul.f32 %v19288_v22, %v11080_v44  ;;  %v12934_v14 = vpop.f32.mrb[116].mxu0 }
 0xa1e   : > { %v12935_v32 = vpop.f32.mrb[117].mxu0 }
 0xa1f   : > { %v11227_v26 = vmax.f32 %v11195_v39, 0.0  ;;  %v11196_v57 = vadd.f32 %v19294_v7, %v11157_v21  ;;  %v12936_v61 = vadd.f32 %v12935_v32, %v12934_v14  ;;  %v12937_v3 = vpop.f32.mrb[118].mxu0 }
 0xa20   : > { %v12938_v10 = vpop.f32.mrb[119].mxu0 }
 0xa21   : > { %v11275_v18 = vadd.f32 %v20137_v55, %v11227_v26  ;;  %v11228_v50 = vmax.f32 %v11196_v57, 0.0  ;;  %v11085_v23 = vadd.f32 %v12936_v61, %v19243_v56  ;;  %v12939_v0 = vadd.f32 %v12938_v10, %v12937_v3 }
 0xa23   : > { %v11276_v51 = vadd.f32 %v20138_v49, %v11228_v50  ;;  %v11158_v47 = vmul.f32 %v19288_v22, %v11085_v23  ;;  %v11088_v60 = vadd.f32 %v12939_v0, %v19252_v38 }
 0xa25   : > { %v11197_v20 = vadd.f32 %v19294_v7, %v11158_v47  ;;  %v11159_v15 = vmul.f32 %v19288_v22, %v11088_v60  ;;  %v13162_v53 = vpack.c.bf16 %v11276_v51, %v11275_v18 }
 0xa27   : > { %v11229_v37 = vmax.f32 %v11197_v20, 0.0  ;;  %v11198_v19 = vadd.f32 %v19294_v7, %v11159_v15  ;;  %13164 = vmatprep.subr.msk.bf16.mxu0 %vm19449_vm2, %v13162_v53 }
 0xa28   : > { %13167 = vmatpush3.bf16.xpose.msk.msra.mxu0 %vm19449_vm2, %v13165_v9 }
 0xa29   : > { %v11277_v56 = vadd.f32 %v20137_v55, %v11229_v37  ;;  %v11230_v38 = vmax.f32 %v11198_v19, 0.0 }
 0xa2b   : > { %v11278_v31 = vadd.f32 %v20138_v49, %v11230_v38 }
 0xa2c   : > { %v12940_v2 = vpop.f32.mrb[120].mxu0 }
 0xa2d   : > { %v13168_v35 = vpack.c.bf16 %v11278_v31, %v11277_v56  ;;  %v12941_v44 = vpop.f32.mrb[121].mxu0 }
 0xa2e   : > { %v12942_v39 = vadd.f32 %v12941_v44, %v12940_v2  ;;  %v12943_v21 = vpop.f32.mrb[122].mxu0 }
 0xa2f   : > { %13170 = vmatprep.subr.msk.bf16.mxu0 %vm19449_vm2, %v13168_v35  ;;  %v12944_v29 = vpop.f32.mrb[123].mxu0 }
 0xa30   : > { %13173 = vmatpush3.bf16.xpose.msk.msra.mxu0 %vm19449_vm2, %v13171_v24  ;;  %v11093_v34 = vadd.f32 %v19240_v27, %v12942_v39  ;;  %v12945_v9 = vadd.f32 %v12944_v29, %v12943_v21 }
 0xa32   : > { %v11160_v14 = vmul.f32 %v19288_v22, %v11093_v34  ;;  %v11096_v32 = vadd.f32 %v19249_v12, %v12945_v9 }
 0xa34   : > { %v11199_v26 = vadd.f32 %v19294_v7, %v11160_v14  ;;  %v11161_v57 = vmul.f32 %v19288_v22, %v11096_v32  ;;  %v12946_v61 = vpop.f32.mrb[124].mxu0 }
 0xa35   : > { %v12947_v3 = vpop.f32.mrb[125].mxu0 }
 0xa36   : > { %v11231_v10 = vmax.f32 %v11199_v26, 0.0  ;;  %v11200_v54 = vadd.f32 %v19294_v7, %v11161_v57  ;;  %v12948_v45 = vadd.f32 %v12947_v3, %v12946_v61  ;;  %v12949_v18 = vpop.f32.mrb[126].mxu0 }
 0xa37   : > { %v12950_v24 = vpop.f32.mrb[127].mxu0 }
 0xa38   : > { %v11279_v50 = vadd.f32 %v20137_v55, %v11231_v10  ;;  %v11232_v27 = vmax.f32 %v11200_v54, 0.0  ;;  %v11101_v23 = vadd.f32 %v12948_v45, %v19343_v63  ;;  %v12951_v0 = vadd.f32 %v12950_v24, %v12949_v18  ;;  %v20141_v63 = vld [vmem:[#allocation39_spill] sm:$0xff] }
 0xa3a   : > { %v11280_v12 = vadd.f32 %v20138_v49, %v11232_v27  ;;  %v11162_v51 = vmul.f32 %v19288_v22, %v11101_v23  ;;  %v11104_v47 = vadd.f32 %v12951_v0, %v19350_v30  ;;  %v20142_v49 = vld [vmem:[#allocation33_spill] sm:$0xff] }
 0xa3c   : > { %v11201_v60 = vadd.f32 %v19294_v7, %v11162_v51  ;;  %v11163_v20 = vmul.f32 %v19288_v22, %v11104_v47  ;;  %v13174_v15 = vpack.c.bf16 %v11280_v12, %v11279_v50 }
 0xa3e   : > { %v11233_v53 = vmax.f32 %v11201_v60, 0.0  ;;  %v11202_v37 = vadd.f32 %v19294_v7, %v11163_v20  ;;  %13176 = vmatprep.subr.msk.bf16.mxu0 %vm19449_vm2, %v13174_v15 }
 0xa3f   : > { %13179 = vmatpush3.bf16.xpose.msk.msra.mxu0 %vm19449_vm2, %v13177_v52 }
 0xa40   : > { %v11281_v55 = vadd.f32 %v20141_v63, %v11233_v53  ;;  %v11234_v30 = vmax.f32 %v11202_v37, 0.0 }
 0xa42   : > { %v11282_v19 = vadd.f32 %v20142_v49, %v11234_v30 }
 0xa44   : > { %v13180_v56 = vpack.c.bf16 %v11282_v19, %v11281_v55 }
 0xa46   : > { %13182 = vmatprep.subr.msk.bf16.mxu0 %vm19449_vm2, %v13180_v56 }
 0xa47   : > { %13185 = vmatpush3.bf16.xpose.msk.msra.mxu0 %vm19449_vm2, %v13183_v43 }
 0xa48   : > { %v12952_v38 = vpop.f32.mrb[128].mxu0 }
 0xa49   : > { %v12953_v36 = vpop.f32.mrb[129].mxu0 }
 0xa4a   : > { %v12954_v25 = vadd.f32 %v12953_v36, %v12952_v38  ;;  %v12955_v31 = vpop.f32.mrb[130].mxu0 }
 0xa4b   : > { %v12956_v52 = vpop.f32.mrb[131].mxu0 }
 0xa4c   : > { %v11109_v35 = vadd.f32 %v19338_v16, %v12954_v25  ;;  %v12957_v2 = vadd.f32 %v12956_v52, %v12955_v31 }
 0xa4e   : > { %v11164_v44 = vmul.f32 %v19288_v22, %v11109_v35  ;;  %v11112_v39 = vadd.f32 %v19345_v58, %v12957_v2 }
 0xa50   : > { %v11203_v21 = vadd.f32 %v19294_v7, %v11164_v44  ;;  %v11165_v29 = vmul.f32 %v19288_v22, %v11112_v39 }
 0xa52   : > { %v12958_v34 = vpop.f32.mrb[132].mxu0  ;;  %v11235_v4 = vmax.f32 %v11203_v21, 0.0  ;;  %v11204_v43 = vadd.f32 %v19294_v7, %v11165_v29 }
 0xa53   : > { %v12959_v48 = vpop.f32.mrb[133].mxu0 }
 0xa54   : > { %v12960_v9 = vadd.f32 %v12959_v48, %v12958_v34  ;;  %v12961_v14 = vpop.f32.mrb[134].mxu0  ;;  %v11283_v26 = vadd.f32 %v20141_v63, %v11235_v4  ;;  %v11236_v16 = vmax.f32 %v11204_v43, 0.0 }
 0xa55   : > { %v12962_v32 = vpop.f32.mrb[135].mxu0 }
 0xa56   : > { %v12963_v57 = vadd.f32 %v12962_v32, %v12961_v14  ;;  %v11117_v61 = vadd.f32 %v12960_v9, %v19440_v42  ;;  %v11284_v58 = vadd.f32 %v20142_v49, %v11236_v16 }
 0xa58   : > { %v11166_v3 = vmul.f32 %v19288_v22, %v11117_v61  ;;  %v11120_v10 = vadd.f32 %v12963_v57, %v19445_v17  ;;  %v13186_v18 = vpack.c.bf16 %v11284_v58, %v11283_v26 }
 0xa5a   : > { %v11205_v54 = vadd.f32 %v19294_v7, %v11166_v3  ;;  %v11167_v45 = vmul.f32 %v19288_v22, %v11120_v10  ;;  %13188 = vmatprep.subr.msk.bf16.mxu0 %vm19449_vm2, %v13186_v18 }
 0xa5b   : > { %13191 = vmatpush3.bf16.xpose.msk.msra.mxu0 %vm19449_vm2, %v13189_v6 }
 0xa5c   : > { %v11237_v24 = vmax.f32 %v11205_v54, 0.0  ;;  %v11206_v50 = vadd.f32 %v19294_v7, %v11167_v45 }
 0xa5e   : > { %v11285_v42 = vadd.f32 %v20141_v63, %v11237_v24  ;;  %v11238_v17 = vmax.f32 %v11206_v50, 0.0 }
 0xa60   : > { %v11286_v27 = vadd.f32 %v20142_v49, %v11238_v17 }
 0xa62   : > { %v13192_v23 = vpack.c.bf16 %v11286_v27, %v11285_v42 }
 0xa64   : > { %13194 = vmatprep.subr.msk.bf16.mxu0 %vm19449_vm2, %v13192_v23  ;;  %v12964_v0 = vpop.f32.mrb[136].mxu0 }
 0xa65   : > { %13197 = vmatpush3.bf16.xpose.msk.msra.mxu0 %vm19449_vm2, %v13195_v33  ;;  %v12965_v59 = vpop.f32.mrb[137].mxu0 }
 0xa66   : > { %v12966_v41 = vadd.f32 %v12965_v59, %v12964_v0  ;;  %v12967_v12 = vpop.f32.mrb[138].mxu0 }
 0xa67   : > { %v12968_v6 = vpop.f32.mrb[139].mxu0 }
 0xa68   : > { %v11125_v51 = vadd.f32 %v19437_v1, %v12966_v41  ;;  %v12969_v47 = vadd.f32 %v12968_v6, %v12967_v12 }
 0xa6a   : > { %v11168_v60 = vmul.f32 %v19288_v22, %v11125_v51  ;;  %v11128_v20 = vadd.f32 %v19442_v28, %v12969_v47 }
 0xa6c   : > { %v11207_v15 = vadd.f32 %v19294_v7, %v11168_v60  ;;  %v11169_v53 = vmul.f32 %v19288_v22, %v11128_v20  ;;  %v11290_v22 = vld [vmem:[%s19648_s16 + $0x8] sm:$0xff] }
 0xa6e   : > { %v11239_v37 = vmax.f32 %v11207_v15, 0.0  ;;  %v11208_v5 = vadd.f32 %v19294_v7, %v11169_v53  ;;  %v11291_v7 = vld [vmem:[%s19648_s16 + $0x10] sm:$0xff] }
 0xa70   : > { %v11287_v13 = vadd.f32 %v20141_v63, %v11239_v37  ;;  %v11240_v33 = vmax.f32 %v11208_v5, 0.0 }
 0xa72   : > { %v11288_v55 = vadd.f32 %v20142_v49, %v11240_v33 }
 0xa74   : > { %v13198_v30 = vpack.c.bf16 %v11288_v55, %v11287_v13 }
 0xa76   : > { %13200 = vmatprep.subr.msk.bf16.mxu0 %vm19449_vm2, %v13198_v30 }
 0xa77   : > { %13203 = vmatpush3.bf16.xpose.msk.msra.mxu0 %vm19449_vm2, %v13201_v62 }
 0xa7e   : > { %13021 = vmatmul.mubr.msk.f32.vlgmr.msra.gmra.mrb[140].mxu0 %vm3549_vm14, %v19386_v8 }
 0xa7f   : > { %13022 = vmatprep.mubr.msk.f32.mxu0 %vm3549_vm14, %v11290_v22 }
 0xa82   : > { %13023 = vmatmul.mubr.msk.f32.gmra.mrb[142].mxu0 %vm3549_vm14, %v11290_v22 }
 0xa83   : > { %13024 = vmatprep.mubr.msk.f32.mxu0 %vm3549_vm14, %v11291_v7 }
 0xa86   : > { %13025 = vmatmul.mubr.msk.f32.gmra.mrb[144].mxu0 %vm3549_vm14, %v11291_v7 }
 0xa87   : > { %13026 = vmatprep.mubr.msk.f32.mxu0 %vm3549_vm14, %v11292_v40 }
 0xa8a   : > { %13027 = vmatmul.mubr.msk.f32.gmra.mrb[146].mxu0 %vm3549_vm14, %v11292_v40 }
 0xb51   : > { %v11467_v8 = vpop.f32.mrb[140].mxu0 }
 0xb52   : > { %11490 = vst [vmem:[%s556_s29] sm:$0xff] %v11467_v8  ;;  %v11469_v11 = vpop.f32.mrb[141].mxu0 }
 0xb53   : > { %11491 = vst [vmem:[%s556_s29 + $0x8] sm:$0xff] %v11469_v11 }
 0xb55   : > { %v11473_v62 = vpop.f32.mrb[142].mxu0 }
 0xb56   : > { %11492 = vst [vmem:[%s556_s29 + $0x10] sm:$0xff] %v11473_v62  ;;  %v11475_v1 = vpop.f32.mrb[143].mxu0 }
 0xb57   : > { %11493 = vst [vmem:[%s556_s29 + $0x18] sm:$0xff] %v11475_v1 }
 0xb59   : > { %v11479_v28 = vpop.f32.mrb[144].mxu0 }
 0xb5a   : > { %11494 = vst [vmem:[%s556_s29 + $0x20] sm:$0xff] %v11479_v28  ;;  %v11481_v46 = vpop.f32.mrb[145].mxu0 }
 0xb5b   : > { %11495 = vst [vmem:[%s556_s29 + $0x28] sm:$0xff] %v11481_v46 }
 0xb5d   : > { %v11485_v63 = vpop.f32.mrb[146].mxu0 }
 0xb5e   : > { %11496 = vst [vmem:[%s556_s29 + $0x30] sm:$0xff] %v11485_v63  ;;  %v11487_v49 = vpop.f32.mrb[147].mxu0 }
 0xb5f   : > { %11497 = vst [vmem:[%s556_s29 + $0x38] sm:$0xff] %v11487_v49 }
 0xb60   : > { %13626 = shalt.err (!%p13623_p3)
}
 0xb61   : > { %s13627_s27 = scalar_lea.hbm %s19589_s0, 1024  ;;  %s13631_s30 = scalar_lea.hbm %s19649_s17, 2048 }
 0xb62   : > { %p13628_p4 = scmp.ne.s32.totalorder %s19589_s0, %s13627_s27  ;;  %p13632_p9 = scmp.lt.u32.totalorder %s19589_s0, %s19649_s17 }
 0xb63   : > { %p13633_p10 = scmp.lt.u32.totalorder %s13631_s30, %s13627_s27  ;;  %p13635_p12 = scmp.lt.u32.totalorder %s13627_s27, %s19589_s0 }
 0xb64   : > { %p13629_p7 = pnand %p13628_p4, %p13816_p5 }
 0xb65   : > { %p13634_p11 = por %p13633_p10, %p13632_p9 }
 0xb66   : > { %p13630_p8 = pneg %p13629_p7 }
 0xb67   : > { %p13636_p13 = por %p13635_p12, %p13634_p11 }
 0xb69   : > { %p13637_p0 = pnand %p13636_p13, %p13630_p8 }
 0xb6b   : > { %13640 = shalt.err (!%p13637_p0)
}
 0xb6c   : > { %s13686_s24 = smov 256   ;;  %s13687_s28 = smov 16  }
 0xb6d   : > { %13206 = dma.vmem_to_hbm [thread:$0]  (%p13816_p5), %s19584_s23, 1024, %s19589_s0, %s19591_s26, %s13686_s24, %s13686_s24, %s13687_s28  }
 0xb6e PF: > { %s20143_s20 = sld [smem:[#allocation9_spill]]  ;;  %s20144_s18 = sld [smem:[#allocation7_spill]] }
 0xb74   : > { %p13212_p1 = scmp.ge.s32.totalorder %s20143_s20, 2  ;;  %s11527_s29 = sand.u32 1, %s20144_s18  }
 0xb75   : > { %s11528_s27 = scalar_lea.sflag [#allocation5], %s11527_s29 }
 0xb76   : > { %p13209_p2 = pnand %p13212_p1, %p13820_p6 }
 0xb78   : > { %13658 = dma.done.wait (!%p13209_p2), %s11528_s27, 1024  }
 0xb79   : > { %13660 = vsyncadd (!%p13209_p2), %s11528_s27, 4294966272  ;;  %s20146_s27 = sld [smem:[#allocation10_spill]]  ;;  %s20147_s30 = sld [smem:[#allocation8_spill]] }
 0xb7a   : > { %s20148_s26 = sld [smem:[#allocation11_spill]]  ;;  %s20149_s24 = smov %s13667_s25 }
 0xb7f   : > { %p27_p3 = scmp.ge.s32.totalorder %s20146_s27, 4   ;;  %s20150_s25 = smov %s20147_s30 }
 0xb81   :  { %29 = sbr.rel (!%p27_p3) target bundleno = 6 (0x6), region = 139 }
 0xb88   :  { %11533 = vsyncpa [#allocation5], 1 }
 0xb89   :  { %11535 = vsyncpa [#allocation5 + $0x1], 1 }

</bundles_post_ra>
